<compile_context>
chip_gen: v6e
topology: v6e:2x2x1
jax: 0.10.0
libtpu: 0.0.40
codegen_flags: <defaults>
</compile_context>

<pallas_src>
import functools

import jax
import jax.numpy as jnp
from jax.experimental import pallas as pl
from jax.experimental.pallas import tpu as pltpu

EPS = 1e-5
VMEM_LIMIT = 48 * 1024 * 1024  # leave headroom on v7x's 64 MiB physical VMEM


def _round_up(x, m):
    return (x + m - 1) // m * m


# --------------------------- Pallas kernels ---------------------------------

def _mm_bn_acc_kernel(x_ref, w_ref, s_ref, b_ref, o_ref, acc_ref, *, relu):
    # x: [tm, tk] bf16, w: [tk, tn] bf16, s/b: [1, tn] f32 (folded BN),
    # o: [tm, tn] bf16, acc: [tm, tn] f32 scratch. Grid = (M, N, K); K last.
    @pl.when(pl.program_id(2) == 0)
    def _():
        acc_ref[...] = jnp.zeros_like(acc_ref)

    acc_ref[...] += jnp.dot(x_ref[...], w_ref[...],
                            preferred_element_type=jnp.float32)

    @pl.when(pl.program_id(2) == pl.num_programs(2) - 1)
    def _():
        acc = acc_ref[...] * s_ref[...] + b_ref[...]
        if relu:
            acc = jnp.maximum(acc, 0.0)
        o_ref[...] = acc.astype(o_ref.dtype)


def _mm_bn_add_relu_acc_kernel(x_ref, w_ref, s_ref, b_ref, r_ref, o_ref, acc_ref):
    # conv + BN + residual add + ReLU (second conv of a BasicBlock), K tiled.
    @pl.when(pl.program_id(2) == 0)
    def _():
        acc_ref[...] = jnp.zeros_like(acc_ref)

    acc_ref[...] += jnp.dot(x_ref[...], w_ref[...],
                            preferred_element_type=jnp.float32)

    @pl.when(pl.program_id(2) == pl.num_programs(2) - 1)
    def _():
        acc = (acc_ref[...] * s_ref[...] + b_ref[...]
               + r_ref[...].astype(jnp.float32))
        o_ref[...] = jnp.maximum(acc, 0.0).astype(o_ref.dtype)


def _mm_bn_single_kernel(x_ref, w_ref, s_ref, b_ref, o_ref, *, relu):
    # Single-K-tile path: no accumulator scratch round trip; 2-D grid (M, N).
    acc = jnp.dot(x_ref[...], w_ref[...], preferred_element_type=jnp.float32)
    acc = acc * s_ref[...] + b_ref[...]
    if relu:
        acc = jnp.maximum(acc, 0.0)
    o_ref[...] = acc.astype(o_ref.dtype)


def _mm_bn_add_relu_single_kernel(x_ref, w_ref, s_ref, b_ref, r_ref, o_ref):
    acc = jnp.dot(x_ref[...], w_ref[...], preferred_element_type=jnp.float32)
    acc = acc * s_ref[...] + b_ref[...] + r_ref[...].astype(jnp.float32)
    o_ref[...] = jnp.maximum(acc, 0.0).astype(o_ref.dtype)


def _maxpool9_kernel(t0, t1, t2, t3, t4, t5, t6, t7, t8, o_ref):
    # 9 window taps, each [tm, C]; in-kernel maximum tree (no stacked HBM array).
    m = jnp.maximum(t0[...], t1[...])
    m = jnp.maximum(m, t2[...])
    m = jnp.maximum(m, t3[...])
    m = jnp.maximum(m, t4[...])
    m = jnp.maximum(m, t5[...])
    m = jnp.maximum(m, t6[...])
    m = jnp.maximum(m, t7[...])
    m = jnp.maximum(m, t8[...])
    o_ref[...] = m


def _avgpool_kernel(x_ref, o_ref):
    # x: [N, H*W, C] bf16, o: [N, C] f32 (adaptive avg pool to 1x1 + flatten)
    o_ref[...] = jnp.mean(x_ref[...].astype(jnp.float32), axis=1)


# --------------------------- kernel wrappers ---------------------------------

def _pick_tiles(M, Npad, Kpad):
    tm = 512 if M >= 512 else _round_up(M, 8)
    tn = 256 if Npad % 256 == 0 else 128
    if Kpad % 512 == 0:
        tk = 512
    elif Kpad % 256 == 0:
        tk = 256
    else:
        tk = 128
    return tm, tn, tk


def matmul_bn(x2d, w2d, scale, bias, residual=None, relu=True):
    # x2d: [M, K] bf16, w2d: [Kpad, Npad] bf16 (pre-padded / pre-transposed),
    # scale/bias: [1, Cout] f32 folded BN, residual: [M, Cout] bf16 or None.
    M, K = x2d.shape
    Kpad, Npad = w2d.shape
    Cout = scale.shape[1]

    tm, tn, tk = _pick_tiles(M, Npad, Kpad)
    Mpad = _round_up(M, tm)

    if Mpad != M or Kpad != K:
        x2d = jnp.pad(x2d, ((0, Mpad - M), (0, Kpad - K)))
    s2 = scale.astype(jnp.float32)
    b2 = bias.astype(jnp.float32)
    if Npad != Cout:
        s2 = jnp.pad(s2, ((0, 0), (0, Npad - Cout)))
        b2 = jnp.pad(b2, ((0, 0), (0, Npad - Cout)))

    r2 = None
    if residual is not None:
        r2 = residual.astype(jnp.bfloat16)
        if Mpad != M or Npad != Cout:
            r2 = jnp.pad(r2, ((0, Mpad - M), (0, Npad - Cout)))

    cost = pl.CostEstimate(
        flops=2 * Mpad * Npad * Kpad,
        transcendentals=0,
        bytes_accessed=2 * (Mpad * Kpad + Kpad * Npad + Mpad * Npad),
    )

    k_steps = Kpad // tk
    if k_steps == 1:
        # Single K tile: 2-D grid, no accumulator scratch.
        grid = (Mpad // tm, Npad // tn)
        x_spec = pl.BlockSpec((tm, Kpad), lambda i, j: (i, 0))
        w_spec = pl.BlockSpec((Kpad, tn), lambda i, j: (0, j))
        s_spec = pl.BlockSpec((1, tn), lambda i, j: (0, j))
        o_spec = pl.BlockSpec((tm, tn), lambda i, j: (i, j))
        scratch = []
        semantics = ("parallel", "parallel")
        if residual is None:
            kernel = functools.partial(_mm_bn_single_kernel, relu=relu)
            in_specs = [x_spec, w_spec, s_spec, s_spec]
            args = (x2d, w2d, s2, b2)
        else:
            kernel = _mm_bn_add_relu_single_kernel
            in_specs = [x_spec, w_spec, s_spec, s_spec, o_spec]
            args = (x2d, w2d, s2, b2, r2)
    else:
        grid = (Mpad // tm, Npad // tn, k_steps)
        x_spec = pl.BlockSpec((tm, tk), lambda i, j, k: (i, k))
        w_spec = pl.BlockSpec((tk, tn), lambda i, j, k: (k, j))
        s_spec = pl.BlockSpec((1, tn), lambda i, j, k: (0, j))
        o_spec = pl.BlockSpec((tm, tn), lambda i, j, k: (i, j))
        scratch = [pltpu.VMEM((tm, tn), jnp.float32)]
        semantics = ("parallel", "parallel", "arbitrary")
        if residual is None:
            kernel = functools.partial(_mm_bn_acc_kernel, relu=relu)
            in_specs = [x_spec, w_spec, s_spec, s_spec]
            args = (x2d, w2d, s2, b2)
        else:
            kernel = _mm_bn_add_relu_acc_kernel
            in_specs = [x_spec, w_spec, s_spec, s_spec, o_spec]
            args = (x2d, w2d, s2, b2, r2)

    out = pl.pallas_call(
        kernel,
        out_shape=jax.ShapeDtypeStruct((Mpad, Npad), jnp.bfloat16),
        grid_spec=pltpu.PrefetchScalarGridSpec(
            num_scalar_prefetch=0,
            grid=grid,
            in_specs=in_specs,
            out_specs=o_spec,
            scratch_shapes=scratch,
        ),
        compiler_params=pltpu.CompilerParams(
            dimension_semantics=semantics,
            vmem_limit_bytes=VMEM_LIMIT,
        ),
        cost_estimate=cost,
    )(*args)
    return out[:M, :Cout]


def _im2col(x, kh, kw, stride, pad):
    # x: NHWC -> [N, Ho, Wo, kh*kw*C] with K-ordering (kh, kw, C).
    # TODO(synk): a fully im2col-free conv (in-kernel accumulation of shifted-window
    # matmuls via manual DMA) would cut HBM traffic further for the 3x3 layers.
    N, H, W, C = x.shape
    xp = jnp.pad(x, ((0, 0), (pad, pad), (pad, pad), (0, 0)))
    Ho = (H + 2 * pad - kh) // stride + 1
    Wo = (W + 2 * pad - kw) // stride + 1
    cols = []
    for i in range(kh):
        for j in range(kw):
            cols.append(xp[:, i:i + stride * Ho:stride,
                           j:j + stride * Wo:stride, :])
    return jnp.concatenate(cols, axis=-1), Ho, Wo


def conv_bn(x, p, kh, kw, stride, pad, relu=True, residual=None):
    # x: NHWC bf16; p holds pre-transposed/padded bf16 weights + folded BN rows.
    N, _, _, Cin = x.shape
    Cout = p['scale'].shape[1]
    cols, Ho, Wo = _im2col(x, kh, kw, stride, pad)
    M = N * Ho * Wo
    x2d = cols.reshape(M, kh * kw * Cin)
    res2d = None if residual is None else residual.reshape(M, Cout)
    out = matmul_bn(x2d, p['w2d'], p['scale'], p['bias'],
                    residual=res2d, relu=relu)
    return out.reshape(N, Ho, Wo, Cout)


def maxpool_3x3_s2_p1(x):
    N, H, W, C = x.shape
    k, stride, pad = 3, 2, 1
    xp = jnp.pad(x, ((0, 0), (pad, pad), (pad, pad), (0, 0)),
                 constant_values=-jnp.inf)
    Ho = (H + 2 * pad - k) // stride + 1
    Wo = (W + 2 * pad - k) // stride + 1
    M = N * Ho * Wo
    tm = 512 if M >= 512 else _round_up(M, 8)
    Mpad = _round_up(M, tm)

    taps = []
    for i in range(k):
        for j in range(k):
            t = xp[:, i:i + stride * Ho:stride,
                   j:j + stride * Wo:stride, :].reshape(M, C)
            if Mpad != M:
                t = jnp.pad(t, ((0, Mpad - M), (0, 0)))
            taps.append(t)

    spec = pl.BlockSpec((tm, C), lambda i: (i, 0))
    out = pl.pallas_call(
        _maxpool9_kernel,
        out_shape=jax.ShapeDtypeStruct((Mpad, C), x.dtype),
        grid_spec=pltpu.PrefetchScalarGridSpec(
            num_scalar_prefetch=0,
            grid=(Mpad // tm,),
            in_specs=[spec] * 9,
            out_specs=spec,
        ),
        compiler_params=pltpu.CompilerParams(
            dimension_semantics=("parallel",),
            vmem_limit_bytes=VMEM_LIMIT,
        ),
    )(*taps)
    return out[:M].reshape(N, Ho, Wo, C)


def avgpool_flatten(x):
    N, H, W, C = x.shape
    xr = x.reshape(N, H * W, C)
    return pl.pallas_call(
        _avgpool_kernel,
        out_shape=jax.ShapeDtypeStruct((N, C), jnp.float32),
        grid_spec=pltpu.PrefetchScalarGridSpec(
            num_scalar_prefetch=0,
            grid=(1,),
            in_specs=[pl.BlockSpec((N, H * W, C), lambda i: (0, 0, 0))],
            out_specs=pl.BlockSpec((N, C), lambda i: (0, 0)),
        ),
        compiler_params=pltpu.CompilerParams(vmem_limit_bytes=VMEM_LIMIT),
    )(xr)


# --------------------------- ResNet18 forward --------------------------------

def basic_block(x, p, stride):
    identity = x
    out = conv_bn(x, p['conv1'], 3, 3, stride=stride, pad=1, relu=True)
    if 'down' in p:
        identity = conv_bn(x, p['down'], 1, 1, stride=stride, pad=0, relu=False)
    out = conv_bn(out, p['conv2'], 3, 3, stride=1, pad=1, relu=True,
                  residual=identity)
    return out


def resnet18_forward(x_nchw, params):
    # NCHW (PyTorch) -> NHWC; bf16 activations between layers (f32 accum in-kernel).
    x = jnp.transpose(x_nchw, (0, 2, 3, 1)).astype(jnp.bfloat16)
    x = conv_bn(x, params['stem'], 7, 7, stride=2, pad=3, relu=True)
    # TODO(synk): fuse the maxpool into the conv1 epilogue to skip one HBM round trip
    # of the largest activation tensor.
    x = maxpool_3x3_s2_p1(x)
    for blocks, s in zip(params['layers'], (1, 2, 2, 2)):
        x = basic_block(x, blocks[0], s)
        x = basic_block(x, blocks[1], 1)
    return avgpool_flatten(x)  # [N, 512] == torch.flatten(avgpool(x), 1), f32


# --------------------------- parameter init / preprocessing ------------------

def _bn_fold(gamma, beta, mean, var):
    scale = gamma / jnp.sqrt(var + EPS)
    bias = beta - mean * scale
    return scale, bias


def _prep_conv(w_oihw, scale, bias):
    # One-time preprocessing (hoisted out of the forward path):
    # PyTorch layout [Cout, Cin, kh, kw] -> bf16 [Kpad, Npad] with K ordering
    # (kh, kw, Cin) matching _im2col, zero-padded to multiples of 128 for
    # lane-dense MXU tiles (conv1's K=147 -> 256).
    Cout, Cin, kh, kw = w_oihw.shape
    K = kh * kw * Cin
    Kpad = _round_up(K, 128)
    Npad = _round_up(Cout, 128)
    w2d = jnp.transpose(w_oihw, (2, 3, 1, 0)).reshape(K, Cout)
    w2d = jnp.pad(w2d, ((0, Kpad - K), (0, Npad - Cout))).astype(jnp.bfloat16)
    return {'w2d': w2d,
            'scale': scale.reshape(1, Cout).astype(jnp.float32),
            'bias': bias.reshape(1, Cout).astype(jnp.float32)}


def init_params(key):
    keys = iter(jax.random.split(key, 256))

    def conv_w(cout, cin, k):
        return jax.random.normal(next(keys), (cout, cin, k, k),
                                 jnp.float32) * 0.05

    def bn(c):
        gamma = jax.random.uniform(next(keys), (c,), jnp.float32, 0.5, 1.5)
        beta = jax.random.normal(next(keys), (c,), jnp.float32) * 0.1
        mean = jax.random.normal(next(keys), (c,), jnp.float32) * 0.1
        var = jax.random.uniform(next(keys), (c,), jnp.float32, 0.5, 1.5)
        return _bn_fold(gamma, beta, mean, var)

    params = {'stem': _prep_conv(conv_w(64, 3, 7), *bn(64))}

    layers = []
    in_c = 64
    for out_c, stride in [(64, 1), (128, 2), (256, 2), (512, 2)]:
        blocks = []
        for b in range(2):
            s = stride if b == 0 else 1
            cin = in_c if b == 0 else out_c
            bp = {'conv1': _prep_conv(conv_w(out_c, cin, 3), *bn(out_c)),
                  'conv2': _prep_conv(conv_w(out_c, out_c, 3), *bn(out_c))}
            if b == 0 and (s != 1 or in_c != out_c):
                bp['down'] = _prep_conv(conv_w(out_c, in_c, 1), *bn(out_c))
            blocks.append(bp)
        layers.append(blocks)
        in_c = out_c
    params['layers'] = layers
    return params


# --------------------------- main ---------------------------------------------

if __name__ == "__main__":
    key = jax.random.PRNGKey(0)
    k_x, k_p = jax.random.split(key)
    # Small input consistent with the module: NCHW, 3 channels (resnet18 stem).
    x = jax.random.normal(k_x, (2, 3, 32, 32), jnp.float32)
    params = init_params(k_p)  # weights pre-transposed/padded/cast once, outside jit

    fwd = jax.jit(resnet18_forward)
    out = jax.block_until_ready(fwd(x, params))

    assert out.shape == (2, 512), out.shape
    assert bool(jnp.all(jnp.isfinite(out)))
    print("KERNEL_OK")
</pallas_src>

<mosaic_0001>
module attributes {stable_mosaic.version = 11 : i64} {
  func.func @_mm_bn_single_kernel(%arg0: i32, %arg1: i32, %arg2: memref<512x256xbf16, #tpu.memory_space<vmem>>, %arg3: memref<256x128xbf16, #tpu.memory_space<vmem>>, %arg4: memref<1x128xf32, #tpu.memory_space<vmem>>, %arg5: memref<1x128xf32, #tpu.memory_space<vmem>>, %arg6: memref<512x128xbf16, #tpu.memory_space<vmem>>) attributes {dimension_semantics = [#tpu.dimension_semantics<parallel>, #tpu.dimension_semantics<parallel>], iteration_bounds = array<i64: 1, 1>, scalar_prefetch = 0 : i64, scratch_operands = 0 : i64, tpu.core_type = #tpu.core_type<tc>, window_params = [{transform_indices = @transform_0, window_bounds = array<i64: 512, 256>}, {transform_indices = @transform_1, window_bounds = array<i64: 256, 128>}, {transform_indices = @transform_2, window_bounds = array<i64: 1, 128>}, {transform_indices = @transform_3, window_bounds = array<i64: 1, 128>}, {transform_indices = @transform_4, window_bounds = array<i64: 512, 128>}]} {
    %c0 = arith.constant 0 : index
    %c0_0 = arith.constant 0 : index
    %0 = vector.load %arg2[%c0, %c0_0] : memref<512x256xbf16, #tpu.memory_space<vmem>>, vector<512x256xbf16>
    %c0_1 = arith.constant 0 : index
    %c0_2 = arith.constant 0 : index
    %1 = vector.load %arg3[%c0_1, %c0_2] : memref<256x128xbf16, #tpu.memory_space<vmem>>, vector<256x128xbf16>
    %cst = arith.constant dense<0.000000e+00> : vector<512x128xf32>
    %2 = tpu.matmul %0, %1, %cst {dimension_numbers = #tpu.dot_dimension_numbers<[1], [0], [0], [1], [0, 0, 1, 1], [], []>} : vector<512x256xbf16>, vector<256x128xbf16>, vector<512x128xf32> -> vector<512x128xf32>
    %c0_3 = arith.constant 0 : index
    %c0_4 = arith.constant 0 : index
    %3 = vector.load %arg4[%c0_3, %c0_4] : memref<1x128xf32, #tpu.memory_space<vmem>>, vector<1x128xf32>
    %4 = vector.broadcast %3 : vector<1x128xf32> to vector<512x128xf32>
    %5 = arith.mulf %2, %4 : vector<512x128xf32>
    %c0_5 = arith.constant 0 : index
    %c0_6 = arith.constant 0 : index
    %6 = vector.load %arg5[%c0_5, %c0_6] : memref<1x128xf32, #tpu.memory_space<vmem>>, vector<1x128xf32>
    %7 = vector.broadcast %6 : vector<1x128xf32> to vector<512x128xf32>
    %8 = arith.addf %5, %7 : vector<512x128xf32>
    %cst_7 = arith.constant 0.000000e+00 : f32
    %9 = vector.broadcast %cst_7 : f32 to vector<512x128xf32>
    %10 = arith.maximumf %8, %9 : vector<512x128xf32>
    %11 = arith.truncf %10 : vector<512x128xf32> to vector<512x128xbf16>
    %c0_8 = arith.constant 0 : index
    %c0_9 = arith.constant 0 : index
    %12 = vector.load %arg6[%c0_8, %c0_9] : memref<512x128xbf16, #tpu.memory_space<vmem>>, vector<512x128xbf16>
    tpu.vector_store %arg6[%c0_8, %c0_9], %11 {strides = array<i32>} : memref<512x128xbf16, #tpu.memory_space<vmem>>, vector<512x128xbf16>,
    return
  }
  func.func @transform_0(%arg0: i32, %arg1: i32) -> (i32, i32) {
    %c0_i32 = arith.constant 0 : i32
    %c0_i32_0 = arith.constant 0 : i32
    return %arg0, %c0_i32 : i32, i32
  }
  func.func @transform_1(%arg0: i32, %arg1: i32) -> (i32, i32) {
    %c0_i32 = arith.constant 0 : i32
    %c0_i32_0 = arith.constant 0 : i32
    return %c0_i32, %arg1 : i32, i32
  }
  func.func @transform_2(%arg0: i32, %arg1: i32) -> (i32, i32) {
    %c0_i32 = arith.constant 0 : i32
    %c0_i32_0 = arith.constant 0 : i32
    return %c0_i32, %arg1 : i32, i32
  }
  func.func @transform_3(%arg0: i32, %arg1: i32) -> (i32, i32) {
    %c0_i32 = arith.constant 0 : i32
    %c0_i32_0 = arith.constant 0 : i32
    return %c0_i32, %arg1 : i32, i32
  }
  func.func @transform_4(%arg0: i32, %arg1: i32) -> (i32, i32) {
    %c0_i32 = arith.constant 0 : i32
    return %arg0, %arg1 : i32, i32
  }
}

module attributes {stable_mosaic.version = 11 : i64} {
  func.func @_maxpool9_kernel(%arg0: i32, %arg1: memref<128x64xbf16, #tpu.memory_space<vmem>>, %arg2: memref<128x64xbf16, #tpu.memory_space<vmem>>, %arg3: memref<128x64xbf16, #tpu.memory_space<vmem>>, %arg4: memref<128x64xbf16, #tpu.memory_space<vmem>>, %arg5: memref<128x64xbf16, #tpu.memory_space<vmem>>, %arg6: memref<128x64xbf16, #tpu.memory_space<vmem>>, %arg7: memref<128x64xbf16, #tpu.memory_space<vmem>>, %arg8: memref<128x64xbf16, #tpu.memory_space<vmem>>, %arg9: memref<128x64xbf16, #tpu.memory_space<vmem>>, %arg10: memref<128x64xbf16, #tpu.memory_space<vmem>>) attributes {dimension_semantics = [#tpu.dimension_semantics<parallel>], iteration_bounds = array<i64: 1>, scalar_prefetch = 0 : i64, scratch_operands = 0 : i64, tpu.core_type = #tpu.core_type<tc>, window_params = [{transform_indices = @transform_0, window_bounds = array<i64: 128, 64>}, {transform_indices = @transform_1, window_bounds = array<i64: 128, 64>}, {transform_indices = @transform_2, window_bounds = array<i64: 128, 64>}, {transform_indices = @transform_3, window_bounds = array<i64: 128, 64>}, {transform_indices = @transform_4, window_bounds = array<i64: 128, 64>}, {transform_indices = @transform_5, window_bounds = array<i64: 128, 64>}, {transform_indices = @transform_6, window_bounds = array<i64: 128, 64>}, {transform_indices = @transform_7, window_bounds = array<i64: 128, 64>}, {transform_indices = @transform_8, window_bounds = array<i64: 128, 64>}, {transform_indices = @transform_9, window_bounds = array<i64: 128, 64>}]} {
    %c0 = arith.constant 0 : index
    %c0_0 = arith.constant 0 : index
    %0 = vector.load %arg1[%c0, %c0_0] : memref<128x64xbf16, #tpu.memory_space<vmem>>, vector<128x64xbf16>
    %c0_1 = arith.constant 0 : index
    %c0_2 = arith.constant 0 : index
    %1 = vector.load %arg2[%c0_1, %c0_2] : memref<128x64xbf16, #tpu.memory_space<vmem>>, vector<128x64xbf16>
    %2 = arith.maximumf %0, %1 : vector<128x64xbf16>
    %c0_3 = arith.constant 0 : index
    %c0_4 = arith.constant 0 : index
    %3 = vector.load %arg3[%c0_3, %c0_4] : memref<128x64xbf16, #tpu.memory_space<vmem>>, vector<128x64xbf16>
    %4 = arith.maximumf %2, %3 : vector<128x64xbf16>
    %c0_5 = arith.constant 0 : index
    %c0_6 = arith.constant 0 : index
    %5 = vector.load %arg4[%c0_5, %c0_6] : memref<128x64xbf16, #tpu.memory_space<vmem>>, vector<128x64xbf16>
    %6 = arith.maximumf %4, %5 : vector<128x64xbf16>
    %c0_7 = arith.constant 0 : index
    %c0_8 = arith.constant 0 : index
    %7 = vector.load %arg5[%c0_7, %c0_8] : memref<128x64xbf16, #tpu.memory_space<vmem>>, vector<128x64xbf16>
    %8 = arith.maximumf %6, %7 : vector<128x64xbf16>
    %c0_9 = arith.constant 0 : index
    %c0_10 = arith.constant 0 : index
    %9 = vector.load %arg6[%c0_9, %c0_10] : memref<128x64xbf16, #tpu.memory_space<vmem>>, vector<128x64xbf16>
    %10 = arith.maximumf %8, %9 : vector<128x64xbf16>
    %c0_11 = arith.constant 0 : index
    %c0_12 = arith.constant 0 : index
    %11 = vector.load %arg7[%c0_11, %c0_12] : memref<128x64xbf16, #tpu.memory_space<vmem>>, vector<128x64xbf16>
    %12 = arith.maximumf %10, %11 : vector<128x64xbf16>
    %c0_13 = arith.constant 0 : index
    %c0_14 = arith.constant 0 : index
    %13 = vector.load %arg8[%c0_13, %c0_14] : memref<128x64xbf16, #tpu.memory_space<vmem>>, vector<128x64xbf16>
    %14 = arith.maximumf %12, %13 : vector<128x64xbf16>
    %c0_15 = arith.constant 0 : index
    %c0_16 = arith.constant 0 : index
    %15 = vector.load %arg9[%c0_15, %c0_16] : memref<128x64xbf16, #tpu.memory_space<vmem>>, vector<128x64xbf16>
    %16 = arith.maximumf %14, %15 : vector<128x64xbf16>
    %c0_17 = arith.constant 0 : index
    %c0_18 = arith.constant 0 : index
    %17 = vector.load %arg10[%c0_17, %c0_18] : memref<128x64xbf16, #tpu.memory_space<vmem>>, vector<128x64xbf16>
    tpu.vector_store %arg10[%c0_17, %c0_18], %16 {strides = array<i32>} : memref<128x64xbf16, #tpu.memory_space<vmem>>, vector<128x64xbf16>,
    return
  }
  func.func @transform_0(%arg0: i32) -> (i32, i32) {
    %c0_i32 = arith.constant 0 : i32
    %c0_i32_0 = arith.constant 0 : i32
    return %arg0, %c0_i32 : i32, i32
  }
  func.func @transform_1(%arg0: i32) -> (i32, i32) {
    %c0_i32 = arith.constant 0 : i32
    %c0_i32_0 = arith.constant 0 : i32
    return %arg0, %c0_i32 : i32, i32
  }
  func.func @transform_2(%arg0: i32) -> (i32, i32) {
    %c0_i32 = arith.constant 0 : i32
    %c0_i32_0 = arith.constant 0 : i32
    return %arg0, %c0_i32 : i32, i32
  }
  func.func @transform_3(%arg0: i32) -> (i32, i32) {
    %c0_i32 = arith.constant 0 : i32
    %c0_i32_0 = arith.constant 0 : i32
    return %arg0, %c0_i32 : i32, i32
  }
  func.func @transform_4(%arg0: i32) -> (i32, i32) {
    %c0_i32 = arith.constant 0 : i32
    %c0_i32_0 = arith.constant 0 : i32
    return %arg0, %c0_i32 : i32, i32
  }
  func.func @transform_5(%arg0: i32) -> (i32, i32) {
    %c0_i32 = arith.constant 0 : i32
    %c0_i32_0 = arith.constant 0 : i32
    return %arg0, %c0_i32 : i32, i32
  }
  func.func @transform_6(%arg0: i32) -> (i32, i32) {
    %c0_i32 = arith.constant 0 : i32
    %c0_i32_0 = arith.constant 0 : i32
    return %arg0, %c0_i32 : i32, i32
  }
  func.func @transform_7(%arg0: i32) -> (i32, i32) {
    %c0_i32 = arith.constant 0 : i32
    %c0_i32_0 = arith.constant 0 : i32
    return %arg0, %c0_i32 : i32, i32
  }
  func.func @transform_8(%arg0: i32) -> (i32, i32) {
    %c0_i32 = arith.constant 0 : i32
    %c0_i32_0 = arith.constant 0 : i32
    return %arg0, %c0_i32 : i32, i32
  }
  func.func @transform_9(%arg0: i32) -> (i32, i32) {
    %c0_i32 = arith.constant 0 : i32
    %c0_i32_0 = arith.constant 0 : i32
    return %arg0, %c0_i32 : i32, i32
  }
}

module attributes {stable_mosaic.version = 11 : i64} {
  func.func @_mm_bn_acc_kernel(%arg0: i32, %arg1: i32, %arg2: i32, %arg3: memref<128x128xbf16, #tpu.memory_space<vmem>>, %arg4: memref<128x128xbf16, #tpu.memory_space<vmem>>, %arg5: memref<1x128xf32, #tpu.memory_space<vmem>>, %arg6: memref<1x128xf32, #tpu.memory_space<vmem>>, %arg7: memref<128x128xbf16, #tpu.memory_space<vmem>>, %arg8: memref<128x128xf32, #tpu.memory_space<vmem>>) attributes {dimension_semantics = [#tpu.dimension_semantics<parallel>, #tpu.dimension_semantics<parallel>, #tpu.dimension_semantics<arbitrary>], iteration_bounds = array<i64: 1, 1, 5>, scalar_prefetch = 0 : i64, scratch_operands = 1 : i64, tpu.core_type = #tpu.core_type<tc>, window_params = [{transform_indices = @transform_0, window_bounds = array<i64: 128, 128>}, {transform_indices = @transform_1, window_bounds = array<i64: 128, 128>}, {transform_indices = @transform_2, window_bounds = array<i64: 1, 128>}, {transform_indices = @transform_3, window_bounds = array<i64: 1, 128>}, {transform_indices = @transform_4, window_bounds = array<i64: 128, 128>}]} {
    %c0_i32 = arith.constant 0 : i32
    %0 = arith.cmpi eq, %arg2, %c0_i32 : i32
    %1 = arith.extui %0 : i1 to i32
    %c0_i32_0 = arith.constant 0 : i32
    %2 = arith.cmpi ne, %1, %c0_i32_0 : i32
    scf.if %2 {
      %cst_9 = arith.constant 0.000000e+00 : f32
      %12 = vector.broadcast %cst_9 : f32 to vector<128x128xf32>
      %c0_10 = arith.constant 0 : index
      %c0_11 = arith.constant 0 : index
      %13 = vector.load %arg8[%c0_10, %c0_11] : memref<128x128xf32, #tpu.memory_space<vmem>>, vector<128x128xf32>
      tpu.vector_store %arg8[%c0_10, %c0_11], %12 {strides = array<i32>} : memref<128x128xf32, #tpu.memory_space<vmem>>, vector<128x128xf32>,
    } else {
    }
    %c0 = arith.constant 0 : index
    %c0_1 = arith.constant 0 : index
    %3 = vector.load %arg8[%c0, %c0_1] : memref<128x128xf32, #tpu.memory_space<vmem>>, vector<128x128xf32>
    %c0_2 = arith.constant 0 : index
    %c0_3 = arith.constant 0 : index
    %4 = vector.load %arg3[%c0_2, %c0_3] : memref<128x128xbf16, #tpu.memory_space<vmem>>, vector<128x128xbf16>
    %c0_4 = arith.constant 0 : index
    %c0_5 = arith.constant 0 : index
    %5 = vector.load %arg4[%c0_4, %c0_5] : memref<128x128xbf16, #tpu.memory_space<vmem>>, vector<128x128xbf16>
    %cst = arith.constant dense<0.000000e+00> : vector<128x128xf32>
    %6 = tpu.matmul %4, %5, %cst {dimension_numbers = #tpu.dot_dimension_numbers<[1], [0], [0], [1], [0, 0, 1, 1], [], []>} : vector<128x128xbf16>, vector<128x128xbf16>, vector<128x128xf32> -> vector<128x128xf32>
    %7 = arith.addf %3, %6 : vector<128x128xf32>
    %c0_6 = arith.constant 0 : index
    %c0_7 = arith.constant 0 : index
    %8 = vector.load %arg8[%c0_6, %c0_7] : memref<128x128xf32, #tpu.memory_space<vmem>>, vector<128x128xf32>
    tpu.vector_store %arg8[%c0_6, %c0_7], %7 {strides = array<i32>} : memref<128x128xf32, #tpu.memory_space<vmem>>, vector<128x128xf32>,
    %c4_i32 = arith.constant 4 : i32
    %9 = arith.cmpi eq, %arg2, %c4_i32 : i32
    %10 = arith.extui %9 : i1 to i32
    %c0_i32_8 = arith.constant 0 : i32
    %11 = arith.cmpi ne, %10, %c0_i32_8 : i32
    scf.if %11 {
      %c0_9 = arith.constant 0 : index
      %c0_10 = arith.constant 0 : index
      %12 = vector.load %arg8[%c0_9, %c0_10] : memref<128x128xf32, #tpu.memory_space<vmem>>, vector<128x128xf32>
      %c0_11 = arith.constant 0 : index
      %c0_12 = arith.constant 0 : index
      %13 = vector.load %arg5[%c0_11, %c0_12] : memref<1x128xf32, #tpu.memory_space<vmem>>, vector<1x128xf32>
      %14 = vector.broadcast %13 : vector<1x128xf32> to vector<128x128xf32>
      %15 = arith.mulf %12, %14 : vector<128x128xf32>
      %c0_13 = arith.constant 0 : index
      %c0_14 = arith.constant 0 : index
      %16 = vector.load %arg6[%c0_13, %c0_14] : memref<1x128xf32, #tpu.memory_space<vmem>>, vector<1x128xf32>
      %17 = vector.broadcast %16 : vector<1x128xf32> to vector<128x128xf32>
      %18 = arith.addf %15, %17 : vector<128x128xf32>
      %cst_15 = arith.constant 0.000000e+00 : f32
      %19 = vector.broadcast %cst_15 : f32 to vector<128x128xf32>
      %20 = arith.maximumf %18, %19 : vector<128x128xf32>
      %21 = arith.truncf %20 : vector<128x128xf32> to vector<128x128xbf16>
      %c0_16 = arith.constant 0 : index
      %c0_17 = arith.constant 0 : index
      %22 = vector.load %arg7[%c0_16, %c0_17] : memref<128x128xbf16, #tpu.memory_space<vmem>>, vector<128x128xbf16>
      tpu.vector_store %arg7[%c0_16, %c0_17], %21 {strides = array<i32>} : memref<128x128xbf16, #tpu.memory_space<vmem>>, vector<128x128xbf16>,
    } else {
    }
    return
  }
  func.func @transform_0(%arg0: i32, %arg1: i32, %arg2: i32) -> (i32, i32) {
    %c0_i32 = arith.constant 0 : i32
    return %arg0, %arg2 : i32, i32
  }
  func.func @transform_1(%arg0: i32, %arg1: i32, %arg2: i32) -> (i32, i32) {
    %c0_i32 = arith.constant 0 : i32
    return %arg2, %arg1 : i32, i32
  }
  func.func @transform_2(%arg0: i32, %arg1: i32, %arg2: i32) -> (i32, i32) {
    %c0_i32 = arith.constant 0 : i32
    %c0_i32_0 = arith.constant 0 : i32
    return %c0_i32, %arg1 : i32, i32
  }
  func.func @transform_3(%arg0: i32, %arg1: i32, %arg2: i32) -> (i32, i32) {
    %c0_i32 = arith.constant 0 : i32
    %c0_i32_0 = arith.constant 0 : i32
    return %c0_i32, %arg1 : i32, i32
  }
  func.func @transform_4(%arg0: i32, %arg1: i32, %arg2: i32) -> (i32, i32) {
    %c0_i32 = arith.constant 0 : i32
    return %arg0, %arg1 : i32, i32
  }
}

module attributes {stable_mosaic.version = 11 : i64} {
  func.func @_mm_bn_add_relu_acc_kernel(%arg0: i32, %arg1: i32, %arg2: i32, %arg3: memref<128x128xbf16, #tpu.memory_space<vmem>>, %arg4: memref<128x128xbf16, #tpu.memory_space<vmem>>, %arg5: memref<1x128xf32, #tpu.memory_space<vmem>>, %arg6: memref<1x128xf32, #tpu.memory_space<vmem>>, %arg7: memref<128x128xbf16, #tpu.memory_space<vmem>>, %arg8: memref<128x128xbf16, #tpu.memory_space<vmem>>, %arg9: memref<128x128xf32, #tpu.memory_space<vmem>>) attributes {dimension_semantics = [#tpu.dimension_semantics<parallel>, #tpu.dimension_semantics<parallel>, #tpu.dimension_semantics<arbitrary>], iteration_bounds = array<i64: 1, 1, 5>, scalar_prefetch = 0 : i64, scratch_operands = 1 : i64, tpu.core_type = #tpu.core_type<tc>, window_params = [{transform_indices = @transform_0, window_bounds = array<i64: 128, 128>}, {transform_indices = @transform_1, window_bounds = array<i64: 128, 128>}, {transform_indices = @transform_2, window_bounds = array<i64: 1, 128>}, {transform_indices = @transform_3, window_bounds = array<i64: 1, 128>}, {transform_indices = @transform_4, window_bounds = array<i64: 128, 128>}, {transform_indices = @transform_5, window_bounds = array<i64: 128, 128>}]} {
    %c0_i32 = arith.constant 0 : i32
    %0 = arith.cmpi eq, %arg2, %c0_i32 : i32
    %1 = arith.extui %0 : i1 to i32
    %c0_i32_0 = arith.constant 0 : i32
    %2 = arith.cmpi ne, %1, %c0_i32_0 : i32
    scf.if %2 {
      %cst_9 = arith.constant 0.000000e+00 : f32
      %12 = vector.broadcast %cst_9 : f32 to vector<128x128xf32>
      %c0_10 = arith.constant 0 : index
      %c0_11 = arith.constant 0 : index
      %13 = vector.load %arg9[%c0_10, %c0_11] : memref<128x128xf32, #tpu.memory_space<vmem>>, vector<128x128xf32>
      tpu.vector_store %arg9[%c0_10, %c0_11], %12 {strides = array<i32>} : memref<128x128xf32, #tpu.memory_space<vmem>>, vector<128x128xf32>,
    } else {
    }
    %c0 = arith.constant 0 : index
    %c0_1 = arith.constant 0 : index
    %3 = vector.load %arg9[%c0, %c0_1] : memref<128x128xf32, #tpu.memory_space<vmem>>, vector<128x128xf32>
    %c0_2 = arith.constant 0 : index
    %c0_3 = arith.constant 0 : index
    %4 = vector.load %arg3[%c0_2, %c0_3] : memref<128x128xbf16, #tpu.memory_space<vmem>>, vector<128x128xbf16>
    %c0_4 = arith.constant 0 : index
    %c0_5 = arith.constant 0 : index
    %5 = vector.load %arg4[%c0_4, %c0_5] : memref<128x128xbf16, #tpu.memory_space<vmem>>, vector<128x128xbf16>
    %cst = arith.constant dense<0.000000e+00> : vector<128x128xf32>
    %6 = tpu.matmul %4, %5, %cst {dimension_numbers = #tpu.dot_dimension_numbers<[1], [0], [0], [1], [0, 0, 1, 1], [], []>} : vector<128x128xbf16>, vector<128x128xbf16>, vector<128x128xf32> -> vector<128x128xf32>
    %7 = arith.addf %3, %6 : vector<128x128xf32>
    %c0_6 = arith.constant 0 : index
    %c0_7 = arith.constant 0 : index
    %8 = vector.load %arg9[%c0_6, %c0_7] : memref<128x128xf32, #tpu.memory_space<vmem>>, vector<128x128xf32>
    tpu.vector_store %arg9[%c0_6, %c0_7], %7 {strides = array<i32>} : memref<128x128xf32, #tpu.memory_space<vmem>>, vector<128x128xf32>,
    %c4_i32 = arith.constant 4 : i32
    %9 = arith.cmpi eq, %arg2, %c4_i32 : i32
    %10 = arith.extui %9 : i1 to i32
    %c0_i32_8 = arith.constant 0 : i32
    %11 = arith.cmpi ne, %10, %c0_i32_8 : i32
    scf.if %11 {
      %c0_9 = arith.constant 0 : index
      %c0_10 = arith.constant 0 : index
      %12 = vector.load %arg9[%c0_9, %c0_10] : memref<128x128xf32, #tpu.memory_space<vmem>>, vector<128x128xf32>
      %c0_11 = arith.constant 0 : index
      %c0_12 = arith.constant 0 : index
      %13 = vector.load %arg5[%c0_11, %c0_12] : memref<1x128xf32, #tpu.memory_space<vmem>>, vector<1x128xf32>
      %14 = vector.broadcast %13 : vector<1x128xf32> to vector<128x128xf32>
      %15 = arith.mulf %12, %14 : vector<128x128xf32>
      %c0_13 = arith.constant 0 : index
      %c0_14 = arith.constant 0 : index
      %16 = vector.load %arg6[%c0_13, %c0_14] : memref<1x128xf32, #tpu.memory_space<vmem>>, vector<1x128xf32>
      %17 = vector.broadcast %16 : vector<1x128xf32> to vector<128x128xf32>
      %18 = arith.addf %15, %17 : vector<128x128xf32>
      %c0_15 = arith.constant 0 : index
      %c0_16 = arith.constant 0 : index
      %19 = vector.load %arg7[%c0_15, %c0_16] : memref<128x128xbf16, #tpu.memory_space<vmem>>, vector<128x128xbf16>
      %20 = arith.extf %19 : vector<128x128xbf16> to vector<128x128xf32>
      %21 = arith.addf %18, %20 : vector<128x128xf32>
      %cst_17 = arith.constant 0.000000e+00 : f32
      %22 = vector.broadcast %cst_17 : f32 to vector<128x128xf32>
      %23 = arith.maximumf %21, %22 : vector<128x128xf32>
      %24 = arith.truncf %23 : vector<128x128xf32> to vector<128x128xbf16>
      %c0_18 = arith.constant 0 : index
      %c0_19 = arith.constant 0 : index
      %25 = vector.load %arg8[%c0_18, %c0_19] : memref<128x128xbf16, #tpu.memory_space<vmem>>, vector<128x128xbf16>
      tpu.vector_store %arg8[%c0_18, %c0_19], %24 {strides = array<i32>} : memref<128x128xbf16, #tpu.memory_space<vmem>>, vector<128x128xbf16>,
    } else {
    }
    return
  }
  func.func @transform_0(%arg0: i32, %arg1: i32, %arg2: i32) -> (i32, i32) {
    %c0_i32 = arith.constant 0 : i32
    return %arg0, %arg2 : i32, i32
  }
  func.func @transform_1(%arg0: i32, %arg1: i32, %arg2: i32) -> (i32, i32) {
    %c0_i32 = arith.constant 0 : i32
    return %arg2, %arg1 : i32, i32
  }
  func.func @transform_2(%arg0: i32, %arg1: i32, %arg2: i32) -> (i32, i32) {
    %c0_i32 = arith.constant 0 : i32
    %c0_i32_0 = arith.constant 0 : i32
    return %c0_i32, %arg1 : i32, i32
  }
  func.func @transform_3(%arg0: i32, %arg1: i32, %arg2: i32) -> (i32, i32) {
    %c0_i32 = arith.constant 0 : i32
    %c0_i32_0 = arith.constant 0 : i32
    return %c0_i32, %arg1 : i32, i32
  }
  func.func @transform_4(%arg0: i32, %arg1: i32, %arg2: i32) -> (i32, i32) {
    %c0_i32 = arith.constant 0 : i32
    return %arg0, %arg1 : i32, i32
  }
  func.func @transform_5(%arg0: i32, %arg1: i32, %arg2: i32) -> (i32, i32) {
    %c0_i32 = arith.constant 0 : i32
    return %arg0, %arg1 : i32, i32
  }
}

module attributes {stable_mosaic.version = 11 : i64} {
  func.func @_mm_bn_single_kernel(%arg0: i32, %arg1: i32, %arg2: memref<32x128xbf16, #tpu.memory_space<vmem>>, %arg3: memref<128x128xbf16, #tpu.memory_space<vmem>>, %arg4: memref<1x128xf32, #tpu.memory_space<vmem>>, %arg5: memref<1x128xf32, #tpu.memory_space<vmem>>, %arg6: memref<32x128xbf16, #tpu.memory_space<vmem>>) attributes {dimension_semantics = [#tpu.dimension_semantics<parallel>, #tpu.dimension_semantics<parallel>], iteration_bounds = array<i64: 1, 1>, scalar_prefetch = 0 : i64, scratch_operands = 0 : i64, tpu.core_type = #tpu.core_type<tc>, window_params = [{transform_indices = @transform_0, window_bounds = array<i64: 32, 128>}, {transform_indices = @transform_1, window_bounds = array<i64: 128, 128>}, {transform_indices = @transform_2, window_bounds = array<i64: 1, 128>}, {transform_indices = @transform_3, window_bounds = array<i64: 1, 128>}, {transform_indices = @transform_4, window_bounds = array<i64: 32, 128>}]} {
    %c0 = arith.constant 0 : index
    %c0_0 = arith.constant 0 : index
    %0 = vector.load %arg2[%c0, %c0_0] : memref<32x128xbf16, #tpu.memory_space<vmem>>, vector<32x128xbf16>
    %c0_1 = arith.constant 0 : index
    %c0_2 = arith.constant 0 : index
    %1 = vector.load %arg3[%c0_1, %c0_2] : memref<128x128xbf16, #tpu.memory_space<vmem>>, vector<128x128xbf16>
    %cst = arith.constant dense<0.000000e+00> : vector<32x128xf32>
    %2 = tpu.matmul %0, %1, %cst {dimension_numbers = #tpu.dot_dimension_numbers<[1], [0], [0], [1], [0, 0, 1, 1], [], []>} : vector<32x128xbf16>, vector<128x128xbf16>, vector<32x128xf32> -> vector<32x128xf32>
    %c0_3 = arith.constant 0 : index
    %c0_4 = arith.constant 0 : index
    %3 = vector.load %arg4[%c0_3, %c0_4] : memref<1x128xf32, #tpu.memory_space<vmem>>, vector<1x128xf32>
    %4 = vector.broadcast %3 : vector<1x128xf32> to vector<32x128xf32>
    %5 = arith.mulf %2, %4 : vector<32x128xf32>
    %c0_5 = arith.constant 0 : index
    %c0_6 = arith.constant 0 : index
    %6 = vector.load %arg5[%c0_5, %c0_6] : memref<1x128xf32, #tpu.memory_space<vmem>>, vector<1x128xf32>
    %7 = vector.broadcast %6 : vector<1x128xf32> to vector<32x128xf32>
    %8 = arith.addf %5, %7 : vector<32x128xf32>
    %9 = arith.truncf %8 : vector<32x128xf32> to vector<32x128xbf16>
    %c0_7 = arith.constant 0 : index
    %c0_8 = arith.constant 0 : index
    %10 = vector.load %arg6[%c0_7, %c0_8] : memref<32x128xbf16, #tpu.memory_space<vmem>>, vector<32x128xbf16>
    tpu.vector_store %arg6[%c0_7, %c0_8], %9 {strides = array<i32>} : memref<32x128xbf16, #tpu.memory_space<vmem>>, vector<32x128xbf16>,
    return
  }
  func.func @transform_0(%arg0: i32, %arg1: i32) -> (i32, i32) {
    %c0_i32 = arith.constant 0 : i32
    %c0_i32_0 = arith.constant 0 : i32
    return %arg0, %c0_i32 : i32, i32
  }
  func.func @transform_1(%arg0: i32, %arg1: i32) -> (i32, i32) {
    %c0_i32 = arith.constant 0 : i32
    %c0_i32_0 = arith.constant 0 : i32
    return %c0_i32, %arg1 : i32, i32
  }
  func.func @transform_2(%arg0: i32, %arg1: i32) -> (i32, i32) {
    %c0_i32 = arith.constant 0 : i32
    %c0_i32_0 = arith.constant 0 : i32
    return %c0_i32, %arg1 : i32, i32
  }
  func.func @transform_3(%arg0: i32, %arg1: i32) -> (i32, i32) {
    %c0_i32 = arith.constant 0 : i32
    %c0_i32_0 = arith.constant 0 : i32
    return %c0_i32, %arg1 : i32, i32
  }
  func.func @transform_4(%arg0: i32, %arg1: i32) -> (i32, i32) {
    %c0_i32 = arith.constant 0 : i32
    return %arg0, %arg1 : i32, i32
  }
}

module attributes {stable_mosaic.version = 11 : i64} {
  func.func @_mm_bn_add_relu_acc_kernel(%arg0: i32, %arg1: i32, %arg2: i32, %arg3: memref<32x128xbf16, #tpu.memory_space<vmem>>, %arg4: memref<128x128xbf16, #tpu.memory_space<vmem>>, %arg5: memref<1x128xf32, #tpu.memory_space<vmem>>, %arg6: memref<1x128xf32, #tpu.memory_space<vmem>>, %arg7: memref<32x128xbf16, #tpu.memory_space<vmem>>, %arg8: memref<32x128xbf16, #tpu.memory_space<vmem>>, %arg9: memref<32x128xf32, #tpu.memory_space<vmem>>) attributes {dimension_semantics = [#tpu.dimension_semantics<parallel>, #tpu.dimension_semantics<parallel>, #tpu.dimension_semantics<arbitrary>], iteration_bounds = array<i64: 1, 1, 9>, scalar_prefetch = 0 : i64, scratch_operands = 1 : i64, tpu.core_type = #tpu.core_type<tc>, window_params = [{transform_indices = @transform_0, window_bounds = array<i64: 32, 128>}, {transform_indices = @transform_1, window_bounds = array<i64: 128, 128>}, {transform_indices = @transform_2, window_bounds = array<i64: 1, 128>}, {transform_indices = @transform_3, window_bounds = array<i64: 1, 128>}, {transform_indices = @transform_4, window_bounds = array<i64: 32, 128>}, {transform_indices = @transform_5, window_bounds = array<i64: 32, 128>}]} {
    %c0_i32 = arith.constant 0 : i32
    %0 = arith.cmpi eq, %arg2, %c0_i32 : i32
    %1 = arith.extui %0 : i1 to i32
    %c0_i32_0 = arith.constant 0 : i32
    %2 = arith.cmpi ne, %1, %c0_i32_0 : i32
    scf.if %2 {
      %cst_9 = arith.constant 0.000000e+00 : f32
      %12 = vector.broadcast %cst_9 : f32 to vector<32x128xf32>
      %c0_10 = arith.constant 0 : index
      %c0_11 = arith.constant 0 : index
      %13 = vector.load %arg9[%c0_10, %c0_11] : memref<32x128xf32, #tpu.memory_space<vmem>>, vector<32x128xf32>
      tpu.vector_store %arg9[%c0_10, %c0_11], %12 {strides = array<i32>} : memref<32x128xf32, #tpu.memory_space<vmem>>, vector<32x128xf32>,
    } else {
    }
    %c0 = arith.constant 0 : index
    %c0_1 = arith.constant 0 : index
    %3 = vector.load %arg9[%c0, %c0_1] : memref<32x128xf32, #tpu.memory_space<vmem>>, vector<32x128xf32>
    %c0_2 = arith.constant 0 : index
    %c0_3 = arith.constant 0 : index
    %4 = vector.load %arg3[%c0_2, %c0_3] : memref<32x128xbf16, #tpu.memory_space<vmem>>, vector<32x128xbf16>
    %c0_4 = arith.constant 0 : index
    %c0_5 = arith.constant 0 : index
    %5 = vector.load %arg4[%c0_4, %c0_5] : memref<128x128xbf16, #tpu.memory_space<vmem>>, vector<128x128xbf16>
    %cst = arith.constant dense<0.000000e+00> : vector<32x128xf32>
    %6 = tpu.matmul %4, %5, %cst {dimension_numbers = #tpu.dot_dimension_numbers<[1], [0], [0], [1], [0, 0, 1, 1], [], []>} : vector<32x128xbf16>, vector<128x128xbf16>, vector<32x128xf32> -> vector<32x128xf32>
    %7 = arith.addf %3, %6 : vector<32x128xf32>
    %c0_6 = arith.constant 0 : index
    %c0_7 = arith.constant 0 : index
    %8 = vector.load %arg9[%c0_6, %c0_7] : memref<32x128xf32, #tpu.memory_space<vmem>>, vector<32x128xf32>
    tpu.vector_store %arg9[%c0_6, %c0_7], %7 {strides = array<i32>} : memref<32x128xf32, #tpu.memory_space<vmem>>, vector<32x128xf32>,
    %c8_i32 = arith.constant 8 : i32
    %9 = arith.cmpi eq, %arg2, %c8_i32 : i32
    %10 = arith.extui %9 : i1 to i32
    %c0_i32_8 = arith.constant 0 : i32
    %11 = arith.cmpi ne, %10, %c0_i32_8 : i32
    scf.if %11 {
      %c0_9 = arith.constant 0 : index
      %c0_10 = arith.constant 0 : index
      %12 = vector.load %arg9[%c0_9, %c0_10] : memref<32x128xf32, #tpu.memory_space<vmem>>, vector<32x128xf32>
      %c0_11 = arith.constant 0 : index
      %c0_12 = arith.constant 0 : index
      %13 = vector.load %arg5[%c0_11, %c0_12] : memref<1x128xf32, #tpu.memory_space<vmem>>, vector<1x128xf32>
      %14 = vector.broadcast %13 : vector<1x128xf32> to vector<32x128xf32>
      %15 = arith.mulf %12, %14 : vector<32x128xf32>
      %c0_13 = arith.constant 0 : index
      %c0_14 = arith.constant 0 : index
      %16 = vector.load %arg6[%c0_13, %c0_14] : memref<1x128xf32, #tpu.memory_space<vmem>>, vector<1x128xf32>
      %17 = vector.broadcast %16 : vector<1x128xf32> to vector<32x128xf32>
      %18 = arith.addf %15, %17 : vector<32x128xf32>
      %c0_15 = arith.constant 0 : index
      %c0_16 = arith.constant 0 : index
      %19 = vector.load %arg7[%c0_15, %c0_16] : memref<32x128xbf16, #tpu.memory_space<vmem>>, vector<32x128xbf16>
      %20 = arith.extf %19 : vector<32x128xbf16> to vector<32x128xf32>
      %21 = arith.addf %18, %20 : vector<32x128xf32>
      %cst_17 = arith.constant 0.000000e+00 : f32
      %22 = vector.broadcast %cst_17 : f32 to vector<32x128xf32>
      %23 = arith.maximumf %21, %22 : vector<32x128xf32>
      %24 = arith.truncf %23 : vector<32x128xf32> to vector<32x128xbf16>
      %c0_18 = arith.constant 0 : index
      %c0_19 = arith.constant 0 : index
      %25 = vector.load %arg8[%c0_18, %c0_19] : memref<32x128xbf16, #tpu.memory_space<vmem>>, vector<32x128xbf16>
      tpu.vector_store %arg8[%c0_18, %c0_19], %24 {strides = array<i32>} : memref<32x128xbf16, #tpu.memory_space<vmem>>, vector<32x128xbf16>,
    } else {
    }
    return
  }
  func.func @transform_0(%arg0: i32, %arg1: i32, %arg2: i32) -> (i32, i32) {
    %c0_i32 = arith.constant 0 : i32
    return %arg0, %arg2 : i32, i32
  }
  func.func @transform_1(%arg0: i32, %arg1: i32, %arg2: i32) -> (i32, i32) {
    %c0_i32 = arith.constant 0 : i32
    return %arg2, %arg1 : i32, i32
  }
  func.func @transform_2(%arg0: i32, %arg1: i32, %arg2: i32) -> (i32, i32) {
    %c0_i32 = arith.constant 0 : i32
    %c0_i32_0 = arith.constant 0 : i32
    return %c0_i32, %arg1 : i32, i32
  }
  func.func @transform_3(%arg0: i32, %arg1: i32, %arg2: i32) -> (i32, i32) {
    %c0_i32 = arith.constant 0 : i32
    %c0_i32_0 = arith.constant 0 : i32
    return %c0_i32, %arg1 : i32, i32
  }
  func.func @transform_4(%arg0: i32, %arg1: i32, %arg2: i32) -> (i32, i32) {
    %c0_i32 = arith.constant 0 : i32
    return %arg0, %arg1 : i32, i32
  }
  func.func @transform_5(%arg0: i32, %arg1: i32, %arg2: i32) -> (i32, i32) {
    %c0_i32 = arith.constant 0 : i32
    return %arg0, %arg1 : i32, i32
  }
}

module attributes {stable_mosaic.version = 11 : i64} {
  func.func @_mm_bn_acc_kernel(%arg0: i32, %arg1: i32, %arg2: i32, %arg3: memref<32x128xbf16, #tpu.memory_space<vmem>>, %arg4: memref<128x128xbf16, #tpu.memory_space<vmem>>, %arg5: memref<1x128xf32, #tpu.memory_space<vmem>>, %arg6: memref<1x128xf32, #tpu.memory_space<vmem>>, %arg7: memref<32x128xbf16, #tpu.memory_space<vmem>>, %arg8: memref<32x128xf32, #tpu.memory_space<vmem>>) attributes {dimension_semantics = [#tpu.dimension_semantics<parallel>, #tpu.dimension_semantics<parallel>, #tpu.dimension_semantics<arbitrary>], iteration_bounds = array<i64: 1, 1, 5>, scalar_prefetch = 0 : i64, scratch_operands = 1 : i64, tpu.core_type = #tpu.core_type<tc>, window_params = [{transform_indices = @transform_0, window_bounds = array<i64: 32, 128>}, {transform_indices = @transform_1, window_bounds = array<i64: 128, 128>}, {transform_indices = @transform_2, window_bounds = array<i64: 1, 128>}, {transform_indices = @transform_3, window_bounds = array<i64: 1, 128>}, {transform_indices = @transform_4, window_bounds = array<i64: 32, 128>}]} {
    %c0_i32 = arith.constant 0 : i32
    %0 = arith.cmpi eq, %arg2, %c0_i32 : i32
    %1 = arith.extui %0 : i1 to i32
    %c0_i32_0 = arith.constant 0 : i32
    %2 = arith.cmpi ne, %1, %c0_i32_0 : i32
    scf.if %2 {
      %cst_9 = arith.constant 0.000000e+00 : f32
      %12 = vector.broadcast %cst_9 : f32 to vector<32x128xf32>
      %c0_10 = arith.constant 0 : index
      %c0_11 = arith.constant 0 : index
      %13 = vector.load %arg8[%c0_10, %c0_11] : memref<32x128xf32, #tpu.memory_space<vmem>>, vector<32x128xf32>
      tpu.vector_store %arg8[%c0_10, %c0_11], %12 {strides = array<i32>} : memref<32x128xf32, #tpu.memory_space<vmem>>, vector<32x128xf32>,
    } else {
    }
    %c0 = arith.constant 0 : index
    %c0_1 = arith.constant 0 : index
    %3 = vector.load %arg8[%c0, %c0_1] : memref<32x128xf32, #tpu.memory_space<vmem>>, vector<32x128xf32>
    %c0_2 = arith.constant 0 : index
    %c0_3 = arith.constant 0 : index
    %4 = vector.load %arg3[%c0_2, %c0_3] : memref<32x128xbf16, #tpu.memory_space<vmem>>, vector<32x128xbf16>
    %c0_4 = arith.constant 0 : index
    %c0_5 = arith.constant 0 : index
    %5 = vector.load %arg4[%c0_4, %c0_5] : memref<128x128xbf16, #tpu.memory_space<vmem>>, vector<128x128xbf16>
    %cst = arith.constant dense<0.000000e+00> : vector<32x128xf32>
    %6 = tpu.matmul %4, %5, %cst {dimension_numbers = #tpu.dot_dimension_numbers<[1], [0], [0], [1], [0, 0, 1, 1], [], []>} : vector<32x128xbf16>, vector<128x128xbf16>, vector<32x128xf32> -> vector<32x128xf32>
    %7 = arith.addf %3, %6 : vector<32x128xf32>
    %c0_6 = arith.constant 0 : index
    %c0_7 = arith.constant 0 : index
    %8 = vector.load %arg8[%c0_6, %c0_7] : memref<32x128xf32, #tpu.memory_space<vmem>>, vector<32x128xf32>
    tpu.vector_store %arg8[%c0_6, %c0_7], %7 {strides = array<i32>} : memref<32x128xf32, #tpu.memory_space<vmem>>, vector<32x128xf32>,
    %c4_i32 = arith.constant 4 : i32
    %9 = arith.cmpi eq, %arg2, %c4_i32 : i32
    %10 = arith.extui %9 : i1 to i32
    %c0_i32_8 = arith.constant 0 : i32
    %11 = arith.cmpi ne, %10, %c0_i32_8 : i32
    scf.if %11 {
      %c0_9 = arith.constant 0 : index
      %c0_10 = arith.constant 0 : index
      %12 = vector.load %arg8[%c0_9, %c0_10] : memref<32x128xf32, #tpu.memory_space<vmem>>, vector<32x128xf32>
      %c0_11 = arith.constant 0 : index
      %c0_12 = arith.constant 0 : index
      %13 = vector.load %arg5[%c0_11, %c0_12] : memref<1x128xf32, #tpu.memory_space<vmem>>, vector<1x128xf32>
      %14 = vector.broadcast %13 : vector<1x128xf32> to vector<32x128xf32>
      %15 = arith.mulf %12, %14 : vector<32x128xf32>
      %c0_13 = arith.constant 0 : index
      %c0_14 = arith.constant 0 : index
      %16 = vector.load %arg6[%c0_13, %c0_14] : memref<1x128xf32, #tpu.memory_space<vmem>>, vector<1x128xf32>
      %17 = vector.broadcast %16 : vector<1x128xf32> to vector<32x128xf32>
      %18 = arith.addf %15, %17 : vector<32x128xf32>
      %cst_15 = arith.constant 0.000000e+00 : f32
      %19 = vector.broadcast %cst_15 : f32 to vector<32x128xf32>
      %20 = arith.maximumf %18, %19 : vector<32x128xf32>
      %21 = arith.truncf %20 : vector<32x128xf32> to vector<32x128xbf16>
      %c0_16 = arith.constant 0 : index
      %c0_17 = arith.constant 0 : index
      %22 = vector.load %arg7[%c0_16, %c0_17] : memref<32x128xbf16, #tpu.memory_space<vmem>>, vector<32x128xbf16>
      tpu.vector_store %arg7[%c0_16, %c0_17], %21 {strides = array<i32>} : memref<32x128xbf16, #tpu.memory_space<vmem>>, vector<32x128xbf16>,
    } else {
    }
    return
  }
  func.func @transform_0(%arg0: i32, %arg1: i32, %arg2: i32) -> (i32, i32) {
    %c0_i32 = arith.constant 0 : i32
    return %arg0, %arg2 : i32, i32
  }
  func.func @transform_1(%arg0: i32, %arg1: i32, %arg2: i32) -> (i32, i32) {
    %c0_i32 = arith.constant 0 : i32
    return %arg2, %arg1 : i32, i32
  }
  func.func @transform_2(%arg0: i32, %arg1: i32, %arg2: i32) -> (i32, i32) {
    %c0_i32 = arith.constant 0 : i32
    %c0_i32_0 = arith.constant 0 : i32
    return %c0_i32, %arg1 : i32, i32
  }
  func.func @transform_3(%arg0: i32, %arg1: i32, %arg2: i32) -> (i32, i32) {
    %c0_i32 = arith.constant 0 : i32
    %c0_i32_0 = arith.constant 0 : i32
    return %c0_i32, %arg1 : i32, i32
  }
  func.func @transform_4(%arg0: i32, %arg1: i32, %arg2: i32) -> (i32, i32) {
    %c0_i32 = arith.constant 0 : i32
    return %arg0, %arg1 : i32, i32
  }
}

module attributes {stable_mosaic.version = 11 : i64} {
  func.func @_mm_bn_acc_kernel(%arg0: i32, %arg1: i32, %arg2: i32, %arg3: memref<32x128xbf16, #tpu.memory_space<vmem>>, %arg4: memref<128x128xbf16, #tpu.memory_space<vmem>>, %arg5: memref<1x128xf32, #tpu.memory_space<vmem>>, %arg6: memref<1x128xf32, #tpu.memory_space<vmem>>, %arg7: memref<32x128xbf16, #tpu.memory_space<vmem>>, %arg8: memref<32x128xf32, #tpu.memory_space<vmem>>) attributes {dimension_semantics = [#tpu.dimension_semantics<parallel>, #tpu.dimension_semantics<parallel>, #tpu.dimension_semantics<arbitrary>], iteration_bounds = array<i64: 1, 1, 9>, scalar_prefetch = 0 : i64, scratch_operands = 1 : i64, tpu.core_type = #tpu.core_type<tc>, window_params = [{transform_indices = @transform_0, window_bounds = array<i64: 32, 128>}, {transform_indices = @transform_1, window_bounds = array<i64: 128, 128>}, {transform_indices = @transform_2, window_bounds = array<i64: 1, 128>}, {transform_indices = @transform_3, window_bounds = array<i64: 1, 128>}, {transform_indices = @transform_4, window_bounds = array<i64: 32, 128>}]} {
    %c0_i32 = arith.constant 0 : i32
    %0 = arith.cmpi eq, %arg2, %c0_i32 : i32
    %1 = arith.extui %0 : i1 to i32
    %c0_i32_0 = arith.constant 0 : i32
    %2 = arith.cmpi ne, %1, %c0_i32_0 : i32
    scf.if %2 {
      %cst_9 = arith.constant 0.000000e+00 : f32
      %12 = vector.broadcast %cst_9 : f32 to vector<32x128xf32>
      %c0_10 = arith.constant 0 : index
      %c0_11 = arith.constant 0 : index
      %13 = vector.load %arg8[%c0_10, %c0_11] : memref<32x128xf32, #tpu.memory_space<vmem>>, vector<32x128xf32>
      tpu.vector_store %arg8[%c0_10, %c0_11], %12 {strides = array<i32>} : memref<32x128xf32, #tpu.memory_space<vmem>>, vector<32x128xf32>,
    } else {
    }
    %c0 = arith.constant 0 : index
    %c0_1 = arith.constant 0 : index
    %3 = vector.load %arg8[%c0, %c0_1] : memref<32x128xf32, #tpu.memory_space<vmem>>, vector<32x128xf32>
    %c0_2 = arith.constant 0 : index
    %c0_3 = arith.constant 0 : index
    %4 = vector.load %arg3[%c0_2, %c0_3] : memref<32x128xbf16, #tpu.memory_space<vmem>>, vector<32x128xbf16>
    %c0_4 = arith.constant 0 : index
    %c0_5 = arith.constant 0 : index
    %5 = vector.load %arg4[%c0_4, %c0_5] : memref<128x128xbf16, #tpu.memory_space<vmem>>, vector<128x128xbf16>
    %cst = arith.constant dense<0.000000e+00> : vector<32x128xf32>
    %6 = tpu.matmul %4, %5, %cst {dimension_numbers = #tpu.dot_dimension_numbers<[1], [0], [0], [1], [0, 0, 1, 1], [], []>} : vector<32x128xbf16>, vector<128x128xbf16>, vector<32x128xf32> -> vector<32x128xf32>
    %7 = arith.addf %3, %6 : vector<32x128xf32>
    %c0_6 = arith.constant 0 : index
    %c0_7 = arith.constant 0 : index
    %8 = vector.load %arg8[%c0_6, %c0_7] : memref<32x128xf32, #tpu.memory_space<vmem>>, vector<32x128xf32>
    tpu.vector_store %arg8[%c0_6, %c0_7], %7 {strides = array<i32>} : memref<32x128xf32, #tpu.memory_space<vmem>>, vector<32x128xf32>,
    %c8_i32 = arith.constant 8 : i32
    %9 = arith.cmpi eq, %arg2, %c8_i32 : i32
    %10 = arith.extui %9 : i1 to i32
    %c0_i32_8 = arith.constant 0 : i32
    %11 = arith.cmpi ne, %10, %c0_i32_8 : i32
    scf.if %11 {
      %c0_9 = arith.constant 0 : index
      %c0_10 = arith.constant 0 : index
      %12 = vector.load %arg8[%c0_9, %c0_10] : memref<32x128xf32, #tpu.memory_space<vmem>>, vector<32x128xf32>
      %c0_11 = arith.constant 0 : index
      %c0_12 = arith.constant 0 : index
      %13 = vector.load %arg5[%c0_11, %c0_12] : memref<1x128xf32, #tpu.memory_space<vmem>>, vector<1x128xf32>
      %14 = vector.broadcast %13 : vector<1x128xf32> to vector<32x128xf32>
      %15 = arith.mulf %12, %14 : vector<32x128xf32>
      %c0_13 = arith.constant 0 : index
      %c0_14 = arith.constant 0 : index
      %16 = vector.load %arg6[%c0_13, %c0_14] : memref<1x128xf32, #tpu.memory_space<vmem>>, vector<1x128xf32>
      %17 = vector.broadcast %16 : vector<1x128xf32> to vector<32x128xf32>
      %18 = arith.addf %15, %17 : vector<32x128xf32>
      %cst_15 = arith.constant 0.000000e+00 : f32
      %19 = vector.broadcast %cst_15 : f32 to vector<32x128xf32>
      %20 = arith.maximumf %18, %19 : vector<32x128xf32>
      %21 = arith.truncf %20 : vector<32x128xf32> to vector<32x128xbf16>
      %c0_16 = arith.constant 0 : index
      %c0_17 = arith.constant 0 : index
      %22 = vector.load %arg7[%c0_16, %c0_17] : memref<32x128xbf16, #tpu.memory_space<vmem>>, vector<32x128xbf16>
      tpu.vector_store %arg7[%c0_16, %c0_17], %21 {strides = array<i32>} : memref<32x128xbf16, #tpu.memory_space<vmem>>, vector<32x128xbf16>,
    } else {
    }
    return
  }
  func.func @transform_0(%arg0: i32, %arg1: i32, %arg2: i32) -> (i32, i32) {
    %c0_i32 = arith.constant 0 : i32
    return %arg0, %arg2 : i32, i32
  }
  func.func @transform_1(%arg0: i32, %arg1: i32, %arg2: i32) -> (i32, i32) {
    %c0_i32 = arith.constant 0 : i32
    return %arg2, %arg1 : i32, i32
  }
  func.func @transform_2(%arg0: i32, %arg1: i32, %arg2: i32) -> (i32, i32) {
    %c0_i32 = arith.constant 0 : i32
    %c0_i32_0 = arith.constant 0 : i32
    return %c0_i32, %arg1 : i32, i32
  }
  func.func @transform_3(%arg0: i32, %arg1: i32, %arg2: i32) -> (i32, i32) {
    %c0_i32 = arith.constant 0 : i32
    %c0_i32_0 = arith.constant 0 : i32
    return %c0_i32, %arg1 : i32, i32
  }
  func.func @transform_4(%arg0: i32, %arg1: i32, %arg2: i32) -> (i32, i32) {
    %c0_i32 = arith.constant 0 : i32
    return %arg0, %arg1 : i32, i32
  }
}

module attributes {stable_mosaic.version = 11 : i64} {
  func.func @_mm_bn_add_relu_acc_kernel(%arg0: i32, %arg1: i32, %arg2: i32, %arg3: memref<32x128xbf16, #tpu.memory_space<vmem>>, %arg4: memref<128x128xbf16, #tpu.memory_space<vmem>>, %arg5: memref<1x128xf32, #tpu.memory_space<vmem>>, %arg6: memref<1x128xf32, #tpu.memory_space<vmem>>, %arg7: memref<32x128xbf16, #tpu.memory_space<vmem>>, %arg8: memref<32x128xbf16, #tpu.memory_space<vmem>>, %arg9: memref<32x128xf32, #tpu.memory_space<vmem>>) attributes {dimension_semantics = [#tpu.dimension_semantics<parallel>, #tpu.dimension_semantics<parallel>, #tpu.dimension_semantics<arbitrary>], iteration_bounds = array<i64: 1, 1, 9>, scalar_prefetch = 0 : i64, scratch_operands = 1 : i64, tpu.core_type = #tpu.core_type<tc>, window_params = [{transform_indices = @transform_0, window_bounds = array<i64: 32, 128>}, {transform_indices = @transform_1, window_bounds = array<i64: 128, 128>}, {transform_indices = @transform_2, window_bounds = array<i64: 1, 128>}, {transform_indices = @transform_3, window_bounds = array<i64: 1, 128>}, {transform_indices = @transform_4, window_bounds = array<i64: 32, 128>}, {transform_indices = @transform_5, window_bounds = array<i64: 32, 128>}]} {
    %c0_i32 = arith.constant 0 : i32
    %0 = arith.cmpi eq, %arg2, %c0_i32 : i32
    %1 = arith.extui %0 : i1 to i32
    %c0_i32_0 = arith.constant 0 : i32
    %2 = arith.cmpi ne, %1, %c0_i32_0 : i32
    scf.if %2 {
      %cst_9 = arith.constant 0.000000e+00 : f32
      %12 = vector.broadcast %cst_9 : f32 to vector<32x128xf32>
      %c0_10 = arith.constant 0 : index
      %c0_11 = arith.constant 0 : index
      %13 = vector.load %arg9[%c0_10, %c0_11] : memref<32x128xf32, #tpu.memory_space<vmem>>, vector<32x128xf32>
      tpu.vector_store %arg9[%c0_10, %c0_11], %12 {strides = array<i32>} : memref<32x128xf32, #tpu.memory_space<vmem>>, vector<32x128xf32>,
    } else {
    }
    %c0 = arith.constant 0 : index
    %c0_1 = arith.constant 0 : index
    %3 = vector.load %arg9[%c0, %c0_1] : memref<32x128xf32, #tpu.memory_space<vmem>>, vector<32x128xf32>
    %c0_2 = arith.constant 0 : index
    %c0_3 = arith.constant 0 : index
    %4 = vector.load %arg3[%c0_2, %c0_3] : memref<32x128xbf16, #tpu.memory_space<vmem>>, vector<32x128xbf16>
    %c0_4 = arith.constant 0 : index
    %c0_5 = arith.constant 0 : index
    %5 = vector.load %arg4[%c0_4, %c0_5] : memref<128x128xbf16, #tpu.memory_space<vmem>>, vector<128x128xbf16>
    %cst = arith.constant dense<0.000000e+00> : vector<32x128xf32>
    %6 = tpu.matmul %4, %5, %cst {dimension_numbers = #tpu.dot_dimension_numbers<[1], [0], [0], [1], [0, 0, 1, 1], [], []>} : vector<32x128xbf16>, vector<128x128xbf16>, vector<32x128xf32> -> vector<32x128xf32>
    %7 = arith.addf %3, %6 : vector<32x128xf32>
    %c0_6 = arith.constant 0 : index
    %c0_7 = arith.constant 0 : index
    %8 = vector.load %arg9[%c0_6, %c0_7] : memref<32x128xf32, #tpu.memory_space<vmem>>, vector<32x128xf32>
    tpu.vector_store %arg9[%c0_6, %c0_7], %7 {strides = array<i32>} : memref<32x128xf32, #tpu.memory_space<vmem>>, vector<32x128xf32>,
    %c8_i32 = arith.constant 8 : i32
    %9 = arith.cmpi eq, %arg2, %c8_i32 : i32
    %10 = arith.extui %9 : i1 to i32
    %c0_i32_8 = arith.constant 0 : i32
    %11 = arith.cmpi ne, %10, %c0_i32_8 : i32
    scf.if %11 {
      %c0_9 = arith.constant 0 : index
      %c0_10 = arith.constant 0 : index
      %12 = vector.load %arg9[%c0_9, %c0_10] : memref<32x128xf32, #tpu.memory_space<vmem>>, vector<32x128xf32>
      %c0_11 = arith.constant 0 : index
      %c0_12 = arith.constant 0 : index
      %13 = vector.load %arg5[%c0_11, %c0_12] : memref<1x128xf32, #tpu.memory_space<vmem>>, vector<1x128xf32>
      %14 = vector.broadcast %13 : vector<1x128xf32> to vector<32x128xf32>
      %15 = arith.mulf %12, %14 : vector<32x128xf32>
      %c0_13 = arith.constant 0 : index
      %c0_14 = arith.constant 0 : index
      %16 = vector.load %arg6[%c0_13, %c0_14] : memref<1x128xf32, #tpu.memory_space<vmem>>, vector<1x128xf32>
      %17 = vector.broadcast %16 : vector<1x128xf32> to vector<32x128xf32>
      %18 = arith.addf %15, %17 : vector<32x128xf32>
      %c0_15 = arith.constant 0 : index
      %c0_16 = arith.constant 0 : index
      %19 = vector.load %arg7[%c0_15, %c0_16] : memref<32x128xbf16, #tpu.memory_space<vmem>>, vector<32x128xbf16>
      %20 = arith.extf %19 : vector<32x128xbf16> to vector<32x128xf32>
      %21 = arith.addf %18, %20 : vector<32x128xf32>
      %cst_17 = arith.constant 0.000000e+00 : f32
      %22 = vector.broadcast %cst_17 : f32 to vector<32x128xf32>
      %23 = arith.maximumf %21, %22 : vector<32x128xf32>
      %24 = arith.truncf %23 : vector<32x128xf32> to vector<32x128xbf16>
      %c0_18 = arith.constant 0 : index
      %c0_19 = arith.constant 0 : index
      %25 = vector.load %arg8[%c0_18, %c0_19] : memref<32x128xbf16, #tpu.memory_space<vmem>>, vector<32x128xbf16>
      tpu.vector_store %arg8[%c0_18, %c0_19], %24 {strides = array<i32>} : memref<32x128xbf16, #tpu.memory_space<vmem>>, vector<32x128xbf16>,
    } else {
    }
    return
  }
  func.func @transform_0(%arg0: i32, %arg1: i32, %arg2: i32) -> (i32, i32) {
    %c0_i32 = arith.constant 0 : i32
    return %arg0, %arg2 : i32, i32
  }
  func.func @transform_1(%arg0: i32, %arg1: i32, %arg2: i32) -> (i32, i32) {
    %c0_i32 = arith.constant 0 : i32
    return %arg2, %arg1 : i32, i32
  }
  func.func @transform_2(%arg0: i32, %arg1: i32, %arg2: i32) -> (i32, i32) {
    %c0_i32 = arith.constant 0 : i32
    %c0_i32_0 = arith.constant 0 : i32
    return %c0_i32, %arg1 : i32, i32
  }
  func.func @transform_3(%arg0: i32, %arg1: i32, %arg2: i32) -> (i32, i32) {
    %c0_i32 = arith.constant 0 : i32
    %c0_i32_0 = arith.constant 0 : i32
    return %c0_i32, %arg1 : i32, i32
  }
  func.func @transform_4(%arg0: i32, %arg1: i32, %arg2: i32) -> (i32, i32) {
    %c0_i32 = arith.constant 0 : i32
    return %arg0, %arg1 : i32, i32
  }
  func.func @transform_5(%arg0: i32, %arg1: i32, %arg2: i32) -> (i32, i32) {
    %c0_i32 = arith.constant 0 : i32
    return %arg0, %arg1 : i32, i32
  }
}

module attributes {stable_mosaic.version = 11 : i64} {
  func.func @_mm_bn_acc_kernel(%arg0: i32, %arg1: i32, %arg2: i32, %arg3: memref<8x128xbf16, #tpu.memory_space<vmem>>, %arg4: memref<128x256xbf16, #tpu.memory_space<vmem>>, %arg5: memref<1x256xf32, #tpu.memory_space<vmem>>, %arg6: memref<1x256xf32, #tpu.memory_space<vmem>>, %arg7: memref<8x256xbf16, #tpu.memory_space<vmem>>, %arg8: memref<8x256xf32, #tpu.memory_space<vmem>>) attributes {dimension_semantics = [#tpu.dimension_semantics<parallel>, #tpu.dimension_semantics<parallel>, #tpu.dimension_semantics<arbitrary>], iteration_bounds = array<i64: 1, 1, 9>, scalar_prefetch = 0 : i64, scratch_operands = 1 : i64, tpu.core_type = #tpu.core_type<tc>, window_params = [{transform_indices = @transform_0, window_bounds = array<i64: 8, 128>}, {transform_indices = @transform_1, window_bounds = array<i64: 128, 256>}, {transform_indices = @transform_2, window_bounds = array<i64: 1, 256>}, {transform_indices = @transform_3, window_bounds = array<i64: 1, 256>}, {transform_indices = @transform_4, window_bounds = array<i64: 8, 256>}]} {
    %c0_i32 = arith.constant 0 : i32
    %0 = arith.cmpi eq, %arg2, %c0_i32 : i32
    %1 = arith.extui %0 : i1 to i32
    %c0_i32_0 = arith.constant 0 : i32
    %2 = arith.cmpi ne, %1, %c0_i32_0 : i32
    scf.if %2 {
      %cst_9 = arith.constant 0.000000e+00 : f32
      %12 = vector.broadcast %cst_9 : f32 to vector<8x256xf32>
      %c0_10 = arith.constant 0 : index
      %c0_11 = arith.constant 0 : index
      %13 = vector.load %arg8[%c0_10, %c0_11] : memref<8x256xf32, #tpu.memory_space<vmem>>, vector<8x256xf32>
      tpu.vector_store %arg8[%c0_10, %c0_11], %12 {strides = array<i32>} : memref<8x256xf32, #tpu.memory_space<vmem>>, vector<8x256xf32>,
    } else {
    }
    %c0 = arith.constant 0 : index
    %c0_1 = arith.constant 0 : index
    %3 = vector.load %arg8[%c0, %c0_1] : memref<8x256xf32, #tpu.memory_space<vmem>>, vector<8x256xf32>
    %c0_2 = arith.constant 0 : index
    %c0_3 = arith.constant 0 : index
    %4 = vector.load %arg3[%c0_2, %c0_3] : memref<8x128xbf16, #tpu.memory_space<vmem>>, vector<8x128xbf16>
    %c0_4 = arith.constant 0 : index
    %c0_5 = arith.constant 0 : index
    %5 = vector.load %arg4[%c0_4, %c0_5] : memref<128x256xbf16, #tpu.memory_space<vmem>>, vector<128x256xbf16>
    %cst = arith.constant dense<0.000000e+00> : vector<8x256xf32>
    %6 = tpu.matmul %4, %5, %cst {dimension_numbers = #tpu.dot_dimension_numbers<[1], [0], [0], [1], [0, 0, 1, 1], [], []>} : vector<8x128xbf16>, vector<128x256xbf16>, vector<8x256xf32> -> vector<8x256xf32>
    %7 = arith.addf %3, %6 : vector<8x256xf32>
    %c0_6 = arith.constant 0 : index
    %c0_7 = arith.constant 0 : index
    %8 = vector.load %arg8[%c0_6, %c0_7] : memref<8x256xf32, #tpu.memory_space<vmem>>, vector<8x256xf32>
    tpu.vector_store %arg8[%c0_6, %c0_7], %7 {strides = array<i32>} : memref<8x256xf32, #tpu.memory_space<vmem>>, vector<8x256xf32>,
    %c8_i32 = arith.constant 8 : i32
    %9 = arith.cmpi eq, %arg2, %c8_i32 : i32
    %10 = arith.extui %9 : i1 to i32
    %c0_i32_8 = arith.constant 0 : i32
    %11 = arith.cmpi ne, %10, %c0_i32_8 : i32
    scf.if %11 {
      %c0_9 = arith.constant 0 : index
      %c0_10 = arith.constant 0 : index
      %12 = vector.load %arg8[%c0_9, %c0_10] : memref<8x256xf32, #tpu.memory_space<vmem>>, vector<8x256xf32>
      %c0_11 = arith.constant 0 : index
      %c0_12 = arith.constant 0 : index
      %13 = vector.load %arg5[%c0_11, %c0_12] : memref<1x256xf32, #tpu.memory_space<vmem>>, vector<1x256xf32>
      %14 = vector.broadcast %13 : vector<1x256xf32> to vector<8x256xf32>
      %15 = arith.mulf %12, %14 : vector<8x256xf32>
      %c0_13 = arith.constant 0 : index
      %c0_14 = arith.constant 0 : index
      %16 = vector.load %arg6[%c0_13, %c0_14] : memref<1x256xf32, #tpu.memory_space<vmem>>, vector<1x256xf32>
      %17 = vector.broadcast %16 : vector<1x256xf32> to vector<8x256xf32>
      %18 = arith.addf %15, %17 : vector<8x256xf32>
      %cst_15 = arith.constant 0.000000e+00 : f32
      %19 = vector.broadcast %cst_15 : f32 to vector<8x256xf32>
      %20 = arith.maximumf %18, %19 : vector<8x256xf32>
      %21 = arith.truncf %20 : vector<8x256xf32> to vector<8x256xbf16>
      %c0_16 = arith.constant 0 : index
      %c0_17 = arith.constant 0 : index
      %22 = vector.load %arg7[%c0_16, %c0_17] : memref<8x256xbf16, #tpu.memory_space<vmem>>, vector<8x256xbf16>
      tpu.vector_store %arg7[%c0_16, %c0_17], %21 {strides = array<i32>} : memref<8x256xbf16, #tpu.memory_space<vmem>>, vector<8x256xbf16>,
    } else {
    }
    return
  }
  func.func @transform_0(%arg0: i32, %arg1: i32, %arg2: i32) -> (i32, i32) {
    %c0_i32 = arith.constant 0 : i32
    return %arg0, %arg2 : i32, i32
  }
  func.func @transform_1(%arg0: i32, %arg1: i32, %arg2: i32) -> (i32, i32) {
    %c0_i32 = arith.constant 0 : i32
    return %arg2, %arg1 : i32, i32
  }
  func.func @transform_2(%arg0: i32, %arg1: i32, %arg2: i32) -> (i32, i32) {
    %c0_i32 = arith.constant 0 : i32
    %c0_i32_0 = arith.constant 0 : i32
    return %c0_i32, %arg1 : i32, i32
  }
  func.func @transform_3(%arg0: i32, %arg1: i32, %arg2: i32) -> (i32, i32) {
    %c0_i32 = arith.constant 0 : i32
    %c0_i32_0 = arith.constant 0 : i32
    return %c0_i32, %arg1 : i32, i32
  }
  func.func @transform_4(%arg0: i32, %arg1: i32, %arg2: i32) -> (i32, i32) {
    %c0_i32 = arith.constant 0 : i32
    return %arg0, %arg1 : i32, i32
  }
}

module attributes {stable_mosaic.version = 11 : i64} {
  func.func @_mm_bn_add_relu_acc_kernel(%arg0: i32, %arg1: i32, %arg2: i32, %arg3: memref<8x256xbf16, #tpu.memory_space<vmem>>, %arg4: memref<256x256xbf16, #tpu.memory_space<vmem>>, %arg5: memref<1x256xf32, #tpu.memory_space<vmem>>, %arg6: memref<1x256xf32, #tpu.memory_space<vmem>>, %arg7: memref<8x256xbf16, #tpu.memory_space<vmem>>, %arg8: memref<8x256xbf16, #tpu.memory_space<vmem>>, %arg9: memref<8x256xf32, #tpu.memory_space<vmem>>) attributes {dimension_semantics = [#tpu.dimension_semantics<parallel>, #tpu.dimension_semantics<parallel>, #tpu.dimension_semantics<arbitrary>], iteration_bounds = array<i64: 1, 1, 9>, scalar_prefetch = 0 : i64, scratch_operands = 1 : i64, tpu.core_type = #tpu.core_type<tc>, window_params = [{transform_indices = @transform_0, window_bounds = array<i64: 8, 256>}, {transform_indices = @transform_1, window_bounds = array<i64: 256, 256>}, {transform_indices = @transform_2, window_bounds = array<i64: 1, 256>}, {transform_indices = @transform_3, window_bounds = array<i64: 1, 256>}, {transform_indices = @transform_4, window_bounds = array<i64: 8, 256>}, {transform_indices = @transform_5, window_bounds = array<i64: 8, 256>}]} {
    %c0_i32 = arith.constant 0 : i32
    %0 = arith.cmpi eq, %arg2, %c0_i32 : i32
    %1 = arith.extui %0 : i1 to i32
    %c0_i32_0 = arith.constant 0 : i32
    %2 = arith.cmpi ne, %1, %c0_i32_0 : i32
    scf.if %2 {
      %cst_9 = arith.constant 0.000000e+00 : f32
      %12 = vector.broadcast %cst_9 : f32 to vector<8x256xf32>
      %c0_10 = arith.constant 0 : index
      %c0_11 = arith.constant 0 : index
      %13 = vector.load %arg9[%c0_10, %c0_11] : memref<8x256xf32, #tpu.memory_space<vmem>>, vector<8x256xf32>
      tpu.vector_store %arg9[%c0_10, %c0_11], %12 {strides = array<i32>} : memref<8x256xf32, #tpu.memory_space<vmem>>, vector<8x256xf32>,
    } else {
    }
    %c0 = arith.constant 0 : index
    %c0_1 = arith.constant 0 : index
    %3 = vector.load %arg9[%c0, %c0_1] : memref<8x256xf32, #tpu.memory_space<vmem>>, vector<8x256xf32>
    %c0_2 = arith.constant 0 : index
    %c0_3 = arith.constant 0 : index
    %4 = vector.load %arg3[%c0_2, %c0_3] : memref<8x256xbf16, #tpu.memory_space<vmem>>, vector<8x256xbf16>
    %c0_4 = arith.constant 0 : index
    %c0_5 = arith.constant 0 : index
    %5 = vector.load %arg4[%c0_4, %c0_5] : memref<256x256xbf16, #tpu.memory_space<vmem>>, vector<256x256xbf16>
    %cst = arith.constant dense<0.000000e+00> : vector<8x256xf32>
    %6 = tpu.matmul %4, %5, %cst {dimension_numbers = #tpu.dot_dimension_numbers<[1], [0], [0], [1], [0, 0, 1, 1], [], []>} : vector<8x256xbf16>, vector<256x256xbf16>, vector<8x256xf32> -> vector<8x256xf32>
    %7 = arith.addf %3, %6 : vector<8x256xf32>
    %c0_6 = arith.constant 0 : index
    %c0_7 = arith.constant 0 : index
    %8 = vector.load %arg9[%c0_6, %c0_7] : memref<8x256xf32, #tpu.memory_space<vmem>>, vector<8x256xf32>
    tpu.vector_store %arg9[%c0_6, %c0_7], %7 {strides = array<i32>} : memref<8x256xf32, #tpu.memory_space<vmem>>, vector<8x256xf32>,
    %c8_i32 = arith.constant 8 : i32
    %9 = arith.cmpi eq, %arg2, %c8_i32 : i32
    %10 = arith.extui %9 : i1 to i32
    %c0_i32_8 = arith.constant 0 : i32
    %11 = arith.cmpi ne, %10, %c0_i32_8 : i32
    scf.if %11 {
      %c0_9 = arith.constant 0 : index
      %c0_10 = arith.constant 0 : index
      %12 = vector.load %arg9[%c0_9, %c0_10] : memref<8x256xf32, #tpu.memory_space<vmem>>, vector<8x256xf32>
      %c0_11 = arith.constant 0 : index
      %c0_12 = arith.constant 0 : index
      %13 = vector.load %arg5[%c0_11, %c0_12] : memref<1x256xf32, #tpu.memory_space<vmem>>, vector<1x256xf32>
      %14 = vector.broadcast %13 : vector<1x256xf32> to vector<8x256xf32>
      %15 = arith.mulf %12, %14 : vector<8x256xf32>
      %c0_13 = arith.constant 0 : index
      %c0_14 = arith.constant 0 : index
      %16 = vector.load %arg6[%c0_13, %c0_14] : memref<1x256xf32, #tpu.memory_space<vmem>>, vector<1x256xf32>
      %17 = vector.broadcast %16 : vector<1x256xf32> to vector<8x256xf32>
      %18 = arith.addf %15, %17 : vector<8x256xf32>
      %c0_15 = arith.constant 0 : index
      %c0_16 = arith.constant 0 : index
      %19 = vector.load %arg7[%c0_15, %c0_16] : memref<8x256xbf16, #tpu.memory_space<vmem>>, vector<8x256xbf16>
      %20 = arith.extf %19 : vector<8x256xbf16> to vector<8x256xf32>
      %21 = arith.addf %18, %20 : vector<8x256xf32>
      %cst_17 = arith.constant 0.000000e+00 : f32
      %22 = vector.broadcast %cst_17 : f32 to vector<8x256xf32>
      %23 = arith.maximumf %21, %22 : vector<8x256xf32>
      %24 = arith.truncf %23 : vector<8x256xf32> to vector<8x256xbf16>
      %c0_18 = arith.constant 0 : index
      %c0_19 = arith.constant 0 : index
      %25 = vector.load %arg8[%c0_18, %c0_19] : memref<8x256xbf16, #tpu.memory_space<vmem>>, vector<8x256xbf16>
      tpu.vector_store %arg8[%c0_18, %c0_19], %24 {strides = array<i32>} : memref<8x256xbf16, #tpu.memory_space<vmem>>, vector<8x256xbf16>,
    } else {
    }
    return
  }
  func.func @transform_0(%arg0: i32, %arg1: i32, %arg2: i32) -> (i32, i32) {
    %c0_i32 = arith.constant 0 : i32
    return %arg0, %arg2 : i32, i32
  }
  func.func @transform_1(%arg0: i32, %arg1: i32, %arg2: i32) -> (i32, i32) {
    %c0_i32 = arith.constant 0 : i32
    return %arg2, %arg1 : i32, i32
  }
  func.func @transform_2(%arg0: i32, %arg1: i32, %arg2: i32) -> (i32, i32) {
    %c0_i32 = arith.constant 0 : i32
    %c0_i32_0 = arith.constant 0 : i32
    return %c0_i32, %arg1 : i32, i32
  }
  func.func @transform_3(%arg0: i32, %arg1: i32, %arg2: i32) -> (i32, i32) {
    %c0_i32 = arith.constant 0 : i32
    %c0_i32_0 = arith.constant 0 : i32
    return %c0_i32, %arg1 : i32, i32
  }
  func.func @transform_4(%arg0: i32, %arg1: i32, %arg2: i32) -> (i32, i32) {
    %c0_i32 = arith.constant 0 : i32
    return %arg0, %arg1 : i32, i32
  }
  func.func @transform_5(%arg0: i32, %arg1: i32, %arg2: i32) -> (i32, i32) {
    %c0_i32 = arith.constant 0 : i32
    return %arg0, %arg1 : i32, i32
  }
}

module attributes {stable_mosaic.version = 11 : i64} {
  func.func @_mm_bn_single_kernel(%arg0: i32, %arg1: i32, %arg2: memref<8x128xbf16, #tpu.memory_space<vmem>>, %arg3: memref<128x256xbf16, #tpu.memory_space<vmem>>, %arg4: memref<1x256xf32, #tpu.memory_space<vmem>>, %arg5: memref<1x256xf32, #tpu.memory_space<vmem>>, %arg6: memref<8x256xbf16, #tpu.memory_space<vmem>>) attributes {dimension_semantics = [#tpu.dimension_semantics<parallel>, #tpu.dimension_semantics<parallel>], iteration_bounds = array<i64: 1, 1>, scalar_prefetch = 0 : i64, scratch_operands = 0 : i64, tpu.core_type = #tpu.core_type<tc>, window_params = [{transform_indices = @transform_0, window_bounds = array<i64: 8, 128>}, {transform_indices = @transform_1, window_bounds = array<i64: 128, 256>}, {transform_indices = @transform_2, window_bounds = array<i64: 1, 256>}, {transform_indices = @transform_3, window_bounds = array<i64: 1, 256>}, {transform_indices = @transform_4, window_bounds = array<i64: 8, 256>}]} {
    %c0 = arith.constant 0 : index
    %c0_0 = arith.constant 0 : index
    %0 = vector.load %arg2[%c0, %c0_0] : memref<8x128xbf16, #tpu.memory_space<vmem>>, vector<8x128xbf16>
    %c0_1 = arith.constant 0 : index
    %c0_2 = arith.constant 0 : index
    %1 = vector.load %arg3[%c0_1, %c0_2] : memref<128x256xbf16, #tpu.memory_space<vmem>>, vector<128x256xbf16>
    %cst = arith.constant dense<0.000000e+00> : vector<8x256xf32>
    %2 = tpu.matmul %0, %1, %cst {dimension_numbers = #tpu.dot_dimension_numbers<[1], [0], [0], [1], [0, 0, 1, 1], [], []>} : vector<8x128xbf16>, vector<128x256xbf16>, vector<8x256xf32> -> vector<8x256xf32>
    %c0_3 = arith.constant 0 : index
    %c0_4 = arith.constant 0 : index
    %3 = vector.load %arg4[%c0_3, %c0_4] : memref<1x256xf32, #tpu.memory_space<vmem>>, vector<1x256xf32>
    %4 = vector.broadcast %3 : vector<1x256xf32> to vector<8x256xf32>
    %5 = arith.mulf %2, %4 : vector<8x256xf32>
    %c0_5 = arith.constant 0 : index
    %c0_6 = arith.constant 0 : index
    %6 = vector.load %arg5[%c0_5, %c0_6] : memref<1x256xf32, #tpu.memory_space<vmem>>, vector<1x256xf32>
    %7 = vector.broadcast %6 : vector<1x256xf32> to vector<8x256xf32>
    %8 = arith.addf %5, %7 : vector<8x256xf32>
    %9 = arith.truncf %8 : vector<8x256xf32> to vector<8x256xbf16>
    %c0_7 = arith.constant 0 : index
    %c0_8 = arith.constant 0 : index
    %10 = vector.load %arg6[%c0_7, %c0_8] : memref<8x256xbf16, #tpu.memory_space<vmem>>, vector<8x256xbf16>
    tpu.vector_store %arg6[%c0_7, %c0_8], %9 {strides = array<i32>} : memref<8x256xbf16, #tpu.memory_space<vmem>>, vector<8x256xbf16>,
    return
  }
  func.func @transform_0(%arg0: i32, %arg1: i32) -> (i32, i32) {
    %c0_i32 = arith.constant 0 : i32
    %c0_i32_0 = arith.constant 0 : i32
    return %arg0, %c0_i32 : i32, i32
  }
  func.func @transform_1(%arg0: i32, %arg1: i32) -> (i32, i32) {
    %c0_i32 = arith.constant 0 : i32
    %c0_i32_0 = arith.constant 0 : i32
    return %c0_i32, %arg1 : i32, i32
  }
  func.func @transform_2(%arg0: i32, %arg1: i32) -> (i32, i32) {
    %c0_i32 = arith.constant 0 : i32
    %c0_i32_0 = arith.constant 0 : i32
    return %c0_i32, %arg1 : i32, i32
  }
  func.func @transform_3(%arg0: i32, %arg1: i32) -> (i32, i32) {
    %c0_i32 = arith.constant 0 : i32
    %c0_i32_0 = arith.constant 0 : i32
    return %c0_i32, %arg1 : i32, i32
  }
  func.func @transform_4(%arg0: i32, %arg1: i32) -> (i32, i32) {
    %c0_i32 = arith.constant 0 : i32
    return %arg0, %arg1 : i32, i32
  }
}

module attributes {stable_mosaic.version = 11 : i64} {
  func.func @_mm_bn_acc_kernel(%arg0: i32, %arg1: i32, %arg2: i32, %arg3: memref<8x256xbf16, #tpu.memory_space<vmem>>, %arg4: memref<256x256xbf16, #tpu.memory_space<vmem>>, %arg5: memref<1x256xf32, #tpu.memory_space<vmem>>, %arg6: memref<1x256xf32, #tpu.memory_space<vmem>>, %arg7: memref<8x256xbf16, #tpu.memory_space<vmem>>, %arg8: memref<8x256xf32, #tpu.memory_space<vmem>>) attributes {dimension_semantics = [#tpu.dimension_semantics<parallel>, #tpu.dimension_semantics<parallel>, #tpu.dimension_semantics<arbitrary>], iteration_bounds = array<i64: 1, 1, 9>, scalar_prefetch = 0 : i64, scratch_operands = 1 : i64, tpu.core_type = #tpu.core_type<tc>, window_params = [{transform_indices = @transform_0, window_bounds = array<i64: 8, 256>}, {transform_indices = @transform_1, window_bounds = array<i64: 256, 256>}, {transform_indices = @transform_2, window_bounds = array<i64: 1, 256>}, {transform_indices = @transform_3, window_bounds = array<i64: 1, 256>}, {transform_indices = @transform_4, window_bounds = array<i64: 8, 256>}]} {
    %c0_i32 = arith.constant 0 : i32
    %0 = arith.cmpi eq, %arg2, %c0_i32 : i32
    %1 = arith.extui %0 : i1 to i32
    %c0_i32_0 = arith.constant 0 : i32
    %2 = arith.cmpi ne, %1, %c0_i32_0 : i32
    scf.if %2 {
      %cst_9 = arith.constant 0.000000e+00 : f32
      %12 = vector.broadcast %cst_9 : f32 to vector<8x256xf32>
      %c0_10 = arith.constant 0 : index
      %c0_11 = arith.constant 0 : index
      %13 = vector.load %arg8[%c0_10, %c0_11] : memref<8x256xf32, #tpu.memory_space<vmem>>, vector<8x256xf32>
      tpu.vector_store %arg8[%c0_10, %c0_11], %12 {strides = array<i32>} : memref<8x256xf32, #tpu.memory_space<vmem>>, vector<8x256xf32>,
    } else {
    }
    %c0 = arith.constant 0 : index
    %c0_1 = arith.constant 0 : index
    %3 = vector.load %arg8[%c0, %c0_1] : memref<8x256xf32, #tpu.memory_space<vmem>>, vector<8x256xf32>
    %c0_2 = arith.constant 0 : index
    %c0_3 = arith.constant 0 : index
    %4 = vector.load %arg3[%c0_2, %c0_3] : memref<8x256xbf16, #tpu.memory_space<vmem>>, vector<8x256xbf16>
    %c0_4 = arith.constant 0 : index
    %c0_5 = arith.constant 0 : index
    %5 = vector.load %arg4[%c0_4, %c0_5] : memref<256x256xbf16, #tpu.memory_space<vmem>>, vector<256x256xbf16>
    %cst = arith.constant dense<0.000000e+00> : vector<8x256xf32>
    %6 = tpu.matmul %4, %5, %cst {dimension_numbers = #tpu.dot_dimension_numbers<[1], [0], [0], [1], [0, 0, 1, 1], [], []>} : vector<8x256xbf16>, vector<256x256xbf16>, vector<8x256xf32> -> vector<8x256xf32>
    %7 = arith.addf %3, %6 : vector<8x256xf32>
    %c0_6 = arith.constant 0 : index
    %c0_7 = arith.constant 0 : index
    %8 = vector.load %arg8[%c0_6, %c0_7] : memref<8x256xf32, #tpu.memory_space<vmem>>, vector<8x256xf32>
    tpu.vector_store %arg8[%c0_6, %c0_7], %7 {strides = array<i32>} : memref<8x256xf32, #tpu.memory_space<vmem>>, vector<8x256xf32>,
    %c8_i32 = arith.constant 8 : i32
    %9 = arith.cmpi eq, %arg2, %c8_i32 : i32
    %10 = arith.extui %9 : i1 to i32
    %c0_i32_8 = arith.constant 0 : i32
    %11 = arith.cmpi ne, %10, %c0_i32_8 : i32
    scf.if %11 {
      %c0_9 = arith.constant 0 : index
      %c0_10 = arith.constant 0 : index
      %12 = vector.load %arg8[%c0_9, %c0_10] : memref<8x256xf32, #tpu.memory_space<vmem>>, vector<8x256xf32>
      %c0_11 = arith.constant 0 : index
      %c0_12 = arith.constant 0 : index
      %13 = vector.load %arg5[%c0_11, %c0_12] : memref<1x256xf32, #tpu.memory_space<vmem>>, vector<1x256xf32>
      %14 = vector.broadcast %13 : vector<1x256xf32> to vector<8x256xf32>
      %15 = arith.mulf %12, %14 : vector<8x256xf32>
      %c0_13 = arith.constant 0 : index
      %c0_14 = arith.constant 0 : index
      %16 = vector.load %arg6[%c0_13, %c0_14] : memref<1x256xf32, #tpu.memory_space<vmem>>, vector<1x256xf32>
      %17 = vector.broadcast %16 : vector<1x256xf32> to vector<8x256xf32>
      %18 = arith.addf %15, %17 : vector<8x256xf32>
      %cst_15 = arith.constant 0.000000e+00 : f32
      %19 = vector.broadcast %cst_15 : f32 to vector<8x256xf32>
      %20 = arith.maximumf %18, %19 : vector<8x256xf32>
      %21 = arith.truncf %20 : vector<8x256xf32> to vector<8x256xbf16>
      %c0_16 = arith.constant 0 : index
      %c0_17 = arith.constant 0 : index
      %22 = vector.load %arg7[%c0_16, %c0_17] : memref<8x256xbf16, #tpu.memory_space<vmem>>, vector<8x256xbf16>
      tpu.vector_store %arg7[%c0_16, %c0_17], %21 {strides = array<i32>} : memref<8x256xbf16, #tpu.memory_space<vmem>>, vector<8x256xbf16>,
    } else {
    }
    return
  }
  func.func @transform_0(%arg0: i32, %arg1: i32, %arg2: i32) -> (i32, i32) {
    %c0_i32 = arith.constant 0 : i32
    return %arg0, %arg2 : i32, i32
  }
  func.func @transform_1(%arg0: i32, %arg1: i32, %arg2: i32) -> (i32, i32) {
    %c0_i32 = arith.constant 0 : i32
    return %arg2, %arg1 : i32, i32
  }
  func.func @transform_2(%arg0: i32, %arg1: i32, %arg2: i32) -> (i32, i32) {
    %c0_i32 = arith.constant 0 : i32
    %c0_i32_0 = arith.constant 0 : i32
    return %c0_i32, %arg1 : i32, i32
  }
  func.func @transform_3(%arg0: i32, %arg1: i32, %arg2: i32) -> (i32, i32) {
    %c0_i32 = arith.constant 0 : i32
    %c0_i32_0 = arith.constant 0 : i32
    return %c0_i32, %arg1 : i32, i32
  }
  func.func @transform_4(%arg0: i32, %arg1: i32, %arg2: i32) -> (i32, i32) {
    %c0_i32 = arith.constant 0 : i32
    return %arg0, %arg1 : i32, i32
  }
}

module attributes {stable_mosaic.version = 11 : i64} {
  func.func @_mm_bn_acc_kernel(%arg0: i32, %arg1: i32, %arg2: i32, %arg3: memref<8x256xbf16, #tpu.memory_space<vmem>>, %arg4: memref<256x256xbf16, #tpu.memory_space<vmem>>, %arg5: memref<1x256xf32, #tpu.memory_space<vmem>>, %arg6: memref<1x256xf32, #tpu.memory_space<vmem>>, %arg7: memref<8x256xbf16, #tpu.memory_space<vmem>>, %arg8: memref<8x256xf32, #tpu.memory_space<vmem>>) attributes {dimension_semantics = [#tpu.dimension_semantics<parallel>, #tpu.dimension_semantics<parallel>, #tpu.dimension_semantics<arbitrary>], iteration_bounds = array<i64: 1, 2, 9>, scalar_prefetch = 0 : i64, scratch_operands = 1 : i64, tpu.core_type = #tpu.core_type<tc>, window_params = [{transform_indices = @transform_0, window_bounds = array<i64: 8, 256>}, {transform_indices = @transform_1, window_bounds = array<i64: 256, 256>}, {transform_indices = @transform_2, window_bounds = array<i64: 1, 256>}, {transform_indices = @transform_3, window_bounds = array<i64: 1, 256>}, {transform_indices = @transform_4, window_bounds = array<i64: 8, 256>}]} {
    %c0_i32 = arith.constant 0 : i32
    %0 = arith.cmpi eq, %arg2, %c0_i32 : i32
    %1 = arith.extui %0 : i1 to i32
    %c0_i32_0 = arith.constant 0 : i32
    %2 = arith.cmpi ne, %1, %c0_i32_0 : i32
    scf.if %2 {
      %cst_9 = arith.constant 0.000000e+00 : f32
      %12 = vector.broadcast %cst_9 : f32 to vector<8x256xf32>
      %c0_10 = arith.constant 0 : index
      %c0_11 = arith.constant 0 : index
      %13 = vector.load %arg8[%c0_10, %c0_11] : memref<8x256xf32, #tpu.memory_space<vmem>>, vector<8x256xf32>
      tpu.vector_store %arg8[%c0_10, %c0_11], %12 {strides = array<i32>} : memref<8x256xf32, #tpu.memory_space<vmem>>, vector<8x256xf32>,
    } else {
    }
    %c0 = arith.constant 0 : index
    %c0_1 = arith.constant 0 : index
    %3 = vector.load %arg8[%c0, %c0_1] : memref<8x256xf32, #tpu.memory_space<vmem>>, vector<8x256xf32>
    %c0_2 = arith.constant 0 : index
    %c0_3 = arith.constant 0 : index
    %4 = vector.load %arg3[%c0_2, %c0_3] : memref<8x256xbf16, #tpu.memory_space<vmem>>, vector<8x256xbf16>
    %c0_4 = arith.constant 0 : index
    %c0_5 = arith.constant 0 : index
    %5 = vector.load %arg4[%c0_4, %c0_5] : memref<256x256xbf16, #tpu.memory_space<vmem>>, vector<256x256xbf16>
    %cst = arith.constant dense<0.000000e+00> : vector<8x256xf32>
    %6 = tpu.matmul %4, %5, %cst {dimension_numbers = #tpu.dot_dimension_numbers<[1], [0], [0], [1], [0, 0, 1, 1], [], []>} : vector<8x256xbf16>, vector<256x256xbf16>, vector<8x256xf32> -> vector<8x256xf32>
    %7 = arith.addf %3, %6 : vector<8x256xf32>
    %c0_6 = arith.constant 0 : index
    %c0_7 = arith.constant 0 : index
    %8 = vector.load %arg8[%c0_6, %c0_7] : memref<8x256xf32, #tpu.memory_space<vmem>>, vector<8x256xf32>
    tpu.vector_store %arg8[%c0_6, %c0_7], %7 {strides = array<i32>} : memref<8x256xf32, #tpu.memory_space<vmem>>, vector<8x256xf32>,
    %c8_i32 = arith.constant 8 : i32
    %9 = arith.cmpi eq, %arg2, %c8_i32 : i32
    %10 = arith.extui %9 : i1 to i32
    %c0_i32_8 = arith.constant 0 : i32
    %11 = arith.cmpi ne, %10, %c0_i32_8 : i32
    scf.if %11 {
      %c0_9 = arith.constant 0 : index
      %c0_10 = arith.constant 0 : index
      %12 = vector.load %arg8[%c0_9, %c0_10] : memref<8x256xf32, #tpu.memory_space<vmem>>, vector<8x256xf32>
      %c0_11 = arith.constant 0 : index
      %c0_12 = arith.constant 0 : index
      %13 = vector.load %arg5[%c0_11, %c0_12] : memref<1x256xf32, #tpu.memory_space<vmem>>, vector<1x256xf32>
      %14 = vector.broadcast %13 : vector<1x256xf32> to vector<8x256xf32>
      %15 = arith.mulf %12, %14 : vector<8x256xf32>
      %c0_13 = arith.constant 0 : index
      %c0_14 = arith.constant 0 : index
      %16 = vector.load %arg6[%c0_13, %c0_14] : memref<1x256xf32, #tpu.memory_space<vmem>>, vector<1x256xf32>
      %17 = vector.broadcast %16 : vector<1x256xf32> to vector<8x256xf32>
      %18 = arith.addf %15, %17 : vector<8x256xf32>
      %cst_15 = arith.constant 0.000000e+00 : f32
      %19 = vector.broadcast %cst_15 : f32 to vector<8x256xf32>
      %20 = arith.maximumf %18, %19 : vector<8x256xf32>
      %21 = arith.truncf %20 : vector<8x256xf32> to vector<8x256xbf16>
      %c0_16 = arith.constant 0 : index
      %c0_17 = arith.constant 0 : index
      %22 = vector.load %arg7[%c0_16, %c0_17] : memref<8x256xbf16, #tpu.memory_space<vmem>>, vector<8x256xbf16>
      tpu.vector_store %arg7[%c0_16, %c0_17], %21 {strides = array<i32>} : memref<8x256xbf16, #tpu.memory_space<vmem>>, vector<8x256xbf16>,
    } else {
    }
    return
  }
  func.func @transform_0(%arg0: i32, %arg1: i32, %arg2: i32) -> (i32, i32) {
    %c0_i32 = arith.constant 0 : i32
    return %arg0, %arg2 : i32, i32
  }
  func.func @transform_1(%arg0: i32, %arg1: i32, %arg2: i32) -> (i32, i32) {
    %c0_i32 = arith.constant 0 : i32
    return %arg2, %arg1 : i32, i32
  }
  func.func @transform_2(%arg0: i32, %arg1: i32, %arg2: i32) -> (i32, i32) {
    %c0_i32 = arith.constant 0 : i32
    %c0_i32_0 = arith.constant 0 : i32
    return %c0_i32, %arg1 : i32, i32
  }
  func.func @transform_3(%arg0: i32, %arg1: i32, %arg2: i32) -> (i32, i32) {
    %c0_i32 = arith.constant 0 : i32
    %c0_i32_0 = arith.constant 0 : i32
    return %c0_i32, %arg1 : i32, i32
  }
  func.func @transform_4(%arg0: i32, %arg1: i32, %arg2: i32) -> (i32, i32) {
    %c0_i32 = arith.constant 0 : i32
    return %arg0, %arg1 : i32, i32
  }
}

module attributes {stable_mosaic.version = 11 : i64} {
  func.func @_mm_bn_single_kernel(%arg0: i32, %arg1: i32, %arg2: memref<8x256xbf16, #tpu.memory_space<vmem>>, %arg3: memref<256x256xbf16, #tpu.memory_space<vmem>>, %arg4: memref<1x256xf32, #tpu.memory_space<vmem>>, %arg5: memref<1x256xf32, #tpu.memory_space<vmem>>, %arg6: memref<8x256xbf16, #tpu.memory_space<vmem>>) attributes {dimension_semantics = [#tpu.dimension_semantics<parallel>, #tpu.dimension_semantics<parallel>], iteration_bounds = array<i64: 1, 2>, scalar_prefetch = 0 : i64, scratch_operands = 0 : i64, tpu.core_type = #tpu.core_type<tc>, window_params = [{transform_indices = @transform_0, window_bounds = array<i64: 8, 256>}, {transform_indices = @transform_1, window_bounds = array<i64: 256, 256>}, {transform_indices = @transform_2, window_bounds = array<i64: 1, 256>}, {transform_indices = @transform_3, window_bounds = array<i64: 1, 256>}, {transform_indices = @transform_4, window_bounds = array<i64: 8, 256>}]} {
    %c0 = arith.constant 0 : index
    %c0_0 = arith.constant 0 : index
    %0 = vector.load %arg2[%c0, %c0_0] : memref<8x256xbf16, #tpu.memory_space<vmem>>, vector<8x256xbf16>
    %c0_1 = arith.constant 0 : index
    %c0_2 = arith.constant 0 : index
    %1 = vector.load %arg3[%c0_1, %c0_2] : memref<256x256xbf16, #tpu.memory_space<vmem>>, vector<256x256xbf16>
    %cst = arith.constant dense<0.000000e+00> : vector<8x256xf32>
    %2 = tpu.matmul %0, %1, %cst {dimension_numbers = #tpu.dot_dimension_numbers<[1], [0], [0], [1], [0, 0, 1, 1], [], []>} : vector<8x256xbf16>, vector<256x256xbf16>, vector<8x256xf32> -> vector<8x256xf32>
    %c0_3 = arith.constant 0 : index
    %c0_4 = arith.constant 0 : index
    %3 = vector.load %arg4[%c0_3, %c0_4] : memref<1x256xf32, #tpu.memory_space<vmem>>, vector<1x256xf32>
    %4 = vector.broadcast %3 : vector<1x256xf32> to vector<8x256xf32>
    %5 = arith.mulf %2, %4 : vector<8x256xf32>
    %c0_5 = arith.constant 0 : index
    %c0_6 = arith.constant 0 : index
    %6 = vector.load %arg5[%c0_5, %c0_6] : memref<1x256xf32, #tpu.memory_space<vmem>>, vector<1x256xf32>
    %7 = vector.broadcast %6 : vector<1x256xf32> to vector<8x256xf32>
    %8 = arith.addf %5, %7 : vector<8x256xf32>
    %9 = arith.truncf %8 : vector<8x256xf32> to vector<8x256xbf16>
    %c0_7 = arith.constant 0 : index
    %c0_8 = arith.constant 0 : index
    %10 = vector.load %arg6[%c0_7, %c0_8] : memref<8x256xbf16, #tpu.memory_space<vmem>>, vector<8x256xbf16>
    tpu.vector_store %arg6[%c0_7, %c0_8], %9 {strides = array<i32>} : memref<8x256xbf16, #tpu.memory_space<vmem>>, vector<8x256xbf16>,
    return
  }
  func.func @transform_0(%arg0: i32, %arg1: i32) -> (i32, i32) {
    %c0_i32 = arith.constant 0 : i32
    %c0_i32_0 = arith.constant 0 : i32
    return %arg0, %c0_i32 : i32, i32
  }
  func.func @transform_1(%arg0: i32, %arg1: i32) -> (i32, i32) {
    %c0_i32 = arith.constant 0 : i32
    %c0_i32_0 = arith.constant 0 : i32
    return %c0_i32, %arg1 : i32, i32
  }
  func.func @transform_2(%arg0: i32, %arg1: i32) -> (i32, i32) {
    %c0_i32 = arith.constant 0 : i32
    %c0_i32_0 = arith.constant 0 : i32
    return %c0_i32, %arg1 : i32, i32
  }
  func.func @transform_3(%arg0: i32, %arg1: i32) -> (i32, i32) {
    %c0_i32 = arith.constant 0 : i32
    %c0_i32_0 = arith.constant 0 : i32
    return %c0_i32, %arg1 : i32, i32
  }
  func.func @transform_4(%arg0: i32, %arg1: i32) -> (i32, i32) {
    %c0_i32 = arith.constant 0 : i32
    return %arg0, %arg1 : i32, i32
  }
}

module attributes {stable_mosaic.version = 11 : i64} {
  func.func @_mm_bn_add_relu_acc_kernel(%arg0: i32, %arg1: i32, %arg2: i32, %arg3: memref<8x512xbf16, #tpu.memory_space<vmem>>, %arg4: memref<512x256xbf16, #tpu.memory_space<vmem>>, %arg5: memref<1x256xf32, #tpu.memory_space<vmem>>, %arg6: memref<1x256xf32, #tpu.memory_space<vmem>>, %arg7: memref<8x256xbf16, #tpu.memory_space<vmem>>, %arg8: memref<8x256xbf16, #tpu.memory_space<vmem>>, %arg9: memref<8x256xf32, #tpu.memory_space<vmem>>) attributes {dimension_semantics = [#tpu.dimension_semantics<parallel>, #tpu.dimension_semantics<parallel>, #tpu.dimension_semantics<arbitrary>], iteration_bounds = array<i64: 1, 2, 9>, scalar_prefetch = 0 : i64, scratch_operands = 1 : i64, tpu.core_type = #tpu.core_type<tc>, window_params = [{transform_indices = @transform_0, window_bounds = array<i64: 8, 512>}, {transform_indices = @transform_1, window_bounds = array<i64: 512, 256>}, {transform_indices = @transform_2, window_bounds = array<i64: 1, 256>}, {transform_indices = @transform_3, window_bounds = array<i64: 1, 256>}, {transform_indices = @transform_4, window_bounds = array<i64: 8, 256>}, {transform_indices = @transform_5, window_bounds = array<i64: 8, 256>}]} {
    %c0_i32 = arith.constant 0 : i32
    %0 = arith.cmpi eq, %arg2, %c0_i32 : i32
    %1 = arith.extui %0 : i1 to i32
    %c0_i32_0 = arith.constant 0 : i32
    %2 = arith.cmpi ne, %1, %c0_i32_0 : i32
    scf.if %2 {
      %cst_9 = arith.constant 0.000000e+00 : f32
      %12 = vector.broadcast %cst_9 : f32 to vector<8x256xf32>
      %c0_10 = arith.constant 0 : index
      %c0_11 = arith.constant 0 : index
      %13 = vector.load %arg9[%c0_10, %c0_11] : memref<8x256xf32, #tpu.memory_space<vmem>>, vector<8x256xf32>
      tpu.vector_store %arg9[%c0_10, %c0_11], %12 {strides = array<i32>} : memref<8x256xf32, #tpu.memory_space<vmem>>, vector<8x256xf32>,
    } else {
    }
    %c0 = arith.constant 0 : index
    %c0_1 = arith.constant 0 : index
    %3 = vector.load %arg9[%c0, %c0_1] : memref<8x256xf32, #tpu.memory_space<vmem>>, vector<8x256xf32>
    %c0_2 = arith.constant 0 : index
    %c0_3 = arith.constant 0 : index
    %4 = vector.load %arg3[%c0_2, %c0_3] : memref<8x512xbf16, #tpu.memory_space<vmem>>, vector<8x512xbf16>
    %c0_4 = arith.constant 0 : index
    %c0_5 = arith.constant 0 : index
    %5 = vector.load %arg4[%c0_4, %c0_5] : memref<512x256xbf16, #tpu.memory_space<vmem>>, vector<512x256xbf16>
    %cst = arith.constant dense<0.000000e+00> : vector<8x256xf32>
    %6 = tpu.matmul %4, %5, %cst {dimension_numbers = #tpu.dot_dimension_numbers<[1], [0], [0], [1], [0, 0, 1, 1], [], []>} : vector<8x512xbf16>, vector<512x256xbf16>, vector<8x256xf32> -> vector<8x256xf32>
    %7 = arith.addf %3, %6 : vector<8x256xf32>
    %c0_6 = arith.constant 0 : index
    %c0_7 = arith.constant 0 : index
    %8 = vector.load %arg9[%c0_6, %c0_7] : memref<8x256xf32, #tpu.memory_space<vmem>>, vector<8x256xf32>
    tpu.vector_store %arg9[%c0_6, %c0_7], %7 {strides = array<i32>} : memref<8x256xf32, #tpu.memory_space<vmem>>, vector<8x256xf32>,
    %c8_i32 = arith.constant 8 : i32
    %9 = arith.cmpi eq, %arg2, %c8_i32 : i32
    %10 = arith.extui %9 : i1 to i32
    %c0_i32_8 = arith.constant 0 : i32
    %11 = arith.cmpi ne, %10, %c0_i32_8 : i32
    scf.if %11 {
      %c0_9 = arith.constant 0 : index
      %c0_10 = arith.constant 0 : index
      %12 = vector.load %arg9[%c0_9, %c0_10] : memref<8x256xf32, #tpu.memory_space<vmem>>, vector<8x256xf32>
      %c0_11 = arith.constant 0 : index
      %c0_12 = arith.constant 0 : index
      %13 = vector.load %arg5[%c0_11, %c0_12] : memref<1x256xf32, #tpu.memory_space<vmem>>, vector<1x256xf32>
      %14 = vector.broadcast %13 : vector<1x256xf32> to vector<8x256xf32>
      %15 = arith.mulf %12, %14 : vector<8x256xf32>
      %c0_13 = arith.constant 0 : index
      %c0_14 = arith.constant 0 : index
      %16 = vector.load %arg6[%c0_13, %c0_14] : memref<1x256xf32, #tpu.memory_space<vmem>>, vector<1x256xf32>
      %17 = vector.broadcast %16 : vector<1x256xf32> to vector<8x256xf32>
      %18 = arith.addf %15, %17 : vector<8x256xf32>
      %c0_15 = arith.constant 0 : index
      %c0_16 = arith.constant 0 : index
      %19 = vector.load %arg7[%c0_15, %c0_16] : memref<8x256xbf16, #tpu.memory_space<vmem>>, vector<8x256xbf16>
      %20 = arith.extf %19 : vector<8x256xbf16> to vector<8x256xf32>
      %21 = arith.addf %18, %20 : vector<8x256xf32>
      %cst_17 = arith.constant 0.000000e+00 : f32
      %22 = vector.broadcast %cst_17 : f32 to vector<8x256xf32>
      %23 = arith.maximumf %21, %22 : vector<8x256xf32>
      %24 = arith.truncf %23 : vector<8x256xf32> to vector<8x256xbf16>
      %c0_18 = arith.constant 0 : index
      %c0_19 = arith.constant 0 : index
      %25 = vector.load %arg8[%c0_18, %c0_19] : memref<8x256xbf16, #tpu.memory_space<vmem>>, vector<8x256xbf16>
      tpu.vector_store %arg8[%c0_18, %c0_19], %24 {strides = array<i32>} : memref<8x256xbf16, #tpu.memory_space<vmem>>, vector<8x256xbf16>,
    } else {
    }
    return
  }
  func.func @transform_0(%arg0: i32, %arg1: i32, %arg2: i32) -> (i32, i32) {
    %c0_i32 = arith.constant 0 : i32
    return %arg0, %arg2 : i32, i32
  }
  func.func @transform_1(%arg0: i32, %arg1: i32, %arg2: i32) -> (i32, i32) {
    %c0_i32 = arith.constant 0 : i32
    return %arg2, %arg1 : i32, i32
  }
  func.func @transform_2(%arg0: i32, %arg1: i32, %arg2: i32) -> (i32, i32) {
    %c0_i32 = arith.constant 0 : i32
    %c0_i32_0 = arith.constant 0 : i32
    return %c0_i32, %arg1 : i32, i32
  }
  func.func @transform_3(%arg0: i32, %arg1: i32, %arg2: i32) -> (i32, i32) {
    %c0_i32 = arith.constant 0 : i32
    %c0_i32_0 = arith.constant 0 : i32
    return %c0_i32, %arg1 : i32, i32
  }
  func.func @transform_4(%arg0: i32, %arg1: i32, %arg2: i32) -> (i32, i32) {
    %c0_i32 = arith.constant 0 : i32
    return %arg0, %arg1 : i32, i32
  }
  func.func @transform_5(%arg0: i32, %arg1: i32, %arg2: i32) -> (i32, i32) {
    %c0_i32 = arith.constant 0 : i32
    return %arg0, %arg1 : i32, i32
  }
}

module attributes {stable_mosaic.version = 11 : i64} {
  func.func @_mm_bn_acc_kernel(%arg0: i32, %arg1: i32, %arg2: i32, %arg3: memref<8x512xbf16, #tpu.memory_space<vmem>>, %arg4: memref<512x256xbf16, #tpu.memory_space<vmem>>, %arg5: memref<1x256xf32, #tpu.memory_space<vmem>>, %arg6: memref<1x256xf32, #tpu.memory_space<vmem>>, %arg7: memref<8x256xbf16, #tpu.memory_space<vmem>>, %arg8: memref<8x256xf32, #tpu.memory_space<vmem>>) attributes {dimension_semantics = [#tpu.dimension_semantics<parallel>, #tpu.dimension_semantics<parallel>, #tpu.dimension_semantics<arbitrary>], iteration_bounds = array<i64: 1, 2, 9>, scalar_prefetch = 0 : i64, scratch_operands = 1 : i64, tpu.core_type = #tpu.core_type<tc>, window_params = [{transform_indices = @transform_0, window_bounds = array<i64: 8, 512>}, {transform_indices = @transform_1, window_bounds = array<i64: 512, 256>}, {transform_indices = @transform_2, window_bounds = array<i64: 1, 256>}, {transform_indices = @transform_3, window_bounds = array<i64: 1, 256>}, {transform_indices = @transform_4, window_bounds = array<i64: 8, 256>}]} {
    %c0_i32 = arith.constant 0 : i32
    %0 = arith.cmpi eq, %arg2, %c0_i32 : i32
    %1 = arith.extui %0 : i1 to i32
    %c0_i32_0 = arith.constant 0 : i32
    %2 = arith.cmpi ne, %1, %c0_i32_0 : i32
    scf.if %2 {
      %cst_9 = arith.constant 0.000000e+00 : f32
      %12 = vector.broadcast %cst_9 : f32 to vector<8x256xf32>
      %c0_10 = arith.constant 0 : index
      %c0_11 = arith.constant 0 : index
      %13 = vector.load %arg8[%c0_10, %c0_11] : memref<8x256xf32, #tpu.memory_space<vmem>>, vector<8x256xf32>
      tpu.vector_store %arg8[%c0_10, %c0_11], %12 {strides = array<i32>} : memref<8x256xf32, #tpu.memory_space<vmem>>, vector<8x256xf32>,
    } else {
    }
    %c0 = arith.constant 0 : index
    %c0_1 = arith.constant 0 : index
    %3 = vector.load %arg8[%c0, %c0_1] : memref<8x256xf32, #tpu.memory_space<vmem>>, vector<8x256xf32>
    %c0_2 = arith.constant 0 : index
    %c0_3 = arith.constant 0 : index
    %4 = vector.load %arg3[%c0_2, %c0_3] : memref<8x512xbf16, #tpu.memory_space<vmem>>, vector<8x512xbf16>
    %c0_4 = arith.constant 0 : index
    %c0_5 = arith.constant 0 : index
    %5 = vector.load %arg4[%c0_4, %c0_5] : memref<512x256xbf16, #tpu.memory_space<vmem>>, vector<512x256xbf16>
    %cst = arith.constant dense<0.000000e+00> : vector<8x256xf32>
    %6 = tpu.matmul %4, %5, %cst {dimension_numbers = #tpu.dot_dimension_numbers<[1], [0], [0], [1], [0, 0, 1, 1], [], []>} : vector<8x512xbf16>, vector<512x256xbf16>, vector<8x256xf32> -> vector<8x256xf32>
    %7 = arith.addf %3, %6 : vector<8x256xf32>
    %c0_6 = arith.constant 0 : index
    %c0_7 = arith.constant 0 : index
    %8 = vector.load %arg8[%c0_6, %c0_7] : memref<8x256xf32, #tpu.memory_space<vmem>>, vector<8x256xf32>
    tpu.vector_store %arg8[%c0_6, %c0_7], %7 {strides = array<i32>} : memref<8x256xf32, #tpu.memory_space<vmem>>, vector<8x256xf32>,
    %c8_i32 = arith.constant 8 : i32
    %9 = arith.cmpi eq, %arg2, %c8_i32 : i32
    %10 = arith.extui %9 : i1 to i32
    %c0_i32_8 = arith.constant 0 : i32
    %11 = arith.cmpi ne, %10, %c0_i32_8 : i32
    scf.if %11 {
      %c0_9 = arith.constant 0 : index
      %c0_10 = arith.constant 0 : index
      %12 = vector.load %arg8[%c0_9, %c0_10] : memref<8x256xf32, #tpu.memory_space<vmem>>, vector<8x256xf32>
      %c0_11 = arith.constant 0 : index
      %c0_12 = arith.constant 0 : index
      %13 = vector.load %arg5[%c0_11, %c0_12] : memref<1x256xf32, #tpu.memory_space<vmem>>, vector<1x256xf32>
      %14 = vector.broadcast %13 : vector<1x256xf32> to vector<8x256xf32>
      %15 = arith.mulf %12, %14 : vector<8x256xf32>
      %c0_13 = arith.constant 0 : index
      %c0_14 = arith.constant 0 : index
      %16 = vector.load %arg6[%c0_13, %c0_14] : memref<1x256xf32, #tpu.memory_space<vmem>>, vector<1x256xf32>
      %17 = vector.broadcast %16 : vector<1x256xf32> to vector<8x256xf32>
      %18 = arith.addf %15, %17 : vector<8x256xf32>
      %cst_15 = arith.constant 0.000000e+00 : f32
      %19 = vector.broadcast %cst_15 : f32 to vector<8x256xf32>
      %20 = arith.maximumf %18, %19 : vector<8x256xf32>
      %21 = arith.truncf %20 : vector<8x256xf32> to vector<8x256xbf16>
      %c0_16 = arith.constant 0 : index
      %c0_17 = arith.constant 0 : index
      %22 = vector.load %arg7[%c0_16, %c0_17] : memref<8x256xbf16, #tpu.memory_space<vmem>>, vector<8x256xbf16>
      tpu.vector_store %arg7[%c0_16, %c0_17], %21 {strides = array<i32>} : memref<8x256xbf16, #tpu.memory_space<vmem>>, vector<8x256xbf16>,
    } else {
    }
    return
  }
  func.func @transform_0(%arg0: i32, %arg1: i32, %arg2: i32) -> (i32, i32) {
    %c0_i32 = arith.constant 0 : i32
    return %arg0, %arg2 : i32, i32
  }
  func.func @transform_1(%arg0: i32, %arg1: i32, %arg2: i32) -> (i32, i32) {
    %c0_i32 = arith.constant 0 : i32
    return %arg2, %arg1 : i32, i32
  }
  func.func @transform_2(%arg0: i32, %arg1: i32, %arg2: i32) -> (i32, i32) {
    %c0_i32 = arith.constant 0 : i32
    %c0_i32_0 = arith.constant 0 : i32
    return %c0_i32, %arg1 : i32, i32
  }
  func.func @transform_3(%arg0: i32, %arg1: i32, %arg2: i32) -> (i32, i32) {
    %c0_i32 = arith.constant 0 : i32
    %c0_i32_0 = arith.constant 0 : i32
    return %c0_i32, %arg1 : i32, i32
  }
  func.func @transform_4(%arg0: i32, %arg1: i32, %arg2: i32) -> (i32, i32) {
    %c0_i32 = arith.constant 0 : i32
    return %arg0, %arg1 : i32, i32
  }
}

module attributes {stable_mosaic.version = 11 : i64} {
  func.func @_avgpool_kernel(%arg0: i32, %arg1: memref<2x1x512xbf16, #tpu.memory_space<vmem>>, %arg2: memref<2x512xf32, #tpu.memory_space<vmem>>) attributes {dimension_semantics = [#tpu.dimension_semantics<arbitrary>], iteration_bounds = array<i64: 1>, scalar_prefetch = 0 : i64, scratch_operands = 0 : i64, tpu.core_type = #tpu.core_type<tc>, window_params = [{pipeline_mode = #tpu.pipeline_mode<synchronous>, transform_indices = @transform_0, window_bounds = array<i64: 2, 1, 512>}, {pipeline_mode = #tpu.pipeline_mode<synchronous>, transform_indices = @transform_1, window_bounds = array<i64: 2, 512>}]} {
    %c0 = arith.constant 0 : index
    %c0_0 = arith.constant 0 : index
    %c0_1 = arith.constant 0 : index
    %0 = vector.load %arg1[%c0, %c0_0, %c0_1] : memref<2x1x512xbf16, #tpu.memory_space<vmem>>, vector<2x1x512xbf16>
    %1 = arith.extf %0 : vector<2x1x512xbf16> to vector<2x1x512xf32>
    %cst = arith.constant dense<0.000000e+00> : vector<2x512xf32>
    %2 = vector.multi_reduction <add>, %1, %cst [1] : vector<2x1x512xf32> to vector<2x512xf32>
    %cst_2 = arith.constant 1.000000e+00 : f32
    %3 = vector.broadcast %cst_2 : f32 to vector<2x512xf32>
    %4 = arith.divf %2, %3 : vector<2x512xf32>
    %c0_3 = arith.constant 0 : index
    %c0_4 = arith.constant 0 : index
    %5 = vector.load %arg2[%c0_3, %c0_4] : memref<2x512xf32, #tpu.memory_space<vmem>>, vector<2x512xf32>
    tpu.vector_store %arg2[%c0_3, %c0_4], %4 {strides = array<i32>} : memref<2x512xf32, #tpu.memory_space<vmem>>, vector<2x512xf32>,
    return
  }
  func.func @transform_0(%arg0: i32) -> (i32, i32, i32) {
    %c0_i32 = arith.constant 0 : i32
    %c0_i32_0 = arith.constant 0 : i32
    %c0_i32_1 = arith.constant 0 : i32
    %c0_i32_2 = arith.constant 0 : i32
    return %c0_i32, %c0_i32_0, %c0_i32_1 : i32, i32, i32
  }
  func.func @transform_1(%arg0: i32) -> (i32, i32) {
    %c0_i32 = arith.constant 0 : i32
    %c0_i32_0 = arith.constant 0 : i32
    %c0_i32_1 = arith.constant 0 : i32
    return %c0_i32, %c0_i32_0 : i32, i32
  }
}

</mosaic_0001>

<bundles_post_ra>
// kernel: resnet18_forward.23
= control target key start
LH: loop header
LB: loop body
LE: loop exit
PB: predicated region body
PF: predicated region fallthrough
CT: control target
= control target key end

     0   :  { %vm304_vm0 = vcmask 519168   ;;  %s871_s0 = inlined_call_operand.vmem [shape: bf16[128,64], index: 0, kind: input, shape index: {}]   ;;  %s872_s1 = inlined_call_operand.vmem [shape: bf16[128,64], index: 1, kind: input, shape index: {}]   ;;  %s873_s2 = inlined_call_operand.vmem [shape: bf16[128,64], index: 2, kind: input, shape index: {}]   ;;  %s874_s3 = inlined_call_operand.vmem [shape: bf16[128,64], index: 3, kind: input, shape index: {}]   ;;  %s875_s4 = inlined_call_operand.vmem [shape: bf16[128,64], index: 4, kind: input, shape index: {}]   ;;  %s876_s5 = inlined_call_operand.vmem [shape: bf16[128,64], index: 5, kind: input, shape index: {}]   ;;  %s877_s6 = inlined_call_operand.vmem [shape: bf16[128,64], index: 6, kind: input, shape index: {}]   ;;  %s878_s7 = inlined_call_operand.vmem [shape: bf16[128,64], index: 7, kind: input, shape index: {}]   ;;  %s879_s8 = inlined_call_operand.vmem [shape: bf16[128,64], index: 8, kind: input, shape index: {}]   ;;  %s880_s9 = inlined_call_operand.vmem [shape: bf16[128,64], index: 9, kind: output, shape index: {}]  }
   0x1   :  { %v32_v0 = vld [vmem:[%s871_s0] sm:$0xf]  ;;  %v33_v6 = vld [vmem:[%s871_s0 + $0x4] sm:$0xf]  ;;  %v34_v15 = vld [vmem:[%s871_s0 + $0x8] sm:$0xf] }
   0x2   :  { %v48_v1 = vld [vmem:[%s872_s1] sm:$0xf]  ;;  %v49_v7 = vld [vmem:[%s872_s1 + $0x4] sm:$0xf]  ;;  %v50_v16 = vld [vmem:[%s872_s1 + $0x8] sm:$0xf] }
   0x3   :  { %v80_v2 = vld [vmem:[%s873_s2] sm:$0xf]  ;;  %v64_v3 = vmax.bf16 %v48_v1, %v32_v0  ;;  %v81_v8 = vld [vmem:[%s873_s2 + $0x4] sm:$0xf]  ;;  %v65_v10 = vmax.bf16 %v49_v7, %v33_v6  ;;  %v82_v17 = vld [vmem:[%s873_s2 + $0x8] sm:$0xf]  ;;  %v66_v20 = vmax.bf16 %v50_v16, %v34_v15 }
   0x4   :  { %v112_v4 = vld [vmem:[%s874_s3] sm:$0xf]  ;;  %v113_v13 = vld [vmem:[%s874_s3 + $0x4] sm:$0xf]  ;;  %v114_v24 = vld [vmem:[%s874_s3 + $0x8] sm:$0xf] }
   0x5   :  { %v96_v5 = vmax.bf16 %v80_v2, %v64_v3  ;;  %v144_v9 = vld [vmem:[%s875_s4] sm:$0xf]  ;;  %v97_v14 = vmax.bf16 %v81_v8, %v65_v10  ;;  %v145_v19 = vld [vmem:[%s875_s4 + $0x4] sm:$0xf]  ;;  %v98_v26 = vmax.bf16 %v82_v17, %v66_v20  ;;  %v35_v27 = vld [vmem:[%s871_s0 + $0xc] sm:$0xf] }
   0x6   :  { %v176_v12 = vld [vmem:[%s876_s5] sm:$0xf]  ;;  %v177_v23 = vld [vmem:[%s876_s5 + $0x4] sm:$0xf]  ;;  %v51_v28 = vld [vmem:[%s872_s1 + $0xc] sm:$0xf] }
   0x7   :  { %v128_v11 = vmax.bf16 %v112_v4, %v96_v5  ;;  %v208_v21 = vld [vmem:[%s877_s6] sm:$0xf]  ;;  %v129_v22 = vmax.bf16 %v113_v13, %v97_v14  ;;  %v83_v29 = vld [vmem:[%s873_s2 + $0xc] sm:$0xf]  ;;  %v146_v33 = vld [vmem:[%s875_s4 + $0x8] sm:$0xf]  ;;  %v67_v34 = vmax.bf16 %v51_v28, %v35_v27  ;;  %v130_v37 = vmax.bf16 %v114_v24, %v98_v26 }
   0x8   :  { %v240_v30 = vld [vmem:[%s878_s7] sm:$0xf]  ;;  %v209_v36 = vld [vmem:[%s877_s6 + $0x4] sm:$0xf]  ;;  %v178_v38 = vld [vmem:[%s876_s5 + $0x8] sm:$0xf] }
   0x9   :  { %v160_v18 = vmax.bf16 %v144_v9, %v128_v11  ;;  %v272_v31 = vld [vmem:[%s879_s8] sm:$0xf]  ;;  %v161_v32 = vmax.bf16 %v145_v19, %v129_v22  ;;  %v115_v39 = vld [vmem:[%s874_s3 + $0xc] sm:$0xf]  ;;  %v99_v41 = vmax.bf16 %v83_v29, %v67_v34  ;;  %v36_v42 = vld [vmem:[%s871_s0 + $0x10] sm:$0xf]  ;;  %v162_v48 = vmax.bf16 %v146_v33, %v130_v37 }
   0xa   :  { %v52_v43 = vld [vmem:[%s872_s1 + $0x10] sm:$0xf]  ;;  %v241_v46 = vld [vmem:[%s878_s7 + $0x4] sm:$0xf]  ;;  %v147_v49 = vld [vmem:[%s875_s4 + $0xc] sm:$0xf] }
   0xb   :  { %v192_v25 = vmax.bf16 %v176_v12, %v160_v18  ;;  %v193_v40 = vmax.bf16 %v177_v23, %v161_v32  ;;  %v84_v44 = vld [vmem:[%s873_s2 + $0x10] sm:$0xf]  ;;  %v273_v47 = vld [vmem:[%s879_s8 + $0x4] sm:$0xf]  ;;  %v68_v50 = vmax.bf16 %v52_v43, %v36_v42  ;;  %v210_v52 = vld [vmem:[%s877_s6 + $0x8] sm:$0xf]  ;;  %v131_v53 = vmax.bf16 %v115_v39, %v99_v41 }
   0xc   :  { %v179_v54 = vld [vmem:[%s876_s5 + $0xc] sm:$0xf]  ;;  %v116_v55 = vld [vmem:[%s874_s3 + $0x10] sm:$0xf]  ;;  %v194_v57 = vmax.bf16 %v178_v38, %v162_v48  ;;  %v37_v59 = vld [vmem:[%s871_s0 + $0x14] sm:$0xf] }
   0xd   :  { %v224_v35 = vmax.bf16 %v208_v21, %v192_v25  ;;  %v225_v51 = vmax.bf16 %v209_v36, %v193_v40  ;;  %v100_v58 = vmax.bf16 %v84_v44, %v68_v50  ;;  %v53_v60 = vld [vmem:[%s872_s1 + $0x14] sm:$0xf]  ;;  %v242_v63 = vld [vmem:[%s878_s7 + $0x8] sm:$0xf]  ;;  %v163_v1 = vmax.bf16 %v147_v49, %v131_v53  ;;  %v148_v2 = vld [vmem:[%s875_s4 + $0x10] sm:$0xf] }
   0xe   :  { %v85_v61 = vld [vmem:[%s873_s2 + $0x14] sm:$0xf]  ;;  %v274_v0 = vld [vmem:[%s879_s8 + $0x8] sm:$0xf]  ;;  %v69_v3 = vmax.bf16 %v53_v60, %v37_v59  ;;  %v226_v4 = vmax.bf16 %v210_v52, %v194_v57  ;;  %v211_v5 = vld [vmem:[%s877_s6 + $0xc] sm:$0xf] }
   0xf   :  { %v256_v45 = vmax.bf16 %v240_v30, %v224_v35  ;;  %v257_v62 = vmax.bf16 %v241_v46, %v225_v51  ;;  %v132_v6 = vmax.bf16 %v116_v55, %v100_v58  ;;  %v180_v7 = vld [vmem:[%s876_s5 + $0x10] sm:$0xf]  ;;  %v117_v8 = vld [vmem:[%s874_s3 + $0x14] sm:$0xf]  ;;  %v195_v10 = vmax.bf16 %v179_v54, %v163_v1  ;;  %v38_v12 = vld [vmem:[%s871_s0 + $0x18] sm:$0xf] }
  0x10   :  { %v101_v11 = vmax.bf16 %v85_v61, %v69_v3  ;;  %v54_v13 = vld [vmem:[%s872_s1 + $0x18] sm:$0xf]  ;;  %v258_v15 = vmax.bf16 %v242_v63, %v226_v4  ;;  %v243_v16 = vld [vmem:[%s878_s7 + $0xc] sm:$0xf]  ;;  %v149_v19 = vld [vmem:[%s875_s4 + $0x14] sm:$0xf] }
  0x11   :  { %v288_v56 = vmax.bf16 %v272_v31, %v256_v45  ;;  %v289_v9 = vmax.bf16 %v273_v47, %v257_v62  ;;  %v86_v14 = vld [vmem:[%s873_s2 + $0x18] sm:$0xf]  ;;  %v275_v17 = vld [vmem:[%s879_s8 + $0xc] sm:$0xf]  ;;  %v164_v18 = vmax.bf16 %v148_v2, %v132_v6  ;;  %v70_v20 = vmax.bf16 %v54_v13, %v38_v12  ;;  %v212_v22 = vld [vmem:[%s877_s6 + $0x10] sm:$0xf] }
  0x12   :  { %v227_v21 = vmax.bf16 %v211_v5, %v195_v10  ;;  %v133_v23 = vmax.bf16 %v117_v8, %v101_v11  ;;  %v181_v24 = vld [vmem:[%s876_s5 + $0x14] sm:$0xf]  ;;  %v118_v25 = vld [vmem:[%s874_s3 + $0x18] sm:$0xf]  ;;  %v290_v26 = vmax.bf16 %v274_v0, %v258_v15  ;;  %v39_v29 = vld [vmem:[%s871_s0 + $0x1c] sm:$0xf] }
  0x13   :  { %305 = vst.msk [vmem:[%s880_s9] sm:$0xf] %vm304_vm0, %v288_v56  ;;  %306 = vst.msk [vmem:[%s880_s9 + $0x4] sm:$0xf] %vm304_vm0, %v289_v9  ;;  %v196_v27 = vmax.bf16 %v180_v7, %v164_v18  ;;  %v102_v28 = vmax.bf16 %v86_v14, %v70_v20  ;;  %v55_v30 = vld [vmem:[%s872_s1 + $0x1c] sm:$0xf] }
  0x14   :  { %v87_v31 = vld [vmem:[%s873_s2 + $0x1c] sm:$0xf]  ;;  %v259_v32 = vmax.bf16 %v243_v16, %v227_v21  ;;  %v244_v33 = vld [vmem:[%s878_s7 + $0x10] sm:$0xf]  ;;  %v165_v35 = vmax.bf16 %v149_v19, %v133_v23  ;;  %v150_v36 = vld [vmem:[%s875_s4 + $0x18] sm:$0xf]  ;;  %v71_v37 = vmax.bf16 %v55_v30, %v39_v29 }
  0x15   :  { %v276_v34 = vld [vmem:[%s879_s8 + $0x10] sm:$0xf]  ;;  %307 = vst.msk [vmem:[%s880_s9 + $0x8] sm:$0xf] %vm304_vm0, %v290_v26  ;;  %v228_v38 = vmax.bf16 %v212_v22, %v196_v27  ;;  %v213_v39 = vld [vmem:[%s877_s6 + $0x14] sm:$0xf]  ;;  %v134_v40 = vmax.bf16 %v118_v25, %v102_v28 }
  0x16   :  { %v182_v41 = vld [vmem:[%s876_s5 + $0x18] sm:$0xf]  ;;  %v119_v42 = vld [vmem:[%s874_s3 + $0x1c] sm:$0xf]  ;;  %v291_v43 = vmax.bf16 %v275_v17, %v259_v32  ;;  %v197_v44 = vmax.bf16 %v181_v24, %v165_v35  ;;  %v103_v45 = vmax.bf16 %v87_v31, %v71_v37  ;;  %v40_v46 = vld [vmem:[%s871_s0 + $0x20] sm:$0xf] }
  0x17   :  { %v56_v47 = vld [vmem:[%s872_s1 + $0x20] sm:$0xf]  ;;  %v260_v49 = vmax.bf16 %v244_v33, %v228_v38  ;;  %v245_v50 = vld [vmem:[%s878_s7 + $0x14] sm:$0xf]  ;;  %v166_v52 = vmax.bf16 %v150_v36, %v134_v40  ;;  %v151_v53 = vld [vmem:[%s875_s4 + $0x1c] sm:$0xf] }
  0x18   :  { %v88_v48 = vld [vmem:[%s873_s2 + $0x20] sm:$0xf]  ;;  %v277_v51 = vld [vmem:[%s879_s8 + $0x14] sm:$0xf]  ;;  %v72_v54 = vmax.bf16 %v56_v47, %v40_v46  ;;  %308 = vst.msk [vmem:[%s880_s9 + $0xc] sm:$0xf] %vm304_vm0, %v291_v43  ;;  %v229_v55 = vmax.bf16 %v213_v39, %v197_v44  ;;  %v135_v57 = vmax.bf16 %v119_v42, %v103_v45 }
  0x19   :  { %v214_v56 = vld [vmem:[%s877_s6 + $0x18] sm:$0xf]  ;;  %v183_v58 = vld [vmem:[%s876_s5 + $0x1c] sm:$0xf]  ;;  %v120_v59 = vld [vmem:[%s874_s3 + $0x20] sm:$0xf]  ;;  %v292_v60 = vmax.bf16 %v276_v34, %v260_v49  ;;  %v198_v61 = vmax.bf16 %v182_v41, %v166_v52 }
  0x1a   :  { %v104_v62 = vmax.bf16 %v88_v48, %v72_v54  ;;  %v41_v63 = vld [vmem:[%s871_s0 + $0x24] sm:$0xf]  ;;  %v261_v2 = vmax.bf16 %v245_v50, %v229_v55  ;;  %v246_v3 = vld [vmem:[%s878_s7 + $0x18] sm:$0xf]  ;;  %v167_v5 = vmax.bf16 %v151_v53, %v135_v57  ;;  %v152_v6 = vld [vmem:[%s875_s4 + $0x20] sm:$0xf] }
  0x1b   :  { %v57_v0 = vld [vmem:[%s872_s1 + $0x24] sm:$0xf]  ;;  %v278_v4 = vld [vmem:[%s879_s8 + $0x18] sm:$0xf]  ;;  %309 = vst.msk [vmem:[%s880_s9 + $0x10] sm:$0xf] %vm304_vm0, %v292_v60  ;;  %v230_v8 = vmax.bf16 %v214_v56, %v198_v61 }
  0x1c   :  { %v89_v1 = vld [vmem:[%s873_s2 + $0x24] sm:$0xf]  ;;  %v73_v7 = vmax.bf16 %v57_v0, %v41_v63  ;;  %v215_v9 = vld [vmem:[%s877_s6 + $0x1c] sm:$0xf]  ;;  %v136_v10 = vmax.bf16 %v120_v59, %v104_v62  ;;  %v184_v11 = vld [vmem:[%s876_s5 + $0x20] sm:$0xf]  ;;  %v293_v13 = vmax.bf16 %v277_v51, %v261_v2  ;;  %v199_v14 = vmax.bf16 %v183_v58, %v167_v5 }
  0x1d   :  { %v121_v12 = vld [vmem:[%s874_s3 + $0x24] sm:$0xf]  ;;  %v42_v16 = vld [vmem:[%s871_s0 + $0x28] sm:$0xf]  ;;  %v262_v19 = vmax.bf16 %v246_v3, %v230_v8  ;;  %v247_v20 = vld [vmem:[%s878_s7 + $0x1c] sm:$0xf] }
  0x1e   :  { %v105_v15 = vmax.bf16 %v89_v1, %v73_v7  ;;  %v58_v17 = vld [vmem:[%s872_s1 + $0x28] sm:$0xf]  ;;  %v279_v21 = vld [vmem:[%s879_s8 + $0x1c] sm:$0xf]  ;;  %v168_v22 = vmax.bf16 %v152_v6, %v136_v10  ;;  %v153_v23 = vld [vmem:[%s875_s4 + $0x24] sm:$0xf]  ;;  %v231_v25 = vmax.bf16 %v215_v9, %v199_v14 }
  0x1f   :  { %v90_v18 = vld [vmem:[%s873_s2 + $0x28] sm:$0xf]  ;;  %v74_v24 = vmax.bf16 %v58_v17, %v42_v16  ;;  %310 = vst.msk [vmem:[%s880_s9 + $0x14] sm:$0xf] %vm304_vm0, %v293_v13  ;;  %v216_v26 = vld [vmem:[%s877_s6 + $0x20] sm:$0xf]  ;;  %v294_v30 = vmax.bf16 %v278_v4, %v262_v19 }
  0x20   :  { %v137_v27 = vmax.bf16 %v121_v12, %v105_v15  ;;  %v185_v28 = vld [vmem:[%s876_s5 + $0x24] sm:$0xf]  ;;  %v122_v29 = vld [vmem:[%s874_s3 + $0x28] sm:$0xf]  ;;  %v200_v31 = vmax.bf16 %v184_v11, %v168_v22  ;;  %v43_v33 = vld [vmem:[%s871_s0 + $0x2c] sm:$0xf]  ;;  %v263_v36 = vmax.bf16 %v247_v20, %v231_v25 }
  0x21   :  { %v106_v32 = vmax.bf16 %v90_v18, %v74_v24  ;;  %v59_v34 = vld [vmem:[%s872_s1 + $0x2c] sm:$0xf]  ;;  %v248_v37 = vld [vmem:[%s878_s7 + $0x20] sm:$0xf]  ;;  %v154_v40 = vld [vmem:[%s875_s4 + $0x28] sm:$0xf] }
  0x22   :  { %v91_v35 = vld [vmem:[%s873_s2 + $0x2c] sm:$0xf]  ;;  %v280_v38 = vld [vmem:[%s879_s8 + $0x20] sm:$0xf]  ;;  %v169_v39 = vmax.bf16 %v153_v23, %v137_v27  ;;  %v75_v41 = vmax.bf16 %v59_v34, %v43_v33  ;;  %311 = vst.msk [vmem:[%s880_s9 + $0x18] sm:$0xf] %vm304_vm0, %v294_v30  ;;  %v232_v42 = vmax.bf16 %v216_v26, %v200_v31  ;;  %v295_v47 = vmax.bf16 %v279_v21, %v263_v36 }
  0x23   :  { %v217_v43 = vld [vmem:[%s877_s6 + $0x24] sm:$0xf]  ;;  %v138_v44 = vmax.bf16 %v122_v29, %v106_v32  ;;  %v186_v45 = vld [vmem:[%s876_s5 + $0x28] sm:$0xf]  ;;  %v123_v46 = vld [vmem:[%s874_s3 + $0x2c] sm:$0xf] }
  0x24   :  { %v201_v48 = vmax.bf16 %v185_v28, %v169_v39  ;;  %v107_v49 = vmax.bf16 %v91_v35, %v75_v41  ;;  %v44_v50 = vld [vmem:[%s871_s0 + $0x30] sm:$0xf]  ;;  %v264_v53 = vmax.bf16 %v248_v37, %v232_v42  ;;  %v249_v54 = vld [vmem:[%s878_s7 + $0x24] sm:$0xf]  ;;  %v155_v57 = vld [vmem:[%s875_s4 + $0x2c] sm:$0xf] }
  0x25   :  { %v60_v51 = vld [vmem:[%s872_s1 + $0x30] sm:$0xf]  ;;  %v281_v55 = vld [vmem:[%s879_s8 + $0x24] sm:$0xf]  ;;  %v170_v56 = vmax.bf16 %v154_v40, %v138_v44  ;;  %312 = vst.msk [vmem:[%s880_s9 + $0x1c] sm:$0xf] %vm304_vm0, %v295_v47 }
  0x26   :  { %v92_v52 = vld [vmem:[%s873_s2 + $0x30] sm:$0xf]  ;;  %v76_v58 = vmax.bf16 %v60_v51, %v44_v50  ;;  %v233_v59 = vmax.bf16 %v217_v43, %v201_v48  ;;  %v218_v60 = vld [vmem:[%s877_s6 + $0x28] sm:$0xf]  ;;  %v139_v61 = vmax.bf16 %v123_v46, %v107_v49  ;;  %v187_v62 = vld [vmem:[%s876_s5 + $0x2c] sm:$0xf]  ;;  %v296_v0 = vmax.bf16 %v280_v38, %v264_v53 }
  0x27   :  { %v124_v63 = vld [vmem:[%s874_s3 + $0x30] sm:$0xf]  ;;  %v202_v1 = vmax.bf16 %v186_v45, %v170_v56  ;;  %v45_v3 = vld [vmem:[%s871_s0 + $0x34] sm:$0xf]  ;;  %v250_v7 = vld [vmem:[%s878_s7 + $0x28] sm:$0xf] }
  0x28   :  { %v108_v2 = vmax.bf16 %v92_v52, %v76_v58  ;;  %v61_v4 = vld [vmem:[%s872_s1 + $0x34] sm:$0xf]  ;;  %v265_v6 = vmax.bf16 %v249_v54, %v233_v59  ;;  %v282_v8 = vld [vmem:[%s879_s8 + $0x28] sm:$0xf]  ;;  %v171_v9 = vmax.bf16 %v155_v57, %v139_v61  ;;  %v156_v10 = vld [vmem:[%s875_s4 + $0x30] sm:$0xf] }
  0x29   :  { %v93_v5 = vld [vmem:[%s873_s2 + $0x34] sm:$0xf]  ;;  %v77_v11 = vmax.bf16 %v61_v4, %v45_v3  ;;  %313 = vst.msk [vmem:[%s880_s9 + $0x20] sm:$0xf] %vm304_vm0, %v296_v0  ;;  %v234_v12 = vmax.bf16 %v218_v60, %v202_v1  ;;  %v219_v13 = vld [vmem:[%s877_s6 + $0x2c] sm:$0xf] }
  0x2a   :  { %v140_v14 = vmax.bf16 %v124_v63, %v108_v2  ;;  %v188_v15 = vld [vmem:[%s876_s5 + $0x30] sm:$0xf]  ;;  %v125_v16 = vld [vmem:[%s874_s3 + $0x34] sm:$0xf]  ;;  %v297_v17 = vmax.bf16 %v281_v55, %v265_v6  ;;  %v203_v18 = vmax.bf16 %v187_v62, %v171_v9  ;;  %v46_v20 = vld [vmem:[%s871_s0 + $0x38] sm:$0xf] }
  0x2b   :  { %v109_v19 = vmax.bf16 %v93_v5, %v77_v11  ;;  %v62_v21 = vld [vmem:[%s872_s1 + $0x38] sm:$0xf]  ;;  %v266_v23 = vmax.bf16 %v250_v7, %v234_v12  ;;  %v251_v24 = vld [vmem:[%s878_s7 + $0x2c] sm:$0xf]  ;;  %v157_v27 = vld [vmem:[%s875_s4 + $0x34] sm:$0xf] }
  0x2c   :  { %v94_v22 = vld [vmem:[%s873_s2 + $0x38] sm:$0xf]  ;;  %v283_v25 = vld [vmem:[%s879_s8 + $0x2c] sm:$0xf]  ;;  %v172_v26 = vmax.bf16 %v156_v10, %v140_v14  ;;  %v78_v28 = vmax.bf16 %v62_v21, %v46_v20  ;;  %314 = vst.msk [vmem:[%s880_s9 + $0x24] sm:$0xf] %vm304_vm0, %v297_v17  ;;  %v235_v29 = vmax.bf16 %v219_v13, %v203_v18 }
  0x2d   :  { %v220_v30 = vld [vmem:[%s877_s6 + $0x30] sm:$0xf]  ;;  %v141_v31 = vmax.bf16 %v125_v16, %v109_v19  ;;  %v189_v32 = vld [vmem:[%s876_s5 + $0x34] sm:$0xf]  ;;  %v126_v33 = vld [vmem:[%s874_s3 + $0x38] sm:$0xf]  ;;  %v298_v34 = vmax.bf16 %v282_v8, %v266_v23 }
  0x2e   :  { %v204_v35 = vmax.bf16 %v188_v15, %v172_v26  ;;  %v110_v36 = vmax.bf16 %v94_v22, %v78_v28  ;;  %v47_v37 = vld [vmem:[%s871_s0 + $0x3c] sm:$0xf]  ;;  %v267_v40 = vmax.bf16 %v251_v24, %v235_v29  ;;  %v252_v41 = vld [vmem:[%s878_s7 + $0x30] sm:$0xf]  ;;  %v158_v43 = vld [vmem:[%s875_s4 + $0x38] sm:$0xf] }
  0x2f   :  { %v63_v38 = vld [vmem:[%s872_s1 + $0x3c] sm:$0xf]  ;;  %v173_v42 = vmax.bf16 %v157_v27, %v141_v31  ;;  %315 = vst.msk [vmem:[%s880_s9 + $0x28] sm:$0xf] %vm304_vm0, %v298_v34  ;;  %v221_v46 = vld [vmem:[%s877_s6 + $0x34] sm:$0xf] }
  0x30   :  { %v95_v39 = vld [vmem:[%s873_s2 + $0x3c] sm:$0xf]  ;;  %v79_v44 = vmax.bf16 %v63_v38, %v47_v37  ;;  %v236_v45 = vmax.bf16 %v220_v30, %v204_v35  ;;  %v142_v47 = vmax.bf16 %v126_v33, %v110_v36  ;;  %v299_v49 = vmax.bf16 %v283_v25, %v267_v40  ;;  %v284_v50 = vld [vmem:[%s879_s8 + $0x30] sm:$0xf]  ;;  %v190_v52 = vld [vmem:[%s876_s5 + $0x38] sm:$0xf] }
  0x31   :  { %v127_v48 = vld [vmem:[%s874_s3 + $0x3c] sm:$0xf]  ;;  %v205_v51 = vmax.bf16 %v189_v32, %v173_v42  ;;  %v253_v55 = vld [vmem:[%s878_s7 + $0x34] sm:$0xf]  ;;  %v222_v59 = vld [vmem:[%s877_s6 + $0x38] sm:$0xf] }
  0x32   :  { %v111_v53 = vmax.bf16 %v95_v39, %v79_v44  ;;  %v268_v54 = vmax.bf16 %v252_v41, %v236_v45  ;;  %v174_v56 = vmax.bf16 %v158_v43, %v142_v47  ;;  %v159_v57 = vld [vmem:[%s875_s4 + $0x3c] sm:$0xf]  ;;  %316 = vst.msk [vmem:[%s880_s9 + $0x2c] sm:$0xf] %vm304_vm0, %v299_v49  ;;  %v285_v62 = vld [vmem:[%s879_s8 + $0x34] sm:$0xf] }
  0x33   :  { %v237_v58 = vmax.bf16 %v221_v46, %v205_v51  ;;  %v191_v0 = vld [vmem:[%s876_s5 + $0x3c] sm:$0xf]  ;;  %v254_v2 = vld [vmem:[%s878_s7 + $0x38] sm:$0xf] }
  0x34   :  { %v143_v60 = vmax.bf16 %v127_v48, %v111_v53  ;;  %v300_v61 = vmax.bf16 %v284_v50, %v268_v54  ;;  %v206_v63 = vmax.bf16 %v190_v52, %v174_v56  ;;  %v223_v5 = vld [vmem:[%s877_s6 + $0x3c] sm:$0xf]  ;;  %v286_v7 = vld [vmem:[%s879_s8 + $0x38] sm:$0xf] }
  0x35   :  { %v269_v1 = vmax.bf16 %v253_v55, %v237_v58  ;;  %v255_v10 = vld [vmem:[%s878_s7 + $0x3c] sm:$0xf] }
  0x36   :  { %v175_v3 = vmax.bf16 %v159_v57, %v143_v60  ;;  %317 = vst.msk [vmem:[%s880_s9 + $0x30] sm:$0xf] %vm304_vm0, %v300_v61  ;;  %v238_v4 = vmax.bf16 %v222_v59, %v206_v63  ;;  %v287_v13 = vld [vmem:[%s879_s8 + $0x3c] sm:$0xf] }
  0x37   :  { %v301_v6 = vmax.bf16 %v285_v62, %v269_v1 }
  0x38   :  { %v207_v8 = vmax.bf16 %v191_v0, %v175_v3  ;;  %v270_v9 = vmax.bf16 %v254_v2, %v238_v4 }
  0x39   :  { %318 = vst.msk [vmem:[%s880_s9 + $0x34] sm:$0xf] %vm304_vm0, %v301_v6 }
  0x3a   :  { %v239_v11 = vmax.bf16 %v223_v5, %v207_v8  ;;  %v302_v12 = vmax.bf16 %v286_v7, %v270_v9 }
  0x3c   :  { %v271_v14 = vmax.bf16 %v255_v10, %v239_v11  ;;  %319 = vst.msk [vmem:[%s880_s9 + $0x38] sm:$0xf] %vm304_vm0, %v302_v12 }
  0x3e   :  { %v303_v15 = vmax.bf16 %v287_v13, %v271_v14 }
  0x40   :  { %320 = vst.msk [vmem:[%s880_s9 + $0x3c] sm:$0xf] %vm304_vm0, %v303_v15 }

// kernel: resnet18_forward.22
= control target key start
LH: loop header
LB: loop body
LE: loop exit
PB: predicated region body
PF: predicated region fallthrough
CT: control target
= control target key end

     0   :  { %v1895_v0 = vmov 0   ;;  %s2427_s1 = inlined_call_operand.vmem [shape: bf16[256,128], index: 1, kind: input, shape index: {}]   ;;  %s2428_s0 = inlined_call_operand.vmem [shape: bf16[512,256], index: 0, kind: input, shape index: {}]   ;;  %s2429_s2 = inlined_call_operand.vmem [shape: f32[1,128], index: 2, kind: input, shape index: {}]   ;;  %s2430_s3 = inlined_call_operand.vmem [shape: f32[1,128], index: 3, kind: input, shape index: {}]   ;;  %s2431_s4 = inlined_call_operand.vmem [shape: bf16[512,128], index: 4, kind: output, shape index: {}]  }
   0x1   :  { %530 = vmatprep.subr.bf16.mxu0 %v1895_v0  ;;  %1750 = vmatprep.subr.bf16.mxu1 %v1895_v0  ;;  %v1783_v1 = vld [vmem:[%s2427_s1 + $0x38] sm:$0xff]   ;;  %v1784_v2 = vld [vmem:[%s2427_s1 + $0x30] sm:$0xff]   ;;  %v1785_v3 = vld [vmem:[%s2427_s1 + $0x28] sm:$0xff]  }
   0x2   :  { %531 = vmatpush1.bf16.msra.mxu0 %v1783_v1  ;;  %1766 = vmatpush1.bf16.msra.mxu1 %v1783_v1  ;;  %v1786_v4 = vld [vmem:[%s2427_s1 + $0x20] sm:$0xff]   ;;  %v1787_v5 = vld [vmem:[%s2427_s1 + $0x18] sm:$0xff]   ;;  %v1788_v7 = vld [vmem:[%s2427_s1 + $0x10] sm:$0xff]  }
   0x3   :  { %532 = vmatprep.subr.bf16.mxu0 %v1895_v0  ;;  %1751 = vmatprep.subr.bf16.mxu1 %v1895_v0  ;;  %v1801_v6 = vld [vmem:[%s2428_s0 + $0x4] ss:$8 sps:$4 sm:$0xff]   ;;  %v1791_v11 = vld [vmem:[%s2427_s1 + $0x78] sm:$0xff]   ;;  %v1792_v12 = vld [vmem:[%s2427_s1 + $0x70] sm:$0xff]  }
   0x4   :  { %v1804_v8 = vld [vmem:[%s2428_s0 + $0x104] ss:$8 sps:$4 sm:$0xff]   ;;  %562 = vmatprep.mubr.bf16.mxu0 %v1801_v6  ;;  %v1795_v15 = vld [vmem:[%s2427_s1 + $0x58] sm:$0xff]   ;;  %v1796_v16 = vld [vmem:[%s2427_s1 + $0x50] sm:$0xff]  }
   0x5   :  { %690 = vmatprep.mubr.bf16.mxu1 %v1804_v8  ;;  %v1789_v9 = vld [vmem:[%s2427_s1 + $0x8] sm:$0xff]   ;;  %v1790_v10 = vld [vmem:[%s2427_s1] sm:$0xff]   ;;  %v1805_v21 = vld [vmem:[%s2428_s0 + $0x14] ss:$8 sps:$4 sm:$0xff]  }
   0x6   :  { %533 = vmatpush1.bf16.msra.mxu0 %v1784_v2  ;;  %1767 = vmatpush1.bf16.msra.mxu1 %v1784_v2  ;;  %v1793_v13 = vld [vmem:[%s2427_s1 + $0x68] sm:$0xff]   ;;  %v1794_v14 = vld [vmem:[%s2427_s1 + $0x60] sm:$0xff]   ;;  %v1807_v22 = vld [vmem:[%s2428_s0 + $0x114] ss:$8 sps:$4 sm:$0xff]  }
   0x7   :  { %534 = vmatprep.subr.bf16.mxu0 %v1895_v0  ;;  %1752 = vmatprep.subr.bf16.mxu1 %v1895_v0  ;;  %v1797_v17 = vld [vmem:[%s2427_s1 + $0x48] sm:$0xff]   ;;  %v1798_v18 = vld [vmem:[%s2427_s1 + $0x40] sm:$0xff]   ;;  %v1809_v23 = vld [vmem:[%s2428_s0 + $0x10] ss:$8 sps:$4 sm:$0xff]  }
   0x8   :  { %v1799_v19 = vld [vmem:[%s2428_s0] ss:$8 sps:$4 sm:$0xff]   ;;  %v1810_v24 = vld [vmem:[%s2428_s0 + $0x110] ss:$8 sps:$4 sm:$0xff]   ;;  %v1811_v25 = vld [vmem:[%s2428_s0 + $0x24] ss:$8 sps:$4 sm:$0xff]  }
   0x9   :  { %v1802_v20 = vld [vmem:[%s2428_s0 + $0x100] ss:$8 sps:$4 sm:$0xff]   ;;  %v1813_v26 = vld [vmem:[%s2428_s0 + $0x124] ss:$8 sps:$4 sm:$0xff]   ;;  %v1817_v29 = vld [vmem:[%s2428_s0 + $0x34] ss:$8 sps:$4 sm:$0xff]  }
   0xa   :  { %535 = vmatpush1.bf16.msra.mxu0 %v1785_v3  ;;  %1768 = vmatpush1.bf16.msra.mxu1 %v1785_v3  ;;  %v1815_v27 = vld [vmem:[%s2428_s0 + $0x20] ss:$8 sps:$4 sm:$0xff]   ;;  %v1819_v30 = vld [vmem:[%s2428_s0 + $0x134] ss:$8 sps:$4 sm:$0xff]   ;;  %v1821_v31 = vld [vmem:[%s2428_s0 + $0x30] ss:$8 sps:$4 sm:$0xff]  }
   0xb   :  { %536 = vmatprep.subr.bf16.mxu0 %v1895_v0  ;;  %1753 = vmatprep.subr.bf16.mxu1 %v1895_v0  ;;  %v1816_v28 = vld [vmem:[%s2428_s0 + $0x120] ss:$8 sps:$4 sm:$0xff]   ;;  %v1822_v32 = vld [vmem:[%s2428_s0 + $0x130] ss:$8 sps:$4 sm:$0xff]   ;;  %v1823_v33 = vld [vmem:[%s2428_s0 + $0x44] ss:$8 sps:$4 sm:$0xff]  }
   0xc   :  { %v1825_v34 = vld [vmem:[%s2428_s0 + $0x144] ss:$8 sps:$4 sm:$0xff]   ;;  %v1827_v35 = vld [vmem:[%s2428_s0 + $0x40] ss:$8 sps:$4 sm:$0xff]   ;;  %v1829_v37 = vld [vmem:[%s2428_s0 + $0x54] ss:$8 sps:$4 sm:$0xff]  }
   0xd   :  { %v1828_v36 = vld [vmem:[%s2428_s0 + $0x140] ss:$8 sps:$4 sm:$0xff]   ;;  %v1831_v38 = vld [vmem:[%s2428_s0 + $0x154] ss:$8 sps:$4 sm:$0xff]   ;;  %v1833_v39 = vld [vmem:[%s2428_s0 + $0x50] ss:$8 sps:$4 sm:$0xff]  }
   0xe   :  { %537 = vmatpush1.bf16.msra.mxu0 %v1786_v4  ;;  %1769 = vmatpush1.bf16.msra.mxu1 %v1786_v4  ;;  %v1834_v40 = vld [vmem:[%s2428_s0 + $0x150] ss:$8 sps:$4 sm:$0xff]   ;;  %v1835_v41 = vld [vmem:[%s2428_s0 + $0x64] ss:$8 sps:$4 sm:$0xff]   ;;  %v1839_v43 = vld [vmem:[%s2428_s0 + $0x60] ss:$8 sps:$4 sm:$0xff]  }
   0xf   :  { %538 = vmatprep.subr.bf16.mxu0 %v1895_v0  ;;  %1754 = vmatprep.subr.bf16.mxu1 %v1895_v0  ;;  %v1837_v42 = vld [vmem:[%s2428_s0 + $0x164] ss:$8 sps:$4 sm:$0xff]   ;;  %v1840_v44 = vld [vmem:[%s2428_s0 + $0x160] ss:$8 sps:$4 sm:$0xff]   ;;  %v1841_v45 = vld [vmem:[%s2428_s0 + $0x74] ss:$8 sps:$4 sm:$0xff]  }
  0x10   :  { %v1843_v46 = vld [vmem:[%s2428_s0 + $0x174] ss:$8 sps:$4 sm:$0xff]   ;;  %v1845_v47 = vld [vmem:[%s2428_s0 + $0x70] ss:$8 sps:$4 sm:$0xff]   ;;  %v1847_v49 = vld [vmem:[%s2428_s0 + $0x84] ss:$8 sps:$4 sm:$0xff]  }
  0x11   :  { %v1846_v48 = vld [vmem:[%s2428_s0 + $0x170] ss:$8 sps:$4 sm:$0xff]   ;;  %v1849_v50 = vld [vmem:[%s2428_s0 + $0x184] ss:$8 sps:$4 sm:$0xff]   ;;  %v1851_v51 = vld [vmem:[%s2428_s0 + $0x80] ss:$8 sps:$4 sm:$0xff]  }
  0x12   :  { %539 = vmatpush1.bf16.msra.mxu0 %v1787_v5  ;;  %1770 = vmatpush1.bf16.msra.mxu1 %v1787_v5  ;;  %v1852_v52 = vld [vmem:[%s2428_s0 + $0x180] ss:$8 sps:$4 sm:$0xff]   ;;  %v1853_v53 = vld [vmem:[%s2428_s0 + $0x94] ss:$8 sps:$4 sm:$0xff]   ;;  %v1857_v55 = vld [vmem:[%s2428_s0 + $0x90] ss:$8 sps:$4 sm:$0xff]  }
  0x13   :  { %540 = vmatprep.subr.bf16.mxu0 %v1895_v0  ;;  %1755 = vmatprep.subr.bf16.mxu1 %v1895_v0  ;;  %v1855_v54 = vld [vmem:[%s2428_s0 + $0x194] ss:$8 sps:$4 sm:$0xff]   ;;  %v1858_v56 = vld [vmem:[%s2428_s0 + $0x190] ss:$8 sps:$4 sm:$0xff]   ;;  %v1859_v57 = vld [vmem:[%s2428_s0 + $0xa4] ss:$8 sps:$4 sm:$0xff]  }
  0x14   :  { %v1861_v58 = vld [vmem:[%s2428_s0 + $0x1a4] ss:$8 sps:$4 sm:$0xff]   ;;  %v1863_v59 = vld [vmem:[%s2428_s0 + $0xa0] ss:$8 sps:$4 sm:$0xff]   ;;  %v1865_v61 = vld [vmem:[%s2428_s0 + $0xb4] ss:$8 sps:$4 sm:$0xff]  }
  0x15   :  { %v1864_v60 = vld [vmem:[%s2428_s0 + $0x1a0] ss:$8 sps:$4 sm:$0xff]   ;;  %v1867_v62 = vld [vmem:[%s2428_s0 + $0x1b4] ss:$8 sps:$4 sm:$0xff]   ;;  %v1869_v63 = vld [vmem:[%s2428_s0 + $0xb0] ss:$8 sps:$4 sm:$0xff]  }
  0x16   :  { %541 = vmatpush1.bf16.msra.mxu0 %v1788_v7  ;;  %1771 = vmatpush1.bf16.msra.mxu1 %v1788_v7  ;;  %v1871_v1 = vld [vmem:[%s2428_s0 + $0xc4] ss:$8 sps:$4 sm:$0xff]   ;;  %v1875_v3 = vld [vmem:[%s2428_s0 + $0xc0] ss:$8 sps:$4 sm:$0xff]   ;;  %v1877_v5 = vld [vmem:[%s2428_s0 + $0xd4] ss:$8 sps:$4 sm:$0xff]  }
  0x17   :  { %542 = vmatprep.subr.bf16.mxu0 %v1895_v0  ;;  %1756 = vmatprep.subr.bf16.mxu1 %v1895_v0  ;;  %v1873_v2 = vld [vmem:[%s2428_s0 + $0x1c4] ss:$8 sps:$4 sm:$0xff]   ;;  %v1876_v4 = vld [vmem:[%s2428_s0 + $0x1c0] ss:$8 sps:$4 sm:$0xff]   ;;  %v1879_v6 = vld [vmem:[%s2428_s0 + $0x1d4] ss:$8 sps:$4 sm:$0xff]  }
  0x18   :  { %v1881_v7 = vld [vmem:[%s2428_s0 + $0xd0] ss:$8 sps:$4 sm:$0xff]  }
  0x19   :  { %v1882_v8 = vld [vmem:[%s2428_s0 + $0x1d0] ss:$8 sps:$4 sm:$0xff]  }
  0x1a   :  { %543 = vmatpush1.bf16.msra.mxu0 %v1789_v9  ;;  %1772 = vmatpush1.bf16.msra.mxu1 %v1789_v9  ;;  %v1883_v9 = vld [vmem:[%s2428_s0 + $0xe4] ss:$8 sps:$4 sm:$0xff]  }
  0x1b   :  { %544 = vmatprep.subr.bf16.mxu0 %v1895_v0  ;;  %1757 = vmatprep.subr.bf16.mxu1 %v1895_v0 }
  0x1e   :  { %545 = vmatpush1.bf16.msra.mxu0 %v1790_v10  ;;  %1773 = vmatpush1.bf16.msra.mxu1 %v1790_v10  ;;  %v1885_v10 = vld [vmem:[%s2428_s0 + $0x1e4] ss:$8 sps:$4 sm:$0xff]  }
  0x1f   :  { %546 = vmatprep.subr.bf16.mxu0 %v1895_v0  ;;  %1758 = vmatprep.subr.bf16.mxu1 %v1895_v0 }
  0x22   :  { %547 = vmatpush2.bf16.msra.mxu0 %v1791_v11  ;;  %1774 = vmatpush2.bf16.msra.mxu1 %v1791_v11  ;;  %v1887_v11 = vld [vmem:[%s2428_s0 + $0xe0] ss:$8 sps:$4 sm:$0xff]  }
  0x23   :  { %548 = vmatprep.subr.bf16.mxu0 %v1895_v0  ;;  %1759 = vmatprep.subr.bf16.mxu1 %v1895_v0 }
  0x26   :  { %549 = vmatpush2.bf16.msra.mxu0 %v1792_v12  ;;  %1775 = vmatpush2.bf16.msra.mxu1 %v1792_v12  ;;  %v1888_v12 = vld [vmem:[%s2428_s0 + $0x1e0] ss:$8 sps:$4 sm:$0xff]  }
  0x27   :  { %550 = vmatprep.subr.bf16.mxu0 %v1895_v0  ;;  %1760 = vmatprep.subr.bf16.mxu1 %v1895_v0 }
  0x2a   :  { %551 = vmatpush2.bf16.msra.mxu0 %v1793_v13  ;;  %1776 = vmatpush2.bf16.msra.mxu1 %v1793_v13  ;;  %v1889_v13 = vld [vmem:[%s2428_s0 + $0xf4] ss:$8 sps:$4 sm:$0xff]  }
  0x2b   :  { %552 = vmatprep.subr.bf16.mxu0 %v1895_v0  ;;  %1761 = vmatprep.subr.bf16.mxu1 %v1895_v0 }
  0x2e   :  { %553 = vmatpush2.bf16.msra.mxu0 %v1794_v14  ;;  %1777 = vmatpush2.bf16.msra.mxu1 %v1794_v14  ;;  %v1891_v14 = vld [vmem:[%s2428_s0 + $0x1f4] ss:$8 sps:$4 sm:$0xff]  }
  0x2f   :  { %554 = vmatprep.subr.bf16.mxu0 %v1895_v0  ;;  %1762 = vmatprep.subr.bf16.mxu1 %v1895_v0 }
  0x32   :  { %555 = vmatpush2.bf16.msra.mxu0 %v1795_v15  ;;  %1778 = vmatpush2.bf16.msra.mxu1 %v1795_v15  ;;  %v1893_v15 = vld [vmem:[%s2428_s0 + $0xf0] ss:$8 sps:$4 sm:$0xff]  }
  0x33   :  { %556 = vmatprep.subr.bf16.mxu0 %v1895_v0  ;;  %1763 = vmatprep.subr.bf16.mxu1 %v1895_v0 }
  0x36   :  { %557 = vmatpush2.bf16.msra.mxu0 %v1796_v16  ;;  %1779 = vmatpush2.bf16.msra.mxu1 %v1796_v16  ;;  %v1894_v16 = vld [vmem:[%s2428_s0 + $0x1f0] ss:$8 sps:$4 sm:$0xff]  }
  0x37   :  { %558 = vmatprep.subr.bf16.mxu0 %v1895_v0  ;;  %1764 = vmatprep.subr.bf16.mxu1 %v1895_v0 }
  0x3a   :  { %559 = vmatpush2.bf16.msra.mxu0 %v1797_v17  ;;  %1780 = vmatpush2.bf16.msra.mxu1 %v1797_v17  ;;  %v2196_v17 = vld [vmem:[%s2429_s2] ss:$0 sm:$0xff] }
  0x3b   :  { %560 = vmatprep.subr.bf16.mxu0 %v1895_v0  ;;  %1765 = vmatprep.subr.bf16.mxu1 %v1895_v0  ;;  %v1870_v0 = vld [vmem:[%s2428_s0 + $0x1b0] ss:$8 sps:$4 sm:$0xff]  }
  0x3e   :  { %561 = vmatpush2.bf16.msra.mxu0 %v1798_v18  ;;  %1781 = vmatpush2.bf16.msra.mxu1 %v1798_v18 }
  0x41   :  { %563 = vmatmul.mubr.bf16.vlgmr.msra.gmra.mxu0 %v1799_v19  ;;  %691 = vmatmul.mubr.bf16.vlgmr.msra.gmra.mxu1 %v1802_v20 }
  0x42   :  { %570 = vmatprep.mubr.bf16.mxu0 %v1805_v21  ;;  %698 = vmatprep.mubr.bf16.mxu1 %v1807_v22  ;;  %v2202_v21 = vld [vmem:[%s2430_s3] ss:$0 sm:$0xff] }
  0x49   :  { %571 = vmatmul.mubr.bf16.gmra.mxu0 %v1809_v23  ;;  %699 = vmatmul.mubr.bf16.gmra.mxu1 %v1810_v24 }
  0x4a   :  { %578 = vmatprep.mubr.bf16.mxu0 %v1811_v25  ;;  %706 = vmatprep.mubr.bf16.mxu1 %v1813_v26 }
  0x51   :  { %579 = vmatmul.mubr.bf16.gmra.mxu0 %v1815_v27  ;;  %707 = vmatmul.mubr.bf16.gmra.mxu1 %v1816_v28 }
  0x52   :  { %586 = vmatprep.mubr.bf16.mxu0 %v1817_v29  ;;  %714 = vmatprep.mubr.bf16.mxu1 %v1819_v30 }
  0x59   :  { %587 = vmatmul.mubr.bf16.gmra.mxu0 %v1821_v31  ;;  %715 = vmatmul.mubr.bf16.gmra.mxu1 %v1822_v32 }
  0x5a   :  { %594 = vmatprep.mubr.bf16.mxu0 %v1823_v33  ;;  %722 = vmatprep.mubr.bf16.mxu1 %v1825_v34 }
  0x61   :  { %595 = vmatmul.mubr.bf16.gmra.mxu0 %v1827_v35  ;;  %723 = vmatmul.mubr.bf16.gmra.mxu1 %v1828_v36 }
  0x62   :  { %602 = vmatprep.mubr.bf16.mxu0 %v1829_v37  ;;  %730 = vmatprep.mubr.bf16.mxu1 %v1831_v38 }
  0x69   :  { %603 = vmatmul.mubr.bf16.gmra.mxu0 %v1833_v39  ;;  %731 = vmatmul.mubr.bf16.gmra.mxu1 %v1834_v40 }
  0x6a   :  { %610 = vmatprep.mubr.bf16.mxu0 %v1835_v41  ;;  %738 = vmatprep.mubr.bf16.mxu1 %v1837_v42 }
  0x71   :  { %611 = vmatmul.mubr.bf16.gmra.mxu0 %v1839_v43  ;;  %739 = vmatmul.mubr.bf16.gmra.mxu1 %v1840_v44 }
  0x72   :  { %618 = vmatprep.mubr.bf16.mxu0 %v1841_v45  ;;  %746 = vmatprep.mubr.bf16.mxu1 %v1843_v46 }
  0x79   :  { %619 = vmatmul.mubr.bf16.gmra.mxu0 %v1845_v47  ;;  %747 = vmatmul.mubr.bf16.gmra.mxu1 %v1846_v48 }
  0x7a   :  { %626 = vmatprep.mubr.bf16.mxu0 %v1847_v49  ;;  %754 = vmatprep.mubr.bf16.mxu1 %v1849_v50 }
  0x81   :  { %627 = vmatmul.mubr.bf16.gmra.mxu0 %v1851_v51  ;;  %755 = vmatmul.mubr.bf16.gmra.mxu1 %v1852_v52 }
  0x82   :  { %634 = vmatprep.mubr.bf16.mxu0 %v1853_v53  ;;  %762 = vmatprep.mubr.bf16.mxu1 %v1855_v54 }
  0x89   :  { %635 = vmatmul.mubr.bf16.gmra.mxu0 %v1857_v55  ;;  %763 = vmatmul.mubr.bf16.gmra.mxu1 %v1858_v56 }
  0x8a   :  { %642 = vmatprep.mubr.bf16.mxu0 %v1859_v57  ;;  %770 = vmatprep.mubr.bf16.mxu1 %v1861_v58 }
  0x91   :  { %643 = vmatmul.mubr.bf16.gmra.mxu0 %v1863_v59  ;;  %771 = vmatmul.mubr.bf16.gmra.mxu1 %v1864_v60 }
  0x92   :  { %650 = vmatprep.mubr.bf16.mxu0 %v1865_v61  ;;  %778 = vmatprep.mubr.bf16.mxu1 %v1867_v62 }
  0x99   :  { %651 = vmatmul.mubr.bf16.gmra.mxu0 %v1869_v63  ;;  %779 = vmatmul.mubr.bf16.gmra.mxu1 %v1870_v0 }
  0x9a   :  { %658 = vmatprep.mubr.bf16.mxu0 %v1871_v1  ;;  %786 = vmatprep.mubr.bf16.mxu1 %v1873_v2 }
  0xa1   :  { %659 = vmatmul.mubr.bf16.gmra.mxu0 %v1875_v3  ;;  %787 = vmatmul.mubr.bf16.gmra.mxu1 %v1876_v4 }
  0xa2   :  { %666 = vmatprep.mubr.bf16.mxu0 %v1877_v5  ;;  %794 = vmatprep.mubr.bf16.mxu1 %v1879_v6 }
  0xa9   :  { %667 = vmatmul.mubr.bf16.gmra.mxu0 %v1881_v7  ;;  %795 = vmatmul.mubr.bf16.gmra.mxu1 %v1882_v8 }
  0xaa   :  { %674 = vmatprep.mubr.bf16.mxu0 %v1883_v9  ;;  %802 = vmatprep.mubr.bf16.mxu1 %v1885_v10 }
  0xb1   :  { %675 = vmatmul.mubr.bf16.gmra.mxu0 %v1887_v11  ;;  %803 = vmatmul.mubr.bf16.gmra.mxu1 %v1888_v12 }
  0xb2   :  { %682 = vmatprep.mubr.bf16.mxu0 %v1889_v13  ;;  %810 = vmatprep.mubr.bf16.mxu1 %v1891_v14 }
  0xb9   :  { %683 = vmatmul.mubr.bf16.gmra.mxu0 %v1893_v15  ;;  %811 = vmatmul.mubr.bf16.gmra.mxu1 %v1894_v16 }
 0x101   :  { %v564_v18 = vpop.f32.mrf.mxu0  ;;  %v692_v19 = vpop.f32.mrf.mxu1 }
 0x102   :  { %v826_v20 = vmul.f32 %v2196_v17, %v564_v18  ;;  %v858_v22 = vmul.f32 %v2196_v17, %v692_v19 }
 0x103   :  { %v566_v23 = vpop.f32.mrf.mxu0  ;;  %v694_v24 = vpop.f32.mrf.mxu1 }
 0x104   :  { %v897_v25 = vadd.f32 %v2202_v21, %v826_v20  ;;  %v929_v26 = vadd.f32 %v2202_v21, %v858_v22 }
 0x105   :  { %v567_v27 = vpop.f32.mrf.mxu0  ;;  %v695_v28 = vpop.f32.mrf.mxu1 }
 0x106   :  { %v827_v29 = vmul.f32 %v2196_v17, %v567_v27  ;;  %v859_v30 = vmul.f32 %v2196_v17, %v695_v28  ;;  %v961_v35 = vmax.f32 %v897_v25, 0.0  ;;  %v993_v36 = vmax.f32 %v929_v26, 0.0 }
 0x107   :  { %v569_v31 = vpop.f32.mrf.mxu0  ;;  %v697_v32 = vpop.f32.mrf.mxu1 }
 0x108   :  { %v898_v33 = vadd.f32 %v2202_v21, %v827_v29  ;;  %v930_v34 = vadd.f32 %v2202_v21, %v859_v30 }
 0x109   :  { %v572_v37 = vpop.f32.mrf.mxu0  ;;  %v700_v38 = vpop.f32.mrf.mxu1 }
 0x10a   :  { %v962_v39 = vmax.f32 %v898_v33, 0.0  ;;  %v994_v40 = vmax.f32 %v930_v34, 0.0  ;;  %v828_v41 = vmul.f32 %v2196_v17, %v572_v37  ;;  %v860_v42 = vmul.f32 %v2196_v17, %v700_v38 }
 0x10b   :  { %v574_v43 = vpop.f32.mrf.mxu0  ;;  %v702_v44 = vpop.f32.mrf.mxu1 }
 0x10c   :  { %v1562_v45 = vpack.c.bf16 %v962_v39, %v961_v35  ;;  %v1642_v46 = vpack.c.bf16 %v994_v40, %v993_v36  ;;  %v899_v47 = vadd.f32 %v2202_v21, %v828_v41  ;;  %v931_v48 = vadd.f32 %v2202_v21, %v860_v42 }
 0x10d   :  { %v575_v49 = vpop.f32.mrf.mxu0  ;;  %v703_v50 = vpop.f32.mrf.mxu1 }
 0x10e   :  { %1563 = vst [vmem:[%s2431_s4] sm:$0xff] %v1562_v45   ;;  %1734 = vst [vmem:[%s2431_s4 + $0x80] sm:$0xff] %v1642_v46   ;;  %v829_v51 = vmul.f32 %v2196_v17, %v575_v49  ;;  %v861_v52 = vmul.f32 %v2196_v17, %v703_v50  ;;  %v963_v57 = vmax.f32 %v899_v47, 0.0  ;;  %v995_v58 = vmax.f32 %v931_v48, 0.0 }
 0x10f   :  { %v577_v53 = vpop.f32.mrf.mxu0  ;;  %v705_v54 = vpop.f32.mrf.mxu1 }
 0x110   :  { %v900_v55 = vadd.f32 %v2202_v21, %v829_v51  ;;  %v932_v56 = vadd.f32 %v2202_v21, %v861_v52 }
 0x111   :  { %v580_v59 = vpop.f32.mrf.mxu0  ;;  %v708_v60 = vpop.f32.mrf.mxu1 }
 0x112   :  { %v964_v61 = vmax.f32 %v900_v55, 0.0  ;;  %v996_v62 = vmax.f32 %v932_v56, 0.0  ;;  %v830_v63 = vmul.f32 %v2196_v17, %v580_v59  ;;  %v862_v0 = vmul.f32 %v2196_v17, %v708_v60 }
 0x113   :  { %v582_v1 = vpop.f32.mrf.mxu0  ;;  %v710_v2 = vpop.f32.mrf.mxu1 }
 0x114   :  { %v1567_v3 = vpack.c.bf16 %v964_v61, %v963_v57  ;;  %v1647_v4 = vpack.c.bf16 %v996_v62, %v995_v58  ;;  %v901_v5 = vadd.f32 %v2202_v21, %v830_v63  ;;  %v933_v6 = vadd.f32 %v2202_v21, %v862_v0 }
 0x115   :  { %v583_v7 = vpop.f32.mrf.mxu0  ;;  %v711_v8 = vpop.f32.mrf.mxu1 }
 0x116   :  { %1719 = vst [vmem:[%s2431_s4 + $0x8] sm:$0xff] %v1567_v3   ;;  %1735 = vst [vmem:[%s2431_s4 + $0x88] sm:$0xff] %v1647_v4   ;;  %v831_v9 = vmul.f32 %v2196_v17, %v583_v7  ;;  %v863_v10 = vmul.f32 %v2196_v17, %v711_v8  ;;  %v965_v15 = vmax.f32 %v901_v5, 0.0  ;;  %v997_v16 = vmax.f32 %v933_v6, 0.0 }
 0x117   :  { %v585_v11 = vpop.f32.mrf.mxu0  ;;  %v713_v12 = vpop.f32.mrf.mxu1 }
 0x118   :  { %v902_v13 = vadd.f32 %v2202_v21, %v831_v9  ;;  %v934_v14 = vadd.f32 %v2202_v21, %v863_v10 }
 0x119   :  { %v588_v18 = vpop.f32.mrf.mxu0  ;;  %v716_v19 = vpop.f32.mrf.mxu1 }
 0x11a   :  { %v966_v20 = vmax.f32 %v902_v13, 0.0  ;;  %v998_v22 = vmax.f32 %v934_v14, 0.0  ;;  %v832_v23 = vmul.f32 %v2196_v17, %v588_v18  ;;  %v864_v24 = vmul.f32 %v2196_v17, %v716_v19 }
 0x11b   :  { %v590_v25 = vpop.f32.mrf.mxu0  ;;  %v718_v26 = vpop.f32.mrf.mxu1 }
 0x11c   :  { %v1572_v27 = vpack.c.bf16 %v966_v20, %v965_v15  ;;  %v1652_v28 = vpack.c.bf16 %v998_v22, %v997_v16  ;;  %v903_v29 = vadd.f32 %v2202_v21, %v832_v23  ;;  %v935_v30 = vadd.f32 %v2202_v21, %v864_v24 }
 0x11d   :  { %v591_v31 = vpop.f32.mrf.mxu0  ;;  %v719_v32 = vpop.f32.mrf.mxu1 }
 0x11e   :  { %1720 = vst [vmem:[%s2431_s4 + $0x10] sm:$0xff] %v1572_v27   ;;  %1736 = vst [vmem:[%s2431_s4 + $0x90] sm:$0xff] %v1652_v28   ;;  %v833_v33 = vmul.f32 %v2196_v17, %v591_v31  ;;  %v865_v34 = vmul.f32 %v2196_v17, %v719_v32  ;;  %v967_v39 = vmax.f32 %v903_v29, 0.0  ;;  %v999_v40 = vmax.f32 %v935_v30, 0.0 }
 0x11f   :  { %v593_v35 = vpop.f32.mrf.mxu0  ;;  %v721_v36 = vpop.f32.mrf.mxu1 }
 0x120   :  { %v904_v37 = vadd.f32 %v2202_v21, %v833_v33  ;;  %v936_v38 = vadd.f32 %v2202_v21, %v865_v34 }
 0x121   :  { %v596_v41 = vpop.f32.mrf.mxu0  ;;  %v724_v42 = vpop.f32.mrf.mxu1 }
 0x122   :  { %v968_v43 = vmax.f32 %v904_v37, 0.0  ;;  %v1000_v44 = vmax.f32 %v936_v38, 0.0  ;;  %v834_v45 = vmul.f32 %v2196_v17, %v596_v41  ;;  %v866_v46 = vmul.f32 %v2196_v17, %v724_v42 }
 0x123   :  { %v598_v47 = vpop.f32.mrf.mxu0  ;;  %v726_v48 = vpop.f32.mrf.mxu1 }
 0x124   :  { %v1577_v49 = vpack.c.bf16 %v968_v43, %v967_v39  ;;  %v1657_v50 = vpack.c.bf16 %v1000_v44, %v999_v40  ;;  %v905_v51 = vadd.f32 %v2202_v21, %v834_v45  ;;  %v937_v52 = vadd.f32 %v2202_v21, %v866_v46 }
 0x125   :  { %v599_v53 = vpop.f32.mrf.mxu0  ;;  %v727_v54 = vpop.f32.mrf.mxu1 }
 0x126   :  { %1721 = vst [vmem:[%s2431_s4 + $0x18] sm:$0xff] %v1577_v49   ;;  %1737 = vst [vmem:[%s2431_s4 + $0x98] sm:$0xff] %v1657_v50   ;;  %v835_v55 = vmul.f32 %v2196_v17, %v599_v53  ;;  %v867_v56 = vmul.f32 %v2196_v17, %v727_v54  ;;  %v969_v61 = vmax.f32 %v905_v51, 0.0  ;;  %v1001_v62 = vmax.f32 %v937_v52, 0.0 }
 0x127   :  { %v601_v57 = vpop.f32.mrf.mxu0  ;;  %v729_v58 = vpop.f32.mrf.mxu1 }
 0x128   :  { %v906_v59 = vadd.f32 %v2202_v21, %v835_v55  ;;  %v938_v60 = vadd.f32 %v2202_v21, %v867_v56 }
 0x129   :  { %v604_v63 = vpop.f32.mrf.mxu0  ;;  %v732_v0 = vpop.f32.mrf.mxu1 }
 0x12a   :  { %v970_v1 = vmax.f32 %v906_v59, 0.0  ;;  %v1002_v2 = vmax.f32 %v938_v60, 0.0  ;;  %v836_v3 = vmul.f32 %v2196_v17, %v604_v63  ;;  %v868_v4 = vmul.f32 %v2196_v17, %v732_v0 }
 0x12b   :  { %v606_v5 = vpop.f32.mrf.mxu0  ;;  %v734_v6 = vpop.f32.mrf.mxu1 }
 0x12c   :  { %v1582_v7 = vpack.c.bf16 %v970_v1, %v969_v61  ;;  %v1662_v8 = vpack.c.bf16 %v1002_v2, %v1001_v62  ;;  %v907_v9 = vadd.f32 %v2202_v21, %v836_v3  ;;  %v939_v10 = vadd.f32 %v2202_v21, %v868_v4 }
 0x12d   :  { %v607_v11 = vpop.f32.mrf.mxu0  ;;  %v735_v12 = vpop.f32.mrf.mxu1 }
 0x12e   :  { %1722 = vst [vmem:[%s2431_s4 + $0x20] sm:$0xff] %v1582_v7   ;;  %1738 = vst [vmem:[%s2431_s4 + $0xa0] sm:$0xff] %v1662_v8   ;;  %v837_v13 = vmul.f32 %v2196_v17, %v607_v11  ;;  %v869_v14 = vmul.f32 %v2196_v17, %v735_v12  ;;  %v971_v20 = vmax.f32 %v907_v9, 0.0  ;;  %v1003_v22 = vmax.f32 %v939_v10, 0.0 }
 0x12f   :  { %v609_v15 = vpop.f32.mrf.mxu0  ;;  %v737_v16 = vpop.f32.mrf.mxu1 }
 0x130   :  { %v908_v18 = vadd.f32 %v2202_v21, %v837_v13  ;;  %v940_v19 = vadd.f32 %v2202_v21, %v869_v14 }
 0x131   :  { %v612_v23 = vpop.f32.mrf.mxu0  ;;  %v740_v24 = vpop.f32.mrf.mxu1 }
 0x132   :  { %v972_v25 = vmax.f32 %v908_v18, 0.0  ;;  %v1004_v26 = vmax.f32 %v940_v19, 0.0  ;;  %v838_v27 = vmul.f32 %v2196_v17, %v612_v23  ;;  %v870_v28 = vmul.f32 %v2196_v17, %v740_v24 }
 0x133   :  { %v614_v29 = vpop.f32.mrf.mxu0  ;;  %v742_v30 = vpop.f32.mrf.mxu1 }
 0x134   :  { %v1587_v31 = vpack.c.bf16 %v972_v25, %v971_v20  ;;  %v1667_v32 = vpack.c.bf16 %v1004_v26, %v1003_v22  ;;  %v909_v33 = vadd.f32 %v2202_v21, %v838_v27  ;;  %v941_v34 = vadd.f32 %v2202_v21, %v870_v28 }
 0x135   :  { %v615_v35 = vpop.f32.mrf.mxu0  ;;  %v743_v36 = vpop.f32.mrf.mxu1 }
 0x136   :  { %1723 = vst [vmem:[%s2431_s4 + $0x28] sm:$0xff] %v1587_v31   ;;  %1739 = vst [vmem:[%s2431_s4 + $0xa8] sm:$0xff] %v1667_v32   ;;  %v839_v37 = vmul.f32 %v2196_v17, %v615_v35  ;;  %v871_v38 = vmul.f32 %v2196_v17, %v743_v36  ;;  %v973_v43 = vmax.f32 %v909_v33, 0.0  ;;  %v1005_v44 = vmax.f32 %v941_v34, 0.0 }
 0x137   :  { %v617_v39 = vpop.f32.mrf.mxu0  ;;  %v745_v40 = vpop.f32.mrf.mxu1 }
 0x138   :  { %v910_v41 = vadd.f32 %v2202_v21, %v839_v37  ;;  %v942_v42 = vadd.f32 %v2202_v21, %v871_v38 }
 0x139   :  { %v620_v45 = vpop.f32.mrf.mxu0  ;;  %v748_v46 = vpop.f32.mrf.mxu1 }
 0x13a   :  { %v974_v47 = vmax.f32 %v910_v41, 0.0  ;;  %v1006_v48 = vmax.f32 %v942_v42, 0.0  ;;  %v840_v49 = vmul.f32 %v2196_v17, %v620_v45  ;;  %v872_v50 = vmul.f32 %v2196_v17, %v748_v46 }
 0x13b   :  { %v622_v51 = vpop.f32.mrf.mxu0  ;;  %v750_v52 = vpop.f32.mrf.mxu1 }
 0x13c   :  { %v1592_v53 = vpack.c.bf16 %v974_v47, %v973_v43  ;;  %v1672_v54 = vpack.c.bf16 %v1006_v48, %v1005_v44  ;;  %v911_v55 = vadd.f32 %v2202_v21, %v840_v49  ;;  %v943_v56 = vadd.f32 %v2202_v21, %v872_v50 }
 0x13d   :  { %v623_v57 = vpop.f32.mrf.mxu0  ;;  %v751_v58 = vpop.f32.mrf.mxu1 }
 0x13e   :  { %1724 = vst [vmem:[%s2431_s4 + $0x30] sm:$0xff] %v1592_v53   ;;  %1740 = vst [vmem:[%s2431_s4 + $0xb0] sm:$0xff] %v1672_v54   ;;  %v841_v59 = vmul.f32 %v2196_v17, %v623_v57  ;;  %v873_v60 = vmul.f32 %v2196_v17, %v751_v58  ;;  %v975_v1 = vmax.f32 %v911_v55, 0.0  ;;  %v1007_v2 = vmax.f32 %v943_v56, 0.0 }
 0x13f   :  { %v625_v61 = vpop.f32.mrf.mxu0  ;;  %v753_v62 = vpop.f32.mrf.mxu1 }
 0x140   :  { %v912_v63 = vadd.f32 %v2202_v21, %v841_v59  ;;  %v944_v0 = vadd.f32 %v2202_v21, %v873_v60 }
 0x141   :  { %v628_v3 = vpop.f32.mrf.mxu0  ;;  %v756_v4 = vpop.f32.mrf.mxu1 }
 0x142   :  { %v976_v5 = vmax.f32 %v912_v63, 0.0  ;;  %v1008_v6 = vmax.f32 %v944_v0, 0.0  ;;  %v842_v7 = vmul.f32 %v2196_v17, %v628_v3  ;;  %v874_v8 = vmul.f32 %v2196_v17, %v756_v4 }
 0x143   :  { %v630_v9 = vpop.f32.mrf.mxu0  ;;  %v758_v10 = vpop.f32.mrf.mxu1 }
 0x144   :  { %v1597_v11 = vpack.c.bf16 %v976_v5, %v975_v1  ;;  %v1677_v12 = vpack.c.bf16 %v1008_v6, %v1007_v2  ;;  %v913_v13 = vadd.f32 %v2202_v21, %v842_v7  ;;  %v945_v14 = vadd.f32 %v2202_v21, %v874_v8 }
 0x145   :  { %v631_v15 = vpop.f32.mrf.mxu0  ;;  %v759_v16 = vpop.f32.mrf.mxu1 }
 0x146   :  { %1725 = vst [vmem:[%s2431_s4 + $0x38] sm:$0xff] %v1597_v11   ;;  %1741 = vst [vmem:[%s2431_s4 + $0xb8] sm:$0xff] %v1677_v12   ;;  %v843_v18 = vmul.f32 %v2196_v17, %v631_v15  ;;  %v875_v19 = vmul.f32 %v2196_v17, %v759_v16  ;;  %v977_v25 = vmax.f32 %v913_v13, 0.0  ;;  %v1009_v26 = vmax.f32 %v945_v14, 0.0 }
 0x147   :  { %v633_v20 = vpop.f32.mrf.mxu0  ;;  %v761_v22 = vpop.f32.mrf.mxu1 }
 0x148   :  { %v914_v23 = vadd.f32 %v2202_v21, %v843_v18  ;;  %v946_v24 = vadd.f32 %v2202_v21, %v875_v19 }
 0x149   :  { %v636_v27 = vpop.f32.mrf.mxu0  ;;  %v764_v28 = vpop.f32.mrf.mxu1 }
 0x14a   :  { %v978_v29 = vmax.f32 %v914_v23, 0.0  ;;  %v1010_v30 = vmax.f32 %v946_v24, 0.0  ;;  %v844_v31 = vmul.f32 %v2196_v17, %v636_v27  ;;  %v876_v32 = vmul.f32 %v2196_v17, %v764_v28 }
 0x14b   :  { %v638_v33 = vpop.f32.mrf.mxu0  ;;  %v766_v34 = vpop.f32.mrf.mxu1 }
 0x14c   :  { %v1602_v35 = vpack.c.bf16 %v978_v29, %v977_v25  ;;  %v1682_v36 = vpack.c.bf16 %v1010_v30, %v1009_v26  ;;  %v915_v37 = vadd.f32 %v2202_v21, %v844_v31  ;;  %v947_v38 = vadd.f32 %v2202_v21, %v876_v32 }
 0x14d   :  { %v639_v39 = vpop.f32.mrf.mxu0  ;;  %v767_v40 = vpop.f32.mrf.mxu1 }
 0x14e   :  { %1726 = vst [vmem:[%s2431_s4 + $0x40] sm:$0xff] %v1602_v35   ;;  %1742 = vst [vmem:[%s2431_s4 + $0xc0] sm:$0xff] %v1682_v36   ;;  %v845_v41 = vmul.f32 %v2196_v17, %v639_v39  ;;  %v877_v42 = vmul.f32 %v2196_v17, %v767_v40  ;;  %v979_v47 = vmax.f32 %v915_v37, 0.0  ;;  %v1011_v48 = vmax.f32 %v947_v38, 0.0 }
 0x14f   :  { %v641_v43 = vpop.f32.mrf.mxu0  ;;  %v769_v44 = vpop.f32.mrf.mxu1 }
 0x150   :  { %v916_v45 = vadd.f32 %v2202_v21, %v845_v41  ;;  %v948_v46 = vadd.f32 %v2202_v21, %v877_v42 }
 0x151   :  { %v644_v49 = vpop.f32.mrf.mxu0  ;;  %v772_v50 = vpop.f32.mrf.mxu1 }
 0x152   :  { %v980_v51 = vmax.f32 %v916_v45, 0.0  ;;  %v1012_v52 = vmax.f32 %v948_v46, 0.0  ;;  %v846_v53 = vmul.f32 %v2196_v17, %v644_v49  ;;  %v878_v54 = vmul.f32 %v2196_v17, %v772_v50 }
 0x153   :  { %v646_v55 = vpop.f32.mrf.mxu0  ;;  %v774_v56 = vpop.f32.mrf.mxu1 }
 0x154   :  { %v1607_v57 = vpack.c.bf16 %v980_v51, %v979_v47  ;;  %v1687_v58 = vpack.c.bf16 %v1012_v52, %v1011_v48  ;;  %v917_v59 = vadd.f32 %v2202_v21, %v846_v53  ;;  %v949_v60 = vadd.f32 %v2202_v21, %v878_v54 }
 0x155   :  { %v647_v61 = vpop.f32.mrf.mxu0  ;;  %v775_v62 = vpop.f32.mrf.mxu1 }
 0x156   :  { %1727 = vst [vmem:[%s2431_s4 + $0x48] sm:$0xff] %v1607_v57   ;;  %1743 = vst [vmem:[%s2431_s4 + $0xc8] sm:$0xff] %v1687_v58   ;;  %v847_v63 = vmul.f32 %v2196_v17, %v647_v61  ;;  %v879_v0 = vmul.f32 %v2196_v17, %v775_v62  ;;  %v981_v5 = vmax.f32 %v917_v59, 0.0  ;;  %v1013_v6 = vmax.f32 %v949_v60, 0.0 }
 0x157   :  { %v649_v1 = vpop.f32.mrf.mxu0  ;;  %v777_v2 = vpop.f32.mrf.mxu1 }
 0x158   :  { %v918_v3 = vadd.f32 %v2202_v21, %v847_v63  ;;  %v950_v4 = vadd.f32 %v2202_v21, %v879_v0 }
 0x159   :  { %v652_v7 = vpop.f32.mrf.mxu0  ;;  %v780_v8 = vpop.f32.mrf.mxu1 }
 0x15a   :  { %v982_v9 = vmax.f32 %v918_v3, 0.0  ;;  %v1014_v10 = vmax.f32 %v950_v4, 0.0  ;;  %v848_v11 = vmul.f32 %v2196_v17, %v652_v7  ;;  %v880_v12 = vmul.f32 %v2196_v17, %v780_v8 }
 0x15b   :  { %v654_v13 = vpop.f32.mrf.mxu0  ;;  %v782_v14 = vpop.f32.mrf.mxu1 }
 0x15c   :  { %v1612_v15 = vpack.c.bf16 %v982_v9, %v981_v5  ;;  %v1692_v16 = vpack.c.bf16 %v1014_v10, %v1013_v6  ;;  %v919_v18 = vadd.f32 %v2202_v21, %v848_v11  ;;  %v951_v19 = vadd.f32 %v2202_v21, %v880_v12 }
 0x15d   :  { %v655_v20 = vpop.f32.mrf.mxu0  ;;  %v783_v22 = vpop.f32.mrf.mxu1 }
 0x15e   :  { %1728 = vst [vmem:[%s2431_s4 + $0x50] sm:$0xff] %v1612_v15   ;;  %1744 = vst [vmem:[%s2431_s4 + $0xd0] sm:$0xff] %v1692_v16   ;;  %v849_v23 = vmul.f32 %v2196_v17, %v655_v20  ;;  %v881_v24 = vmul.f32 %v2196_v17, %v783_v22  ;;  %v983_v29 = vmax.f32 %v919_v18, 0.0  ;;  %v1015_v30 = vmax.f32 %v951_v19, 0.0 }
 0x15f   :  { %v657_v25 = vpop.f32.mrf.mxu0  ;;  %v785_v26 = vpop.f32.mrf.mxu1 }
 0x160   :  { %v920_v27 = vadd.f32 %v2202_v21, %v849_v23  ;;  %v952_v28 = vadd.f32 %v2202_v21, %v881_v24 }
 0x161   :  { %v660_v31 = vpop.f32.mrf.mxu0  ;;  %v788_v32 = vpop.f32.mrf.mxu1 }
 0x162   :  { %v984_v33 = vmax.f32 %v920_v27, 0.0  ;;  %v1016_v34 = vmax.f32 %v952_v28, 0.0  ;;  %v850_v35 = vmul.f32 %v2196_v17, %v660_v31  ;;  %v882_v36 = vmul.f32 %v2196_v17, %v788_v32 }
 0x163   :  { %v662_v37 = vpop.f32.mrf.mxu0  ;;  %v790_v38 = vpop.f32.mrf.mxu1 }
 0x164   :  { %v1617_v39 = vpack.c.bf16 %v984_v33, %v983_v29  ;;  %v1697_v40 = vpack.c.bf16 %v1016_v34, %v1015_v30  ;;  %v921_v41 = vadd.f32 %v2202_v21, %v850_v35  ;;  %v953_v42 = vadd.f32 %v2202_v21, %v882_v36 }
 0x165   :  { %v663_v43 = vpop.f32.mrf.mxu0  ;;  %v791_v44 = vpop.f32.mrf.mxu1 }
 0x166   :  { %1729 = vst [vmem:[%s2431_s4 + $0x58] sm:$0xff] %v1617_v39   ;;  %1745 = vst [vmem:[%s2431_s4 + $0xd8] sm:$0xff] %v1697_v40   ;;  %v851_v45 = vmul.f32 %v2196_v17, %v663_v43  ;;  %v883_v46 = vmul.f32 %v2196_v17, %v791_v44  ;;  %v985_v51 = vmax.f32 %v921_v41, 0.0  ;;  %v1017_v52 = vmax.f32 %v953_v42, 0.0 }
 0x167   :  { %v665_v47 = vpop.f32.mrf.mxu0  ;;  %v793_v48 = vpop.f32.mrf.mxu1 }
 0x168   :  { %v922_v49 = vadd.f32 %v2202_v21, %v851_v45  ;;  %v954_v50 = vadd.f32 %v2202_v21, %v883_v46 }
 0x169   :  { %v668_v53 = vpop.f32.mrf.mxu0  ;;  %v796_v54 = vpop.f32.mrf.mxu1 }
 0x16a   :  { %v986_v55 = vmax.f32 %v922_v49, 0.0  ;;  %v1018_v56 = vmax.f32 %v954_v50, 0.0  ;;  %v852_v57 = vmul.f32 %v2196_v17, %v668_v53  ;;  %v884_v58 = vmul.f32 %v2196_v17, %v796_v54 }
 0x16b   :  { %v670_v59 = vpop.f32.mrf.mxu0  ;;  %v798_v60 = vpop.f32.mrf.mxu1 }
 0x16c   :  { %v1622_v61 = vpack.c.bf16 %v986_v55, %v985_v51  ;;  %v1702_v62 = vpack.c.bf16 %v1018_v56, %v1017_v52  ;;  %v923_v63 = vadd.f32 %v2202_v21, %v852_v57  ;;  %v955_v0 = vadd.f32 %v2202_v21, %v884_v58 }
 0x16d   :  { %v671_v1 = vpop.f32.mrf.mxu0  ;;  %v799_v2 = vpop.f32.mrf.mxu1 }
 0x16e   :  { %1730 = vst [vmem:[%s2431_s4 + $0x60] sm:$0xff] %v1622_v61   ;;  %1746 = vst [vmem:[%s2431_s4 + $0xe0] sm:$0xff] %v1702_v62   ;;  %v853_v3 = vmul.f32 %v2196_v17, %v671_v1  ;;  %v885_v4 = vmul.f32 %v2196_v17, %v799_v2  ;;  %v987_v9 = vmax.f32 %v923_v63, 0.0  ;;  %v1019_v10 = vmax.f32 %v955_v0, 0.0 }
 0x16f   :  { %v673_v5 = vpop.f32.mrf.mxu0  ;;  %v801_v6 = vpop.f32.mrf.mxu1 }
 0x170   :  { %v924_v7 = vadd.f32 %v2202_v21, %v853_v3  ;;  %v956_v8 = vadd.f32 %v2202_v21, %v885_v4 }
 0x171   :  { %v676_v11 = vpop.f32.mrf.mxu0  ;;  %v804_v12 = vpop.f32.mrf.mxu1 }
 0x172   :  { %v988_v13 = vmax.f32 %v924_v7, 0.0  ;;  %v1020_v14 = vmax.f32 %v956_v8, 0.0  ;;  %v854_v15 = vmul.f32 %v2196_v17, %v676_v11  ;;  %v886_v16 = vmul.f32 %v2196_v17, %v804_v12 }
 0x173   :  { %v678_v18 = vpop.f32.mrf.mxu0  ;;  %v806_v19 = vpop.f32.mrf.mxu1 }
 0x174   :  { %v1627_v20 = vpack.c.bf16 %v988_v13, %v987_v9  ;;  %v1707_v22 = vpack.c.bf16 %v1020_v14, %v1019_v10  ;;  %v925_v23 = vadd.f32 %v2202_v21, %v854_v15  ;;  %v957_v24 = vadd.f32 %v2202_v21, %v886_v16 }
 0x175   :  { %v679_v25 = vpop.f32.mrf.mxu0  ;;  %v807_v26 = vpop.f32.mrf.mxu1 }
 0x176   :  { %1731 = vst [vmem:[%s2431_s4 + $0x68] sm:$0xff] %v1627_v20   ;;  %1747 = vst [vmem:[%s2431_s4 + $0xe8] sm:$0xff] %v1707_v22   ;;  %v855_v27 = vmul.f32 %v2196_v17, %v679_v25  ;;  %v887_v28 = vmul.f32 %v2196_v17, %v807_v26  ;;  %v989_v33 = vmax.f32 %v925_v23, 0.0  ;;  %v1021_v34 = vmax.f32 %v957_v24, 0.0 }
 0x177   :  { %v681_v29 = vpop.f32.mrf.mxu0  ;;  %v809_v30 = vpop.f32.mrf.mxu1 }
 0x178   :  { %v926_v31 = vadd.f32 %v2202_v21, %v855_v27  ;;  %v958_v32 = vadd.f32 %v2202_v21, %v887_v28 }
 0x179   :  { %v684_v35 = vpop.f32.mrf.mxu0  ;;  %v812_v36 = vpop.f32.mrf.mxu1 }
 0x17a   :  { %v990_v37 = vmax.f32 %v926_v31, 0.0  ;;  %v1022_v38 = vmax.f32 %v958_v32, 0.0  ;;  %v856_v39 = vmul.f32 %v2196_v17, %v684_v35  ;;  %v888_v40 = vmul.f32 %v2196_v17, %v812_v36 }
 0x17b   :  { %v686_v41 = vpop.f32.mrf.mxu0  ;;  %v814_v42 = vpop.f32.mrf.mxu1 }
 0x17c   :  { %v1632_v43 = vpack.c.bf16 %v990_v37, %v989_v33  ;;  %v1712_v44 = vpack.c.bf16 %v1022_v38, %v1021_v34  ;;  %v927_v47 = vadd.f32 %v2202_v21, %v856_v39  ;;  %v959_v48 = vadd.f32 %v2202_v21, %v888_v40 }
 0x17d   :  { %v687_v45 = vpop.f32.mrf.mxu0  ;;  %v815_v46 = vpop.f32.mrf.mxu1 }
 0x17e   :  { %1732 = vst [vmem:[%s2431_s4 + $0x70] sm:$0xff] %v1632_v43   ;;  %1748 = vst [vmem:[%s2431_s4 + $0xf0] sm:$0xff] %v1712_v44   ;;  %v857_v49 = vmul.f32 %v2196_v17, %v687_v45  ;;  %v889_v50 = vmul.f32 %v2196_v17, %v815_v46  ;;  %v991_v55 = vmax.f32 %v927_v47, 0.0  ;;  %v1023_v56 = vmax.f32 %v959_v48, 0.0 }
 0x17f   :  { %v689_v51 = vpop.f32.mrf.mxu0  ;;  %v817_v52 = vpop.f32.mrf.mxu1 }
 0x180   :  { %v928_v53 = vadd.f32 %v2202_v21, %v857_v49  ;;  %v960_v54 = vadd.f32 %v2202_v21, %v889_v50 }
 0x182   :  { %v992_v57 = vmax.f32 %v928_v53, 0.0  ;;  %v1024_v58 = vmax.f32 %v960_v54, 0.0 }
 0x184   :  { %v1637_v59 = vpack.c.bf16 %v992_v57, %v991_v55  ;;  %v1717_v60 = vpack.c.bf16 %v1024_v58, %v1023_v56 }
 0x186   :  { %1733 = vst [vmem:[%s2431_s4 + $0x78] sm:$0xff] %v1637_v59   ;;  %1749 = vst [vmem:[%s2431_s4 + $0xf8] sm:$0xff] %v1717_v60  }

// kernel: resnet18_forward.24
= control target key start
LH: loop header
LB: loop body
LE: loop exit
PB: predicated region body
PF: predicated region fallthrough
CT: control target
= control target key end

     0   :  { %s1275_s15 = smov 0   ;;  %s1277_s16 = smov 0   ;;  %s1446_s0 = inlined_call_operand.vmem [shape: bf16[128,640], index: 0, kind: input, shape index: {}]   ;;  %s1447_s1 = inlined_call_operand.vmem [shape: bf16[640,128], index: 1, kind: input, shape index: {}]   ;;  %s1448_s2 = inlined_call_operand.vmem [shape: f32[1,128], index: 2, kind: input, shape index: {}]   ;;  %s1449_s3 = inlined_call_operand.vmem [shape: f32[1,128], index: 3, kind: input, shape index: {}]   ;;  %s1450_s4 = inlined_call_operand.vmem [shape: bf16[128,128], index: 4, kind: output, shape index: {}]  }
   0x1   :  { %s1279_s17 = smov 0   ;;  %s1281_s18 = smov 0  }
   0x2   :  { %s1283_s19 = smov 0  }
   0x3 LB: > { %s26_s20 = sadd.s32 1, %s1243_s18  ;;  %p49_p1 = scmp.ne.s32.totalorder %s1235_s16, %s1231_s15  ;;  %s1247_s19 = sphi %s1283_s19, %s14_s19   ;;  %s1243_s18 = sphi %s1281_s18, %s1454_s18   ;;  %s1239_s17 = sphi %s1279_s17, %s1453_s17   ;;  %s1235_s16 = sphi %s1277_s16, %s1452_s16   ;;  %s1231_s15 = sphi %s1275_s15, %s1451_s15  }
   0x4   : > { %p27_p0 = scmp.ge.s32.totalorder %s26_s20, 5  ;;  %p50_p2 = scmp.eq.s32.totalorder %s1247_s19, 0 }
   0x5   : > { %s42_s22 = sadd.s32 1, %s1235_s16  ;;  %p978_p5 = scmp.ge.s32.totalorder %s1247_s19, 5 }
   0x6   : > { %s1456_s20 = smov (%p27_p0, %s26_s20), 0  ;;  %p51_p3 = por %p50_p2, %p49_p1 }
   0x7   : > { %s38_s21 = ssub.s32 %s1243_s18, %s1456_s20  ;;  %195 = sbr.rel (%p978_p5) target bundleno = 26 (0x1a), region = 24 }
   0x8   : > { %p40_p4 = scmp.eq.s32.totalorder %s38_s21, 0 }
   0xa   : > { %s1310_s23 = scalar_select %p40_p4, %s1235_s16, %s42_s22  }
   0xc   : > { %198 = sbr.rel (!%p51_p3) target bundleno = 26 (0x1a), region = 28  ;;  %s200_s24 = sand.u32 (%p51_p3), 1, %s1235_s16  }
   0xd   : > { %s980_s25 = sshll.u32 (%p51_p3), %s1243_s18, 2  ;;  %s979_s26 = sshll.u32 (%p51_p3), %s200_s24, 6 }
   0xe   : > { %s1318_s29 = scalar_lea.vmem (%p51_p3), %s1446_s0, %s980_s25  ;;  %s202_s30 = scalar_lea.vmem (%p51_p3), [#allocation3], %s979_s26 }
   0xf   : > { %v224_v0 = vld [vmem:[%s1318_s29] sm:$0xf] (%p51_p3)  ;;  %v226_v1 = vld [vmem:[%s1318_s29 + $0x14] sm:$0xf] (%p51_p3)  ;;  %v228_v2 = vld [vmem:[%s1318_s29 + $0x28] sm:$0xf] (%p51_p3) }
  0x10   : > { %225 = vst [vmem:[%s202_s30] sm:$0xf] (%p51_p3), %v224_v0  ;;  %227 = vst [vmem:[%s202_s30 + $0x4] sm:$0xf] (%p51_p3), %v226_v1  ;;  %v230_v3 = vld [vmem:[%s1318_s29 + $0x3c] sm:$0xf] (%p51_p3) }
  0x11   : > { %v232_v4 = vld [vmem:[%s1318_s29 + $0x50] sm:$0xf]  ;;  %229 = vst [vmem:[%s202_s30 + $0x8] sm:$0xf] %v228_v2  ;;  %231 = vst [vmem:[%s202_s30 + $0xc] sm:$0xf] %v230_v3 }
  0x12   : > { %233 = vst [vmem:[%s202_s30 + $0x10] sm:$0xf] %v232_v4  ;;  %v234_v5 = vld [vmem:[%s1318_s29 + $0x64] sm:$0xf]  ;;  %v236_v6 = vld [vmem:[%s1318_s29 + $0x78] sm:$0xf] }
  0x13   : > { %v238_v7 = vld [vmem:[%s1318_s29 + $0x8c] sm:$0xf]  ;;  %235 = vst [vmem:[%s202_s30 + $0x14] sm:$0xf] %v234_v5  ;;  %237 = vst [vmem:[%s202_s30 + $0x18] sm:$0xf] %v236_v6 }
  0x14   : > { %239 = vst [vmem:[%s202_s30 + $0x1c] sm:$0xf] %v238_v7  ;;  %v240_v8 = vld [vmem:[%s1318_s29 + $0xa0] sm:$0xf]  ;;  %v242_v9 = vld [vmem:[%s1318_s29 + $0xb4] sm:$0xf] }
  0x15   : > { %v244_v10 = vld [vmem:[%s1318_s29 + $0xc8] sm:$0xf]  ;;  %241 = vst [vmem:[%s202_s30 + $0x20] sm:$0xf] %v240_v8  ;;  %243 = vst [vmem:[%s202_s30 + $0x24] sm:$0xf] %v242_v9 }
  0x16   : > { %245 = vst [vmem:[%s202_s30 + $0x28] sm:$0xf] %v244_v10  ;;  %v246_v11 = vld [vmem:[%s1318_s29 + $0xdc] sm:$0xf]  ;;  %v248_v12 = vld [vmem:[%s1318_s29 + $0xf0] sm:$0xf] }
  0x17   : > { %v250_v13 = vld [vmem:[%s1318_s29 + $0x104] sm:$0xf]  ;;  %247 = vst [vmem:[%s202_s30 + $0x2c] sm:$0xf] %v246_v11  ;;  %249 = vst [vmem:[%s202_s30 + $0x30] sm:$0xf] %v248_v12 }
  0x18   : > { %251 = vst [vmem:[%s202_s30 + $0x34] sm:$0xf] %v250_v13  ;;  %v252_v14 = vld [vmem:[%s1318_s29 + $0x118] sm:$0xf]  ;;  %v254_v15 = vld [vmem:[%s1318_s29 + $0x12c] sm:$0xf] }
  0x19   : > { %253 = vst [vmem:[%s202_s30 + $0x38] sm:$0xf] %v252_v14  ;;  %255 = vst [vmem:[%s202_s30 + $0x3c] sm:$0xf] %v254_v15 }
  0x1a PF: > { %p981_p6 = scmp.ge.s32.totalorder %s1247_s19, 1  ;;  %p322_p7 = scmp.lt.s32.totalorder %s1247_s19, 6 }
  0x1c   : > { %p323_p8 = pnand %p981_p6, %p322_p7 }
  0x1d   : > { %s329_s5 = sand.u32 (!%p323_p8), 1, %s1231_s15   ;;  %s983_s6 = sshll.u32 (!%p323_p8), %s1239_s17, 4 }
  0x1e   : > { %326 = sbr.rel (%p323_p8) target bundleno = 313 (0x139), region = 73  ;;  %s982_s7 = sshll.u32 (!%p323_p8), %s329_s5, 6 }
  0x1f   : > { %p373_p9 = scmp.lt.s32.totalorder (!%p323_p8), %s983_s6, 79  ;;  %s1345_s12 = scalar_lea.vmem (!%p323_p8), [#allocation3], %s982_s7 }
  0x20   : > { %p985_p10 = scmp.ne.s32.totalorder (!%p323_p8), %s1239_s17, 0 }
  0x23   : > { %s1458_s6 = smov (!%p373_p9, %s983_s6), 79  ;;  %400 = sbr.rel (%p985_p10) target bundleno = 49 (0x31), region = 81 }
  0x24   : > { %s984_s8 = sshll.u32 %s1458_s6, 2 }
  0x25   : > { %s1343_s11 = scalar_lea.vmem %s1447_s1, %s984_s8 }
  0x28   : > { %v1249_v16 = vmov 0.0  }
  0x29   : > { %401 = vst [vmem:[#allocation2 + $0x30] sm:$0xff] %v1249_v16  ;;  %402 = vst [vmem:[#allocation2] sm:$0xff] %v1249_v16 }
  0x2a   : > { %403 = vst [vmem:[#allocation2 + $0x58] sm:$0xff] %v1249_v16  ;;  %404 = vst [vmem:[#allocation2 + $0x18] sm:$0xff] %v1249_v16 }
  0x2b   : > { %405 = vst [vmem:[#allocation2 + $0x50] sm:$0xff] %v1249_v16  ;;  %406 = vst [vmem:[#allocation2 + $0x68] sm:$0xff] %v1249_v16 }
  0x2c   : > { %407 = vst [vmem:[#allocation2 + $0x8] sm:$0xff] %v1249_v16  ;;  %408 = vst [vmem:[#allocation2 + $0x48] sm:$0xff] %v1249_v16 }
  0x2d   : > { %409 = vst [vmem:[#allocation2 + $0x40] sm:$0xff] %v1249_v16  ;;  %410 = vst [vmem:[#allocation2 + $0x20] sm:$0xff] %v1249_v16 }
  0x2e   : > { %411 = vst [vmem:[#allocation2 + $0x10] sm:$0xff] %v1249_v16  ;;  %412 = vst [vmem:[#allocation2 + $0x38] sm:$0xff] %v1249_v16 }
  0x2f   : > { %413 = vst [vmem:[#allocation2 + $0x60] sm:$0xff] %v1249_v16  ;;  %414 = vst [vmem:[#allocation2 + $0x70] sm:$0xff] %v1249_v16 }
  0x30   : > { %415 = vst [vmem:[#allocation2 + $0x78] sm:$0xff] %v1249_v16  ;;  %416 = vst [vmem:[#allocation2 + $0x28] sm:$0xff] %v1249_v16 }
  0x31 PF: > { %v1193_v17 = vld [vmem:[%s1343_s11 + $0x38] sm:$0xff]   ;;  %v1194_v18 = vld [vmem:[%s1343_s11 + $0x30] sm:$0xff]   ;;  %v1195_v19 = vld [vmem:[%s1343_s11 + $0x28] sm:$0xff]   ;;  %p1002_p11 = scmp.ne.s32.totalorder %s1239_s17, 4 }
  0x32   : > { %1104 = vmatprep.subr.bf16.mxu0 %v1193_v17  ;;  %1136 = vmatprep.subr.bf16.mxu1 %v1193_v17  ;;  %v1196_v20 = vld [vmem:[%s1343_s11 + $0x20] sm:$0xff]   ;;  %v1197_v23 = vld [vmem:[%s1343_s11 + $0x18] sm:$0xff]   ;;  %v1198_v24 = vld [vmem:[%s1343_s11 + $0x10] sm:$0xff]  }
  0x33   : > { %1105 = vmatpush3.bf16.msra.mxu0 %v1193_v17  ;;  %1144 = vmatpush3.bf16.msra.mxu1 %v1193_v17  ;;  %v1201_v21 = vld [vmem:[%s1345_s12] sm:$0xff]   ;;  %v1199_v25 = vld [vmem:[%s1343_s11 + $0x8] sm:$0xff]   ;;  %v1205_v29 = vld [vmem:[%s1345_s12 + $0x10] sm:$0xff]  }
  0x34   : > { %1106 = vmatprep.subr.bf16.mxu0 %v1194_v18  ;;  %1137 = vmatprep.subr.bf16.mxu1 %v1194_v18  ;;  %v1202_v22 = vld [vmem:[%s1345_s12 + $0x20] sm:$0xff]   ;;  %v1203_v27 = vld [vmem:[%s1345_s12 + $0x8] sm:$0xff]   ;;  %v1206_v30 = vld [vmem:[%s1345_s12 + $0x30] sm:$0xff]  }
  0x35   : > { %1120 = vmatprep.mubr.bf16.mxu0 %v1201_v21  ;;  %1128 = vmatprep.mubr.bf16.mxu1 %v1202_v22  ;;  %v1200_v26 = vld [vmem:[%s1343_s11] sm:$0xff]   ;;  %v1204_v28 = vld [vmem:[%s1345_s12 + $0x28] sm:$0xff]   ;;  %v1207_v31 = vld [vmem:[%s1345_s12 + $0x18] sm:$0xff]  }
  0x36   : > { %v1208_v32 = vld [vmem:[%s1345_s12 + $0x38] sm:$0xff]   ;;  %v427_v34 = vld [vmem:[#allocation2 + $0x10] sm:$0xff]  ;;  %v425_v38 = vld [vmem:[#allocation2 + $0x40] sm:$0xff] }
  0x37   : > { %1107 = vmatpush3.bf16.msra.mxu0 %v1194_v18  ;;  %1145 = vmatpush3.bf16.msra.mxu1 %v1194_v18  ;;  %v419_v33 = vld [vmem:[#allocation2 + $0x58] sm:$0xff]  ;;  %v417_v37 = vld [vmem:[#allocation2 + $0x30] sm:$0xff]  ;;  %v418_v49 = vld [vmem:[#allocation2] sm:$0xff] }
  0x38   : > { %1108 = vmatprep.subr.bf16.mxu0 %v1195_v19  ;;  %1138 = vmatprep.subr.bf16.mxu1 %v1195_v19  ;;  %v420_v43 = vld [vmem:[#allocation2 + $0x18] sm:$0xff]  ;;  %v426_v50 = vld [vmem:[#allocation2 + $0x20] sm:$0xff]  ;;  %v423_v55 = vld [vmem:[#allocation2 + $0x8] sm:$0xff] }
  0x39   : > { %v428_v44 = vld [vmem:[#allocation2 + $0x38] sm:$0xff]  ;;  %v421_v61 = vld [vmem:[#allocation2 + $0x50] sm:$0xff]  ;;  %v429_v62 = vld [vmem:[#allocation2 + $0x60] sm:$0xff] }
  0x3a   : > { %v431_v56 = vld [vmem:[#allocation2 + $0x78] sm:$0xff]  ;;  %v424_v3 = vld [vmem:[#allocation2 + $0x48] sm:$0xff]  ;;  %v430_v10 = vld [vmem:[#allocation2 + $0x70] sm:$0xff] }
  0x3b   : > { %1109 = vmatpush3.bf16.msra.mxu0 %v1195_v19  ;;  %1146 = vmatpush3.bf16.msra.mxu1 %v1195_v19  ;;  %v432_v4 = vld [vmem:[#allocation2 + $0x28] sm:$0xff] }
  0x3c   : > { %1110 = vmatprep.subr.bf16.mxu0 %v1196_v20  ;;  %1139 = vmatprep.subr.bf16.mxu1 %v1196_v20  ;;  %v422_v9 = vld [vmem:[#allocation2 + $0x68] sm:$0xff] }
  0x3f   : > { %1111 = vmatpush3.bf16.msra.mxu0 %v1196_v20  ;;  %1147 = vmatpush3.bf16.msra.mxu1 %v1196_v20 }
  0x40   : > { %1112 = vmatprep.subr.bf16.mxu0 %v1197_v23  ;;  %1140 = vmatprep.subr.bf16.mxu1 %v1197_v23 }
  0x43   : > { %1113 = vmatpush3.bf16.msra.mxu0 %v1197_v23  ;;  %1148 = vmatpush3.bf16.msra.mxu1 %v1197_v23 }
  0x44   : > { %1114 = vmatprep.subr.bf16.mxu0 %v1198_v24  ;;  %1141 = vmatprep.subr.bf16.mxu1 %v1198_v24 }
  0x47   : > { %1115 = vmatpush3.bf16.msra.mxu0 %v1198_v24  ;;  %1149 = vmatpush3.bf16.msra.mxu1 %v1198_v24 }
  0x48   : > { %1116 = vmatprep.subr.bf16.mxu0 %v1199_v25  ;;  %1142 = vmatprep.subr.bf16.mxu1 %v1199_v25 }
  0x4b   : > { %1117 = vmatpush3.bf16.msra.mxu0 %v1199_v25  ;;  %1150 = vmatpush3.bf16.msra.mxu1 %v1199_v25 }
  0x4c   : > { %1118 = vmatprep.subr.bf16.mxu0 %v1200_v26  ;;  %1143 = vmatprep.subr.bf16.mxu1 %v1200_v26 }
  0x4f   : > { %1119 = vmatpush3.bf16.msra.mxu0 %v1200_v26  ;;  %1151 = vmatpush3.bf16.msra.mxu1 %v1200_v26 }
  0x52   : > { %1121 = vmatmul.mubr.bf16.vlgmr.msra.gmra.mxu0 %v1203_v27  ;;  %1129 = vmatmul.mubr.bf16.vlgmr.msra.gmra.mxu1 %v1204_v28 }
  0x53   : > { %1124 = vmatprep.mubr.bf16.mxu0 %v1205_v29  ;;  %1132 = vmatprep.mubr.bf16.mxu1 %v1206_v30 }
  0x5a   : > { %1125 = vmatmul.mubr.bf16.gmra.mxu0 %v1207_v31  ;;  %1133 = vmatmul.mubr.bf16.gmra.mxu1 %v1208_v32 }
 0x112   : > { %v1122_v35 = vpop.f32.mrf.mxu0  ;;  %v1130_v36 = vpop.f32.mrf.mxu1 }
 0x113   : > { %v660_v39 = vadd.f32 %v1122_v35, %v419_v33  ;;  %v668_v40 = vadd.f32 %v1130_v36, %v427_v34 }
 0x114   : > { %v595_v41 = vpop.f32.mrf.mxu0  ;;  %v627_v42 = vpop.f32.mrf.mxu1 }
 0x115   : > { %676 = vst [vmem:[#allocation2 + $0x58] sm:$0xff] %v660_v39  ;;  %684 = vst [vmem:[#allocation2 + $0x10] sm:$0xff] %v668_v40  ;;  %v658_v45 = vadd.f32 %v595_v41, %v417_v37  ;;  %v666_v46 = vadd.f32 %v627_v42, %v425_v38 }
 0x116   : > { %v1123_v47 = vpop.f32.mrf.mxu0  ;;  %v1131_v48 = vpop.f32.mrf.mxu1 }
 0x117   : > { %674 = vst [vmem:[#allocation2 + $0x30] sm:$0xff] %v658_v45  ;;  %682 = vst [vmem:[#allocation2 + $0x40] sm:$0xff] %v666_v46  ;;  %v661_v51 = vadd.f32 %v1123_v47, %v420_v43  ;;  %v669_v52 = vadd.f32 %v1131_v48, %v428_v44 }
 0x118   : > { %v598_v53 = vpop.f32.mrf.mxu0  ;;  %v630_v54 = vpop.f32.mrf.mxu1 }
 0x119   : > { %677 = vst [vmem:[#allocation2 + $0x18] sm:$0xff] %v661_v51  ;;  %685 = vst [vmem:[#allocation2 + $0x38] sm:$0xff] %v669_v52  ;;  %v659_v57 = vadd.f32 %v598_v53, %v418_v49  ;;  %v667_v58 = vadd.f32 %v630_v54, %v426_v50 }
 0x11a   : > { %v1126_v59 = vpop.f32.mrf.mxu0  ;;  %v1134_v60 = vpop.f32.mrf.mxu1 }
 0x11b   : > { %675 = vst [vmem:[#allocation2] sm:$0xff] %v659_v57  ;;  %683 = vst [vmem:[#allocation2 + $0x20] sm:$0xff] %v667_v58  ;;  %v664_v63 = vadd.f32 %v1126_v59, %v423_v55  ;;  %v672_v0 = vadd.f32 %v1134_v60, %v431_v56 }
 0x11c   : > { %v611_v1 = vpop.f32.mrf.mxu0  ;;  %v643_v2 = vpop.f32.mrf.mxu1 }
 0x11d   : > { %680 = vst [vmem:[#allocation2 + $0x8] sm:$0xff] %v664_v63  ;;  %688 = vst [vmem:[#allocation2 + $0x78] sm:$0xff] %v672_v0  ;;  %v662_v5 = vadd.f32 %v611_v1, %v421_v61  ;;  %v670_v6 = vadd.f32 %v643_v2, %v429_v62 }
 0x11e   : > { %v1127_v7 = vpop.f32.mrf.mxu0  ;;  %v1135_v8 = vpop.f32.mrf.mxu1 }
 0x11f   : > { %678 = vst [vmem:[#allocation2 + $0x50] sm:$0xff] %v662_v5  ;;  %686 = vst [vmem:[#allocation2 + $0x60] sm:$0xff] %v670_v6  ;;  %v665_v11 = vadd.f32 %v1127_v7, %v424_v3  ;;  %v673_v12 = vadd.f32 %v1135_v8, %v432_v4  ;;  %693 = sbr.rel (%p1002_p11) target bundleno = 313 (0x139), region = 85 }
 0x120   : > { %v614_v13 = vpop.f32.mrf.mxu0  ;;  %v646_v14 = vpop.f32.mrf.mxu1 }
 0x121   : > { %681 = vst [vmem:[#allocation2 + $0x48] sm:$0xff] %v665_v11  ;;  %689 = vst [vmem:[#allocation2 + $0x28] sm:$0xff] %v673_v12  ;;  %v663_v15 = vadd.f32 %v614_v13, %v422_v9  ;;  %v671_v16 = vadd.f32 %v646_v14, %v430_v10 }
 0x123   : > { %679 = vst [vmem:[#allocation2 + $0x68] sm:$0xff] %v663_v15  ;;  %687 = vst [vmem:[#allocation2 + $0x70] sm:$0xff] %v671_v16 }
 0x124   : > { %v694_v17 = vld [vmem:[#allocation2 + $0x30] sm:$0xff]  ;;  %v695_v18 = vld [vmem:[#allocation2] sm:$0xff]  ;;  %v696_v23 = vld [vmem:[#allocation2 + $0x58] sm:$0xff] }
 0x125   : > { %v1368_v19 = vld [vmem:[%s1448_s2] ss:$0 sm:$0xff]  ;;  %v697_v24 = vld [vmem:[#allocation2 + $0x18] sm:$0xff]  ;;  %v700_v29 = vld [vmem:[#allocation2 + $0x8] sm:$0xff] }
 0x126   : > { %v717_v20 = vmul.f32 %v1368_v19, %v694_v17  ;;  %v718_v21 = vmul.f32 %v1368_v19, %v695_v18  ;;  %v1375_v22 = vld [vmem:[%s1449_s3] ss:$0 sm:$0xff]  ;;  %v719_v25 = vmul.f32 %v1368_v19, %v696_v23  ;;  %v720_v26 = vmul.f32 %v1368_v19, %v697_v24  ;;  %v698_v27 = vld [vmem:[#allocation2 + $0x50] sm:$0xff]  ;;  %v705_v50 = vld [vmem:[#allocation2 + $0x38] sm:$0xff] }
 0x127   : > { %v721_v32 = vmul.f32 %v1368_v19, %v698_v27  ;;  %v723_v37 = vmul.f32 %v1368_v19, %v700_v29  ;;  %v702_v39 = vld [vmem:[#allocation2 + $0x40] sm:$0xff]  ;;  %v704_v49 = vld [vmem:[#allocation2 + $0x10] sm:$0xff]  ;;  %v708_v61 = vld [vmem:[#allocation2 + $0x78] sm:$0xff]  ;;  %v728_v1 = vmul.f32 %v1368_v19, %v705_v50 }
 0x128   : > { %v740_v30 = vadd.f32 %v1375_v22, %v717_v20  ;;  %v741_v31 = vadd.f32 %v1375_v22, %v718_v21  ;;  %v701_v34 = vld [vmem:[#allocation2 + $0x48] sm:$0xff]  ;;  %v742_v35 = vadd.f32 %v1375_v22, %v719_v25  ;;  %v743_v36 = vadd.f32 %v1375_v22, %v720_v26  ;;  %v703_v44 = vld [vmem:[#allocation2 + $0x20] sm:$0xff] }
 0x129   : > { %v724_v38 = vmul.f32 %v1368_v19, %v701_v34  ;;  %v744_v42 = vadd.f32 %v1375_v22, %v721_v32  ;;  %v746_v47 = vadd.f32 %v1375_v22, %v723_v37  ;;  %v725_v54 = vmul.f32 %v1368_v19, %v702_v39  ;;  %v706_v55 = vld [vmem:[#allocation2 + $0x60] sm:$0xff]  ;;  %v709_v2 = vld [vmem:[#allocation2 + $0x28] sm:$0xff] }
 0x12a   : > { %v699_v28 = vld [vmem:[#allocation2 + $0x68] sm:$0xff]  ;;  %v756_v40 = vmax.f32 %v740_v30, 0.0  ;;  %v757_v41 = vmax.f32 %v741_v31, 0.0  ;;  %v758_v45 = vmax.f32 %v742_v35, 0.0  ;;  %v759_v46 = vmax.f32 %v743_v36, 0.0  ;;  %v707_v56 = vld [vmem:[#allocation2 + $0x70] sm:$0xff] }
 0x12b   : > { %v722_v33 = vmul.f32 %v1368_v19, %v699_v28  ;;  %v747_v48 = vadd.f32 %v1375_v22, %v724_v38  ;;  %v760_v52 = vmax.f32 %v744_v42, 0.0  ;;  %v762_v58 = vmax.f32 %v746_v47, 0.0 }
 0x12c   : > { %v1044_v51 = vpack.c.bf16 %v757_v41, %v756_v40  ;;  %v1049_v57 = vpack.c.bf16 %v759_v46, %v758_v45  ;;  %v726_v60 = vmul.f32 %v1368_v19, %v703_v44  ;;  %v748_v63 = vadd.f32 %v1375_v22, %v725_v54 }
 0x12d   : > { %v745_v43 = vadd.f32 %v1375_v22, %v722_v33  ;;  %v763_v59 = vmax.f32 %v747_v48, 0.0  ;;  %v727_v0 = vmul.f32 %v1368_v19, %v704_v49  ;;  %v729_v5 = vmul.f32 %v1368_v19, %v706_v55 }
 0x12e   : > { %1045 = vst [vmem:[%s1450_s4] sm:$0xff] %v1044_v51   ;;  %1081 = vst [vmem:[%s1450_s4 + $0x8] sm:$0xff] %v1049_v57   ;;  %v749_v4 = vadd.f32 %v1375_v22, %v726_v60  ;;  %v730_v6 = vmul.f32 %v1368_v19, %v707_v56  ;;  %v764_v7 = vmax.f32 %v748_v63, 0.0  ;;  %v751_v9 = vadd.f32 %v1375_v22, %v728_v1 }
 0x12f   : > { %v761_v53 = vmax.f32 %v745_v43, 0.0  ;;  %v1059_v3 = vpack.c.bf16 %v763_v59, %v762_v58  ;;  %v750_v8 = vadd.f32 %v1375_v22, %v727_v0  ;;  %v731_v10 = vmul.f32 %v1368_v19, %v708_v61 }
 0x130   : > { %v765_v11 = vmax.f32 %v749_v4, 0.0  ;;  %v752_v12 = vadd.f32 %v1375_v22, %v729_v5  ;;  %v753_v13 = vadd.f32 %v1375_v22, %v730_v6  ;;  %v732_v14 = vmul.f32 %v1368_v19, %v709_v2 }
 0x131   : > { %v1054_v62 = vpack.c.bf16 %v761_v53, %v760_v52  ;;  %1083 = vst [vmem:[%s1450_s4 + $0x18] sm:$0xff] %v1059_v3   ;;  %v766_v15 = vmax.f32 %v750_v8, 0.0  ;;  %v767_v16 = vmax.f32 %v751_v9, 0.0  ;;  %v754_v17 = vadd.f32 %v1375_v22, %v731_v10 }
 0x132   : > { %v1064_v18 = vpack.c.bf16 %v765_v11, %v764_v7  ;;  %v768_v20 = vmax.f32 %v752_v12, 0.0  ;;  %v769_v21 = vmax.f32 %v753_v13, 0.0  ;;  %v755_v23 = vadd.f32 %v1375_v22, %v732_v14 }
 0x133   : > { %1082 = vst [vmem:[%s1450_s4 + $0x10] sm:$0xff] %v1054_v62   ;;  %v1069_v24 = vpack.c.bf16 %v767_v16, %v766_v15  ;;  %v770_v25 = vmax.f32 %v754_v17, 0.0 }
 0x134   : > { %1084 = vst [vmem:[%s1450_s4 + $0x20] sm:$0xff] %v1064_v18   ;;  %v1074_v26 = vpack.c.bf16 %v769_v21, %v768_v20  ;;  %v771_v27 = vmax.f32 %v755_v23, 0.0 }
 0x135   : > { %1085 = vst [vmem:[%s1450_s4 + $0x28] sm:$0xff] %v1069_v24  }
 0x136   : > { %1086 = vst [vmem:[%s1450_s4 + $0x30] sm:$0xff] %v1074_v26   ;;  %v1079_v19 = vpack.c.bf16 %v771_v27, %v770_v25 }
 0x138   : > { %1087 = vst [vmem:[%s1450_s4 + $0x38] sm:$0xff] %v1079_v19  }
 0x139 PF: > { %s14_s19 = sadd.s32 1, %s1247_s19   ;;  %s1451_s15 = smov %s1235_s16 }
 0x13a   : > { %p11_p12 = scmp.ge.s32.totalorder %s14_s19, 7   ;;  %s1452_s16 = smov %s1310_s23 }
 0x13b   : > { %s1453_s17 = smov %s1243_s18  ;;  %s1454_s18 = smov %s1456_s20 }
 0x13c   :  { %13 = sbr.rel (!%p11_p12) target bundleno = 3 (0x3), region = 129 }

// kernel: resnet18_forward.25
= control target key start
LH: loop header
LB: loop body
LE: loop exit
PB: predicated region body
PF: predicated region fallthrough
CT: control target
= control target key end

     0   :  { %s1446_s18 = smov 0   ;;  %s1448_s19 = smov 0   ;;  %s1641_s0 = inlined_call_operand.vmem [shape: bf16[128,640], index: 0, kind: input, shape index: {}]   ;;  %s1642_s1 = inlined_call_operand.vmem [shape: bf16[640,128], index: 1, kind: input, shape index: {}]   ;;  %s1643_s2 = inlined_call_operand.vmem [shape: f32[1,128], index: 2, kind: input, shape index: {}]   ;;  %s1644_s3 = inlined_call_operand.vmem [shape: f32[1,128], index: 3, kind: input, shape index: {}]   ;;  %s1645_s4 = inlined_call_operand.vmem [shape: bf16[128,128], index: 4, kind: input, shape index: {}]   ;;  %s1646_s5 = inlined_call_operand.vmem [shape: bf16[128,128], index: 5, kind: output, shape index: {}]  }
   0x1   :  { %s1450_s20 = smov 0   ;;  %s1452_s21 = smov 0  }
   0x2   :  { %s1454_s22 = smov 0  }
   0x3 LB: > { %s27_s23 = sadd.s32 1, %s1409_s21  ;;  %p50_p1 = scmp.ne.s32.totalorder %s1401_s19, %s1397_s18  ;;  %s1413_s22 = sphi %s1454_s22, %s15_s22   ;;  %s1409_s21 = sphi %s1452_s21, %s1650_s21   ;;  %s1405_s20 = sphi %s1450_s20, %s1649_s20   ;;  %s1401_s19 = sphi %s1448_s19, %s1648_s19   ;;  %s1397_s18 = sphi %s1446_s18, %s1647_s18  }
   0x4   : > { %p28_p0 = scmp.ge.s32.totalorder %s27_s23, 5  ;;  %p51_p2 = scmp.eq.s32.totalorder %s1413_s22, 0 }
   0x5   : > { %s43_s25 = sadd.s32 1, %s1401_s19  ;;  %p1105_p5 = scmp.ge.s32.totalorder %s1413_s22, 5 }
   0x6   : > { %s1652_s23 = smov (%p28_p0, %s27_s23), 0  ;;  %p52_p3 = por %p51_p2, %p50_p1 }
   0x7   : > { %s39_s24 = ssub.s32 %s1409_s21, %s1652_s23  ;;  %236 = sbr.rel (%p1105_p5) target bundleno = 26 (0x1a), region = 28 }
   0x8   : > { %p41_p4 = scmp.eq.s32.totalorder %s39_s24, 0 }
   0xa   : > { %s1481_s26 = scalar_select %p41_p4, %s1401_s19, %s43_s25  }
   0xc   : > { %239 = sbr.rel (!%p52_p3) target bundleno = 26 (0x1a), region = 32  ;;  %s241_s27 = sand.u32 (%p52_p3), 1, %s1401_s19  }
   0xd   : > { %s1107_s28 = sshll.u32 (%p52_p3), %s1409_s21, 2  ;;  %s1106_s29 = sshll.u32 (%p52_p3), %s241_s27, 6 }
   0xe   : > { %s1489_s7 = scalar_lea.vmem (%p52_p3), %s1641_s0, %s1107_s28  ;;  %s243_s8 = scalar_lea.vmem (%p52_p3), [#allocation3], %s1106_s29 }
   0xf   : > { %v265_v0 = vld [vmem:[%s1489_s7] sm:$0xf] (%p52_p3)  ;;  %v267_v1 = vld [vmem:[%s1489_s7 + $0x14] sm:$0xf] (%p52_p3)  ;;  %v269_v2 = vld [vmem:[%s1489_s7 + $0x28] sm:$0xf] (%p52_p3) }
  0x10   : > { %266 = vst [vmem:[%s243_s8] sm:$0xf] (%p52_p3), %v265_v0  ;;  %268 = vst [vmem:[%s243_s8 + $0x4] sm:$0xf] (%p52_p3), %v267_v1  ;;  %v271_v3 = vld [vmem:[%s1489_s7 + $0x3c] sm:$0xf] (%p52_p3) }
  0x11   : > { %v273_v4 = vld [vmem:[%s1489_s7 + $0x50] sm:$0xf]  ;;  %270 = vst [vmem:[%s243_s8 + $0x8] sm:$0xf] %v269_v2  ;;  %272 = vst [vmem:[%s243_s8 + $0xc] sm:$0xf] %v271_v3 }
  0x12   : > { %274 = vst [vmem:[%s243_s8 + $0x10] sm:$0xf] %v273_v4  ;;  %v275_v5 = vld [vmem:[%s1489_s7 + $0x64] sm:$0xf]  ;;  %v277_v6 = vld [vmem:[%s1489_s7 + $0x78] sm:$0xf] }
  0x13   : > { %v279_v7 = vld [vmem:[%s1489_s7 + $0x8c] sm:$0xf]  ;;  %276 = vst [vmem:[%s243_s8 + $0x14] sm:$0xf] %v275_v5  ;;  %278 = vst [vmem:[%s243_s8 + $0x18] sm:$0xf] %v277_v6 }
  0x14   : > { %280 = vst [vmem:[%s243_s8 + $0x1c] sm:$0xf] %v279_v7  ;;  %v281_v8 = vld [vmem:[%s1489_s7 + $0xa0] sm:$0xf]  ;;  %v283_v9 = vld [vmem:[%s1489_s7 + $0xb4] sm:$0xf] }
  0x15   : > { %v285_v10 = vld [vmem:[%s1489_s7 + $0xc8] sm:$0xf]  ;;  %282 = vst [vmem:[%s243_s8 + $0x20] sm:$0xf] %v281_v8  ;;  %284 = vst [vmem:[%s243_s8 + $0x24] sm:$0xf] %v283_v9 }
  0x16   : > { %286 = vst [vmem:[%s243_s8 + $0x28] sm:$0xf] %v285_v10  ;;  %v287_v11 = vld [vmem:[%s1489_s7 + $0xdc] sm:$0xf]  ;;  %v289_v12 = vld [vmem:[%s1489_s7 + $0xf0] sm:$0xf] }
  0x17   : > { %v291_v13 = vld [vmem:[%s1489_s7 + $0x104] sm:$0xf]  ;;  %288 = vst [vmem:[%s243_s8 + $0x2c] sm:$0xf] %v287_v11  ;;  %290 = vst [vmem:[%s243_s8 + $0x30] sm:$0xf] %v289_v12 }
  0x18   : > { %292 = vst [vmem:[%s243_s8 + $0x34] sm:$0xf] %v291_v13  ;;  %v293_v14 = vld [vmem:[%s1489_s7 + $0x118] sm:$0xf]  ;;  %v295_v15 = vld [vmem:[%s1489_s7 + $0x12c] sm:$0xf] }
  0x19   : > { %294 = vst [vmem:[%s243_s8 + $0x38] sm:$0xf] %v293_v14  ;;  %296 = vst [vmem:[%s243_s8 + $0x3c] sm:$0xf] %v295_v15 }
  0x1a PF: > { %p1108_p6 = scmp.ge.s32.totalorder %s1413_s22, 1  ;;  %p363_p7 = scmp.lt.s32.totalorder %s1413_s22, 6 }
  0x1c   : > { %p364_p8 = pnand %p1108_p6, %p363_p7 }
  0x1d   : > { %s370_s9 = sand.u32 (!%p364_p8), 1, %s1397_s18   ;;  %s1110_s10 = sshll.u32 (!%p364_p8), %s1405_s20, 4 }
  0x1e   : > { %367 = sbr.rel (%p364_p8) target bundleno = 322 (0x142), region = 77  ;;  %s1109_s11 = sshll.u32 (!%p364_p8), %s370_s9, 6 }
  0x1f   : > { %p424_p9 = scmp.lt.s32.totalorder (!%p364_p8), %s1110_s10, 79  ;;  %s1516_s16 = scalar_lea.vmem (!%p364_p8), [#allocation3], %s1109_s11 }
  0x20   : > { %p1112_p10 = scmp.ne.s32.totalorder (!%p364_p8), %s1405_s20, 0 }
  0x23   : > { %s1654_s10 = smov (!%p424_p9, %s1110_s10), 79  ;;  %460 = sbr.rel (%p1112_p10) target bundleno = 49 (0x31), region = 85 }
  0x24   : > { %s1111_s12 = sshll.u32 %s1654_s10, 2 }
  0x25   : > { %s1514_s15 = scalar_lea.vmem %s1642_s1, %s1111_s12 }
  0x28   : > { %v1415_v16 = vmov 0.0  }
  0x29   : > { %461 = vst [vmem:[#allocation2 + $0x30] sm:$0xff] %v1415_v16  ;;  %462 = vst [vmem:[#allocation2] sm:$0xff] %v1415_v16 }
  0x2a   : > { %463 = vst [vmem:[#allocation2 + $0x58] sm:$0xff] %v1415_v16  ;;  %464 = vst [vmem:[#allocation2 + $0x18] sm:$0xff] %v1415_v16 }
  0x2b   : > { %465 = vst [vmem:[#allocation2 + $0x50] sm:$0xff] %v1415_v16  ;;  %466 = vst [vmem:[#allocation2 + $0x68] sm:$0xff] %v1415_v16 }
  0x2c   : > { %467 = vst [vmem:[#allocation2 + $0x8] sm:$0xff] %v1415_v16  ;;  %468 = vst [vmem:[#allocation2 + $0x48] sm:$0xff] %v1415_v16 }
  0x2d   : > { %469 = vst [vmem:[#allocation2 + $0x40] sm:$0xff] %v1415_v16  ;;  %470 = vst [vmem:[#allocation2 + $0x20] sm:$0xff] %v1415_v16 }
  0x2e   : > { %471 = vst [vmem:[#allocation2 + $0x10] sm:$0xff] %v1415_v16  ;;  %472 = vst [vmem:[#allocation2 + $0x38] sm:$0xff] %v1415_v16 }
  0x2f   : > { %473 = vst [vmem:[#allocation2 + $0x60] sm:$0xff] %v1415_v16  ;;  %474 = vst [vmem:[#allocation2 + $0x70] sm:$0xff] %v1415_v16 }
  0x30   : > { %475 = vst [vmem:[#allocation2 + $0x78] sm:$0xff] %v1415_v16  ;;  %476 = vst [vmem:[#allocation2 + $0x28] sm:$0xff] %v1415_v16 }
  0x31 PF: > { %v1359_v17 = vld [vmem:[%s1514_s15 + $0x38] sm:$0xff]   ;;  %v1360_v18 = vld [vmem:[%s1514_s15 + $0x30] sm:$0xff]   ;;  %v1361_v19 = vld [vmem:[%s1514_s15 + $0x28] sm:$0xff]   ;;  %p1129_p11 = scmp.ne.s32.totalorder %s1405_s20, 4 }
  0x32   : > { %1270 = vmatprep.subr.bf16.mxu0 %v1359_v17  ;;  %1302 = vmatprep.subr.bf16.mxu1 %v1359_v17  ;;  %v1362_v20 = vld [vmem:[%s1514_s15 + $0x20] sm:$0xff]   ;;  %v1363_v23 = vld [vmem:[%s1514_s15 + $0x18] sm:$0xff]   ;;  %v1364_v24 = vld [vmem:[%s1514_s15 + $0x10] sm:$0xff]  }
  0x33   : > { %1271 = vmatpush3.bf16.msra.mxu0 %v1359_v17  ;;  %1310 = vmatpush3.bf16.msra.mxu1 %v1359_v17  ;;  %v1367_v21 = vld [vmem:[%s1516_s16] sm:$0xff]   ;;  %v1365_v25 = vld [vmem:[%s1514_s15 + $0x8] sm:$0xff]   ;;  %v1371_v29 = vld [vmem:[%s1516_s16 + $0x10] sm:$0xff]  }
  0x34   : > { %1272 = vmatprep.subr.bf16.mxu0 %v1360_v18  ;;  %1303 = vmatprep.subr.bf16.mxu1 %v1360_v18  ;;  %v1368_v22 = vld [vmem:[%s1516_s16 + $0x20] sm:$0xff]   ;;  %v1369_v27 = vld [vmem:[%s1516_s16 + $0x8] sm:$0xff]   ;;  %v1372_v30 = vld [vmem:[%s1516_s16 + $0x30] sm:$0xff]  }
  0x35   : > { %1286 = vmatprep.mubr.bf16.mxu0 %v1367_v21  ;;  %1294 = vmatprep.mubr.bf16.mxu1 %v1368_v22  ;;  %v1366_v26 = vld [vmem:[%s1514_s15] sm:$0xff]   ;;  %v1370_v28 = vld [vmem:[%s1516_s16 + $0x28] sm:$0xff]   ;;  %v1373_v31 = vld [vmem:[%s1516_s16 + $0x18] sm:$0xff]  }
  0x36   : > { %v1374_v32 = vld [vmem:[%s1516_s16 + $0x38] sm:$0xff]   ;;  %v487_v34 = vld [vmem:[#allocation2 + $0x10] sm:$0xff]  ;;  %v485_v38 = vld [vmem:[#allocation2 + $0x40] sm:$0xff] }
  0x37   : > { %1273 = vmatpush3.bf16.msra.mxu0 %v1360_v18  ;;  %1311 = vmatpush3.bf16.msra.mxu1 %v1360_v18  ;;  %v479_v33 = vld [vmem:[#allocation2 + $0x58] sm:$0xff]  ;;  %v477_v37 = vld [vmem:[#allocation2 + $0x30] sm:$0xff]  ;;  %v478_v49 = vld [vmem:[#allocation2] sm:$0xff] }
  0x38   : > { %1274 = vmatprep.subr.bf16.mxu0 %v1361_v19  ;;  %1304 = vmatprep.subr.bf16.mxu1 %v1361_v19  ;;  %v480_v43 = vld [vmem:[#allocation2 + $0x18] sm:$0xff]  ;;  %v486_v50 = vld [vmem:[#allocation2 + $0x20] sm:$0xff]  ;;  %v483_v55 = vld [vmem:[#allocation2 + $0x8] sm:$0xff] }
  0x39   : > { %v488_v44 = vld [vmem:[#allocation2 + $0x38] sm:$0xff]  ;;  %v481_v61 = vld [vmem:[#allocation2 + $0x50] sm:$0xff]  ;;  %v489_v62 = vld [vmem:[#allocation2 + $0x60] sm:$0xff] }
  0x3a   : > { %v491_v56 = vld [vmem:[#allocation2 + $0x78] sm:$0xff]  ;;  %v484_v3 = vld [vmem:[#allocation2 + $0x48] sm:$0xff]  ;;  %v490_v10 = vld [vmem:[#allocation2 + $0x70] sm:$0xff] }
  0x3b   : > { %1275 = vmatpush3.bf16.msra.mxu0 %v1361_v19  ;;  %1312 = vmatpush3.bf16.msra.mxu1 %v1361_v19  ;;  %v492_v4 = vld [vmem:[#allocation2 + $0x28] sm:$0xff] }
  0x3c   : > { %1276 = vmatprep.subr.bf16.mxu0 %v1362_v20  ;;  %1305 = vmatprep.subr.bf16.mxu1 %v1362_v20  ;;  %v482_v9 = vld [vmem:[#allocation2 + $0x68] sm:$0xff] }
  0x3f   : > { %1277 = vmatpush3.bf16.msra.mxu0 %v1362_v20  ;;  %1313 = vmatpush3.bf16.msra.mxu1 %v1362_v20 }
  0x40   : > { %1278 = vmatprep.subr.bf16.mxu0 %v1363_v23  ;;  %1306 = vmatprep.subr.bf16.mxu1 %v1363_v23 }
  0x43   : > { %1279 = vmatpush3.bf16.msra.mxu0 %v1363_v23  ;;  %1314 = vmatpush3.bf16.msra.mxu1 %v1363_v23 }
  0x44   : > { %1280 = vmatprep.subr.bf16.mxu0 %v1364_v24  ;;  %1307 = vmatprep.subr.bf16.mxu1 %v1364_v24 }
  0x47   : > { %1281 = vmatpush3.bf16.msra.mxu0 %v1364_v24  ;;  %1315 = vmatpush3.bf16.msra.mxu1 %v1364_v24 }
  0x48   : > { %1282 = vmatprep.subr.bf16.mxu0 %v1365_v25  ;;  %1308 = vmatprep.subr.bf16.mxu1 %v1365_v25 }
  0x4b   : > { %1283 = vmatpush3.bf16.msra.mxu0 %v1365_v25  ;;  %1316 = vmatpush3.bf16.msra.mxu1 %v1365_v25 }
  0x4c   : > { %1284 = vmatprep.subr.bf16.mxu0 %v1366_v26  ;;  %1309 = vmatprep.subr.bf16.mxu1 %v1366_v26 }
  0x4f   : > { %1285 = vmatpush3.bf16.msra.mxu0 %v1366_v26  ;;  %1317 = vmatpush3.bf16.msra.mxu1 %v1366_v26 }
  0x52   : > { %1287 = vmatmul.mubr.bf16.vlgmr.msra.gmra.mxu0 %v1369_v27  ;;  %1295 = vmatmul.mubr.bf16.vlgmr.msra.gmra.mxu1 %v1370_v28 }
  0x53   : > { %1290 = vmatprep.mubr.bf16.mxu0 %v1371_v29  ;;  %1298 = vmatprep.mubr.bf16.mxu1 %v1372_v30 }
  0x5a   : > { %1291 = vmatmul.mubr.bf16.gmra.mxu0 %v1373_v31  ;;  %1299 = vmatmul.mubr.bf16.gmra.mxu1 %v1374_v32 }
 0x112   : > { %v1288_v35 = vpop.f32.mrf.mxu0  ;;  %v1296_v36 = vpop.f32.mrf.mxu1 }
 0x113   : > { %v720_v39 = vadd.f32 %v1288_v35, %v479_v33  ;;  %v728_v40 = vadd.f32 %v1296_v36, %v487_v34 }
 0x114   : > { %v655_v41 = vpop.f32.mrf.mxu0  ;;  %v687_v42 = vpop.f32.mrf.mxu1 }
 0x115   : > { %736 = vst [vmem:[#allocation2 + $0x58] sm:$0xff] %v720_v39  ;;  %744 = vst [vmem:[#allocation2 + $0x10] sm:$0xff] %v728_v40  ;;  %v718_v45 = vadd.f32 %v655_v41, %v477_v37  ;;  %v726_v46 = vadd.f32 %v687_v42, %v485_v38 }
 0x116   : > { %v1289_v47 = vpop.f32.mrf.mxu0  ;;  %v1297_v48 = vpop.f32.mrf.mxu1 }
 0x117   : > { %734 = vst [vmem:[#allocation2 + $0x30] sm:$0xff] %v718_v45  ;;  %742 = vst [vmem:[#allocation2 + $0x40] sm:$0xff] %v726_v46  ;;  %v721_v51 = vadd.f32 %v1289_v47, %v480_v43  ;;  %v729_v52 = vadd.f32 %v1297_v48, %v488_v44 }
 0x118   : > { %v658_v53 = vpop.f32.mrf.mxu0  ;;  %v690_v54 = vpop.f32.mrf.mxu1 }
 0x119   : > { %737 = vst [vmem:[#allocation2 + $0x18] sm:$0xff] %v721_v51  ;;  %745 = vst [vmem:[#allocation2 + $0x38] sm:$0xff] %v729_v52  ;;  %v719_v57 = vadd.f32 %v658_v53, %v478_v49  ;;  %v727_v58 = vadd.f32 %v690_v54, %v486_v50 }
 0x11a   : > { %v1292_v59 = vpop.f32.mrf.mxu0  ;;  %v1300_v60 = vpop.f32.mrf.mxu1 }
 0x11b   : > { %735 = vst [vmem:[#allocation2] sm:$0xff] %v719_v57  ;;  %743 = vst [vmem:[#allocation2 + $0x20] sm:$0xff] %v727_v58  ;;  %v724_v63 = vadd.f32 %v1292_v59, %v483_v55  ;;  %v732_v0 = vadd.f32 %v1300_v60, %v491_v56 }
 0x11c   : > { %v671_v1 = vpop.f32.mrf.mxu0  ;;  %v703_v2 = vpop.f32.mrf.mxu1 }
 0x11d   : > { %740 = vst [vmem:[#allocation2 + $0x8] sm:$0xff] %v724_v63  ;;  %748 = vst [vmem:[#allocation2 + $0x78] sm:$0xff] %v732_v0  ;;  %v722_v5 = vadd.f32 %v671_v1, %v481_v61  ;;  %v730_v6 = vadd.f32 %v703_v2, %v489_v62 }
 0x11e   : > { %v1293_v7 = vpop.f32.mrf.mxu0  ;;  %v1301_v8 = vpop.f32.mrf.mxu1 }
 0x11f   : > { %738 = vst [vmem:[#allocation2 + $0x50] sm:$0xff] %v722_v5  ;;  %746 = vst [vmem:[#allocation2 + $0x60] sm:$0xff] %v730_v6  ;;  %v725_v11 = vadd.f32 %v1293_v7, %v484_v3  ;;  %v733_v12 = vadd.f32 %v1301_v8, %v492_v4  ;;  %753 = sbr.rel (%p1129_p11) target bundleno = 322 (0x142), region = 89 }
 0x120   : > { %v674_v13 = vpop.f32.mrf.mxu0  ;;  %v706_v14 = vpop.f32.mrf.mxu1 }
 0x121   : > { %741 = vst [vmem:[#allocation2 + $0x48] sm:$0xff] %v725_v11  ;;  %749 = vst [vmem:[#allocation2 + $0x28] sm:$0xff] %v733_v12  ;;  %v723_v15 = vadd.f32 %v674_v13, %v482_v9  ;;  %v731_v16 = vadd.f32 %v706_v14, %v490_v10 }
 0x123   : > { %739 = vst [vmem:[#allocation2 + $0x68] sm:$0xff] %v723_v15  ;;  %747 = vst [vmem:[#allocation2 + $0x70] sm:$0xff] %v731_v16 }
 0x124   : > { %v754_v17 = vld [vmem:[#allocation2 + $0x30] sm:$0xff]  ;;  %v755_v18 = vld [vmem:[#allocation2] sm:$0xff]  ;;  %v756_v24 = vld [vmem:[#allocation2 + $0x58] sm:$0xff] }
 0x125   : > { %v1539_v19 = vld [vmem:[%s1643_s2] ss:$0 sm:$0xff]  ;;  %v757_v27 = vld [vmem:[#allocation2 + $0x18] sm:$0xff]  ;;  %v1240_v29 = vld [vmem:[%s1645_s4 + $0x8] sm:$0xff]  }
 0x126   : > { %v777_v20 = vmul.f32 %v1539_v19, %v754_v17  ;;  %v778_v21 = vmul.f32 %v1539_v19, %v755_v18  ;;  %v1546_v22 = vld [vmem:[%s1644_s3] ss:$0 sm:$0xff]  ;;  %v779_v28 = vmul.f32 %v1539_v19, %v756_v24  ;;  %v758_v30 = vld [vmem:[#allocation2 + $0x50] sm:$0xff]  ;;  %v780_v33 = vmul.f32 %v1539_v19, %v757_v27  ;;  %v760_v41 = vld [vmem:[#allocation2 + $0x8] sm:$0xff] }
 0x127   : > { %v1169_v23 = vld [vmem:[%s1645_s4] sm:$0xff]   ;;  %v1174_v34 = vunpack.c.l.bf16 %v1240_v29  ;;  %v1241_v36 = vld [vmem:[%s1645_s4 + $0x10] sm:$0xff]   ;;  %v1175_v38 = vunpack.c.h.bf16 %v1240_v29  ;;  %v781_v39 = vmul.f32 %v1539_v19, %v758_v30  ;;  %v1242_v51 = vld [vmem:[%s1645_s4 + $0x18] sm:$0xff]   ;;  %v783_v55 = vmul.f32 %v1539_v19, %v760_v41 }
 0x128   : > { %v1170_v25 = vunpack.c.l.bf16 %v1169_v23  ;;  %v1171_v26 = vunpack.c.h.bf16 %v1169_v23  ;;  %v800_v31 = vadd.f32 %v1546_v22, %v777_v20  ;;  %v801_v32 = vadd.f32 %v1546_v22, %v778_v21  ;;  %v761_v46 = vld [vmem:[#allocation2 + $0x48] sm:$0xff]  ;;  %v762_v60 = vld [vmem:[#allocation2 + $0x40] sm:$0xff]  ;;  %v764_v7 = vld [vmem:[#allocation2 + $0x10] sm:$0xff] }
 0x129   : > { %v802_v37 = vadd.f32 %v1546_v22, %v779_v28  ;;  %v803_v44 = vadd.f32 %v1546_v22, %v780_v33  ;;  %v1178_v45 = vunpack.c.l.bf16 %v1241_v36  ;;  %v804_v48 = vadd.f32 %v1546_v22, %v781_v39  ;;  %v763_v61 = vld [vmem:[#allocation2 + $0x20] sm:$0xff]  ;;  %v765_v12 = vld [vmem:[#allocation2 + $0x38] sm:$0xff]  ;;  %v1244_v13 = vld [vmem:[%s1645_s4 + $0x28] sm:$0xff]  }
 0x12a   : > { %v759_v35 = vld [vmem:[#allocation2 + $0x68] sm:$0xff]  ;;  %v848_v42 = vadd.f32 %v1170_v25, %v800_v31  ;;  %v849_v43 = vadd.f32 %v1171_v26, %v801_v32  ;;  %v1179_v50 = vunpack.c.h.bf16 %v1241_v36  ;;  %v784_v59 = vmul.f32 %v1539_v19, %v761_v46  ;;  %v1243_v2 = vld [vmem:[%s1645_s4 + $0x20] sm:$0xff]   ;;  %v767_v25 = vld [vmem:[#allocation2 + $0x70] sm:$0xff] }
 0x12b   : > { %v782_v40 = vmul.f32 %v1539_v19, %v759_v35  ;;  %v850_v47 = vadd.f32 %v1174_v34, %v802_v37  ;;  %v851_v54 = vadd.f32 %v1175_v38, %v803_v44  ;;  %v852_v57 = vadd.f32 %v1178_v45, %v804_v48  ;;  %v766_v18 = vld [vmem:[#allocation2 + $0x60] sm:$0xff]  ;;  %v1245_v26 = vld [vmem:[%s1645_s4 + $0x30] sm:$0xff]   ;;  %v768_v35 = vld [vmem:[#allocation2 + $0x78] sm:$0xff] }
 0x12c   : > { %v864_v52 = vmax.f32 %v848_v42, 0.0  ;;  %v865_v53 = vmax.f32 %v849_v43, 0.0  ;;  %v806_v0 = vadd.f32 %v1546_v22, %v783_v55  ;;  %v1182_v1 = vunpack.c.l.bf16 %v1242_v51  ;;  %v1246_v45 = vld [vmem:[%s1645_s4 + $0x38] sm:$0xff]  }
 0x12d   : > { %v805_v49 = vadd.f32 %v1546_v22, %v782_v40  ;;  %v866_v56 = vmax.f32 %v850_v47, 0.0  ;;  %v867_v63 = vmax.f32 %v851_v54, 0.0  ;;  %v868_v3 = vmax.f32 %v852_v57, 0.0  ;;  %v769_v40 = vld [vmem:[#allocation2 + $0x28] sm:$0xff] }
 0x12e   : > { %v1203_v62 = vpack.c.bf16 %v865_v53, %v864_v52  ;;  %v807_v5 = vadd.f32 %v1546_v22, %v784_v59  ;;  %v1183_v6 = vunpack.c.h.bf16 %v1242_v51  ;;  %v854_v9 = vadd.f32 %v1182_v1, %v806_v0 }
 0x12f   : > { %v853_v58 = vadd.f32 %v1179_v50, %v805_v49  ;;  %v1208_v8 = vpack.c.bf16 %v867_v63, %v866_v56  ;;  %v785_v10 = vmul.f32 %v1539_v19, %v762_v60  ;;  %v786_v11 = vmul.f32 %v1539_v19, %v763_v61 }
 0x130   : > { %1204 = vst [vmem:[%s1646_s5] sm:$0xff] %v1203_v62   ;;  %v855_v15 = vadd.f32 %v1183_v6, %v807_v5  ;;  %v1186_v16 = vunpack.c.l.bf16 %v1243_v2  ;;  %v1187_v17 = vunpack.c.h.bf16 %v1243_v2  ;;  %v870_v20 = vmax.f32 %v854_v9, 0.0 }
 0x131   : > { %v869_v4 = vmax.f32 %v853_v58, 0.0  ;;  %1247 = vst [vmem:[%s1646_s5 + $0x8] sm:$0xff] %v1208_v8   ;;  %v808_v21 = vadd.f32 %v1546_v22, %v785_v10  ;;  %v809_v23 = vadd.f32 %v1546_v22, %v786_v11  ;;  %v787_v24 = vmul.f32 %v1539_v19, %v764_v7 }
 0x132   : > { %v871_v27 = vmax.f32 %v855_v15, 0.0  ;;  %v788_v28 = vmul.f32 %v1539_v19, %v765_v12  ;;  %v1190_v29 = vunpack.c.l.bf16 %v1244_v13  ;;  %v1191_v30 = vunpack.c.h.bf16 %v1244_v13 }
 0x133   : > { %v1213_v14 = vpack.c.bf16 %v869_v4, %v868_v3  ;;  %v856_v31 = vadd.f32 %v1186_v16, %v808_v21  ;;  %v857_v32 = vadd.f32 %v1187_v17, %v809_v23  ;;  %v810_v33 = vadd.f32 %v1546_v22, %v787_v24 }
 0x134   : > { %v789_v34 = vmul.f32 %v1539_v19, %v766_v18  ;;  %v1218_v36 = vpack.c.bf16 %v871_v27, %v870_v20  ;;  %v811_v37 = vadd.f32 %v1546_v22, %v788_v28  ;;  %v790_v38 = vmul.f32 %v1539_v19, %v767_v25 }
 0x135   : > { %1248 = vst [vmem:[%s1646_s5 + $0x10] sm:$0xff] %v1213_v14   ;;  %v1194_v39 = vunpack.c.l.bf16 %v1245_v26  ;;  %v872_v41 = vmax.f32 %v856_v31, 0.0  ;;  %v873_v42 = vmax.f32 %v857_v32, 0.0  ;;  %v858_v43 = vadd.f32 %v1190_v29, %v810_v33 }
 0x136   : > { %v812_v44 = vadd.f32 %v1546_v22, %v789_v34  ;;  %1249 = vst [vmem:[%s1646_s5 + $0x18] sm:$0xff] %v1218_v36   ;;  %v859_v46 = vadd.f32 %v1191_v30, %v811_v37  ;;  %v813_v47 = vadd.f32 %v1546_v22, %v790_v38  ;;  %v1195_v48 = vunpack.c.h.bf16 %v1245_v26 }
 0x137   : > { %v791_v49 = vmul.f32 %v1539_v19, %v768_v35  ;;  %v1223_v50 = vpack.c.bf16 %v873_v42, %v872_v41  ;;  %v874_v51 = vmax.f32 %v858_v43, 0.0  ;;  %v792_v53 = vmul.f32 %v1539_v19, %v769_v40 }
 0x138   : > { %v860_v52 = vadd.f32 %v1194_v39, %v812_v44  ;;  %v875_v54 = vmax.f32 %v859_v46, 0.0  ;;  %v861_v55 = vadd.f32 %v1195_v48, %v813_v47  ;;  %v1198_v57 = vunpack.c.l.bf16 %v1246_v45 }
 0x139   : > { %v814_v56 = vadd.f32 %v1546_v22, %v791_v49  ;;  %1250 = vst [vmem:[%s1646_s5 + $0x20] sm:$0xff] %v1223_v50   ;;  %v815_v59 = vadd.f32 %v1546_v22, %v792_v53  ;;  %v1199_v60 = vunpack.c.h.bf16 %v1246_v45 }
 0x13a   : > { %v876_v58 = vmax.f32 %v860_v52, 0.0  ;;  %v1228_v61 = vpack.c.bf16 %v875_v54, %v874_v51  ;;  %v877_v62 = vmax.f32 %v861_v55, 0.0 }
 0x13b   : > { %v862_v63 = vadd.f32 %v1198_v57, %v814_v56  ;;  %v863_v0 = vadd.f32 %v1199_v60, %v815_v59 }
 0x13c   : > { %1251 = vst [vmem:[%s1646_s5 + $0x28] sm:$0xff] %v1228_v61   ;;  %v1233_v19 = vpack.c.bf16 %v877_v62, %v876_v58 }
 0x13d   : > { %v878_v1 = vmax.f32 %v862_v63, 0.0  ;;  %v879_v2 = vmax.f32 %v863_v0, 0.0 }
 0x13e   : > { %1252 = vst [vmem:[%s1646_s5 + $0x30] sm:$0xff] %v1233_v19  }
 0x13f   : > { %v1238_v3 = vpack.c.bf16 %v879_v2, %v878_v1 }
 0x141   : > { %1253 = vst [vmem:[%s1646_s5 + $0x38] sm:$0xff] %v1238_v3  }
 0x142 PF: > { %s15_s22 = sadd.s32 1, %s1413_s22   ;;  %s1647_s18 = smov %s1401_s19 }
 0x143   : > { %p12_p12 = scmp.ge.s32.totalorder %s15_s22, 7   ;;  %s1648_s19 = smov %s1481_s26 }
 0x144   : > { %s1649_s20 = smov %s1409_s21  ;;  %s1650_s21 = smov %s1652_s23 }
 0x145   :  { %14 = sbr.rel (!%p12_p12) target bundleno = 3 (0x3), region = 136 }

// kernel: resnet18_forward.29
= control target key start
LH: loop header
LB: loop body
LE: loop exit
PB: predicated region body
PF: predicated region fallthrough
CT: control target
= control target key end

     0   :  { %s331_s1 = inlined_call_operand.vmem [shape: bf16[128,128], index: 1, kind: input, shape index: {}]   ;;  %s332_s0 = inlined_call_operand.vmem [shape: bf16[32,128], index: 0, kind: input, shape index: {}]   ;;  %s333_s2 = inlined_call_operand.vmem [shape: f32[1,128], index: 2, kind: input, shape index: {}]   ;;  %s334_s3 = inlined_call_operand.vmem [shape: f32[1,128], index: 3, kind: input, shape index: {}]   ;;  %s335_s4 = inlined_call_operand.vmem [shape: bf16[32,128], index: 4, kind: output, shape index: {}]  }
   0x1   :  { %v254_v0 = vld [vmem:[%s331_s1 + $0x38] sm:$0xff]   ;;  %v255_v1 = vld [vmem:[%s331_s1 + $0x30] sm:$0xff]   ;;  %v256_v2 = vld [vmem:[%s331_s1 + $0x28] sm:$0xff]  }
   0x2   :  { %234 = vmatprep.subr.bf16.mxu0 %v254_v0  ;;  %v257_v3 = vld [vmem:[%s331_s1 + $0x20] sm:$0xff]   ;;  %v258_v5 = vld [vmem:[%s331_s1 + $0x18] sm:$0xff]   ;;  %v259_v6 = vld [vmem:[%s331_s1 + $0x10] sm:$0xff]  }
   0x3   :  { %235 = vmatpush3.bf16.msra.mxu0 %v254_v0  ;;  %v262_v4 = vld [vmem:[%s332_s0] sm:$0xff]   ;;  %v260_v7 = vld [vmem:[%s331_s1 + $0x8] sm:$0xff]  }
   0x4   :  { %236 = vmatprep.subr.bf16.mxu0 %v255_v1  ;;  %250 = vmatprep.mubr.bf16.mxu0 %v262_v4  ;;  %v261_v8 = vld [vmem:[%s331_s1] sm:$0xff]   ;;  %v263_v9 = vld [vmem:[%s332_s0 + $0x8] sm:$0xff]  }
   0x5   :  { %v203_v11 = vld [vmem:[%s333_s2] ss:$0 sm:$0xff] }
   0x6   :  { %v204_v14 = vld [vmem:[%s334_s3] ss:$0 sm:$0xff] }
   0x7   :  { %237 = vmatpush3.bf16.msra.mxu0 %v255_v1 }
   0x8   :  { %238 = vmatprep.subr.bf16.mxu0 %v256_v2 }
   0xb   :  { %239 = vmatpush3.bf16.msra.mxu0 %v256_v2 }
   0xc   :  { %240 = vmatprep.subr.bf16.mxu0 %v257_v3 }
   0xf   :  { %241 = vmatpush3.bf16.msra.mxu0 %v257_v3 }
  0x10   :  { %242 = vmatprep.subr.bf16.mxu0 %v258_v5 }
  0x13   :  { %243 = vmatpush3.bf16.msra.mxu0 %v258_v5 }
  0x14   :  { %244 = vmatprep.subr.bf16.mxu0 %v259_v6 }
  0x17   :  { %245 = vmatpush3.bf16.msra.mxu0 %v259_v6 }
  0x18   :  { %246 = vmatprep.subr.bf16.mxu0 %v260_v7 }
  0x1b   :  { %247 = vmatpush3.bf16.msra.mxu0 %v260_v7 }
  0x1c   :  { %248 = vmatprep.subr.bf16.mxu0 %v261_v8 }
  0x1f   :  { %249 = vmatpush3.bf16.msra.mxu0 %v261_v8 }
  0x22   :  { %251 = vmatmul.mubr.bf16.vlgmr.msra.gmra.mxu0 %v263_v9 }
  0xe2   :  { %v252_v10 = vpop.f32.mrf.mxu0 }
  0xe3   :  { %v156_v13 = vmul.f32 %v252_v10, %v203_v11 }
  0xe4   :  { %v132_v12 = vpop.f32.mrf.mxu0 }
  0xe5   :  { %v154_v16 = vmul.f32 %v203_v11, %v132_v12  ;;  %v167_v19 = vadd.f32 %v204_v14, %v156_v13 }
  0xe6   :  { %v253_v15 = vpop.f32.mrf.mxu0 }
  0xe7   :  { %v157_v17 = vmul.f32 %v253_v15, %v203_v11  ;;  %v165_v22 = vadd.f32 %v204_v14, %v154_v16 }
  0xe8   :  { %v135_v18 = vpop.f32.mrf.mxu0 }
  0xe9   :  { %v168_v20 = vadd.f32 %v204_v14, %v157_v17  ;;  %v155_v21 = vmul.f32 %v203_v11, %v135_v18 }
  0xeb   :  { %v221_v23 = vpack.c.bf16 %v168_v20, %v167_v19  ;;  %v166_v24 = vadd.f32 %v204_v14, %v155_v21 }
  0xed   :  { %223 = vst [vmem:[%s335_s4 + $0x8] sm:$0xff] %v221_v23   ;;  %v216_v25 = vpack.c.bf16 %v166_v24, %v165_v22 }
  0xef   :  { %217 = vst [vmem:[%s335_s4] sm:$0xff] %v216_v25  }

// kernel: resnet18_forward.28
= control target key start
LH: loop header
LB: loop body
LE: loop exit
PB: predicated region body
PF: predicated region fallthrough
CT: control target
= control target key end

     0   :  { %s869_s15 = smov 0   ;;  %s871_s16 = smov 0   ;;  %s965_s0 = inlined_call_operand.vmem [shape: bf16[32,640], index: 0, kind: input, shape index: {}]   ;;  %s966_s1 = inlined_call_operand.vmem [shape: bf16[640,128], index: 1, kind: input, shape index: {}]   ;;  %s967_s2 = inlined_call_operand.vmem [shape: f32[1,128], index: 2, kind: input, shape index: {}]   ;;  %s968_s3 = inlined_call_operand.vmem [shape: f32[1,128], index: 3, kind: input, shape index: {}]   ;;  %s969_s4 = inlined_call_operand.vmem [shape: bf16[32,128], index: 4, kind: output, shape index: {}]  }
   0x1   :  { %s873_s17 = smov 0   ;;  %s875_s18 = smov 0  }
   0x2   :  { %s877_s19 = smov 0  }
   0x3 LB: > { %s26_s20 = sadd.s32 1, %s837_s18  ;;  %p49_p1 = scmp.ne.s32.totalorder %s829_s16, %s825_s15  ;;  %s841_s19 = sphi %s877_s19, %s14_s19   ;;  %s837_s18 = sphi %s875_s18, %s973_s18   ;;  %s833_s17 = sphi %s873_s17, %s972_s17   ;;  %s829_s16 = sphi %s871_s16, %s971_s16   ;;  %s825_s15 = sphi %s869_s15, %s970_s15  }
   0x4   : > { %p27_p0 = scmp.ge.s32.totalorder %s26_s20, 5  ;;  %p50_p2 = scmp.eq.s32.totalorder %s841_s19, 0 }
   0x5   : > { %s42_s22 = sadd.s32 1, %s829_s16  ;;  %p678_p5 = scmp.ge.s32.totalorder %s841_s19, 5 }
   0x6   : > { %s975_s20 = smov (%p27_p0, %s26_s20), 0  ;;  %p51_p3 = por %p50_p2, %p49_p1 }
   0x7   : > { %s38_s21 = ssub.s32 %s837_s18, %s975_s20  ;;  %195 = sbr.rel (%p678_p5) target bundleno = 18 (0x12), region = 24 }
   0x8   : > { %p40_p4 = scmp.eq.s32.totalorder %s38_s21, 0 }
   0xa   : > { %s904_s23 = scalar_select %p40_p4, %s829_s16, %s42_s22  }
   0xc   : > { %198 = sbr.rel (!%p51_p3) target bundleno = 18 (0x12), region = 28  ;;  %s200_s24 = sand.u32 (%p51_p3), 1, %s829_s16  }
   0xd   : > { %s680_s25 = sshll.u32 (%p51_p3), %s837_s18, 2  ;;  %s679_s26 = sshll.u32 (%p51_p3), %s200_s24, 4 }
   0xe   : > { %s207_s29 = scalar_lea.vmem (%p51_p3), %s965_s0, %s680_s25  ;;  %s202_s30 = scalar_lea.vmem (%p51_p3), [#allocation3], %s679_s26 }
   0xf   : > { %v224_v0 = vld [vmem:[%s207_s29] sm:$0xf] (%p51_p3)  ;;  %v226_v1 = vld [vmem:[%s207_s29 + $0x14] sm:$0xf] (%p51_p3)  ;;  %v228_v2 = vld [vmem:[%s207_s29 + $0x28] sm:$0xf] (%p51_p3) }
  0x10   : > { %225 = vst [vmem:[%s202_s30] sm:$0xf] (%p51_p3), %v224_v0  ;;  %227 = vst [vmem:[%s202_s30 + $0x4] sm:$0xf] (%p51_p3), %v226_v1  ;;  %v230_v3 = vld [vmem:[%s207_s29 + $0x3c] sm:$0xf] (%p51_p3) }
  0x11   : > { %229 = vst [vmem:[%s202_s30 + $0x8] sm:$0xf] %v228_v2  ;;  %231 = vst [vmem:[%s202_s30 + $0xc] sm:$0xf] %v230_v3 }
  0x12 PF: > { %p681_p6 = scmp.ge.s32.totalorder %s841_s19, 1  ;;  %p274_p7 = scmp.lt.s32.totalorder %s841_s19, 6 }
  0x14   : > { %p275_p8 = pnand %p681_p6, %p274_p7 }
  0x15   : > { %s281_s5 = sand.u32 (!%p275_p8), 1, %s825_s15   ;;  %s683_s6 = sshll.u32 (!%p275_p8), %s833_s17, 4 }
  0x16   : > { %278 = sbr.rel (%p275_p8) target bundleno = 286 (0x11e), region = 73  ;;  %s916_s7 = sshll.u32 (!%p275_p8), %s281_s5, 4 }
  0x17   : > { %p325_p9 = scmp.lt.s32.totalorder (!%p275_p8), %s683_s6, 79  ;;  %s283_s12 = scalar_lea.vmem (!%p275_p8), [#allocation3], %s916_s7 }
  0x18   : > { %p685_p10 = scmp.ne.s32.totalorder (!%p275_p8), %s833_s17, 0 }
  0x1b   : > { %s977_s6 = smov (!%p325_p9, %s683_s6), 79  ;;  %352 = sbr.rel (%p685_p10) target bundleno = 35 (0x23), region = 81 }
  0x1c   : > { %s684_s8 = sshll.u32 %s977_s6, 2 }
  0x1d   : > { %s921_s11 = scalar_lea.vmem %s966_s1, %s684_s8 }
  0x20   : > { %v843_v4 = vmov 0.0  }
  0x21   : > { %353 = vst [vmem:[#allocation2 + $0x10] sm:$0xff] %v843_v4  ;;  %354 = vst [vmem:[#allocation2] sm:$0xff] %v843_v4 }
  0x22   : > { %355 = vst [vmem:[#allocation2 + $0x18] sm:$0xff] %v843_v4  ;;  %356 = vst [vmem:[#allocation2 + $0x8] sm:$0xff] %v843_v4 }
  0x23 PF: > { %v793_v5 = vld [vmem:[%s921_s11 + $0x38] sm:$0xff]   ;;  %v794_v6 = vld [vmem:[%s921_s11 + $0x30] sm:$0xff]   ;;  %v795_v7 = vld [vmem:[%s921_s11 + $0x28] sm:$0xff]   ;;  %p696_p11 = scmp.ne.s32.totalorder %s833_s17, 4 }
  0x24   : > { %732 = vmatprep.subr.bf16.mxu0 %v793_v5  ;;  %v796_v8 = vld [vmem:[%s921_s11 + $0x20] sm:$0xff]   ;;  %v797_v10 = vld [vmem:[%s921_s11 + $0x18] sm:$0xff]   ;;  %v798_v11 = vld [vmem:[%s921_s11 + $0x10] sm:$0xff]  }
  0x25   : > { %733 = vmatpush3.bf16.msra.mxu0 %v793_v5  ;;  %v801_v9 = vld [vmem:[%s283_s12] sm:$0xff]   ;;  %v799_v12 = vld [vmem:[%s921_s11 + $0x8] sm:$0xff]  }
  0x26   : > { %734 = vmatprep.subr.bf16.mxu0 %v794_v6  ;;  %748 = vmatprep.mubr.bf16.mxu0 %v801_v9  ;;  %v800_v13 = vld [vmem:[%s921_s11] sm:$0xff]   ;;  %v802_v14 = vld [vmem:[%s283_s12 + $0x8] sm:$0xff]  }
  0x28   : > { %v357_v17 = vld [vmem:[#allocation2 + $0x10] sm:$0xff]  ;;  %v358_v23 = vld [vmem:[#allocation2] sm:$0xff] }
  0x29   : > { %735 = vmatpush3.bf16.msra.mxu0 %v794_v6  ;;  %v359_v15 = vld [vmem:[#allocation2 + $0x18] sm:$0xff]  ;;  %v360_v20 = vld [vmem:[#allocation2 + $0x8] sm:$0xff] }
  0x2a   : > { %736 = vmatprep.subr.bf16.mxu0 %v795_v7 }
  0x2d   : > { %737 = vmatpush3.bf16.msra.mxu0 %v795_v7 }
  0x2e   : > { %738 = vmatprep.subr.bf16.mxu0 %v796_v8 }
  0x31   : > { %739 = vmatpush3.bf16.msra.mxu0 %v796_v8 }
  0x32   : > { %740 = vmatprep.subr.bf16.mxu0 %v797_v10 }
  0x35   : > { %741 = vmatpush3.bf16.msra.mxu0 %v797_v10 }
  0x36   : > { %742 = vmatprep.subr.bf16.mxu0 %v798_v11 }
  0x39   : > { %743 = vmatpush3.bf16.msra.mxu0 %v798_v11 }
  0x3a   : > { %744 = vmatprep.subr.bf16.mxu0 %v799_v12 }
  0x3d   : > { %745 = vmatpush3.bf16.msra.mxu0 %v799_v12 }
  0x3e   : > { %746 = vmatprep.subr.bf16.mxu0 %v800_v13 }
  0x41   : > { %747 = vmatpush3.bf16.msra.mxu0 %v800_v13 }
  0x44   : > { %749 = vmatmul.mubr.bf16.vlgmr.msra.gmra.mxu0 %v802_v14 }
 0x104   : > { %v750_v16 = vpop.f32.mrf.mxu0 }
 0x105   : > { %v492_v18 = vadd.f32 %v750_v16, %v359_v15 }
 0x106   : > { %v475_v19 = vpop.f32.mrf.mxu0 }
 0x107   : > { %496 = vst [vmem:[#allocation2 + $0x18] sm:$0xff] %v492_v18  ;;  %v490_v21 = vadd.f32 %v475_v19, %v357_v17 }
 0x108   : > { %v751_v22 = vpop.f32.mrf.mxu0 }
 0x109   : > { %494 = vst [vmem:[#allocation2 + $0x10] sm:$0xff] %v490_v21  ;;  %v493_v24 = vadd.f32 %v751_v22, %v360_v20  ;;  %501 = sbr.rel (%p696_p11) target bundleno = 286 (0x11e), region = 85 }
 0x10a   : > { %v478_v25 = vpop.f32.mrf.mxu0 }
 0x10b   : > { %497 = vst [vmem:[#allocation2 + $0x8] sm:$0xff] %v493_v24  ;;  %v491_v26 = vadd.f32 %v478_v25, %v358_v23 }
 0x10d   : > { %495 = vst [vmem:[#allocation2] sm:$0xff] %v491_v26 }
 0x10e   : > { %v697_v29 = vld [vmem:[%s967_s2] ss:$0 sm:$0xff]  ;;  %v504_v33 = vld [vmem:[#allocation2 + $0x18] sm:$0xff] }
 0x10f   : > { %v698_v32 = vld [vmem:[%s968_s3] ss:$0 sm:$0xff]  ;;  %v515_v35 = vmul.f32 %v697_v29, %v504_v33 }
 0x110   : > { %v502_v27 = vld [vmem:[#allocation2 + $0x10] sm:$0xff] }
 0x111   : > { %v513_v30 = vmul.f32 %v697_v29, %v502_v27  ;;  %v526_v39 = vadd.f32 %v698_v32, %v515_v35 }
 0x112   : > { %v505_v34 = vld [vmem:[#allocation2 + $0x8] sm:$0xff] }
 0x113   : > { %v516_v36 = vmul.f32 %v697_v29, %v505_v34  ;;  %v524_v37 = vadd.f32 %v698_v32, %v513_v30  ;;  %v530_v43 = vmax.f32 %v526_v39, 0.0 }
 0x114   : > { %v503_v28 = vld [vmem:[#allocation2] sm:$0xff] }
 0x115   : > { %v514_v31 = vmul.f32 %v697_v29, %v503_v28  ;;  %v527_v40 = vadd.f32 %v698_v32, %v516_v36  ;;  %v528_v41 = vmax.f32 %v524_v37, 0.0 }
 0x117   : > { %v525_v38 = vadd.f32 %v698_v32, %v514_v31  ;;  %v531_v44 = vmax.f32 %v527_v40, 0.0 }
 0x119   : > { %v529_v42 = vmax.f32 %v525_v38, 0.0  ;;  %v719_v46 = vpack.c.bf16 %v531_v44, %v530_v43 }
 0x11b   : > { %v714_v45 = vpack.c.bf16 %v529_v42, %v528_v41  ;;  %721 = vst [vmem:[%s969_s4 + $0x8] sm:$0xff] %v719_v46  }
 0x11d   : > { %715 = vst [vmem:[%s969_s4] sm:$0xff] %v714_v45  }
 0x11e PF: > { %s14_s19 = sadd.s32 1, %s841_s19   ;;  %s970_s15 = smov %s829_s16 }
 0x11f   : > { %p11_p12 = scmp.ge.s32.totalorder %s14_s19, 7   ;;  %s971_s16 = smov %s904_s23 }
 0x120   : > { %s972_s17 = smov %s837_s18  ;;  %s973_s18 = smov %s975_s20 }
 0x121   :  { %13 = sbr.rel (!%p11_p12) target bundleno = 3 (0x3), region = 129 }

// kernel: resnet18_forward.30
= control target key start
LH: loop header
LB: loop body
LE: loop exit
PB: predicated region body
PF: predicated region fallthrough
CT: control target
= control target key end

     0   :  { %s974_s18 = smov 0   ;;  %s976_s19 = smov 0   ;;  %s1076_s0 = inlined_call_operand.vmem [shape: bf16[32,1152], index: 0, kind: input, shape index: {}]   ;;  %s1077_s1 = inlined_call_operand.vmem [shape: bf16[1152,128], index: 1, kind: input, shape index: {}]   ;;  %s1078_s2 = inlined_call_operand.vmem [shape: f32[1,128], index: 2, kind: input, shape index: {}]   ;;  %s1079_s3 = inlined_call_operand.vmem [shape: f32[1,128], index: 3, kind: input, shape index: {}]   ;;  %s1080_s4 = inlined_call_operand.vmem [shape: bf16[32,128], index: 4, kind: input, shape index: {}]   ;;  %s1081_s5 = inlined_call_operand.vmem [shape: bf16[32,128], index: 5, kind: output, shape index: {}]  }
   0x1   :  { %s978_s20 = smov 0   ;;  %s980_s21 = smov 0  }
   0x2   :  { %s982_s22 = smov 0  }
   0x3 LB: > { %s27_s23 = sadd.s32 1, %s937_s21  ;;  %p50_p1 = scmp.ne.s32.totalorder %s929_s19, %s925_s18  ;;  %s941_s22 = sphi %s982_s22, %s15_s22   ;;  %s937_s21 = sphi %s980_s21, %s1085_s21   ;;  %s933_s20 = sphi %s978_s20, %s1084_s20   ;;  %s929_s19 = sphi %s976_s19, %s1083_s19   ;;  %s925_s18 = sphi %s974_s18, %s1082_s18  }
   0x4   : > { %p28_p0 = scmp.ge.s32.totalorder %s27_s23, 9  ;;  %p51_p2 = scmp.eq.s32.totalorder %s941_s22, 0 }
   0x5   : > { %s43_s25 = sadd.s32 1, %s929_s19  ;;  %p769_p5 = scmp.ge.s32.totalorder %s941_s22, 9 }
   0x6   : > { %s1087_s23 = smov (%p28_p0, %s27_s23), 0  ;;  %p52_p3 = por %p51_p2, %p50_p1 }
   0x7   : > { %s39_s24 = ssub.s32 %s937_s21, %s1087_s23  ;;  %236 = sbr.rel (%p769_p5) target bundleno = 18 (0x12), region = 28 }
   0x8   : > { %p41_p4 = scmp.eq.s32.totalorder %s39_s24, 0 }
   0xa   : > { %s1009_s26 = scalar_select %p41_p4, %s929_s19, %s43_s25  }
   0xc   : > { %239 = sbr.rel (!%p52_p3) target bundleno = 18 (0x12), region = 32  ;;  %s241_s27 = sand.u32 (%p52_p3), 1, %s929_s19  }
   0xd   : > { %s771_s28 = sshll.u32 (%p52_p3), %s937_s21, 2  ;;  %s770_s29 = sshll.u32 (%p52_p3), %s241_s27, 4 }
   0xe   : > { %s248_s7 = scalar_lea.vmem (%p52_p3), %s1076_s0, %s771_s28  ;;  %s243_s8 = scalar_lea.vmem (%p52_p3), [#allocation3], %s770_s29 }
   0xf   : > { %v265_v0 = vld [vmem:[%s248_s7] sm:$0xf] (%p52_p3)  ;;  %v267_v1 = vld [vmem:[%s248_s7 + $0x24] sm:$0xf] (%p52_p3)  ;;  %v269_v2 = vld [vmem:[%s248_s7 + $0x48] sm:$0xf] (%p52_p3) }
  0x10   : > { %266 = vst [vmem:[%s243_s8] sm:$0xf] (%p52_p3), %v265_v0  ;;  %268 = vst [vmem:[%s243_s8 + $0x4] sm:$0xf] (%p52_p3), %v267_v1  ;;  %v271_v3 = vld [vmem:[%s248_s7 + $0x6c] sm:$0xf] (%p52_p3) }
  0x11   : > { %270 = vst [vmem:[%s243_s8 + $0x8] sm:$0xf] %v269_v2  ;;  %272 = vst [vmem:[%s243_s8 + $0xc] sm:$0xf] %v271_v3 }
  0x12 PF: > { %p772_p6 = scmp.ge.s32.totalorder %s941_s22, 1  ;;  %p315_p7 = scmp.lt.s32.totalorder %s941_s22, 10 }
  0x14   : > { %p316_p8 = pnand %p772_p6, %p315_p7 }
  0x15   : > { %s322_s9 = sand.u32 (!%p316_p8), 1, %s925_s18   ;;  %s774_s10 = sshll.u32 (!%p316_p8), %s933_s20, 4 }
  0x16   : > { %319 = sbr.rel (%p316_p8) target bundleno = 288 (0x120), region = 77  ;;  %s1021_s11 = sshll.u32 (!%p316_p8), %s322_s9, 4 }
  0x17   : > { %p376_p9 = scmp.lt.s32.totalorder (!%p316_p8), %s774_s10, 143  ;;  %s324_s16 = scalar_lea.vmem (!%p316_p8), [#allocation3], %s1021_s11 }
  0x18   : > { %p776_p10 = scmp.ne.s32.totalorder (!%p316_p8), %s933_s20, 0 }
  0x1b   : > { %s1089_s10 = smov (!%p376_p9, %s774_s10), 143  ;;  %412 = sbr.rel (%p776_p10) target bundleno = 35 (0x23), region = 85 }
  0x1c   : > { %s775_s12 = sshll.u32 %s1089_s10, 2 }
  0x1d   : > { %s1026_s15 = scalar_lea.vmem %s1077_s1, %s775_s12 }
  0x20   : > { %v943_v4 = vmov 0.0  }
  0x21   : > { %413 = vst [vmem:[#allocation2 + $0x10] sm:$0xff] %v943_v4  ;;  %414 = vst [vmem:[#allocation2] sm:$0xff] %v943_v4 }
  0x22   : > { %415 = vst [vmem:[#allocation2 + $0x18] sm:$0xff] %v943_v4  ;;  %416 = vst [vmem:[#allocation2 + $0x8] sm:$0xff] %v943_v4 }
  0x23 PF: > { %v893_v5 = vld [vmem:[%s1026_s15 + $0x38] sm:$0xff]   ;;  %v894_v6 = vld [vmem:[%s1026_s15 + $0x30] sm:$0xff]   ;;  %v895_v7 = vld [vmem:[%s1026_s15 + $0x28] sm:$0xff]   ;;  %p787_p11 = scmp.ne.s32.totalorder %s933_s20, 8 }
  0x24   : > { %832 = vmatprep.subr.bf16.mxu0 %v893_v5  ;;  %v896_v8 = vld [vmem:[%s1026_s15 + $0x20] sm:$0xff]   ;;  %v897_v10 = vld [vmem:[%s1026_s15 + $0x18] sm:$0xff]   ;;  %v898_v11 = vld [vmem:[%s1026_s15 + $0x10] sm:$0xff]  }
  0x25   : > { %833 = vmatpush3.bf16.msra.mxu0 %v893_v5  ;;  %v901_v9 = vld [vmem:[%s324_s16] sm:$0xff]   ;;  %v899_v12 = vld [vmem:[%s1026_s15 + $0x8] sm:$0xff]  }
  0x26   : > { %834 = vmatprep.subr.bf16.mxu0 %v894_v6  ;;  %848 = vmatprep.mubr.bf16.mxu0 %v901_v9  ;;  %v900_v13 = vld [vmem:[%s1026_s15] sm:$0xff]   ;;  %v902_v14 = vld [vmem:[%s324_s16 + $0x8] sm:$0xff]  }
  0x28   : > { %v417_v17 = vld [vmem:[#allocation2 + $0x10] sm:$0xff]  ;;  %v418_v23 = vld [vmem:[#allocation2] sm:$0xff] }
  0x29   : > { %835 = vmatpush3.bf16.msra.mxu0 %v894_v6  ;;  %v419_v15 = vld [vmem:[#allocation2 + $0x18] sm:$0xff]  ;;  %v420_v20 = vld [vmem:[#allocation2 + $0x8] sm:$0xff] }
  0x2a   : > { %836 = vmatprep.subr.bf16.mxu0 %v895_v7 }
  0x2d   : > { %837 = vmatpush3.bf16.msra.mxu0 %v895_v7 }
  0x2e   : > { %838 = vmatprep.subr.bf16.mxu0 %v896_v8 }
  0x31   : > { %839 = vmatpush3.bf16.msra.mxu0 %v896_v8 }
  0x32   : > { %840 = vmatprep.subr.bf16.mxu0 %v897_v10 }
  0x35   : > { %841 = vmatpush3.bf16.msra.mxu0 %v897_v10 }
  0x36   : > { %842 = vmatprep.subr.bf16.mxu0 %v898_v11 }
  0x39   : > { %843 = vmatpush3.bf16.msra.mxu0 %v898_v11 }
  0x3a   : > { %844 = vmatprep.subr.bf16.mxu0 %v899_v12 }
  0x3d   : > { %845 = vmatpush3.bf16.msra.mxu0 %v899_v12 }
  0x3e   : > { %846 = vmatprep.subr.bf16.mxu0 %v900_v13 }
  0x41   : > { %847 = vmatpush3.bf16.msra.mxu0 %v900_v13 }
  0x44   : > { %849 = vmatmul.mubr.bf16.vlgmr.msra.gmra.mxu0 %v902_v14 }
 0x104   : > { %v850_v16 = vpop.f32.mrf.mxu0 }
 0x105   : > { %v552_v18 = vadd.f32 %v850_v16, %v419_v15 }
 0x106   : > { %v535_v19 = vpop.f32.mrf.mxu0 }
 0x107   : > { %556 = vst [vmem:[#allocation2 + $0x18] sm:$0xff] %v552_v18  ;;  %v550_v21 = vadd.f32 %v535_v19, %v417_v17 }
 0x108   : > { %v851_v22 = vpop.f32.mrf.mxu0 }
 0x109   : > { %554 = vst [vmem:[#allocation2 + $0x10] sm:$0xff] %v550_v21  ;;  %v553_v24 = vadd.f32 %v851_v22, %v420_v20  ;;  %561 = sbr.rel (%p787_p11) target bundleno = 288 (0x120), region = 89 }
 0x10a   : > { %v538_v25 = vpop.f32.mrf.mxu0 }
 0x10b   : > { %557 = vst [vmem:[#allocation2 + $0x8] sm:$0xff] %v553_v24  ;;  %v551_v26 = vadd.f32 %v538_v25, %v418_v23 }
 0x10d   : > { %555 = vst [vmem:[#allocation2] sm:$0xff] %v551_v26 }
 0x10e   : > { %v788_v29 = vld [vmem:[%s1078_s2] ss:$0 sm:$0xff]  ;;  %v564_v34 = vld [vmem:[#allocation2 + $0x18] sm:$0xff]  ;;  %v820_v39 = vld [vmem:[%s1080_s4 + $0x8] sm:$0xff]  }
 0x10f   : > { %v789_v32 = vld [vmem:[%s1079_s3] ss:$0 sm:$0xff]  ;;  %v575_v38 = vmul.f32 %v788_v29, %v564_v34  ;;  %v808_v43 = vunpack.c.l.bf16 %v820_v39  ;;  %v809_v45 = vunpack.c.h.bf16 %v820_v39 }
 0x110   : > { %v562_v27 = vld [vmem:[#allocation2 + $0x10] sm:$0xff]  ;;  %v803_v33 = vld [vmem:[%s1080_s4] sm:$0xff]  }
 0x111   : > { %v573_v30 = vmul.f32 %v788_v29, %v562_v27  ;;  %v804_v35 = vunpack.c.l.bf16 %v803_v33  ;;  %v805_v36 = vunpack.c.h.bf16 %v803_v33  ;;  %v586_v44 = vadd.f32 %v789_v32, %v575_v38 }
 0x112   : > { %v565_v37 = vld [vmem:[#allocation2 + $0x8] sm:$0xff] }
 0x113   : > { %v584_v40 = vadd.f32 %v789_v32, %v573_v30  ;;  %v576_v42 = vmul.f32 %v788_v29, %v565_v37  ;;  %v598_v49 = vadd.f32 %v808_v43, %v586_v44 }
 0x114   : > { %v563_v28 = vld [vmem:[#allocation2] sm:$0xff] }
 0x115   : > { %v574_v31 = vmul.f32 %v788_v29, %v563_v28  ;;  %v596_v46 = vadd.f32 %v804_v35, %v584_v40  ;;  %v587_v48 = vadd.f32 %v789_v32, %v576_v42  ;;  %v602_v53 = vmax.f32 %v598_v49, 0.0 }
 0x117   : > { %v585_v41 = vadd.f32 %v789_v32, %v574_v31  ;;  %v600_v50 = vmax.f32 %v596_v46, 0.0  ;;  %v599_v52 = vadd.f32 %v809_v45, %v587_v48 }
 0x119   : > { %v597_v47 = vadd.f32 %v805_v36, %v585_v41  ;;  %v603_v55 = vmax.f32 %v599_v52, 0.0 }
 0x11b   : > { %v601_v51 = vmax.f32 %v597_v47, 0.0  ;;  %v818_v56 = vpack.c.bf16 %v603_v55, %v602_v53 }
 0x11d   : > { %v813_v54 = vpack.c.bf16 %v601_v51, %v600_v50  ;;  %821 = vst [vmem:[%s1081_s5 + $0x8] sm:$0xff] %v818_v56  }
 0x11f   : > { %814 = vst [vmem:[%s1081_s5] sm:$0xff] %v813_v54  }
 0x120 PF: > { %s15_s22 = sadd.s32 1, %s941_s22   ;;  %s1082_s18 = smov %s929_s19 }
 0x121   : > { %p12_p12 = scmp.ge.s32.totalorder %s15_s22, 11   ;;  %s1083_s19 = smov %s1009_s26 }
 0x122   : > { %s1084_s20 = smov %s937_s21  ;;  %s1085_s21 = smov %s1087_s23 }
 0x123   :  { %14 = sbr.rel (!%p12_p12) target bundleno = 3 (0x3), region = 136 }

// kernel: resnet18_forward.31
= control target key start
LH: loop header
LB: loop body
LE: loop exit
PB: predicated region body
PF: predicated region fallthrough
CT: control target
= control target key end

     0   :  { %s869_s15 = smov 0   ;;  %s871_s16 = smov 0   ;;  %s965_s0 = inlined_call_operand.vmem [shape: bf16[32,1152], index: 0, kind: input, shape index: {}]   ;;  %s966_s1 = inlined_call_operand.vmem [shape: bf16[1152,128], index: 1, kind: input, shape index: {}]   ;;  %s967_s2 = inlined_call_operand.vmem [shape: f32[1,128], index: 2, kind: input, shape index: {}]   ;;  %s968_s3 = inlined_call_operand.vmem [shape: f32[1,128], index: 3, kind: input, shape index: {}]   ;;  %s969_s4 = inlined_call_operand.vmem [shape: bf16[32,128], index: 4, kind: output, shape index: {}]  }
   0x1   :  { %s873_s17 = smov 0   ;;  %s875_s18 = smov 0  }
   0x2   :  { %s877_s19 = smov 0  }
   0x3 LB: > { %s26_s20 = sadd.s32 1, %s837_s18  ;;  %p49_p1 = scmp.ne.s32.totalorder %s829_s16, %s825_s15  ;;  %s841_s19 = sphi %s877_s19, %s14_s19   ;;  %s837_s18 = sphi %s875_s18, %s973_s18   ;;  %s833_s17 = sphi %s873_s17, %s972_s17   ;;  %s829_s16 = sphi %s871_s16, %s971_s16   ;;  %s825_s15 = sphi %s869_s15, %s970_s15  }
   0x4   : > { %p27_p0 = scmp.ge.s32.totalorder %s26_s20, 9  ;;  %p50_p2 = scmp.eq.s32.totalorder %s841_s19, 0 }
   0x5   : > { %s42_s22 = sadd.s32 1, %s829_s16  ;;  %p678_p5 = scmp.ge.s32.totalorder %s841_s19, 9 }
   0x6   : > { %s975_s20 = smov (%p27_p0, %s26_s20), 0  ;;  %p51_p3 = por %p50_p2, %p49_p1 }
   0x7   : > { %s38_s21 = ssub.s32 %s837_s18, %s975_s20  ;;  %195 = sbr.rel (%p678_p5) target bundleno = 18 (0x12), region = 24 }
   0x8   : > { %p40_p4 = scmp.eq.s32.totalorder %s38_s21, 0 }
   0xa   : > { %s904_s23 = scalar_select %p40_p4, %s829_s16, %s42_s22  }
   0xc   : > { %198 = sbr.rel (!%p51_p3) target bundleno = 18 (0x12), region = 28  ;;  %s200_s24 = sand.u32 (%p51_p3), 1, %s829_s16  }
   0xd   : > { %s680_s25 = sshll.u32 (%p51_p3), %s837_s18, 2  ;;  %s679_s26 = sshll.u32 (%p51_p3), %s200_s24, 4 }
   0xe   : > { %s207_s29 = scalar_lea.vmem (%p51_p3), %s965_s0, %s680_s25  ;;  %s202_s30 = scalar_lea.vmem (%p51_p3), [#allocation3], %s679_s26 }
   0xf   : > { %v224_v0 = vld [vmem:[%s207_s29] sm:$0xf] (%p51_p3)  ;;  %v226_v1 = vld [vmem:[%s207_s29 + $0x24] sm:$0xf] (%p51_p3)  ;;  %v228_v2 = vld [vmem:[%s207_s29 + $0x48] sm:$0xf] (%p51_p3) }
  0x10   : > { %225 = vst [vmem:[%s202_s30] sm:$0xf] (%p51_p3), %v224_v0  ;;  %227 = vst [vmem:[%s202_s30 + $0x4] sm:$0xf] (%p51_p3), %v226_v1  ;;  %v230_v3 = vld [vmem:[%s207_s29 + $0x6c] sm:$0xf] (%p51_p3) }
  0x11   : > { %229 = vst [vmem:[%s202_s30 + $0x8] sm:$0xf] %v228_v2  ;;  %231 = vst [vmem:[%s202_s30 + $0xc] sm:$0xf] %v230_v3 }
  0x12 PF: > { %p681_p6 = scmp.ge.s32.totalorder %s841_s19, 1  ;;  %p274_p7 = scmp.lt.s32.totalorder %s841_s19, 10 }
  0x14   : > { %p275_p8 = pnand %p681_p6, %p274_p7 }
  0x15   : > { %s281_s5 = sand.u32 (!%p275_p8), 1, %s825_s15   ;;  %s683_s6 = sshll.u32 (!%p275_p8), %s833_s17, 4 }
  0x16   : > { %278 = sbr.rel (%p275_p8) target bundleno = 286 (0x11e), region = 73  ;;  %s916_s7 = sshll.u32 (!%p275_p8), %s281_s5, 4 }
  0x17   : > { %p325_p9 = scmp.lt.s32.totalorder (!%p275_p8), %s683_s6, 143  ;;  %s283_s12 = scalar_lea.vmem (!%p275_p8), [#allocation3], %s916_s7 }
  0x18   : > { %p685_p10 = scmp.ne.s32.totalorder (!%p275_p8), %s833_s17, 0 }
  0x1b   : > { %s977_s6 = smov (!%p325_p9, %s683_s6), 143  ;;  %352 = sbr.rel (%p685_p10) target bundleno = 35 (0x23), region = 81 }
  0x1c   : > { %s684_s8 = sshll.u32 %s977_s6, 2 }
  0x1d   : > { %s921_s11 = scalar_lea.vmem %s966_s1, %s684_s8 }
  0x20   : > { %v843_v4 = vmov 0.0  }
  0x21   : > { %353 = vst [vmem:[#allocation2 + $0x10] sm:$0xff] %v843_v4  ;;  %354 = vst [vmem:[#allocation2] sm:$0xff] %v843_v4 }
  0x22   : > { %355 = vst [vmem:[#allocation2 + $0x18] sm:$0xff] %v843_v4  ;;  %356 = vst [vmem:[#allocation2 + $0x8] sm:$0xff] %v843_v4 }
  0x23 PF: > { %v793_v5 = vld [vmem:[%s921_s11 + $0x38] sm:$0xff]   ;;  %v794_v6 = vld [vmem:[%s921_s11 + $0x30] sm:$0xff]   ;;  %v795_v7 = vld [vmem:[%s921_s11 + $0x28] sm:$0xff]   ;;  %p696_p11 = scmp.ne.s32.totalorder %s833_s17, 8 }
  0x24   : > { %732 = vmatprep.subr.bf16.mxu0 %v793_v5  ;;  %v796_v8 = vld [vmem:[%s921_s11 + $0x20] sm:$0xff]   ;;  %v797_v10 = vld [vmem:[%s921_s11 + $0x18] sm:$0xff]   ;;  %v798_v11 = vld [vmem:[%s921_s11 + $0x10] sm:$0xff]  }
  0x25   : > { %733 = vmatpush3.bf16.msra.mxu0 %v793_v5  ;;  %v801_v9 = vld [vmem:[%s283_s12] sm:$0xff]   ;;  %v799_v12 = vld [vmem:[%s921_s11 + $0x8] sm:$0xff]  }
  0x26   : > { %734 = vmatprep.subr.bf16.mxu0 %v794_v6  ;;  %748 = vmatprep.mubr.bf16.mxu0 %v801_v9  ;;  %v800_v13 = vld [vmem:[%s921_s11] sm:$0xff]   ;;  %v802_v14 = vld [vmem:[%s283_s12 + $0x8] sm:$0xff]  }
  0x28   : > { %v357_v17 = vld [vmem:[#allocation2 + $0x10] sm:$0xff]  ;;  %v358_v23 = vld [vmem:[#allocation2] sm:$0xff] }
  0x29   : > { %735 = vmatpush3.bf16.msra.mxu0 %v794_v6  ;;  %v359_v15 = vld [vmem:[#allocation2 + $0x18] sm:$0xff]  ;;  %v360_v20 = vld [vmem:[#allocation2 + $0x8] sm:$0xff] }
  0x2a   : > { %736 = vmatprep.subr.bf16.mxu0 %v795_v7 }
  0x2d   : > { %737 = vmatpush3.bf16.msra.mxu0 %v795_v7 }
  0x2e   : > { %738 = vmatprep.subr.bf16.mxu0 %v796_v8 }
  0x31   : > { %739 = vmatpush3.bf16.msra.mxu0 %v796_v8 }
  0x32   : > { %740 = vmatprep.subr.bf16.mxu0 %v797_v10 }
  0x35   : > { %741 = vmatpush3.bf16.msra.mxu0 %v797_v10 }
  0x36   : > { %742 = vmatprep.subr.bf16.mxu0 %v798_v11 }
  0x39   : > { %743 = vmatpush3.bf16.msra.mxu0 %v798_v11 }
  0x3a   : > { %744 = vmatprep.subr.bf16.mxu0 %v799_v12 }
  0x3d   : > { %745 = vmatpush3.bf16.msra.mxu0 %v799_v12 }
  0x3e   : > { %746 = vmatprep.subr.bf16.mxu0 %v800_v13 }
  0x41   : > { %747 = vmatpush3.bf16.msra.mxu0 %v800_v13 }
  0x44   : > { %749 = vmatmul.mubr.bf16.vlgmr.msra.gmra.mxu0 %v802_v14 }
 0x104   : > { %v750_v16 = vpop.f32.mrf.mxu0 }
 0x105   : > { %v492_v18 = vadd.f32 %v750_v16, %v359_v15 }
 0x106   : > { %v475_v19 = vpop.f32.mrf.mxu0 }
 0x107   : > { %496 = vst [vmem:[#allocation2 + $0x18] sm:$0xff] %v492_v18  ;;  %v490_v21 = vadd.f32 %v475_v19, %v357_v17 }
 0x108   : > { %v751_v22 = vpop.f32.mrf.mxu0 }
 0x109   : > { %494 = vst [vmem:[#allocation2 + $0x10] sm:$0xff] %v490_v21  ;;  %v493_v24 = vadd.f32 %v751_v22, %v360_v20  ;;  %501 = sbr.rel (%p696_p11) target bundleno = 286 (0x11e), region = 85 }
 0x10a   : > { %v478_v25 = vpop.f32.mrf.mxu0 }
 0x10b   : > { %497 = vst [vmem:[#allocation2 + $0x8] sm:$0xff] %v493_v24  ;;  %v491_v26 = vadd.f32 %v478_v25, %v358_v23 }
 0x10d   : > { %495 = vst [vmem:[#allocation2] sm:$0xff] %v491_v26 }
 0x10e   : > { %v697_v29 = vld [vmem:[%s967_s2] ss:$0 sm:$0xff]  ;;  %v504_v33 = vld [vmem:[#allocation2 + $0x18] sm:$0xff] }
 0x10f   : > { %v698_v32 = vld [vmem:[%s968_s3] ss:$0 sm:$0xff]  ;;  %v515_v35 = vmul.f32 %v697_v29, %v504_v33 }
 0x110   : > { %v502_v27 = vld [vmem:[#allocation2 + $0x10] sm:$0xff] }
 0x111   : > { %v513_v30 = vmul.f32 %v697_v29, %v502_v27  ;;  %v526_v39 = vadd.f32 %v698_v32, %v515_v35 }
 0x112   : > { %v505_v34 = vld [vmem:[#allocation2 + $0x8] sm:$0xff] }
 0x113   : > { %v516_v36 = vmul.f32 %v697_v29, %v505_v34  ;;  %v524_v37 = vadd.f32 %v698_v32, %v513_v30  ;;  %v530_v43 = vmax.f32 %v526_v39, 0.0 }
 0x114   : > { %v503_v28 = vld [vmem:[#allocation2] sm:$0xff] }
 0x115   : > { %v514_v31 = vmul.f32 %v697_v29, %v503_v28  ;;  %v527_v40 = vadd.f32 %v698_v32, %v516_v36  ;;  %v528_v41 = vmax.f32 %v524_v37, 0.0 }
 0x117   : > { %v525_v38 = vadd.f32 %v698_v32, %v514_v31  ;;  %v531_v44 = vmax.f32 %v527_v40, 0.0 }
 0x119   : > { %v529_v42 = vmax.f32 %v525_v38, 0.0  ;;  %v719_v46 = vpack.c.bf16 %v531_v44, %v530_v43 }
 0x11b   : > { %v714_v45 = vpack.c.bf16 %v529_v42, %v528_v41  ;;  %721 = vst [vmem:[%s969_s4 + $0x8] sm:$0xff] %v719_v46  }
 0x11d   : > { %715 = vst [vmem:[%s969_s4] sm:$0xff] %v714_v45  }
 0x11e PF: > { %s14_s19 = sadd.s32 1, %s841_s19   ;;  %s970_s15 = smov %s829_s16 }
 0x11f   : > { %p11_p12 = scmp.ge.s32.totalorder %s14_s19, 11   ;;  %s971_s16 = smov %s904_s23 }
 0x120   : > { %s972_s17 = smov %s837_s18  ;;  %s973_s18 = smov %s975_s20 }
 0x121   :  { %13 = sbr.rel (!%p11_p12) target bundleno = 3 (0x3), region = 129 }

// kernel: resnet18_forward.32
= control target key start
LH: loop header
LB: loop body
LE: loop exit
PB: predicated region body
PF: predicated region fallthrough
CT: control target
= control target key end

     0   :  { %10 = vsyncpa [#allocation5], 0  ;;  %s1220_s0 = inlined_call_operand.vmem [shape: bf16[32,1152], index: 0, kind: input, shape index: {}]   ;;  %s1221_s1 = inlined_call_operand.vmem [shape: bf16[1152,128], index: 1, kind: input, shape index: {}]   ;;  %s1222_s2 = inlined_call_operand.hbm [shape: f32[1,128], index: 2, kind: input, shape index: {}]   ;;  %s1223_s3 = inlined_call_operand.hbm [shape: f32[1,128], index: 3, kind: input, shape index: {}]   ;;  %s1224_s4 = inlined_call_operand.vmem [shape: bf16[32,128], index: 4, kind: input, shape index: {}]   ;;  %s1225_s5 = inlined_call_operand.vmem [shape: bf16[32,128], index: 5, kind: output, shape index: {}]  }
   0x1   :  { %11 = vsyncpa [#allocation7], 0  ;;  %s1073_s18 = smov 0   ;;  %s1075_s19 = smov 0  }
   0x2   :  { %s1077_s20 = smov 0   ;;  %s1079_s21 = smov 0  }
   0x3   :  { %s1081_s22 = smov 0  }
   0x4 LB: > { %s778_s23 = sadd.s32 4294967295, %s1038_s22   ;;  %s29_s24 = sadd.s32 1, %s1034_s21  ;;  %s1038_s22 = sphi %s1081_s22, %s17_s22   ;;  %s1034_s21 = sphi %s1079_s21, %s1238_s21   ;;  %s1030_s20 = sphi %s1077_s20, %s1237_s20   ;;  %s1026_s19 = sphi %s1075_s19, %s1236_s19   ;;  %s1022_s18 = sphi %s1073_s18, %s1235_s18  }
   0x5   : > { %p30_p0 = scmp.ge.s32.totalorder %s29_s24, 9  ;;  %s45_s25 = sadd.s32 1, %s1026_s19 }
   0x6   : > { %p52_p1 = scmp.ne.s32.totalorder %s1026_s19, %s1022_s18  ;;  %p53_p2 = scmp.eq.s32.totalorder %s1038_s22, 0 }
   0x7   : > { %s1240_s24 = smov (%p30_p0, %s29_s24), 0  ;;  %p779_p4 = scmp.ge.s32.totalorder %s1038_s22, 1 }
   0x8   : > { %p1106_p3 = por %p53_p2, %p52_p1  ;;  %s41_s27 = ssub.s32 %s1034_s21, %s1240_s24 }
   0x9   : > { %p205_p5 = scmp.lt.s32.totalorder %s1038_s22, 10  ;;  %p43_p6 = scmp.eq.s32.totalorder %s41_s27, 0 }
   0xa   : > { %p1118_p8 = scmp.eq.s32.totalorder %s778_s23, 0  ;;  %s1040_s6 = smov [#allocation4]  }
   0xb   : > { %p1114_p7 = pnand %p779_p4, %p205_p5  ;;  %s220_s7 = sshll.u32 %s1040_s6, 4  ;;  %s221_s7 = int_to_ptr.vmem [resolvable:$true] %s220_s7 }
   0xc   : > { %s1231_s29 = scalar_select %p1118_p8, 1, 0 }
   0xd   : > { %s1230_s28 = scalar_select %p1114_p7, 1, 0 }
   0xe   : > { %s1123_s30 = scalar_select %p43_p6, %s1026_s19, %s45_s25  }
   0xf   : > { %p876_p9 = pneg %p1114_p7  ;;  %s1041_s9 = smov [#allocation6]  }
  0x10   : > { %s233_s10 = sshll.u32 %s1041_s9, 4  ;;  %s951_s11 = scalar_lea.vmem %s221_s7, 16  ;;  %s234_s10 = int_to_ptr.vmem [resolvable:$true] %s233_s10 }
  0x11   : > { %p1129_p10 = pnand %p1118_p8, %p876_p9  ;;  %p952_p12 = scmp.ne.s32.totalorder %s221_s7, %s951_s11 }
  0x12   : > { %s958_s12 = scalar_lea.vmem %s221_s7, 32  ;;  %p959_p1 = scmp.lt.s32.totalorder %s221_s7, %s221_s7 }
  0x13   : > { %p942_p11 = pneg %p1129_p10  ;;  %p960_p2 = scmp.lt.s32.totalorder %s958_s12, %s951_s11 }
  0x15   : > { %p954_p13 = pnand %p952_p12, %p942_p11  ;;  %p961_p4 = por %p960_p2, %p959_p1 }
  0x17   : > { %p955_p0 = pneg %p954_p13 }
  0x19   : > { %p962_p5 = pnand %p961_p4, %p955_p0 }
  0x1b   : > { %965 = shalt.err (!%p962_p5)
}
  0x1c   : > { %879 = dma.hbm_to_vmem [thread:$0]  (!%p1129_p10), %s1222_s2, 16, %s221_s7, [#allocation5]  }
  0x1d   : > { %s977_s15 = scalar_lea.vmem %s234_s10, 16  ;;  %s984_s16 = scalar_lea.vmem %s234_s10, 32 }
  0x1e   : > { %p978_p6 = scmp.ne.s32.totalorder %s234_s10, %s977_s15  ;;  %p985_p13 = scmp.lt.s32.totalorder %s234_s10, %s234_s10 }
  0x1f   : > { %p986_p8 = scmp.lt.s32.totalorder %s984_s16, %s977_s15 }
  0x20   : > { %p980_p9 = pnand %p978_p6, %p942_p11 }
  0x21   : > { %p987_p7 = por %p986_p8, %p985_p13 }
  0x22   : > { %p981_p12 = pneg %p980_p9 }
  0x24   : > { %p988_p1 = pnand %p987_p7, %p981_p12 }
  0x26   : > { %991 = shalt.err (!%p988_p1)
}
  0x27   : > { %882 = dma.hbm_to_vmem [thread:$0]  (!%p1129_p10), %s1223_s3, 16, %s234_s10, [#allocation7]  }
  0x28   : > { %p783_p0 = scmp.ge.s32.totalorder %s1038_s22, 9 }
  0x2a   : > { %252 = sbr.rel (%p783_p0) target bundleno = 53 (0x35), region = 28 }
  0x2f   : > { %255 = sbr.rel (!%p1106_p3) target bundleno = 53 (0x35), region = 32  ;;  %s257_s25 = sand.u32 (%p1106_p3), 1, %s1026_s19  }
  0x30   : > { %s785_s27 = sshll.u32 (%p1106_p3), %s1034_s21, 2  ;;  %s784_s6 = sshll.u32 (%p1106_p3), %s257_s25, 4 }
  0x31   : > { %s264_s11 = scalar_lea.vmem (%p1106_p3), %s1220_s0, %s785_s27  ;;  %s259_s8 = scalar_lea.vmem (%p1106_p3), [#allocation3], %s784_s6 }
  0x32   : > { %v281_v0 = vld [vmem:[%s264_s11] sm:$0xf] (%p1106_p3)  ;;  %v283_v1 = vld [vmem:[%s264_s11 + $0x24] sm:$0xf] (%p1106_p3)  ;;  %v285_v2 = vld [vmem:[%s264_s11 + $0x48] sm:$0xf] (%p1106_p3) }
  0x33   : > { %282 = vst [vmem:[%s259_s8] sm:$0xf] (%p1106_p3), %v281_v0  ;;  %284 = vst [vmem:[%s259_s8 + $0x4] sm:$0xf] (%p1106_p3), %v283_v1  ;;  %v287_v3 = vld [vmem:[%s264_s11 + $0x6c] sm:$0xf] (%p1106_p3) }
  0x34   : > { %286 = vst [vmem:[%s259_s8 + $0x8] sm:$0xf] %v285_v2  ;;  %288 = vst [vmem:[%s259_s8 + $0xc] sm:$0xf] %v287_v3 }
  0x35 PF: > { %p1233_p3 = scmp.ne.s32.totalorder %s1230_s28, 0 }
  0x36   : > { %s338_s26 = sand.u32 (!%p1233_p3), 1, %s1022_s18   ;;  %p1234_p7 = scmp.ne.s32.totalorder (!%p1233_p3), %s1231_s29, 0 }
  0x37   : > { %335 = sbr.rel (%p1233_p3) target bundleno = 326 (0x146), region = 77  ;;  %s1162_s10 = sshll.u32 (!%p1233_p3), %s338_s26, 4 }
  0x38   : > { %s340_s12 = scalar_lea.vmem (!%p1233_p3), [#allocation3], %s1162_s10 }
  0x3c   : > { %1013 = dma.done.wait (%p1234_p7), [#allocation5], 16  }
  0x3d   : > { %1015 = vsyncadd (%p1234_p7), [#allocation5], 4294967280 }
  0x3e   : > { %1017 = dma.done.wait (%p1234_p7), [#allocation7], 16  }
  0x3f   : > { %1019 = vsyncadd (%p1234_p7), [#allocation7], 4294967280  ;;  %s790_s28 = sshll.u32 %s1030_s20, 4  ;;  %p792_p10 = scmp.ne.s32.totalorder %s1030_s20, 0 }
  0x40   : > { %p394_p8 = scmp.lt.s32.totalorder %s790_s28, 143 }
  0x41   : > { %424 = sbr.rel (%p792_p10) target bundleno = 73 (0x49), region = 93 }
  0x42   : > { %s1242_s28 = smov (!%p394_p8, %s790_s28), 143 }
  0x43   : > { %s791_s18 = sshll.u32 %s1242_s28, 2 }
  0x44   : > { %s1177_s15 = scalar_lea.vmem %s1221_s1, %s791_s18 }
  0x46   : > { %v1042_v4 = vmov 0.0  }
  0x47   : > { %425 = vst [vmem:[#allocation2 + $0x10] sm:$0xff] %v1042_v4  ;;  %426 = vst [vmem:[#allocation2] sm:$0xff] %v1042_v4 }
  0x48   : > { %427 = vst [vmem:[#allocation2 + $0x18] sm:$0xff] %v1042_v4  ;;  %428 = vst [vmem:[#allocation2 + $0x8] sm:$0xff] %v1042_v4 }
  0x49 PF: > { %v930_v5 = vld [vmem:[%s1177_s15 + $0x38] sm:$0xff]   ;;  %v931_v6 = vld [vmem:[%s1177_s15 + $0x30] sm:$0xff]   ;;  %v932_v7 = vld [vmem:[%s1177_s15 + $0x28] sm:$0xff]   ;;  %p803_p11 = scmp.ne.s32.totalorder %s1030_s20, 8 }
  0x4a   : > { %848 = vmatprep.subr.bf16.mxu0 %v930_v5  ;;  %v933_v8 = vld [vmem:[%s1177_s15 + $0x20] sm:$0xff]   ;;  %v934_v10 = vld [vmem:[%s1177_s15 + $0x18] sm:$0xff]   ;;  %v935_v11 = vld [vmem:[%s1177_s15 + $0x10] sm:$0xff]  }
  0x4b   : > { %849 = vmatpush3.bf16.msra.mxu0 %v930_v5  ;;  %v938_v9 = vld [vmem:[%s340_s12] sm:$0xff]   ;;  %v936_v12 = vld [vmem:[%s1177_s15 + $0x8] sm:$0xff]  }
  0x4c   : > { %850 = vmatprep.subr.bf16.mxu0 %v931_v6  ;;  %864 = vmatprep.mubr.bf16.mxu0 %v938_v9  ;;  %v937_v13 = vld [vmem:[%s1177_s15] sm:$0xff]   ;;  %v939_v14 = vld [vmem:[%s340_s12 + $0x8] sm:$0xff]  }
  0x4e   : > { %v429_v17 = vld [vmem:[#allocation2 + $0x10] sm:$0xff]  ;;  %v430_v23 = vld [vmem:[#allocation2] sm:$0xff] }
  0x4f   : > { %851 = vmatpush3.bf16.msra.mxu0 %v931_v6  ;;  %v431_v15 = vld [vmem:[#allocation2 + $0x18] sm:$0xff]  ;;  %v432_v20 = vld [vmem:[#allocation2 + $0x8] sm:$0xff] }
  0x50   : > { %852 = vmatprep.subr.bf16.mxu0 %v932_v7 }
  0x53   : > { %853 = vmatpush3.bf16.msra.mxu0 %v932_v7 }
  0x54   : > { %854 = vmatprep.subr.bf16.mxu0 %v933_v8 }
  0x57   : > { %855 = vmatpush3.bf16.msra.mxu0 %v933_v8 }
  0x58   : > { %856 = vmatprep.subr.bf16.mxu0 %v934_v10 }
  0x5b   : > { %857 = vmatpush3.bf16.msra.mxu0 %v934_v10 }
  0x5c   : > { %858 = vmatprep.subr.bf16.mxu0 %v935_v11 }
  0x5f   : > { %859 = vmatpush3.bf16.msra.mxu0 %v935_v11 }
  0x60   : > { %860 = vmatprep.subr.bf16.mxu0 %v936_v12 }
  0x63   : > { %861 = vmatpush3.bf16.msra.mxu0 %v936_v12 }
  0x64   : > { %862 = vmatprep.subr.bf16.mxu0 %v937_v13 }
  0x67   : > { %863 = vmatpush3.bf16.msra.mxu0 %v937_v13 }
  0x6a   : > { %865 = vmatmul.mubr.bf16.vlgmr.msra.gmra.mxu0 %v939_v14 }
 0x12a   : > { %v866_v16 = vpop.f32.mrf.mxu0 }
 0x12b   : > { %v564_v18 = vadd.f32 %v866_v16, %v431_v15 }
 0x12c   : > { %v547_v19 = vpop.f32.mrf.mxu0 }
 0x12d   : > { %568 = vst [vmem:[#allocation2 + $0x18] sm:$0xff] %v564_v18  ;;  %v562_v21 = vadd.f32 %v547_v19, %v429_v17 }
 0x12e   : > { %v867_v22 = vpop.f32.mrf.mxu0 }
 0x12f   : > { %566 = vst [vmem:[#allocation2 + $0x10] sm:$0xff] %v562_v21  ;;  %v565_v24 = vadd.f32 %v867_v22, %v432_v20  ;;  %573 = sbr.rel (%p803_p11) target bundleno = 326 (0x146), region = 97 }
 0x130   : > { %v550_v25 = vpop.f32.mrf.mxu0 }
 0x131   : > { %569 = vst [vmem:[#allocation2 + $0x8] sm:$0xff] %v565_v24  ;;  %v563_v26 = vadd.f32 %v550_v25, %v430_v23 }
 0x133   : > { %567 = vst [vmem:[#allocation2] sm:$0xff] %v563_v26 }
 0x134   : > { %v804_v29 = vld [vmem:[#allocation4] ss:$0 sm:$0xff]  ;;  %v805_v32 = vld [vmem:[#allocation6] ss:$0 sm:$0xff]  ;;  %v576_v34 = vld [vmem:[#allocation2 + $0x18] sm:$0xff] }
 0x135   : > { %v819_v33 = vld [vmem:[%s1224_s4] sm:$0xff]   ;;  %v587_v38 = vmul.f32 %v804_v29, %v576_v34  ;;  %v836_v39 = vld [vmem:[%s1224_s4 + $0x8] sm:$0xff]  }
 0x136   : > { %v574_v27 = vld [vmem:[#allocation2 + $0x10] sm:$0xff]  ;;  %v820_v35 = vunpack.c.l.bf16 %v819_v33  ;;  %v821_v36 = vunpack.c.h.bf16 %v819_v33  ;;  %v824_v43 = vunpack.c.l.bf16 %v836_v39  ;;  %v825_v45 = vunpack.c.h.bf16 %v836_v39 }
 0x137   : > { %v585_v30 = vmul.f32 %v804_v29, %v574_v27  ;;  %v598_v44 = vadd.f32 %v805_v32, %v587_v38 }
 0x138   : > { %v577_v37 = vld [vmem:[#allocation2 + $0x8] sm:$0xff] }
 0x139   : > { %v596_v40 = vadd.f32 %v805_v32, %v585_v30  ;;  %v588_v42 = vmul.f32 %v804_v29, %v577_v37  ;;  %v610_v49 = vadd.f32 %v824_v43, %v598_v44 }
 0x13a   : > { %v575_v28 = vld [vmem:[#allocation2] sm:$0xff] }
 0x13b   : > { %v586_v31 = vmul.f32 %v804_v29, %v575_v28  ;;  %v608_v46 = vadd.f32 %v820_v35, %v596_v40  ;;  %v599_v48 = vadd.f32 %v805_v32, %v588_v42  ;;  %v614_v53 = vmax.f32 %v610_v49, 0.0 }
 0x13d   : > { %v597_v41 = vadd.f32 %v805_v32, %v586_v31  ;;  %v612_v50 = vmax.f32 %v608_v46, 0.0  ;;  %v611_v52 = vadd.f32 %v825_v45, %v599_v48 }
 0x13f   : > { %v609_v47 = vadd.f32 %v821_v36, %v597_v41  ;;  %v615_v55 = vmax.f32 %v611_v52, 0.0 }
 0x141   : > { %v613_v51 = vmax.f32 %v609_v47, 0.0  ;;  %v834_v56 = vpack.c.bf16 %v615_v55, %v614_v53 }
 0x143   : > { %v829_v54 = vpack.c.bf16 %v613_v51, %v612_v50  ;;  %837 = vst [vmem:[%s1225_s5 + $0x8] sm:$0xff] %v834_v56  }
 0x145   : > { %830 = vst [vmem:[%s1225_s5] sm:$0xff] %v829_v54  }
 0x146 PF: > { %s17_s22 = sadd.s32 1, %s1038_s22   ;;  %s1235_s18 = smov %s1026_s19 }
 0x147   : > { %p14_p2 = scmp.ge.s32.totalorder %s17_s22, 11   ;;  %s1236_s19 = smov %s1123_s30 }
 0x148   : > { %s1237_s20 = smov %s1034_s21  ;;  %s1238_s21 = smov %s1240_s24 }
 0x149   :  { %16 = sbr.rel (!%p14_p2) target bundleno = 4 (0x4), region = 141 }
 0x14e   :  { %664 = vsyncpa [#allocation5], 1 }
 0x14f   :  { %666 = vsyncpa [#allocation5 + $0x1], 1 }
 0x150   :  { %667 = vsyncpa [#allocation7], 1 }

// kernel: resnet18_forward.33
= control target key start
LH: loop header
LB: loop body
LE: loop exit
PB: predicated region body
PF: predicated region fallthrough
CT: control target
= control target key end

     0   :  { %s779_s15 = smov 0   ;;  %s781_s16 = smov 0   ;;  %s849_s0 = inlined_call_operand.vmem [shape: bf16[8,1152], index: 0, kind: input, shape index: {}]   ;;  %s850_s1 = inlined_call_operand.vmem [shape: bf16[1152,256], index: 1, kind: input, shape index: {}]   ;;  %s851_s2 = inlined_call_operand.vmem [shape: f32[1,256], index: 2, kind: input, shape index: {}]   ;;  %s852_s3 = inlined_call_operand.vmem [shape: f32[1,256], index: 3, kind: input, shape index: {}]   ;;  %s853_s4 = inlined_call_operand.vmem [shape: bf16[8,256], index: 4, kind: output, shape index: {}]  }
   0x1   :  { %s783_s17 = smov 0  }
   0x2 LB: > { %s26_s18 = sadd.s32 1, %s746_s16  ;;  %p648_p0 = scmp.ge.s32.totalorder %s750_s17, 1  ;;  %s750_s17 = sphi %s783_s17, %s14_s17   ;;  %s746_s16 = sphi %s781_s16, %s855_s16   ;;  %s742_s15 = sphi %s779_s15, %s854_s15  }
   0x3   : > { %p27_p1 = scmp.ge.s32.totalorder %s26_s18, 9  ;;  %p227_p2 = scmp.lt.s32.totalorder %s750_s17, 10 }
   0x5   : > { %s857_s18 = smov (%p27_p1, %s26_s18), 0  ;;  %p228_p3 = pnand %p648_p0, %p227_p2 }
   0x6   : > { %p280_p4 = scmp.lt.s32.totalorder (!%p228_p3), %s742_s15, 8  ;;  %s650_s19 = sshll.u32 (!%p228_p3), %s742_s15, 4 }
   0x7   : > { %231 = sbr.rel (%p228_p3) target bundleno = 269 (0x10d), region = 36  ;;  %p288_p5 = scmp.lt.s32.totalorder (!%p228_p3), %s650_s19, 143 }
   0x8   : > { %p653_p6 = scmp.ne.s32.totalorder (!%p228_p3), %s742_s15, 0 }
   0xc   : > { %s281_s20 = scalar_select %p280_p4, %s742_s15, 8 }
   0xd   : > { %s859_s19 = smov (!%p288_p5, %s650_s19), 143  ;;  %322 = sbr.rel (%p653_p6) target bundleno = 20 (0x14), region = 40 }
   0xe   : > { %s649_s21 = sshll.u32 %s281_s20, 2  ;;  %s676_s25 = sshll.u32 %s859_s19, 3 }
   0xf   : > { %s805_s24 = scalar_lea.vmem %s849_s0, %s649_s21  ;;  %s810_s28 = scalar_lea.vmem %s850_s1, %s676_s25 }
  0x12   : > { %v752_v0 = vmov 0.0  }
  0x13   : > { %323 = vst [vmem:[#allocation2] sm:$0xff] %v752_v0  ;;  %324 = vst [vmem:[#allocation2 + $0x8] sm:$0xff] %v752_v0 }
  0x14 PF: > { %v704_v1 = vld [vmem:[%s810_s28 + $0x74] ss:$8 sps:$4 sm:$0xff]   ;;  %v706_v2 = vld [vmem:[%s810_s28 + $0x70] ss:$8 sps:$4 sm:$0xff]   ;;  %v753_v3 = vmov 0   ;;  %p670_p7 = scmp.ne.s32.totalorder %s742_s15, 8 }
  0x15   : > { %456 = vmatprep.mubr.bf16.mxu0 %v753_v3  ;;  %424 = vmatprep.subr.bf16.mxu0 %v704_v1  ;;  %v707_v4 = vld [vmem:[%s810_s28 + $0x64] ss:$8 sps:$4 sm:$0xff]   ;;  %v709_v5 = vld [vmem:[%s810_s28 + $0x60] ss:$8 sps:$4 sm:$0xff]   ;;  %v710_v6 = vld [vmem:[%s810_s28 + $0x54] ss:$8 sps:$4 sm:$0xff]  }
  0x16   : > { %425 = vmatpush1.bf16.msra.mxu0 %v706_v2  ;;  %v712_v7 = vld [vmem:[%s810_s28 + $0x50] ss:$8 sps:$4 sm:$0xff]   ;;  %v713_v8 = vld [vmem:[%s810_s28 + $0x44] ss:$8 sps:$4 sm:$0xff]   ;;  %v715_v9 = vld [vmem:[%s810_s28 + $0x40] ss:$8 sps:$4 sm:$0xff]  }
  0x17   : > { %426 = vmatprep.subr.bf16.mxu0 %v707_v4  ;;  %v716_v10 = vld [vmem:[%s810_s28 + $0x34] ss:$8 sps:$4 sm:$0xff]   ;;  %v718_v11 = vld [vmem:[%s810_s28 + $0x30] ss:$8 sps:$4 sm:$0xff]   ;;  %v719_v12 = vld [vmem:[%s810_s28 + $0x24] ss:$8 sps:$4 sm:$0xff]  }
  0x18   : > { %v721_v13 = vld [vmem:[%s810_s28 + $0x20] ss:$8 sps:$4 sm:$0xff]   ;;  %v722_v14 = vld [vmem:[%s810_s28 + $0x14] ss:$8 sps:$4 sm:$0xff]   ;;  %v724_v15 = vld [vmem:[%s810_s28 + $0x10] ss:$8 sps:$4 sm:$0xff]  }
  0x19   : > { %v725_v16 = vld [vmem:[%s810_s28 + $0x4] ss:$8 sps:$4 sm:$0xff]   ;;  %v727_v17 = vld [vmem:[%s810_s28] ss:$8 sps:$4 sm:$0xff]  }
  0x1a   : > { %427 = vmatpush1.bf16.msra.mxu0 %v709_v5  ;;  %v327_v18 = vld [vmem:[%s805_s24] sm:$0xf]  ;;  %v326_v21 = vld [vmem:[#allocation2 + $0x8] sm:$0xff] }
  0x1b   : > { %428 = vmatprep.subr.bf16.mxu0 %v710_v6  ;;  %v325_v19 = vld [vmem:[#allocation2] sm:$0xff] }
  0x1e   : > { %429 = vmatpush1.bf16.msra.mxu0 %v712_v7 }
  0x1f   : > { %430 = vmatprep.subr.bf16.mxu0 %v713_v8 }
  0x22   : > { %431 = vmatpush1.bf16.msra.mxu0 %v715_v9 }
  0x23   : > { %432 = vmatprep.subr.bf16.mxu0 %v716_v10 }
  0x26   : > { %433 = vmatpush1.bf16.msra.mxu0 %v718_v11 }
  0x27   : > { %434 = vmatprep.subr.bf16.mxu0 %v719_v12 }
  0x2a   : > { %435 = vmatpush1.bf16.msra.mxu0 %v721_v13 }
  0x2b   : > { %436 = vmatprep.subr.bf16.mxu0 %v722_v14 }
  0x2e   : > { %437 = vmatpush1.bf16.msra.mxu0 %v724_v15 }
  0x2f   : > { %438 = vmatprep.subr.bf16.mxu0 %v725_v16 }
  0x32   : > { %439 = vmatpush1.bf16.msra.mxu0 %v727_v17 }
  0x35   : > { %457 = vmatmul.mubr.bf16.vlgmr.msra.gmra.mxu0 %v327_v18 }
  0xf5   : > { %v458_v20 = vpop.f32.mrf.mxu0 }
  0xf6   : > { %v465_v22 = vadd.f32 %v458_v20, %v325_v19 }
  0xf7   : > { %v460_v23 = vpop.f32.mrf.mxu0  ;;  %472 = sbr.rel (%p670_p7) target bundleno = 269 (0x10d), region = 44 }
  0xf8   : > { %467 = vst [vmem:[#allocation2] sm:$0xff] %v465_v22  ;;  %v466_v24 = vadd.f32 %v460_v23, %v326_v21 }
  0xf9   : > { %v462_v25 = vpop.f32.mrf.mxu0 }
  0xfa   : > { %468 = vst [vmem:[#allocation2 + $0x8] sm:$0xff] %v466_v24 }
  0xfb   : > { %v463_v26 = vpop.f32.mrf.mxu0 }
  0xfc   : > { %v477_v27 = vlaneseq  ;;  %v475_v29 = vld [vmem:[%s851_s2] sm:$0x3] }
  0xfd   : > { %v489_v30 = vld [vmem:[%s852_s3] sm:$0x3] }
  0xfe   : > { %v478_v28 = vshrl.u32 %v477_v27, 7 }
  0xff   : > { %v473_v33 = vld [vmem:[#allocation2] sm:$0xff] }
 0x100   : > { %v479_v31 = vsub.s32 0, %v478_v28  ;;  %v483_v32 = vsub.s32 1, %v478_v28 }
 0x101   : > { %v474_v34 = vld [vmem:[#allocation2 + $0x8] sm:$0xff] }
 0x102   : > { %v480_v35 = vrot.slane %v475_v29, %v479_v31  ;;  %v484_v36 = vrot.slane %v475_v29, %v483_v32  ;;  %v494_v37 = vrot.slane %v489_v30, %v479_v31  ;;  %v498_v38 = vrot.slane %v489_v30, %v483_v32 }
 0x104   : > { %v487_v39 = vmul.f32 %v480_v35, %v473_v33  ;;  %v488_v40 = vmul.f32 %v484_v36, %v474_v34 }
 0x106   : > { %v501_v41 = vadd.f32 %v494_v37, %v487_v39  ;;  %v502_v42 = vadd.f32 %v498_v38, %v488_v40 }
 0x108   : > { %v503_v43 = vmax.f32 %v501_v41, 0.0  ;;  %v504_v44 = vmax.f32 %v502_v42, 0.0 }
 0x10a   : > { %v677_v45 = vpack.c.bf16 %v504_v44, %v503_v43 }
 0x10c   : > { %513 = vst [vmem:[%s853_s4] sm:$0xff] %v677_v45 }
 0x10d PF: > { %s14_s17 = sadd.s32 1, %s750_s17   ;;  %s854_s15 = smov %s746_s16 }
 0x10e   : > { %p11_p8 = scmp.ge.s32.totalorder %s14_s17, 11   ;;  %s855_s16 = smov %s857_s18 }
 0x110   :  { %13 = sbr.rel (!%p11_p8) target bundleno = 2 (0x2), region = 83 }

// kernel: resnet18_forward.35
= control target key start
LH: loop header
LB: loop body
LE: loop exit
PB: predicated region body
PF: predicated region fallthrough
CT: control target
= control target key end

     0   :  { %s1024_s18 = smov 0   ;;  %s1026_s19 = smov 0   ;;  %s1112_s0 = inlined_call_operand.vmem [shape: bf16[8,2304], index: 0, kind: input, shape index: {}]   ;;  %s1113_s1 = inlined_call_operand.vmem [shape: bf16[2304,256], index: 1, kind: input, shape index: {}]   ;;  %s1114_s2 = inlined_call_operand.vmem [shape: f32[1,256], index: 2, kind: input, shape index: {}]   ;;  %s1115_s3 = inlined_call_operand.vmem [shape: f32[1,256], index: 3, kind: input, shape index: {}]   ;;  %s1116_s4 = inlined_call_operand.vmem [shape: bf16[8,256], index: 4, kind: input, shape index: {}]   ;;  %s1117_s5 = inlined_call_operand.vmem [shape: bf16[8,256], index: 5, kind: output, shape index: {}]  }
   0x1   :  { %s1028_s20 = smov 0  }
   0x2 LB: > { %s27_s21 = sadd.s32 1, %s987_s19  ;;  %p845_p0 = scmp.ge.s32.totalorder %s991_s20, 1  ;;  %s991_s20 = sphi %s1028_s20, %s15_s20   ;;  %s987_s19 = sphi %s1026_s19, %s1119_s19   ;;  %s983_s18 = sphi %s1024_s18, %s1118_s18  }
   0x3   : > { %p28_p1 = scmp.ge.s32.totalorder %s27_s21, 9  ;;  %p271_p2 = scmp.lt.s32.totalorder %s991_s20, 10 }
   0x5   : > { %s1121_s21 = smov (%p28_p1, %s27_s21), 0  ;;  %p272_p3 = pnand %p845_p0, %p271_p2 }
   0x6   : > { %s846_s22 = sshll.u32 (!%p272_p3), %s983_s18, 1  ;;  %s848_s23 = sshll.u32 (!%p272_p3), %s983_s18, 5 }
   0x7   : > { %275 = sbr.rel (%p272_p3) target bundleno = 305 (0x131), region = 40  ;;  %p337_p4 = scmp.lt.s32.totalorder (!%p272_p3), %s846_s22, 17 }
   0x8   : > { %p346_p5 = scmp.lt.s32.totalorder (!%p272_p3), %s848_s23, 287  ;;  %p851_p6 = scmp.ne.s32.totalorder (!%p272_p3), %s983_s18, 0 }
   0xc   : > { %s1123_s22 = smov (!%p337_p4, %s846_s22), 17  ;;  %s1125_s23 = smov (!%p346_p5, %s848_s23), 287 }
   0xd   : > { %s847_s24 = sshll.u32 %s1123_s22, 2  ;;  %s892_s28 = sshll.u32 %s1125_s23, 3 }
   0xe   : > { %s1049_s27 = scalar_lea.vmem %s1112_s0, %s847_s24  ;;  %s1054_s6 = scalar_lea.vmem %s1113_s1, %s892_s28 }
   0xf   : > { %389 = sbr.rel (%p851_p6) target bundleno = 22 (0x16), region = 44 }
  0x14   : > { %v993_v0 = vmov 0.0  }
  0x15   : > { %390 = vst [vmem:[#allocation2] sm:$0xff] %v993_v0  ;;  %391 = vst [vmem:[#allocation2 + $0x8] sm:$0xff] %v993_v0 }
  0x16 PF: > { %v919_v1 = vld [vmem:[%s1054_s6 + $0x74] ss:$8 sps:$4 sm:$0xff]   ;;  %v921_v2 = vld [vmem:[%s1054_s6 + $0x70] ss:$8 sps:$4 sm:$0xff]   ;;  %v922_v3 = vld [vmem:[%s1054_s6 + $0x64] ss:$8 sps:$4 sm:$0xff]  }
  0x17   : > { %594 = vmatprep.subr.bf16.mxu0 %v919_v1  ;;  %v924_v4 = vld [vmem:[%s1054_s6 + $0x60] ss:$8 sps:$4 sm:$0xff]   ;;  %v925_v5 = vld [vmem:[%s1054_s6 + $0x54] ss:$8 sps:$4 sm:$0xff]   ;;  %v927_v6 = vld [vmem:[%s1054_s6 + $0x50] ss:$8 sps:$4 sm:$0xff]  }
  0x18   : > { %595 = vmatpush1.bf16.msra.mxu0 %v921_v2  ;;  %v928_v7 = vld [vmem:[%s1054_s6 + $0x44] ss:$8 sps:$4 sm:$0xff]   ;;  %v930_v8 = vld [vmem:[%s1054_s6 + $0x40] ss:$8 sps:$4 sm:$0xff]   ;;  %v931_v9 = vld [vmem:[%s1054_s6 + $0x34] ss:$8 sps:$4 sm:$0xff]  }
  0x19   : > { %596 = vmatprep.subr.bf16.mxu0 %v922_v3  ;;  %v933_v10 = vld [vmem:[%s1054_s6 + $0x30] ss:$8 sps:$4 sm:$0xff]   ;;  %v934_v11 = vld [vmem:[%s1054_s6 + $0x24] ss:$8 sps:$4 sm:$0xff]   ;;  %v936_v12 = vld [vmem:[%s1054_s6 + $0x20] ss:$8 sps:$4 sm:$0xff]  }
  0x1a   : > { %v937_v13 = vld [vmem:[%s1054_s6 + $0x14] ss:$8 sps:$4 sm:$0xff]   ;;  %v394_v14 = vld [vmem:[%s1049_s27] sm:$0xff]  ;;  %v939_v16 = vld [vmem:[%s1054_s6 + $0x10] ss:$8 sps:$4 sm:$0xff]   ;;  %p886_p7 = scmp.ne.s32.totalorder %s983_s18, 8 }
  0x1b   : > { %v853_v15 = vcombine.high %v394_v14, %v394_v14  ;;  %v940_v17 = vld [vmem:[%s1054_s6 + $0x4] ss:$8 sps:$4 sm:$0xff]   ;;  %v942_v18 = vld [vmem:[%s1054_s6] ss:$8 sps:$4 sm:$0xff]   ;;  %v943_v19 = vld [vmem:[%s1054_s6 + $0xf4] ss:$8 sps:$4 sm:$0xff]   ;;  %v852_v35 = vcombine.low %v394_v14, %v394_v14 }
  0x1c   : > { %597 = vmatpush1.bf16.msra.mxu0 %v924_v4  ;;  %v945_v20 = vld [vmem:[%s1054_s6 + $0xf0] ss:$8 sps:$4 sm:$0xff]   ;;  %v946_v21 = vld [vmem:[%s1054_s6 + $0xe4] ss:$8 sps:$4 sm:$0xff]   ;;  %v948_v22 = vld [vmem:[%s1054_s6 + $0xe0] ss:$8 sps:$4 sm:$0xff]  }
  0x1d   : > { %598 = vmatprep.subr.bf16.mxu0 %v925_v5  ;;  %626 = vmatprep.mubr.bf16.mxu0 %v853_v15  ;;  %v949_v23 = vld [vmem:[%s1054_s6 + $0xd4] ss:$8 sps:$4 sm:$0xff]   ;;  %v951_v24 = vld [vmem:[%s1054_s6 + $0xd0] ss:$8 sps:$4 sm:$0xff]   ;;  %v952_v25 = vld [vmem:[%s1054_s6 + $0xc4] ss:$8 sps:$4 sm:$0xff]  }
  0x1e   : > { %v954_v26 = vld [vmem:[%s1054_s6 + $0xc0] ss:$8 sps:$4 sm:$0xff]   ;;  %v955_v27 = vld [vmem:[%s1054_s6 + $0xb4] ss:$8 sps:$4 sm:$0xff]   ;;  %v957_v28 = vld [vmem:[%s1054_s6 + $0xb0] ss:$8 sps:$4 sm:$0xff]  }
  0x1f   : > { %v958_v29 = vld [vmem:[%s1054_s6 + $0xa4] ss:$8 sps:$4 sm:$0xff]   ;;  %v960_v30 = vld [vmem:[%s1054_s6 + $0xa0] ss:$8 sps:$4 sm:$0xff]   ;;  %v961_v31 = vld [vmem:[%s1054_s6 + $0x94] ss:$8 sps:$4 sm:$0xff]  }
  0x20   : > { %599 = vmatpush1.bf16.msra.mxu0 %v927_v6  ;;  %v963_v32 = vld [vmem:[%s1054_s6 + $0x90] ss:$8 sps:$4 sm:$0xff]   ;;  %v964_v33 = vld [vmem:[%s1054_s6 + $0x84] ss:$8 sps:$4 sm:$0xff]   ;;  %v966_v34 = vld [vmem:[%s1054_s6 + $0x80] ss:$8 sps:$4 sm:$0xff]  }
  0x21   : > { %600 = vmatprep.subr.bf16.mxu0 %v928_v7  ;;  %v392_v36 = vld [vmem:[#allocation2] sm:$0xff]  ;;  %v393_v38 = vld [vmem:[#allocation2 + $0x8] sm:$0xff] }
  0x24   : > { %601 = vmatpush1.bf16.msra.mxu0 %v930_v8 }
  0x25   : > { %602 = vmatprep.subr.bf16.mxu0 %v931_v9 }
  0x28   : > { %603 = vmatpush1.bf16.msra.mxu0 %v933_v10 }
  0x29   : > { %604 = vmatprep.subr.bf16.mxu0 %v934_v11 }
  0x2c   : > { %605 = vmatpush1.bf16.msra.mxu0 %v936_v12 }
  0x2d   : > { %606 = vmatprep.subr.bf16.mxu0 %v937_v13 }
  0x30   : > { %607 = vmatpush1.bf16.msra.mxu0 %v939_v16 }
  0x31   : > { %608 = vmatprep.subr.bf16.mxu0 %v940_v17 }
  0x34   : > { %609 = vmatpush1.bf16.msra.mxu0 %v942_v18 }
  0x35   : > { %610 = vmatprep.subr.bf16.mxu0 %v943_v19 }
  0x38   : > { %611 = vmatpush2.bf16.msra.mxu0 %v945_v20 }
  0x39   : > { %612 = vmatprep.subr.bf16.mxu0 %v946_v21 }
  0x3c   : > { %613 = vmatpush2.bf16.msra.mxu0 %v948_v22 }
  0x3d   : > { %614 = vmatprep.subr.bf16.mxu0 %v949_v23 }
  0x40   : > { %615 = vmatpush2.bf16.msra.mxu0 %v951_v24 }
  0x41   : > { %616 = vmatprep.subr.bf16.mxu0 %v952_v25 }
  0x44   : > { %617 = vmatpush2.bf16.msra.mxu0 %v954_v26 }
  0x45   : > { %618 = vmatprep.subr.bf16.mxu0 %v955_v27 }
  0x48   : > { %619 = vmatpush2.bf16.msra.mxu0 %v957_v28 }
  0x49   : > { %620 = vmatprep.subr.bf16.mxu0 %v958_v29 }
  0x4c   : > { %621 = vmatpush2.bf16.msra.mxu0 %v960_v30 }
  0x4d   : > { %622 = vmatprep.subr.bf16.mxu0 %v961_v31 }
  0x50   : > { %623 = vmatpush2.bf16.msra.mxu0 %v963_v32 }
  0x51   : > { %624 = vmatprep.subr.bf16.mxu0 %v964_v33 }
  0x54   : > { %625 = vmatpush2.bf16.msra.mxu0 %v966_v34 }
  0x57   : > { %627 = vmatmul.mubr.bf16.vlgmr.msra.gmra.mxu0 %v852_v35 }
 0x117   : > { %v628_v37 = vpop.f32.mrf.mxu0 }
 0x118   : > { %v635_v39 = vadd.f32 %v628_v37, %v392_v36 }
 0x119   : > { %v630_v40 = vpop.f32.mrf.mxu0  ;;  %642 = sbr.rel (%p886_p7) target bundleno = 305 (0x131), region = 48 }
 0x11a   : > { %637 = vst [vmem:[#allocation2] sm:$0xff] %v635_v39  ;;  %v636_v41 = vadd.f32 %v630_v40, %v393_v38 }
 0x11b   : > { %v632_v42 = vpop.f32.mrf.mxu0 }
 0x11c   : > { %638 = vst [vmem:[#allocation2 + $0x8] sm:$0xff] %v636_v41 }
 0x11d   : > { %v633_v43 = vpop.f32.mrf.mxu0 }
 0x11e   : > { %v647_v44 = vlaneseq  ;;  %v645_v46 = vld [vmem:[%s1114_s2] sm:$0x3] }
 0x11f   : > { %v659_v47 = vld [vmem:[%s1115_s3] sm:$0x3] }
 0x120   : > { %v648_v45 = vshrl.u32 %v647_v44, 7  ;;  %v673_v52 = vld [vmem:[%s1116_s4] sm:$0xff] }
 0x121   : > { %v643_v50 = vld [vmem:[#allocation2] sm:$0xff]  ;;  %v674_v59 = vunpack.c.l.bf16 %v673_v52  ;;  %v675_v60 = vunpack.c.h.bf16 %v673_v52 }
 0x122   : > { %v649_v48 = vsub.s32 0, %v648_v45  ;;  %v653_v49 = vsub.s32 1, %v648_v45 }
 0x123   : > { %v644_v51 = vld [vmem:[#allocation2 + $0x8] sm:$0xff] }
 0x124   : > { %v650_v53 = vrot.slane %v645_v46, %v649_v48  ;;  %v654_v54 = vrot.slane %v645_v46, %v653_v49  ;;  %v664_v55 = vrot.slane %v659_v47, %v649_v48  ;;  %v668_v56 = vrot.slane %v659_v47, %v653_v49 }
 0x126   : > { %v657_v57 = vmul.f32 %v650_v53, %v643_v50  ;;  %v658_v58 = vmul.f32 %v654_v54, %v644_v51 }
 0x128   : > { %v671_v61 = vadd.f32 %v664_v55, %v657_v57  ;;  %v672_v62 = vadd.f32 %v668_v56, %v658_v58 }
 0x12a   : > { %v676_v63 = vadd.f32 %v674_v59, %v671_v61  ;;  %v677_v0 = vadd.f32 %v675_v60, %v672_v62 }
 0x12c   : > { %v678_v1 = vmax.f32 %v676_v63, 0.0  ;;  %v679_v2 = vmax.f32 %v677_v0, 0.0 }
 0x12e   : > { %v893_v3 = vpack.c.bf16 %v679_v2, %v678_v1 }
 0x130   : > { %688 = vst [vmem:[%s1117_s5] sm:$0xff] %v893_v3 }
 0x131 PF: > { %s15_s20 = sadd.s32 1, %s991_s20   ;;  %s1118_s18 = smov %s987_s19 }
 0x132   : > { %p12_p8 = scmp.ge.s32.totalorder %s15_s20, 11   ;;  %s1119_s19 = smov %s1121_s21 }
 0x134   :  { %14 = sbr.rel (!%p12_p8) target bundleno = 2 (0x2), region = 90 }

// kernel: resnet18_forward.34
= control target key start
LH: loop header
LB: loop body
LE: loop exit
PB: predicated region body
PF: predicated region fallthrough
CT: control target
= control target key end

     0   :  { %v240_v1 = vmov 0   ;;  %v158_v18 = vlaneseq  ;;  %s326_s1 = inlined_call_operand.vmem [shape: bf16[128,256], index: 1, kind: input, shape index: {}]   ;;  %s327_s0 = inlined_call_operand.vmem [shape: bf16[8,128], index: 0, kind: input, shape index: {}]   ;;  %s328_s2 = inlined_call_operand.vmem [shape: f32[1,256], index: 2, kind: input, shape index: {}]   ;;  %s329_s3 = inlined_call_operand.vmem [shape: f32[1,256], index: 3, kind: input, shape index: {}]   ;;  %s330_s4 = inlined_call_operand.vmem [shape: bf16[8,256], index: 4, kind: output, shape index: {}]  }
   0x1   :  { %v216_v0 = vld [vmem:[%s326_s1 + $0x74] ss:$8 sps:$4 sm:$0xff]   ;;  %147 = vmatprep.mubr.bf16.mxu0 %v240_v1  ;;  %v218_v2 = vld [vmem:[%s326_s1 + $0x70] ss:$8 sps:$4 sm:$0xff]   ;;  %v219_v3 = vld [vmem:[%s326_s1 + $0x64] ss:$8 sps:$4 sm:$0xff]  }
   0x2   :  { %115 = vmatprep.subr.bf16.mxu0 %v216_v0  ;;  %v221_v4 = vld [vmem:[%s326_s1 + $0x60] ss:$8 sps:$4 sm:$0xff]   ;;  %v222_v5 = vld [vmem:[%s326_s1 + $0x54] ss:$8 sps:$4 sm:$0xff]   ;;  %v224_v6 = vld [vmem:[%s326_s1 + $0x50] ss:$8 sps:$4 sm:$0xff]  }
   0x3   :  { %116 = vmatpush1.bf16.msra.mxu0 %v218_v2  ;;  %v225_v7 = vld [vmem:[%s326_s1 + $0x44] ss:$8 sps:$4 sm:$0xff]   ;;  %v227_v8 = vld [vmem:[%s326_s1 + $0x40] ss:$8 sps:$4 sm:$0xff]   ;;  %v228_v9 = vld [vmem:[%s326_s1 + $0x34] ss:$8 sps:$4 sm:$0xff]  }
   0x4   :  { %117 = vmatprep.subr.bf16.mxu0 %v219_v3  ;;  %v230_v10 = vld [vmem:[%s326_s1 + $0x30] ss:$8 sps:$4 sm:$0xff]   ;;  %v231_v11 = vld [vmem:[%s326_s1 + $0x24] ss:$8 sps:$4 sm:$0xff]   ;;  %v233_v12 = vld [vmem:[%s326_s1 + $0x20] ss:$8 sps:$4 sm:$0xff]  }
   0x5   :  { %v234_v13 = vld [vmem:[%s326_s1 + $0x14] ss:$8 sps:$4 sm:$0xff]   ;;  %v236_v14 = vld [vmem:[%s326_s1 + $0x10] ss:$8 sps:$4 sm:$0xff]   ;;  %v237_v15 = vld [vmem:[%s326_s1 + $0x4] ss:$8 sps:$4 sm:$0xff]  }
   0x6   :  { %v239_v16 = vld [vmem:[%s326_s1] ss:$8 sps:$4 sm:$0xff]   ;;  %v159_v19 = vshrl.u32 %v158_v18, 7 }
   0x7   :  { %118 = vmatpush1.bf16.msra.mxu0 %v221_v4  ;;  %v18_v17 = vld [vmem:[%s327_s0] sm:$0xf] }
   0x8   :  { %119 = vmatprep.subr.bf16.mxu0 %v222_v5  ;;  %v160_v20 = vsub.s32 0, %v159_v19  ;;  %v156_v21 = vld [vmem:[%s328_s2] sm:$0x3]  ;;  %v164_v22 = vsub.s32 1, %v159_v19 }
   0x9   :  { %v170_v24 = vld [vmem:[%s329_s3] sm:$0x3] }
   0xa   :  { %v161_v23 = vrot.slane %v156_v21, %v160_v20  ;;  %v165_v25 = vrot.slane %v156_v21, %v164_v22  ;;  %v175_v28 = vrot.slane %v170_v24, %v160_v20  ;;  %v179_v29 = vrot.slane %v170_v24, %v164_v22 }
   0xb   :  { %120 = vmatpush1.bf16.msra.mxu0 %v224_v6 }
   0xc   :  { %121 = vmatprep.subr.bf16.mxu0 %v225_v7 }
   0xf   :  { %122 = vmatpush1.bf16.msra.mxu0 %v227_v8 }
  0x10   :  { %123 = vmatprep.subr.bf16.mxu0 %v228_v9 }
  0x13   :  { %124 = vmatpush1.bf16.msra.mxu0 %v230_v10 }
  0x14   :  { %125 = vmatprep.subr.bf16.mxu0 %v231_v11 }
  0x17   :  { %126 = vmatpush1.bf16.msra.mxu0 %v233_v12 }
  0x18   :  { %127 = vmatprep.subr.bf16.mxu0 %v234_v13 }
  0x1b   :  { %128 = vmatpush1.bf16.msra.mxu0 %v236_v14 }
  0x1c   :  { %129 = vmatprep.subr.bf16.mxu0 %v237_v15 }
  0x1f   :  { %130 = vmatpush1.bf16.msra.mxu0 %v239_v16 }
  0x22   :  { %148 = vmatmul.mubr.bf16.vlgmr.msra.gmra.mxu0 %v18_v17 }
  0xe2   :  { %v149_v26 = vpop.f32.mrf.mxu0 }
  0xe3   :  { %v168_v27 = vmul.f32 %v161_v23, %v149_v26 }
  0xe4   :  { %v151_v30 = vpop.f32.mrf.mxu0 }
  0xe5   :  { %v169_v31 = vmul.f32 %v165_v25, %v151_v30  ;;  %v182_v33 = vadd.f32 %v175_v28, %v168_v27 }
  0xe6   :  { %v153_v32 = vpop.f32.mrf.mxu0 }
  0xe7   :  { %v183_v34 = vadd.f32 %v179_v29, %v169_v31 }
  0xe8   :  { %v154_v35 = vpop.f32.mrf.mxu0 }
  0xe9   :  { %v214_v36 = vpack.c.bf16 %v183_v34, %v182_v33 }
  0xeb   :  { %192 = vst [vmem:[%s330_s4] sm:$0xff] %v214_v36 }

// kernel: resnet18_forward.36
= control target key start
LH: loop header
LB: loop body
LE: loop exit
PB: predicated region body
PF: predicated region fallthrough
CT: control target
= control target key end

     0   :  { %s929_s15 = smov 0   ;;  %s931_s16 = smov 0   ;;  %s1014_s0 = inlined_call_operand.vmem [shape: bf16[8,2304], index: 0, kind: input, shape index: {}]   ;;  %s1015_s1 = inlined_call_operand.vmem [shape: bf16[2304,256], index: 1, kind: input, shape index: {}]   ;;  %s1016_s2 = inlined_call_operand.vmem [shape: f32[1,256], index: 2, kind: input, shape index: {}]   ;;  %s1017_s3 = inlined_call_operand.vmem [shape: f32[1,256], index: 3, kind: input, shape index: {}]   ;;  %s1018_s4 = inlined_call_operand.vmem [shape: bf16[8,256], index: 4, kind: output, shape index: {}]  }
   0x1   :  { %s933_s17 = smov 0  }
   0x2 LB: > { %s26_s18 = sadd.s32 1, %s897_s16  ;;  %p755_p0 = scmp.ge.s32.totalorder %s901_s17, 1  ;;  %s901_s17 = sphi %s933_s17, %s14_s17   ;;  %s897_s16 = sphi %s931_s16, %s1020_s16   ;;  %s893_s15 = sphi %s929_s15, %s1019_s15  }
   0x3   : > { %p27_p1 = scmp.ge.s32.totalorder %s26_s18, 9  ;;  %p229_p2 = scmp.lt.s32.totalorder %s901_s17, 10 }
   0x5   : > { %s1022_s18 = smov (%p27_p1, %s26_s18), 0  ;;  %p230_p3 = pnand %p755_p0, %p229_p2 }
   0x6   : > { %s756_s19 = sshll.u32 (!%p230_p3), %s893_s15, 1  ;;  %s758_s20 = sshll.u32 (!%p230_p3), %s893_s15, 5 }
   0x7   : > { %233 = sbr.rel (%p230_p3) target bundleno = 303 (0x12f), region = 36  ;;  %p284_p4 = scmp.lt.s32.totalorder (!%p230_p3), %s756_s19, 17 }
   0x8   : > { %p293_p5 = scmp.lt.s32.totalorder (!%p230_p3), %s758_s20, 287  ;;  %p761_p6 = scmp.ne.s32.totalorder (!%p230_p3), %s893_s15, 0 }
   0xc   : > { %s1024_s19 = smov (!%p284_p4, %s756_s19), 17  ;;  %s1026_s20 = smov (!%p293_p5, %s758_s20), 287 }
   0xd   : > { %s757_s21 = sshll.u32 %s1024_s19, 2  ;;  %s802_s25 = sshll.u32 %s1026_s20, 3 }
   0xe   : > { %s954_s24 = scalar_lea.vmem %s1014_s0, %s757_s21  ;;  %s959_s28 = scalar_lea.vmem %s1015_s1, %s802_s25 }
   0xf   : > { %326 = sbr.rel (%p761_p6) target bundleno = 22 (0x16), region = 40 }
  0x14   : > { %v903_v0 = vmov 0.0  }
  0x15   : > { %327 = vst [vmem:[#allocation2] sm:$0xff] %v903_v0  ;;  %328 = vst [vmem:[#allocation2 + $0x8] sm:$0xff] %v903_v0 }
  0x16 PF: > { %v829_v1 = vld [vmem:[%s959_s28 + $0x74] ss:$8 sps:$4 sm:$0xff]   ;;  %v831_v2 = vld [vmem:[%s959_s28 + $0x70] ss:$8 sps:$4 sm:$0xff]   ;;  %v832_v3 = vld [vmem:[%s959_s28 + $0x64] ss:$8 sps:$4 sm:$0xff]  }
  0x17   : > { %531 = vmatprep.subr.bf16.mxu0 %v829_v1  ;;  %v834_v4 = vld [vmem:[%s959_s28 + $0x60] ss:$8 sps:$4 sm:$0xff]   ;;  %v835_v5 = vld [vmem:[%s959_s28 + $0x54] ss:$8 sps:$4 sm:$0xff]   ;;  %v837_v6 = vld [vmem:[%s959_s28 + $0x50] ss:$8 sps:$4 sm:$0xff]  }
  0x18   : > { %532 = vmatpush1.bf16.msra.mxu0 %v831_v2  ;;  %v838_v7 = vld [vmem:[%s959_s28 + $0x44] ss:$8 sps:$4 sm:$0xff]   ;;  %v840_v8 = vld [vmem:[%s959_s28 + $0x40] ss:$8 sps:$4 sm:$0xff]   ;;  %v841_v9 = vld [vmem:[%s959_s28 + $0x34] ss:$8 sps:$4 sm:$0xff]  }
  0x19   : > { %533 = vmatprep.subr.bf16.mxu0 %v832_v3  ;;  %v843_v10 = vld [vmem:[%s959_s28 + $0x30] ss:$8 sps:$4 sm:$0xff]   ;;  %v844_v11 = vld [vmem:[%s959_s28 + $0x24] ss:$8 sps:$4 sm:$0xff]   ;;  %v846_v12 = vld [vmem:[%s959_s28 + $0x20] ss:$8 sps:$4 sm:$0xff]  }
  0x1a   : > { %v847_v13 = vld [vmem:[%s959_s28 + $0x14] ss:$8 sps:$4 sm:$0xff]   ;;  %v331_v14 = vld [vmem:[%s954_s24] sm:$0xff]  ;;  %v849_v16 = vld [vmem:[%s959_s28 + $0x10] ss:$8 sps:$4 sm:$0xff]   ;;  %p796_p7 = scmp.ne.s32.totalorder %s893_s15, 8 }
  0x1b   : > { %v763_v15 = vcombine.high %v331_v14, %v331_v14  ;;  %v850_v17 = vld [vmem:[%s959_s28 + $0x4] ss:$8 sps:$4 sm:$0xff]   ;;  %v852_v18 = vld [vmem:[%s959_s28] ss:$8 sps:$4 sm:$0xff]   ;;  %v853_v19 = vld [vmem:[%s959_s28 + $0xf4] ss:$8 sps:$4 sm:$0xff]   ;;  %v762_v35 = vcombine.low %v331_v14, %v331_v14 }
  0x1c   : > { %534 = vmatpush1.bf16.msra.mxu0 %v834_v4  ;;  %v855_v20 = vld [vmem:[%s959_s28 + $0xf0] ss:$8 sps:$4 sm:$0xff]   ;;  %v856_v21 = vld [vmem:[%s959_s28 + $0xe4] ss:$8 sps:$4 sm:$0xff]   ;;  %v858_v22 = vld [vmem:[%s959_s28 + $0xe0] ss:$8 sps:$4 sm:$0xff]  }
  0x1d   : > { %535 = vmatprep.subr.bf16.mxu0 %v835_v5  ;;  %563 = vmatprep.mubr.bf16.mxu0 %v763_v15  ;;  %v859_v23 = vld [vmem:[%s959_s28 + $0xd4] ss:$8 sps:$4 sm:$0xff]   ;;  %v861_v24 = vld [vmem:[%s959_s28 + $0xd0] ss:$8 sps:$4 sm:$0xff]   ;;  %v862_v25 = vld [vmem:[%s959_s28 + $0xc4] ss:$8 sps:$4 sm:$0xff]  }
  0x1e   : > { %v864_v26 = vld [vmem:[%s959_s28 + $0xc0] ss:$8 sps:$4 sm:$0xff]   ;;  %v865_v27 = vld [vmem:[%s959_s28 + $0xb4] ss:$8 sps:$4 sm:$0xff]   ;;  %v867_v28 = vld [vmem:[%s959_s28 + $0xb0] ss:$8 sps:$4 sm:$0xff]  }
  0x1f   : > { %v868_v29 = vld [vmem:[%s959_s28 + $0xa4] ss:$8 sps:$4 sm:$0xff]   ;;  %v870_v30 = vld [vmem:[%s959_s28 + $0xa0] ss:$8 sps:$4 sm:$0xff]   ;;  %v871_v31 = vld [vmem:[%s959_s28 + $0x94] ss:$8 sps:$4 sm:$0xff]  }
  0x20   : > { %536 = vmatpush1.bf16.msra.mxu0 %v837_v6  ;;  %v873_v32 = vld [vmem:[%s959_s28 + $0x90] ss:$8 sps:$4 sm:$0xff]   ;;  %v874_v33 = vld [vmem:[%s959_s28 + $0x84] ss:$8 sps:$4 sm:$0xff]   ;;  %v876_v34 = vld [vmem:[%s959_s28 + $0x80] ss:$8 sps:$4 sm:$0xff]  }
  0x21   : > { %537 = vmatprep.subr.bf16.mxu0 %v838_v7  ;;  %v329_v36 = vld [vmem:[#allocation2] sm:$0xff]  ;;  %v330_v38 = vld [vmem:[#allocation2 + $0x8] sm:$0xff] }
  0x24   : > { %538 = vmatpush1.bf16.msra.mxu0 %v840_v8 }
  0x25   : > { %539 = vmatprep.subr.bf16.mxu0 %v841_v9 }
  0x28   : > { %540 = vmatpush1.bf16.msra.mxu0 %v843_v10 }
  0x29   : > { %541 = vmatprep.subr.bf16.mxu0 %v844_v11 }
  0x2c   : > { %542 = vmatpush1.bf16.msra.mxu0 %v846_v12 }
  0x2d   : > { %543 = vmatprep.subr.bf16.mxu0 %v847_v13 }
  0x30   : > { %544 = vmatpush1.bf16.msra.mxu0 %v849_v16 }
  0x31   : > { %545 = vmatprep.subr.bf16.mxu0 %v850_v17 }
  0x34   : > { %546 = vmatpush1.bf16.msra.mxu0 %v852_v18 }
  0x35   : > { %547 = vmatprep.subr.bf16.mxu0 %v853_v19 }
  0x38   : > { %548 = vmatpush2.bf16.msra.mxu0 %v855_v20 }
  0x39   : > { %549 = vmatprep.subr.bf16.mxu0 %v856_v21 }
  0x3c   : > { %550 = vmatpush2.bf16.msra.mxu0 %v858_v22 }
  0x3d   : > { %551 = vmatprep.subr.bf16.mxu0 %v859_v23 }
  0x40   : > { %552 = vmatpush2.bf16.msra.mxu0 %v861_v24 }
  0x41   : > { %553 = vmatprep.subr.bf16.mxu0 %v862_v25 }
  0x44   : > { %554 = vmatpush2.bf16.msra.mxu0 %v864_v26 }
  0x45   : > { %555 = vmatprep.subr.bf16.mxu0 %v865_v27 }
  0x48   : > { %556 = vmatpush2.bf16.msra.mxu0 %v867_v28 }
  0x49   : > { %557 = vmatprep.subr.bf16.mxu0 %v868_v29 }
  0x4c   : > { %558 = vmatpush2.bf16.msra.mxu0 %v870_v30 }
  0x4d   : > { %559 = vmatprep.subr.bf16.mxu0 %v871_v31 }
  0x50   : > { %560 = vmatpush2.bf16.msra.mxu0 %v873_v32 }
  0x51   : > { %561 = vmatprep.subr.bf16.mxu0 %v874_v33 }
  0x54   : > { %562 = vmatpush2.bf16.msra.mxu0 %v876_v34 }
  0x57   : > { %564 = vmatmul.mubr.bf16.vlgmr.msra.gmra.mxu0 %v762_v35 }
 0x117   : > { %v565_v37 = vpop.f32.mrf.mxu0 }
 0x118   : > { %v572_v39 = vadd.f32 %v565_v37, %v329_v36 }
 0x119   : > { %v567_v40 = vpop.f32.mrf.mxu0  ;;  %579 = sbr.rel (%p796_p7) target bundleno = 303 (0x12f), region = 44 }
 0x11a   : > { %574 = vst [vmem:[#allocation2] sm:$0xff] %v572_v39  ;;  %v573_v41 = vadd.f32 %v567_v40, %v330_v38 }
 0x11b   : > { %v569_v42 = vpop.f32.mrf.mxu0 }
 0x11c   : > { %575 = vst [vmem:[#allocation2 + $0x8] sm:$0xff] %v573_v41 }
 0x11d   : > { %v570_v43 = vpop.f32.mrf.mxu0 }
 0x11e   : > { %v584_v44 = vlaneseq  ;;  %v582_v46 = vld [vmem:[%s1016_s2] sm:$0x3] }
 0x11f   : > { %v596_v47 = vld [vmem:[%s1017_s3] sm:$0x3] }
 0x120   : > { %v585_v45 = vshrl.u32 %v584_v44, 7 }
 0x121   : > { %v580_v50 = vld [vmem:[#allocation2] sm:$0xff] }
 0x122   : > { %v586_v48 = vsub.s32 0, %v585_v45  ;;  %v590_v49 = vsub.s32 1, %v585_v45 }
 0x123   : > { %v581_v51 = vld [vmem:[#allocation2 + $0x8] sm:$0xff] }
 0x124   : > { %v587_v52 = vrot.slane %v582_v46, %v586_v48  ;;  %v591_v53 = vrot.slane %v582_v46, %v590_v49  ;;  %v601_v54 = vrot.slane %v596_v47, %v586_v48  ;;  %v605_v55 = vrot.slane %v596_v47, %v590_v49 }
 0x126   : > { %v594_v56 = vmul.f32 %v587_v52, %v580_v50  ;;  %v595_v57 = vmul.f32 %v591_v53, %v581_v51 }
 0x128   : > { %v608_v58 = vadd.f32 %v601_v54, %v594_v56  ;;  %v609_v59 = vadd.f32 %v605_v55, %v595_v57 }
 0x12a   : > { %v610_v60 = vmax.f32 %v608_v58, 0.0  ;;  %v611_v61 = vmax.f32 %v609_v59, 0.0 }
 0x12c   : > { %v803_v62 = vpack.c.bf16 %v611_v61, %v610_v60 }
 0x12e   : > { %620 = vst [vmem:[%s1018_s4] sm:$0xff] %v803_v62 }
 0x12f PF: > { %s14_s17 = sadd.s32 1, %s901_s17   ;;  %s1019_s15 = smov %s897_s16 }
 0x130   : > { %p11_p8 = scmp.ge.s32.totalorder %s14_s17, 11   ;;  %s1020_s16 = smov %s1022_s18 }
 0x132   :  { %13 = sbr.rel (!%p11_p8) target bundleno = 2 (0x2), region = 83 }

// kernel: resnet18_forward.38
= control target key start
LH: loop header
LB: loop body
LE: loop exit
PB: predicated region body
PF: predicated region fallthrough
CT: control target
= control target key end

     0   :  { %s1146_s15 = smov 0   ;;  %s1148_s16 = smov 0   ;;  %s1369_s0 = inlined_call_operand.vmem [shape: bf16[8,2304], index: 0, kind: input, shape index: {}]   ;;  %s1370_s1 = inlined_call_operand.vmem [shape: bf16[2304,512], index: 1, kind: input, shape index: {}]   ;;  %s1371_s2 = inlined_call_operand.vmem [shape: f32[1,512], index: 2, kind: input, shape index: {}]   ;;  %s1372_s3 = inlined_call_operand.vmem [shape: f32[1,512], index: 3, kind: input, shape index: {}]   ;;  %s1373_s4 = inlined_call_operand.vmem [shape: bf16[8,512], index: 4, kind: output, shape index: {}]  }
   0x1   :  { %s1150_s17 = smov 0   ;;  %s1152_s18 = smov 0  }
   0x2   :  { %s1154_s19 = smov 0   ;;  %s1156_s20 = smov 0  }
   0x3   :  { %s1158_s21 = smov 0  }
   0x4 LB: > { %s26_s22 = sadd.s32 1, %s1110_s19  ;;  %s29_s23 = sadd.s32 1, %s1114_s20  ;;  %s1118_s21 = sphi %s1158_s21, %s14_s21   ;;  %s1114_s20 = sphi %s1156_s20, %s1379_s20   ;;  %s1110_s19 = sphi %s1154_s19, %s1378_s19   ;;  %s1106_s18 = sphi %s1152_s18, %s1377_s18   ;;  %s1102_s17 = sphi %s1150_s17, %s1376_s17   ;;  %s1098_s16 = sphi %s1148_s16, %s1375_s16   ;;  %s1094_s15 = sphi %s1146_s15, %s1374_s15  }
   0x5   : > { %p27_p0 = scmp.ge.s32.totalorder %s26_s22, 9  ;;  %p77_p1 = scmp.ne.s32.totalorder %s1098_s16, %s1094_s15 }
   0x6   : > { %p78_p2 = scmp.eq.s32.totalorder %s1118_s21, 0  ;;  %s70_s27 = sadd.s32 1, %s1098_s16 }
   0x7   : > { %s1381_s22 = smov (%p27_p0, %s26_s22), 0  ;;  %s1383_s23 = smov (!%p27_p0, %s29_s23), %s1114_s20 }
   0x8   : > { %p79_p3 = por %p78_p2, %p77_p1  ;;  %p31_p4 = scmp.ge.s32.totalorder %s1383_s23, 2 }
   0x9   : > { %s65_s24 = ssub.s32 %s1110_s19, %s1381_s22  ;;  %p902_p6 = scmp.ge.s32.totalorder %s1118_s21, 18 }
   0xa   : > { %s1385_s23 = smov (%p31_p4, %s1383_s23), 0 }
   0xb   : > { %s66_s25 = ssub.s32 %s1114_s20, %s1385_s23  ;;  %183 = sbr.rel (%p902_p6) target bundleno = 39 (0x27), region = 16 }
   0xc   : > { %s67_s26 = sor.u32 %s66_s25, %s65_s24 }
   0xd   : > { %p68_p5 = scmp.eq.s32.totalorder %s67_s26, 0 }
   0xf   : > { %s1197_s28 = scalar_select %p68_p5, %s1098_s16, %s70_s27  }
  0x10   : > { %199 = sbr.rel (!%p79_p3) target bundleno = 39 (0x27), region = 24  ;;  %s201_s29 = sand.u32 (%p79_p3), 1, %s1098_s16  }
  0x11   : > { %s905_s30 = sshll.u32 (%p79_p3), %s1114_s20, 1  ;;  %s903_s5 = sshll.u32 (%p79_p3), %s201_s29, 8 }
  0x12   : > { %s955_s6 = sshll.u32 (%p79_p3), %s1110_s19, 7  ;;  %s1211_s12 = scalar_lea.vmem (%p79_p3), [#allocation3], %s903_s5 }
  0x13   : > { %s207_s7 = sadd.s32 (%p79_p3), %s955_s6, %s905_s30 }
  0x14   : > { %s907_s8 = sshll.u32 (%p79_p3), %s207_s7, 2 }
  0x15   : > { %s1206_s11 = scalar_lea.vmem %s1370_s1, %s907_s8 }
  0x16   : > { %v300_v0 = vld [vmem:[%s1206_s11] sm:$0xff]  ;;  %v302_v1 = vld [vmem:[%s1206_s11 + $0x10] sm:$0xff] }
  0x17   : > { %v304_v2 = vld [vmem:[%s1206_s11 + $0x20] sm:$0xff]  ;;  %301 = vst [vmem:[%s1211_s12] sm:$0xff] %v300_v0  ;;  %303 = vst [vmem:[%s1211_s12 + $0x8] sm:$0xff] %v302_v1  ;;  %v306_v3 = vld [vmem:[%s1206_s11 + $0x30] sm:$0xff] }
  0x18   : > { %305 = vst [vmem:[%s1211_s12 + $0x10] sm:$0xff] %v304_v2  ;;  %v308_v4 = vld [vmem:[%s1206_s11 + $0x40] sm:$0xff]  ;;  %v310_v5 = vld [vmem:[%s1206_s11 + $0x50] sm:$0xff]  ;;  %307 = vst [vmem:[%s1211_s12 + $0x18] sm:$0xff] %v306_v3 }
  0x19   : > { %309 = vst [vmem:[%s1211_s12 + $0x20] sm:$0xff] %v308_v4  ;;  %311 = vst [vmem:[%s1211_s12 + $0x28] sm:$0xff] %v310_v5  ;;  %v312_v6 = vld [vmem:[%s1206_s11 + $0x60] sm:$0xff]  ;;  %v314_v7 = vld [vmem:[%s1206_s11 + $0x70] sm:$0xff] }
  0x1a   : > { %v316_v8 = vld [vmem:[%s1206_s11 + $0x80] sm:$0xff]  ;;  %313 = vst [vmem:[%s1211_s12 + $0x30] sm:$0xff] %v312_v6  ;;  %315 = vst [vmem:[%s1211_s12 + $0x38] sm:$0xff] %v314_v7  ;;  %v318_v9 = vld [vmem:[%s1206_s11 + $0x90] sm:$0xff] }
  0x1b   : > { %317 = vst [vmem:[%s1211_s12 + $0x40] sm:$0xff] %v316_v8  ;;  %v320_v10 = vld [vmem:[%s1206_s11 + $0xa0] sm:$0xff]  ;;  %v322_v11 = vld [vmem:[%s1206_s11 + $0xb0] sm:$0xff]  ;;  %319 = vst [vmem:[%s1211_s12 + $0x48] sm:$0xff] %v318_v9 }
  0x1c   : > { %321 = vst [vmem:[%s1211_s12 + $0x50] sm:$0xff] %v320_v10  ;;  %323 = vst [vmem:[%s1211_s12 + $0x58] sm:$0xff] %v322_v11  ;;  %v324_v12 = vld [vmem:[%s1206_s11 + $0xc0] sm:$0xff]  ;;  %v326_v13 = vld [vmem:[%s1206_s11 + $0xd0] sm:$0xff] }
  0x1d   : > { %v328_v14 = vld [vmem:[%s1206_s11 + $0xe0] sm:$0xff]  ;;  %325 = vst [vmem:[%s1211_s12 + $0x60] sm:$0xff] %v324_v12  ;;  %327 = vst [vmem:[%s1211_s12 + $0x68] sm:$0xff] %v326_v13  ;;  %v330_v15 = vld [vmem:[%s1206_s11 + $0xf0] sm:$0xff] }
  0x1e   : > { %329 = vst [vmem:[%s1211_s12 + $0x70] sm:$0xff] %v328_v14  ;;  %v332_v16 = vld [vmem:[%s1206_s11 + $0x100] sm:$0xff]  ;;  %v334_v17 = vld [vmem:[%s1206_s11 + $0x110] sm:$0xff]  ;;  %331 = vst [vmem:[%s1211_s12 + $0x78] sm:$0xff] %v330_v15 }
  0x1f   : > { %333 = vst [vmem:[%s1211_s12 + $0x80] sm:$0xff] %v332_v16  ;;  %335 = vst [vmem:[%s1211_s12 + $0x88] sm:$0xff] %v334_v17  ;;  %v336_v18 = vld [vmem:[%s1206_s11 + $0x120] sm:$0xff]  ;;  %v338_v19 = vld [vmem:[%s1206_s11 + $0x130] sm:$0xff] }
  0x20   : > { %v340_v20 = vld [vmem:[%s1206_s11 + $0x140] sm:$0xff]  ;;  %337 = vst [vmem:[%s1211_s12 + $0x90] sm:$0xff] %v336_v18  ;;  %339 = vst [vmem:[%s1211_s12 + $0x98] sm:$0xff] %v338_v19  ;;  %v342_v21 = vld [vmem:[%s1206_s11 + $0x150] sm:$0xff] }
  0x21   : > { %341 = vst [vmem:[%s1211_s12 + $0xa0] sm:$0xff] %v340_v20  ;;  %v344_v22 = vld [vmem:[%s1206_s11 + $0x160] sm:$0xff]  ;;  %v346_v23 = vld [vmem:[%s1206_s11 + $0x170] sm:$0xff]  ;;  %343 = vst [vmem:[%s1211_s12 + $0xa8] sm:$0xff] %v342_v21 }
  0x22   : > { %345 = vst [vmem:[%s1211_s12 + $0xb0] sm:$0xff] %v344_v22  ;;  %347 = vst [vmem:[%s1211_s12 + $0xb8] sm:$0xff] %v346_v23  ;;  %v348_v24 = vld [vmem:[%s1206_s11 + $0x180] sm:$0xff]  ;;  %v350_v25 = vld [vmem:[%s1206_s11 + $0x190] sm:$0xff] }
  0x23   : > { %v352_v26 = vld [vmem:[%s1206_s11 + $0x1a0] sm:$0xff]  ;;  %349 = vst [vmem:[%s1211_s12 + $0xc0] sm:$0xff] %v348_v24  ;;  %351 = vst [vmem:[%s1211_s12 + $0xc8] sm:$0xff] %v350_v25  ;;  %v354_v27 = vld [vmem:[%s1206_s11 + $0x1b0] sm:$0xff] }
  0x24   : > { %353 = vst [vmem:[%s1211_s12 + $0xd0] sm:$0xff] %v352_v26  ;;  %v356_v28 = vld [vmem:[%s1206_s11 + $0x1c0] sm:$0xff]  ;;  %v358_v29 = vld [vmem:[%s1206_s11 + $0x1d0] sm:$0xff]  ;;  %355 = vst [vmem:[%s1211_s12 + $0xd8] sm:$0xff] %v354_v27 }
  0x25   : > { %357 = vst [vmem:[%s1211_s12 + $0xe0] sm:$0xff] %v356_v28  ;;  %359 = vst [vmem:[%s1211_s12 + $0xe8] sm:$0xff] %v358_v29  ;;  %v360_v30 = vld [vmem:[%s1206_s11 + $0x1e0] sm:$0xff]  ;;  %v362_v31 = vld [vmem:[%s1206_s11 + $0x1f0] sm:$0xff] }
  0x26   : > { %361 = vst [vmem:[%s1211_s12 + $0xf0] sm:$0xff] %v360_v30  ;;  %363 = vst [vmem:[%s1211_s12 + $0xf8] sm:$0xff] %v362_v31 }
  0x27 PF: > { %p908_p7 = scmp.ge.s32.totalorder %s1118_s21, 1  ;;  %p384_p8 = scmp.lt.s32.totalorder %s1118_s21, 19 }
  0x29   : > { %p385_p9 = pnand %p908_p7, %p384_p8 }
  0x2a   : > { %s391_s13 = sand.u32 (!%p385_p9), 1, %s1094_s15   ;;  %s910_s14 = sshll.u32 (!%p385_p9), %s1102_s17, 1 }
  0x2b   : > { %388 = sbr.rel (%p385_p9) target bundleno = 339 (0x153), region = 70  ;;  %s909_s24 = sshll.u32 (!%p385_p9), %s391_s13, 8 }
  0x2c   : > { %p440_p10 = scmp.lt.s32.totalorder (!%p385_p9), %s910_s14, 17  ;;  %s912_s25 = sshll.u32 (!%p385_p9), %s1106_s18, 1 }
  0x2d   : > { %p450_p11 = scmp.lt.s32.totalorder (!%p385_p9), %s912_s25, 3  ;;  %s1300_s13 = scalar_lea.vmem (!%p385_p9), [#allocation3], %s909_s24 }
  0x2e   : > { %p916_p12 = scmp.ne.s32.totalorder (!%p385_p9), %s1102_s17, 0 }
  0x30   : > { %s1387_s14 = smov (!%p440_p10, %s910_s14), 17  ;;  %s1389_s25 = smov (!%p450_p11, %s912_s25), 3 }
  0x31   : > { %s911_s26 = sshll.u32 %s1387_s14, 2  ;;  %s452_s15 = scalar_lea.vmem %s1371_s2, %s1389_s25 }
  0x32   : > { %s1282_s30 = scalar_lea.vmem %s1369_s0, %s911_s26  ;;  %s457_s18 = scalar_lea.vmem %s1372_s3, %s1389_s25 }
  0x33   : > { %s915_s9 = sshll.u32 %s1389_s25, 2  ;;  %472 = sbr.rel (%p916_p12) target bundleno = 58 (0x3a), region = 78 }
  0x34   : > { %s1298_s12 = scalar_lea.vmem %s1373_s4, %s915_s9 }
  0x38   : > { %v1120_v32 = vmov 0.0  }
  0x39   : > { %473 = vst [vmem:[#allocation2] sm:$0xff] %v1120_v32  ;;  %474 = vst [vmem:[#allocation2 + $0x8] sm:$0xff] %v1120_v32 }
  0x3a PF: > { %v1014_v33 = vld [vmem:[%s1300_s13 + $0x74] ss:$8 sps:$4 sm:$0xff]   ;;  %v1016_v34 = vld [vmem:[%s1300_s13 + $0x70] ss:$8 sps:$4 sm:$0xff]   ;;  %v1017_v35 = vld [vmem:[%s1300_s13 + $0x64] ss:$8 sps:$4 sm:$0xff]  }
  0x3b   : > { %677 = vmatprep.subr.bf16.mxu0 %v1014_v33  ;;  %v1019_v36 = vld [vmem:[%s1300_s13 + $0x60] ss:$8 sps:$4 sm:$0xff]   ;;  %v1020_v37 = vld [vmem:[%s1300_s13 + $0x54] ss:$8 sps:$4 sm:$0xff]   ;;  %v1022_v38 = vld [vmem:[%s1300_s13 + $0x50] ss:$8 sps:$4 sm:$0xff]  }
  0x3c   : > { %678 = vmatpush1.bf16.msra.mxu0 %v1016_v34  ;;  %v1023_v39 = vld [vmem:[%s1300_s13 + $0x44] ss:$8 sps:$4 sm:$0xff]   ;;  %v1025_v40 = vld [vmem:[%s1300_s13 + $0x40] ss:$8 sps:$4 sm:$0xff]   ;;  %v1026_v41 = vld [vmem:[%s1300_s13 + $0x34] ss:$8 sps:$4 sm:$0xff]  }
  0x3d   : > { %679 = vmatprep.subr.bf16.mxu0 %v1017_v35  ;;  %v1028_v42 = vld [vmem:[%s1300_s13 + $0x30] ss:$8 sps:$4 sm:$0xff]   ;;  %v1029_v43 = vld [vmem:[%s1300_s13 + $0x24] ss:$8 sps:$4 sm:$0xff]   ;;  %v1031_v44 = vld [vmem:[%s1300_s13 + $0x20] ss:$8 sps:$4 sm:$0xff]  }
  0x3e   : > { %v1032_v45 = vld [vmem:[%s1300_s13 + $0x14] ss:$8 sps:$4 sm:$0xff]   ;;  %v1034_v48 = vld [vmem:[%s1300_s13 + $0x10] ss:$8 sps:$4 sm:$0xff]   ;;  %v1035_v49 = vld [vmem:[%s1300_s13 + $0x4] ss:$8 sps:$4 sm:$0xff]  }
  0x3f   : > { %v477_v46 = vld [vmem:[%s1282_s30] sm:$0xff]  ;;  %v1037_v50 = vld [vmem:[%s1300_s13] ss:$8 sps:$4 sm:$0xff]   ;;  %v1041_v53 = vld [vmem:[%s1300_s13 + $0xe4] ss:$8 sps:$4 sm:$0xff]   ;;  %p951_p13 = scmp.ne.s32.totalorder %s1102_s17, 8 }
  0x40   : > { %680 = vmatpush1.bf16.msra.mxu0 %v1019_v36  ;;  %v918_v47 = vcombine.high %v477_v46, %v477_v46  ;;  %v1038_v51 = vld [vmem:[%s1300_s13 + $0xf4] ss:$8 sps:$4 sm:$0xff]   ;;  %v1040_v52 = vld [vmem:[%s1300_s13 + $0xf0] ss:$8 sps:$4 sm:$0xff]   ;;  %v1043_v54 = vld [vmem:[%s1300_s13 + $0xe0] ss:$8 sps:$4 sm:$0xff]   ;;  %v917_v3 = vcombine.low %v477_v46, %v477_v46 }
  0x41   : > { %681 = vmatprep.subr.bf16.mxu0 %v1020_v37  ;;  %v1044_v55 = vld [vmem:[%s1300_s13 + $0xd4] ss:$8 sps:$4 sm:$0xff]   ;;  %v1046_v56 = vld [vmem:[%s1300_s13 + $0xd0] ss:$8 sps:$4 sm:$0xff]   ;;  %v1047_v57 = vld [vmem:[%s1300_s13 + $0xc4] ss:$8 sps:$4 sm:$0xff]  }
  0x42   : > { %709 = vmatprep.mubr.bf16.mxu0 %v918_v47  ;;  %v1049_v58 = vld [vmem:[%s1300_s13 + $0xc0] ss:$8 sps:$4 sm:$0xff]   ;;  %v1050_v59 = vld [vmem:[%s1300_s13 + $0xb4] ss:$8 sps:$4 sm:$0xff]   ;;  %v1052_v60 = vld [vmem:[%s1300_s13 + $0xb0] ss:$8 sps:$4 sm:$0xff]  }
  0x43   : > { %v1053_v61 = vld [vmem:[%s1300_s13 + $0xa4] ss:$8 sps:$4 sm:$0xff]   ;;  %v1055_v62 = vld [vmem:[%s1300_s13 + $0xa0] ss:$8 sps:$4 sm:$0xff]   ;;  %v1056_v63 = vld [vmem:[%s1300_s13 + $0x94] ss:$8 sps:$4 sm:$0xff]  }
  0x44   : > { %682 = vmatpush1.bf16.msra.mxu0 %v1022_v38  ;;  %v1058_v0 = vld [vmem:[%s1300_s13 + $0x90] ss:$8 sps:$4 sm:$0xff]   ;;  %v1059_v1 = vld [vmem:[%s1300_s13 + $0x84] ss:$8 sps:$4 sm:$0xff]   ;;  %v1061_v2 = vld [vmem:[%s1300_s13 + $0x80] ss:$8 sps:$4 sm:$0xff]  }
  0x45   : > { %683 = vmatprep.subr.bf16.mxu0 %v1023_v39  ;;  %v475_v4 = vld [vmem:[#allocation2] sm:$0xff]  ;;  %v476_v6 = vld [vmem:[#allocation2 + $0x8] sm:$0xff] }
  0x48   : > { %684 = vmatpush1.bf16.msra.mxu0 %v1025_v40 }
  0x49   : > { %685 = vmatprep.subr.bf16.mxu0 %v1026_v41 }
  0x4c   : > { %686 = vmatpush1.bf16.msra.mxu0 %v1028_v42 }
  0x4d   : > { %687 = vmatprep.subr.bf16.mxu0 %v1029_v43 }
  0x50   : > { %688 = vmatpush1.bf16.msra.mxu0 %v1031_v44 }
  0x51   : > { %689 = vmatprep.subr.bf16.mxu0 %v1032_v45 }
  0x54   : > { %690 = vmatpush1.bf16.msra.mxu0 %v1034_v48 }
  0x55   : > { %691 = vmatprep.subr.bf16.mxu0 %v1035_v49 }
  0x58   : > { %692 = vmatpush1.bf16.msra.mxu0 %v1037_v50 }
  0x59   : > { %693 = vmatprep.subr.bf16.mxu0 %v1038_v51 }
  0x5c   : > { %694 = vmatpush2.bf16.msra.mxu0 %v1040_v52 }
  0x5d   : > { %695 = vmatprep.subr.bf16.mxu0 %v1041_v53 }
  0x60   : > { %696 = vmatpush2.bf16.msra.mxu0 %v1043_v54 }
  0x61   : > { %697 = vmatprep.subr.bf16.mxu0 %v1044_v55 }
  0x64   : > { %698 = vmatpush2.bf16.msra.mxu0 %v1046_v56 }
  0x65   : > { %699 = vmatprep.subr.bf16.mxu0 %v1047_v57 }
  0x68   : > { %700 = vmatpush2.bf16.msra.mxu0 %v1049_v58 }
  0x69   : > { %701 = vmatprep.subr.bf16.mxu0 %v1050_v59 }
  0x6c   : > { %702 = vmatpush2.bf16.msra.mxu0 %v1052_v60 }
  0x6d   : > { %703 = vmatprep.subr.bf16.mxu0 %v1053_v61 }
  0x70   : > { %704 = vmatpush2.bf16.msra.mxu0 %v1055_v62 }
  0x71   : > { %705 = vmatprep.subr.bf16.mxu0 %v1056_v63 }
  0x74   : > { %706 = vmatpush2.bf16.msra.mxu0 %v1058_v0 }
  0x75   : > { %707 = vmatprep.subr.bf16.mxu0 %v1059_v1 }
  0x78   : > { %708 = vmatpush2.bf16.msra.mxu0 %v1061_v2 }
  0x7b   : > { %710 = vmatmul.mubr.bf16.vlgmr.msra.gmra.mxu0 %v917_v3 }
 0x13b   : > { %v711_v5 = vpop.f32.mrf.mxu0 }
 0x13c   : > { %v718_v7 = vadd.f32 %v711_v5, %v475_v4 }
 0x13d   : > { %v713_v8 = vpop.f32.mrf.mxu0  ;;  %725 = sbr.rel (%p951_p13) target bundleno = 339 (0x153), region = 82 }
 0x13e   : > { %720 = vst [vmem:[#allocation2] sm:$0xff] %v718_v7  ;;  %v719_v9 = vadd.f32 %v713_v8, %v476_v6 }
 0x13f   : > { %v715_v10 = vpop.f32.mrf.mxu0 }
 0x140   : > { %721 = vst [vmem:[#allocation2 + $0x8] sm:$0xff] %v719_v9 }
 0x141   : > { %v716_v11 = vpop.f32.mrf.mxu0 }
 0x142   : > { %v730_v12 = vlaneseq  ;;  %v728_v14 = vld [vmem:[%s452_s15] sm:$0x3] }
 0x143   : > { %v742_v15 = vld [vmem:[%s457_s18] sm:$0x3] }
 0x144   : > { %v731_v13 = vshrl.u32 %v730_v12, 7 }
 0x145   : > { %v726_v18 = vld [vmem:[#allocation2] sm:$0xff] }
 0x146   : > { %v732_v16 = vsub.s32 0, %v731_v13  ;;  %v736_v17 = vsub.s32 1, %v731_v13 }
 0x147   : > { %v727_v19 = vld [vmem:[#allocation2 + $0x8] sm:$0xff] }
 0x148   : > { %v733_v20 = vrot.slane %v728_v14, %v732_v16  ;;  %v737_v21 = vrot.slane %v728_v14, %v736_v17  ;;  %v747_v22 = vrot.slane %v742_v15, %v732_v16  ;;  %v751_v23 = vrot.slane %v742_v15, %v736_v17 }
 0x14a   : > { %v740_v24 = vmul.f32 %v733_v20, %v726_v18  ;;  %v741_v25 = vmul.f32 %v737_v21, %v727_v19 }
 0x14c   : > { %v754_v26 = vadd.f32 %v747_v22, %v740_v24  ;;  %v755_v27 = vadd.f32 %v751_v23, %v741_v25 }
 0x14e   : > { %v756_v28 = vmax.f32 %v754_v26, 0.0  ;;  %v757_v29 = vmax.f32 %v755_v27, 0.0 }
 0x150   : > { %v956_v30 = vpack.c.bf16 %v757_v29, %v756_v28 }
 0x152   : > { %766 = vst [vmem:[%s1298_s12] sm:$0xff] %v956_v30 }
 0x153 PF: > { %s14_s21 = sadd.s32 1, %s1118_s21   ;;  %s1374_s15 = smov %s1098_s16 }
 0x154   : > { %p11_p0 = scmp.ge.s32.totalorder %s14_s21, 20   ;;  %s1375_s16 = smov %s1197_s28 }
 0x155   : > { %s1376_s17 = smov %s1110_s19  ;;  %s1377_s18 = smov %s1114_s20 }
 0x156   : > { %s1378_s19 = smov %s1381_s22  ;;  %s1379_s20 = smov %s1385_s23 }
 0x157   :  { %13 = sbr.rel (!%p11_p0) target bundleno = 4 (0x4), region = 126 }

// kernel: resnet18_forward.39
= control target key start
LH: loop header
LB: loop body
LE: loop exit
PB: predicated region body
PF: predicated region fallthrough
CT: control target
= control target key end

     0   :  { %s1046_s15 = smov 0   ;;  %s1048_s16 = smov 0   ;;  %s1228_s0 = inlined_call_operand.vmem [shape: bf16[8,256], index: 0, kind: input, shape index: {}]   ;;  %s1229_s1 = inlined_call_operand.vmem [shape: bf16[256,512], index: 1, kind: input, shape index: {}]   ;;  %s1230_s2 = inlined_call_operand.vmem [shape: f32[1,512], index: 2, kind: input, shape index: {}]   ;;  %s1231_s3 = inlined_call_operand.vmem [shape: f32[1,512], index: 3, kind: input, shape index: {}]   ;;  %s1232_s4 = inlined_call_operand.vmem [shape: bf16[8,512], index: 4, kind: output, shape index: {}]  }
   0x1   :  { %s1050_s17 = smov 0   ;;  %s1052_s18 = smov 0  }
   0x2   :  { %s1054_s19 = smov 0  }
   0x3 LB: > { %s23_s20 = sadd.s32 1, %s1015_s18  ;;  %p66_p1 = scmp.ne.s32.totalorder %s1007_s16, %s1003_s15  ;;  %s1019_s19 = sphi %s1054_s19, %s14_s19   ;;  %s1015_s18 = sphi %s1052_s18, %s1236_s18   ;;  %s1011_s17 = sphi %s1050_s17, %s1235_s17   ;;  %s1007_s16 = sphi %s1048_s16, %s1234_s16   ;;  %s1003_s15 = sphi %s1046_s15, %s1233_s15  }
   0x4   : > { %p24_p0 = scmp.ge.s32.totalorder %s23_s20, 2  ;;  %p67_p2 = scmp.eq.s32.totalorder %s1019_s19, 0 }
   0x5   : > { %s59_s22 = sadd.s32 1, %s1007_s16  ;;  %p842_p5 = scmp.ge.s32.totalorder %s1019_s19, 2 }
   0x6   : > { %s1238_s20 = smov (%p24_p0, %s23_s20), 0  ;;  %p68_p3 = por %p67_p2, %p66_p1 }
   0x7   : > { %s56_s21 = ssub.s32 %s1015_s18, %s1238_s20  ;;  %180 = sbr.rel (%p842_p5) target bundleno = 32 (0x20), region = 20 }
   0x8   : > { %p57_p4 = scmp.eq.s32.totalorder %s56_s21, 0 }
   0xa   : > { %s1081_s23 = scalar_select %p57_p4, %s1007_s16, %s59_s22  }
   0xc   : > { %183 = sbr.rel (!%p68_p3) target bundleno = 32 (0x20), region = 24  ;;  %s185_s24 = sand.u32 (%p68_p3), 1, %s1007_s16  }
   0xd   : > { %s889_s25 = sshll.u32 (%p68_p3), %s1015_s18, 3  ;;  %s843_s26 = sshll.u32 (%p68_p3), %s185_s24, 8 }
   0xe   : > { %s1089_s29 = scalar_lea.vmem (%p68_p3), %s1229_s1, %s889_s25  ;;  %s1094_s30 = scalar_lea.vmem (%p68_p3), [#allocation2], %s843_s26 }
   0xf   : > { %v281_v0 = vld [vmem:[%s1089_s29] sm:$0xff] (%p68_p3)  ;;  %v283_v1 = vld [vmem:[%s1089_s29 + $0x10] sm:$0xff] (%p68_p3) }
  0x10   : > { %v285_v2 = vld [vmem:[%s1089_s29 + $0x20] sm:$0xff] (%p68_p3)  ;;  %282 = vst [vmem:[%s1094_s30] sm:$0xff] (%p68_p3), %v281_v0  ;;  %284 = vst [vmem:[%s1094_s30 + $0x8] sm:$0xff] (%p68_p3), %v283_v1  ;;  %v287_v3 = vld [vmem:[%s1089_s29 + $0x30] sm:$0xff] (%p68_p3) }
  0x11   : > { %286 = vst [vmem:[%s1094_s30 + $0x10] sm:$0xff] %v285_v2  ;;  %v289_v4 = vld [vmem:[%s1089_s29 + $0x40] sm:$0xff]  ;;  %v291_v5 = vld [vmem:[%s1089_s29 + $0x50] sm:$0xff]  ;;  %288 = vst [vmem:[%s1094_s30 + $0x18] sm:$0xff] %v287_v3 }
  0x12   : > { %290 = vst [vmem:[%s1094_s30 + $0x20] sm:$0xff] %v289_v4  ;;  %292 = vst [vmem:[%s1094_s30 + $0x28] sm:$0xff] %v291_v5  ;;  %v293_v6 = vld [vmem:[%s1089_s29 + $0x60] sm:$0xff]  ;;  %v295_v7 = vld [vmem:[%s1089_s29 + $0x70] sm:$0xff] }
  0x13   : > { %v297_v8 = vld [vmem:[%s1089_s29 + $0x80] sm:$0xff]  ;;  %294 = vst [vmem:[%s1094_s30 + $0x30] sm:$0xff] %v293_v6  ;;  %296 = vst [vmem:[%s1094_s30 + $0x38] sm:$0xff] %v295_v7  ;;  %v299_v9 = vld [vmem:[%s1089_s29 + $0x90] sm:$0xff] }
  0x14   : > { %298 = vst [vmem:[%s1094_s30 + $0x40] sm:$0xff] %v297_v8  ;;  %v301_v10 = vld [vmem:[%s1089_s29 + $0xa0] sm:$0xff]  ;;  %v303_v11 = vld [vmem:[%s1089_s29 + $0xb0] sm:$0xff]  ;;  %300 = vst [vmem:[%s1094_s30 + $0x48] sm:$0xff] %v299_v9 }
  0x15   : > { %302 = vst [vmem:[%s1094_s30 + $0x50] sm:$0xff] %v301_v10  ;;  %304 = vst [vmem:[%s1094_s30 + $0x58] sm:$0xff] %v303_v11  ;;  %v305_v12 = vld [vmem:[%s1089_s29 + $0xc0] sm:$0xff]  ;;  %v307_v13 = vld [vmem:[%s1089_s29 + $0xd0] sm:$0xff] }
  0x16   : > { %v309_v14 = vld [vmem:[%s1089_s29 + $0xe0] sm:$0xff]  ;;  %306 = vst [vmem:[%s1094_s30 + $0x60] sm:$0xff] %v305_v12  ;;  %308 = vst [vmem:[%s1094_s30 + $0x68] sm:$0xff] %v307_v13  ;;  %v311_v15 = vld [vmem:[%s1089_s29 + $0xf0] sm:$0xff] }
  0x17   : > { %310 = vst [vmem:[%s1094_s30 + $0x70] sm:$0xff] %v309_v14  ;;  %v313_v16 = vld [vmem:[%s1089_s29 + $0x100] sm:$0xff]  ;;  %v315_v17 = vld [vmem:[%s1089_s29 + $0x110] sm:$0xff]  ;;  %312 = vst [vmem:[%s1094_s30 + $0x78] sm:$0xff] %v311_v15 }
  0x18   : > { %314 = vst [vmem:[%s1094_s30 + $0x80] sm:$0xff] %v313_v16  ;;  %316 = vst [vmem:[%s1094_s30 + $0x88] sm:$0xff] %v315_v17  ;;  %v317_v18 = vld [vmem:[%s1089_s29 + $0x120] sm:$0xff]  ;;  %v319_v19 = vld [vmem:[%s1089_s29 + $0x130] sm:$0xff] }
  0x19   : > { %v321_v20 = vld [vmem:[%s1089_s29 + $0x140] sm:$0xff]  ;;  %318 = vst [vmem:[%s1094_s30 + $0x90] sm:$0xff] %v317_v18  ;;  %320 = vst [vmem:[%s1094_s30 + $0x98] sm:$0xff] %v319_v19  ;;  %v323_v21 = vld [vmem:[%s1089_s29 + $0x150] sm:$0xff] }
  0x1a   : > { %322 = vst [vmem:[%s1094_s30 + $0xa0] sm:$0xff] %v321_v20  ;;  %v325_v22 = vld [vmem:[%s1089_s29 + $0x160] sm:$0xff]  ;;  %v327_v23 = vld [vmem:[%s1089_s29 + $0x170] sm:$0xff]  ;;  %324 = vst [vmem:[%s1094_s30 + $0xa8] sm:$0xff] %v323_v21 }
  0x1b   : > { %326 = vst [vmem:[%s1094_s30 + $0xb0] sm:$0xff] %v325_v22  ;;  %328 = vst [vmem:[%s1094_s30 + $0xb8] sm:$0xff] %v327_v23  ;;  %v329_v24 = vld [vmem:[%s1089_s29 + $0x180] sm:$0xff]  ;;  %v331_v25 = vld [vmem:[%s1089_s29 + $0x190] sm:$0xff] }
  0x1c   : > { %v333_v26 = vld [vmem:[%s1089_s29 + $0x1a0] sm:$0xff]  ;;  %330 = vst [vmem:[%s1094_s30 + $0xc0] sm:$0xff] %v329_v24  ;;  %332 = vst [vmem:[%s1094_s30 + $0xc8] sm:$0xff] %v331_v25  ;;  %v335_v27 = vld [vmem:[%s1089_s29 + $0x1b0] sm:$0xff] }
  0x1d   : > { %334 = vst [vmem:[%s1094_s30 + $0xd0] sm:$0xff] %v333_v26  ;;  %v337_v28 = vld [vmem:[%s1089_s29 + $0x1c0] sm:$0xff]  ;;  %v339_v29 = vld [vmem:[%s1089_s29 + $0x1d0] sm:$0xff]  ;;  %336 = vst [vmem:[%s1094_s30 + $0xd8] sm:$0xff] %v335_v27 }
  0x1e   : > { %338 = vst [vmem:[%s1094_s30 + $0xe0] sm:$0xff] %v337_v28  ;;  %340 = vst [vmem:[%s1094_s30 + $0xe8] sm:$0xff] %v339_v29  ;;  %v341_v30 = vld [vmem:[%s1089_s29 + $0x1e0] sm:$0xff]  ;;  %v343_v31 = vld [vmem:[%s1089_s29 + $0x1f0] sm:$0xff] }
  0x1f   : > { %342 = vst [vmem:[%s1094_s30 + $0xf0] sm:$0xff] %v341_v30  ;;  %344 = vst [vmem:[%s1094_s30 + $0xf8] sm:$0xff] %v343_v31 }
  0x20 PF: > { %p846_p6 = scmp.ge.s32.totalorder %s1019_s19, 1  ;;  %p365_p7 = scmp.lt.s32.totalorder %s1019_s19, 3 }
  0x22   : > { %p366_p8 = pnand %p846_p6, %p365_p7 }
  0x23   : > { %s372_s5 = sand.u32 (!%p366_p8), 1, %s1003_s15   ;;  %s848_s10 = sshll.u32 (!%p366_p8), %s1011_s17, 1 }
  0x24   : > { %369 = sbr.rel (%p366_p8) target bundleno = 308 (0x134), region = 70  ;;  %s847_s8 = sshll.u32 (!%p366_p8), %s372_s5, 8 }
  0x25   : > { %s1167_s9 = scalar_lea.vmem (!%p366_p8), [#allocation2], %s847_s8  ;;  %p421_p9 = scmp.lt.s32.totalorder (!%p366_p8), %s848_s10, 3 }
  0x29   : > { %v1163_v32 = vld [vmem:[%s1228_s0] sm:$0xff]  ;;  %v931_v34 = vld [vmem:[%s1167_s9 + $0x74] ss:$8 sps:$4 sm:$0xff]   ;;  %v933_v35 = vld [vmem:[%s1167_s9 + $0x70] ss:$8 sps:$4 sm:$0xff]   ;;  %v683_v3 = vlaneseq  ;;  %s1240_s10 = smov (!%p421_p9, %s848_s10), 3 }
  0x2a   : > { %v853_v33 = vcombine.high %v1163_v32, %v1163_v32  ;;  %640 = vmatprep.subr.bf16.mxu0 %v931_v34  ;;  %v934_v36 = vld [vmem:[%s1167_s9 + $0x64] ss:$8 sps:$4 sm:$0xff]   ;;  %v936_v37 = vld [vmem:[%s1167_s9 + $0x60] ss:$8 sps:$4 sm:$0xff]   ;;  %v937_v38 = vld [vmem:[%s1167_s9 + $0x54] ss:$8 sps:$4 sm:$0xff]   ;;  %v852_v2 = vcombine.low %v1163_v32, %v1163_v32  ;;  %s423_s13 = scalar_lea.vmem %s1230_s2, %s1240_s10  ;;  %s428_s21 = scalar_lea.vmem %s1231_s3, %s1240_s10 }
  0x2b   : > { %641 = vmatpush1.bf16.msra.mxu0 %v933_v35  ;;  %v939_v39 = vld [vmem:[%s1167_s9 + $0x50] ss:$8 sps:$4 sm:$0xff]   ;;  %v940_v40 = vld [vmem:[%s1167_s9 + $0x44] ss:$8 sps:$4 sm:$0xff]   ;;  %v942_v41 = vld [vmem:[%s1167_s9 + $0x40] ss:$8 sps:$4 sm:$0xff]  }
  0x2c   : > { %672 = vmatprep.mubr.bf16.mxu0 %v853_v33  ;;  %642 = vmatprep.subr.bf16.mxu0 %v934_v36  ;;  %v943_v42 = vld [vmem:[%s1167_s9 + $0x34] ss:$8 sps:$4 sm:$0xff]   ;;  %v945_v43 = vld [vmem:[%s1167_s9 + $0x30] ss:$8 sps:$4 sm:$0xff]   ;;  %v946_v44 = vld [vmem:[%s1167_s9 + $0x24] ss:$8 sps:$4 sm:$0xff]  }
  0x2d   : > { %v948_v45 = vld [vmem:[%s1167_s9 + $0x20] ss:$8 sps:$4 sm:$0xff]   ;;  %v949_v46 = vld [vmem:[%s1167_s9 + $0x14] ss:$8 sps:$4 sm:$0xff]   ;;  %v951_v47 = vld [vmem:[%s1167_s9 + $0x10] ss:$8 sps:$4 sm:$0xff]  }
  0x2e   : > { %v952_v48 = vld [vmem:[%s1167_s9 + $0x4] ss:$8 sps:$4 sm:$0xff]   ;;  %v954_v49 = vld [vmem:[%s1167_s9] ss:$8 sps:$4 sm:$0xff]   ;;  %v955_v50 = vld [vmem:[%s1167_s9 + $0xf4] ss:$8 sps:$4 sm:$0xff]  }
  0x2f   : > { %643 = vmatpush1.bf16.msra.mxu0 %v936_v37  ;;  %v957_v51 = vld [vmem:[%s1167_s9 + $0xf0] ss:$8 sps:$4 sm:$0xff]   ;;  %v958_v52 = vld [vmem:[%s1167_s9 + $0xe4] ss:$8 sps:$4 sm:$0xff]   ;;  %v960_v53 = vld [vmem:[%s1167_s9 + $0xe0] ss:$8 sps:$4 sm:$0xff]  }
  0x30   : > { %644 = vmatprep.subr.bf16.mxu0 %v937_v38  ;;  %v961_v54 = vld [vmem:[%s1167_s9 + $0xd4] ss:$8 sps:$4 sm:$0xff]   ;;  %v963_v55 = vld [vmem:[%s1167_s9 + $0xd0] ss:$8 sps:$4 sm:$0xff]   ;;  %v964_v56 = vld [vmem:[%s1167_s9 + $0xc4] ss:$8 sps:$4 sm:$0xff]  }
  0x31   : > { %v966_v57 = vld [vmem:[%s1167_s9 + $0xc0] ss:$8 sps:$4 sm:$0xff]   ;;  %v967_v58 = vld [vmem:[%s1167_s9 + $0xb4] ss:$8 sps:$4 sm:$0xff]   ;;  %v969_v59 = vld [vmem:[%s1167_s9 + $0xb0] ss:$8 sps:$4 sm:$0xff]  }
  0x32   : > { %v970_v60 = vld [vmem:[%s1167_s9 + $0xa4] ss:$8 sps:$4 sm:$0xff]   ;;  %v972_v61 = vld [vmem:[%s1167_s9 + $0xa0] ss:$8 sps:$4 sm:$0xff]   ;;  %v973_v62 = vld [vmem:[%s1167_s9 + $0x94] ss:$8 sps:$4 sm:$0xff]  }
  0x33   : > { %645 = vmatpush1.bf16.msra.mxu0 %v939_v39  ;;  %v975_v63 = vld [vmem:[%s1167_s9 + $0x90] ss:$8 sps:$4 sm:$0xff]   ;;  %v976_v0 = vld [vmem:[%s1167_s9 + $0x84] ss:$8 sps:$4 sm:$0xff]   ;;  %v978_v1 = vld [vmem:[%s1167_s9 + $0x80] ss:$8 sps:$4 sm:$0xff]  }
  0x34   : > { %646 = vmatprep.subr.bf16.mxu0 %v940_v40  ;;  %v684_v4 = vshrl.u32 %v683_v3, 7  ;;  %v681_v6 = vld [vmem:[%s423_s13] sm:$0x3]  ;;  %s851_s17 = sshll.u32 %s1240_s10, 2 }
  0x35   : > { %v695_v9 = vld [vmem:[%s428_s21] sm:$0x3]  ;;  %s438_s25 = scalar_lea.vmem %s1232_s4, %s851_s17 }
  0x36   : > { %v685_v5 = vsub.s32 0, %v684_v4  ;;  %v689_v7 = vsub.s32 1, %v684_v4 }
  0x37   : > { %647 = vmatpush1.bf16.msra.mxu0 %v942_v41 }
  0x38   : > { %648 = vmatprep.subr.bf16.mxu0 %v943_v42  ;;  %v686_v8 = vrot.slane %v681_v6, %v685_v5  ;;  %v690_v10 = vrot.slane %v681_v6, %v689_v7  ;;  %v700_v13 = vrot.slane %v695_v9, %v685_v5  ;;  %v704_v14 = vrot.slane %v695_v9, %v689_v7 }
  0x3b   : > { %649 = vmatpush1.bf16.msra.mxu0 %v945_v43 }
  0x3c   : > { %650 = vmatprep.subr.bf16.mxu0 %v946_v44 }
  0x3f   : > { %651 = vmatpush1.bf16.msra.mxu0 %v948_v45 }
  0x40   : > { %652 = vmatprep.subr.bf16.mxu0 %v949_v46 }
  0x43   : > { %653 = vmatpush1.bf16.msra.mxu0 %v951_v47 }
  0x44   : > { %654 = vmatprep.subr.bf16.mxu0 %v952_v48 }
  0x47   : > { %655 = vmatpush1.bf16.msra.mxu0 %v954_v49 }
  0x48   : > { %656 = vmatprep.subr.bf16.mxu0 %v955_v50 }
  0x4b   : > { %657 = vmatpush2.bf16.msra.mxu0 %v957_v51 }
  0x4c   : > { %658 = vmatprep.subr.bf16.mxu0 %v958_v52 }
  0x4f   : > { %659 = vmatpush2.bf16.msra.mxu0 %v960_v53 }
  0x50   : > { %660 = vmatprep.subr.bf16.mxu0 %v961_v54 }
  0x53   : > { %661 = vmatpush2.bf16.msra.mxu0 %v963_v55 }
  0x54   : > { %662 = vmatprep.subr.bf16.mxu0 %v964_v56 }
  0x57   : > { %663 = vmatpush2.bf16.msra.mxu0 %v966_v57 }
  0x58   : > { %664 = vmatprep.subr.bf16.mxu0 %v967_v58 }
  0x5b   : > { %665 = vmatpush2.bf16.msra.mxu0 %v969_v59 }
  0x5c   : > { %666 = vmatprep.subr.bf16.mxu0 %v970_v60 }
  0x5f   : > { %667 = vmatpush2.bf16.msra.mxu0 %v972_v61 }
  0x60   : > { %668 = vmatprep.subr.bf16.mxu0 %v973_v62 }
  0x63   : > { %669 = vmatpush2.bf16.msra.mxu0 %v975_v63 }
  0x64   : > { %670 = vmatprep.subr.bf16.mxu0 %v976_v0 }
  0x67   : > { %671 = vmatpush2.bf16.msra.mxu0 %v978_v1 }
  0x6a   : > { %673 = vmatmul.mubr.bf16.vlgmr.msra.gmra.mxu0 %v852_v2 }
 0x12a   : > { %v674_v11 = vpop.f32.mrf.mxu0 }
 0x12b   : > { %v693_v12 = vmul.f32 %v686_v8, %v674_v11 }
 0x12c   : > { %v676_v15 = vpop.f32.mrf.mxu0 }
 0x12d   : > { %v694_v16 = vmul.f32 %v690_v10, %v676_v15  ;;  %v707_v18 = vadd.f32 %v700_v13, %v693_v12 }
 0x12e   : > { %v678_v17 = vpop.f32.mrf.mxu0 }
 0x12f   : > { %v708_v19 = vadd.f32 %v704_v14, %v694_v16 }
 0x130   : > { %v679_v20 = vpop.f32.mrf.mxu0 }
 0x131   : > { %v890_v21 = vpack.c.bf16 %v708_v19, %v707_v18 }
 0x133   : > { %717 = vst [vmem:[%s438_s25] sm:$0xff] %v890_v21 }
 0x134 PF: > { %s14_s19 = sadd.s32 1, %s1019_s19   ;;  %s1233_s15 = smov %s1007_s16 }
 0x135   : > { %p11_p10 = scmp.ge.s32.totalorder %s14_s19, 4   ;;  %s1234_s16 = smov %s1081_s23 }
 0x136   : > { %s1235_s17 = smov %s1015_s18  ;;  %s1236_s18 = smov %s1238_s20 }
 0x137   :  { %13 = sbr.rel (!%p11_p10) target bundleno = 3 (0x3), region = 118 }

// kernel: resnet18_forward.40
= control target key start
LH: loop header
LB: loop body
LE: loop exit
PB: predicated region body
PF: predicated region fallthrough
CT: control target
= control target key end

     0   :  { %s1692_s18 = smov 0   ;;  %s1694_s19 = smov 0   ;;  %s2018_s0 = inlined_call_operand.vmem [shape: bf16[8,4608], index: 0, kind: input, shape index: {}]   ;;  %s2019_s1 = inlined_call_operand.vmem [shape: bf16[4608,512], index: 1, kind: input, shape index: {}]   ;;  %s2020_s2 = inlined_call_operand.vmem [shape: f32[1,512], index: 2, kind: input, shape index: {}]   ;;  %s2021_s3 = inlined_call_operand.vmem [shape: f32[1,512], index: 3, kind: input, shape index: {}]   ;;  %s2022_s4 = inlined_call_operand.vmem [shape: bf16[8,512], index: 4, kind: input, shape index: {}]   ;;  %s2023_s5 = inlined_call_operand.vmem [shape: bf16[8,512], index: 5, kind: output, shape index: {}]  }
   0x1   :  { %s1696_s20 = smov 0   ;;  %s1698_s21 = smov 0  }
   0x2   :  { %s1700_s22 = smov 0   ;;  %s1702_s23 = smov 0  }
   0x3   :  { %s1704_s24 = smov 0  }
   0x4 LB: > { %s27_s25 = sadd.s32 1, %s1651_s22  ;;  %s30_s26 = sadd.s32 1, %s1655_s23  ;;  %s1659_s24 = sphi %s1704_s24, %s15_s24   ;;  %s1655_s23 = sphi %s1702_s23, %s2029_s23   ;;  %s1651_s22 = sphi %s1700_s22, %s2028_s22   ;;  %s1647_s21 = sphi %s1698_s21, %s2027_s21   ;;  %s1643_s20 = sphi %s1696_s20, %s2026_s20   ;;  %s1639_s19 = sphi %s1694_s19, %s2025_s19   ;;  %s1635_s18 = sphi %s1692_s18, %s2024_s18  }
   0x5   : > { %p28_p0 = scmp.ge.s32.totalorder %s27_s25, 9  ;;  %p78_p1 = scmp.ne.s32.totalorder %s1639_s19, %s1635_s18 }
   0x6   : > { %p79_p2 = scmp.eq.s32.totalorder %s1659_s24, 0  ;;  %s71_s30 = sadd.s32 1, %s1639_s19 }
   0x7   : > { %s2031_s25 = smov (%p28_p0, %s27_s25), 0  ;;  %s2033_s26 = smov (!%p28_p0, %s30_s26), %s1655_s23 }
   0x8   : > { %p80_p3 = por %p79_p2, %p78_p1  ;;  %p32_p4 = scmp.ge.s32.totalorder %s2033_s26, 2 }
   0x9   : > { %s66_s27 = ssub.s32 %s1651_s22, %s2031_s25  ;;  %p1357_p6 = scmp.ge.s32.totalorder %s1659_s24, 18 }
   0xa   : > { %s2035_s26 = smov (%p32_p4, %s2033_s26), 0 }
   0xb   : > { %s67_s28 = ssub.s32 %s1655_s23, %s2035_s26  ;;  %212 = sbr.rel (%p1357_p6) target bundleno = 55 (0x37), region = 16 }
   0xc   : > { %s68_s29 = sor.u32 %s67_s28, %s66_s27 }
   0xd   : > { %p69_p5 = scmp.eq.s32.totalorder %s68_s29, 0 }
   0xf   : > { %s1743_s6 = scalar_select %p69_p5, %s1639_s19, %s71_s30  }
  0x10   : > { %228 = sbr.rel (!%p80_p3) target bundleno = 55 (0x37), region = 24  ;;  %s230_s7 = sand.u32 (%p80_p3), 1, %s1639_s19  }
  0x11   : > { %s1360_s8 = sshll.u32 (%p80_p3), %s1655_s23, 1  ;;  %s1358_s9 = sshll.u32 (%p80_p3), %s230_s7, 9 }
  0x12   : > { %s1446_s10 = sshll.u32 (%p80_p3), %s1651_s22, 8  ;;  %s1757_s16 = scalar_lea.vmem (%p80_p3), [#allocation3], %s1358_s9 }
  0x13   : > { %s236_s11 = sadd.s32 (%p80_p3), %s1446_s10, %s1360_s8 }
  0x14   : > { %s1362_s12 = sshll.u32 (%p80_p3), %s236_s11, 2 }
  0x15   : > { %s1752_s15 = scalar_lea.vmem %s2019_s1, %s1362_s12 }
  0x16   : > { %v393_v0 = vld [vmem:[%s1752_s15] sm:$0xff]  ;;  %v395_v1 = vld [vmem:[%s1752_s15 + $0x10] sm:$0xff] }
  0x17   : > { %v397_v2 = vld [vmem:[%s1752_s15 + $0x20] sm:$0xff]  ;;  %394 = vst [vmem:[%s1757_s16] sm:$0xff] %v393_v0  ;;  %396 = vst [vmem:[%s1757_s16 + $0x8] sm:$0xff] %v395_v1  ;;  %v399_v3 = vld [vmem:[%s1752_s15 + $0x30] sm:$0xff] }
  0x18   : > { %398 = vst [vmem:[%s1757_s16 + $0x10] sm:$0xff] %v397_v2  ;;  %v401_v4 = vld [vmem:[%s1752_s15 + $0x40] sm:$0xff]  ;;  %v403_v5 = vld [vmem:[%s1752_s15 + $0x50] sm:$0xff]  ;;  %400 = vst [vmem:[%s1757_s16 + $0x18] sm:$0xff] %v399_v3 }
  0x19   : > { %402 = vst [vmem:[%s1757_s16 + $0x20] sm:$0xff] %v401_v4  ;;  %404 = vst [vmem:[%s1757_s16 + $0x28] sm:$0xff] %v403_v5  ;;  %v405_v6 = vld [vmem:[%s1752_s15 + $0x60] sm:$0xff]  ;;  %v407_v7 = vld [vmem:[%s1752_s15 + $0x70] sm:$0xff] }
  0x1a   : > { %v409_v8 = vld [vmem:[%s1752_s15 + $0x80] sm:$0xff]  ;;  %406 = vst [vmem:[%s1757_s16 + $0x30] sm:$0xff] %v405_v6  ;;  %408 = vst [vmem:[%s1757_s16 + $0x38] sm:$0xff] %v407_v7  ;;  %v411_v9 = vld [vmem:[%s1752_s15 + $0x90] sm:$0xff] }
  0x1b   : > { %410 = vst [vmem:[%s1757_s16 + $0x40] sm:$0xff] %v409_v8  ;;  %v413_v10 = vld [vmem:[%s1752_s15 + $0xa0] sm:$0xff]  ;;  %v415_v11 = vld [vmem:[%s1752_s15 + $0xb0] sm:$0xff]  ;;  %412 = vst [vmem:[%s1757_s16 + $0x48] sm:$0xff] %v411_v9 }
  0x1c   : > { %414 = vst [vmem:[%s1757_s16 + $0x50] sm:$0xff] %v413_v10  ;;  %416 = vst [vmem:[%s1757_s16 + $0x58] sm:$0xff] %v415_v11  ;;  %v417_v12 = vld [vmem:[%s1752_s15 + $0xc0] sm:$0xff]  ;;  %v419_v13 = vld [vmem:[%s1752_s15 + $0xd0] sm:$0xff] }
  0x1d   : > { %v421_v14 = vld [vmem:[%s1752_s15 + $0xe0] sm:$0xff]  ;;  %418 = vst [vmem:[%s1757_s16 + $0x60] sm:$0xff] %v417_v12  ;;  %420 = vst [vmem:[%s1757_s16 + $0x68] sm:$0xff] %v419_v13  ;;  %v423_v15 = vld [vmem:[%s1752_s15 + $0xf0] sm:$0xff] }
  0x1e   : > { %422 = vst [vmem:[%s1757_s16 + $0x70] sm:$0xff] %v421_v14  ;;  %v425_v16 = vld [vmem:[%s1752_s15 + $0x100] sm:$0xff]  ;;  %v427_v17 = vld [vmem:[%s1752_s15 + $0x110] sm:$0xff]  ;;  %424 = vst [vmem:[%s1757_s16 + $0x78] sm:$0xff] %v423_v15 }
  0x1f   : > { %426 = vst [vmem:[%s1757_s16 + $0x80] sm:$0xff] %v425_v16  ;;  %428 = vst [vmem:[%s1757_s16 + $0x88] sm:$0xff] %v427_v17  ;;  %v429_v18 = vld [vmem:[%s1752_s15 + $0x120] sm:$0xff]  ;;  %v431_v19 = vld [vmem:[%s1752_s15 + $0x130] sm:$0xff] }
  0x20   : > { %v433_v20 = vld [vmem:[%s1752_s15 + $0x140] sm:$0xff]  ;;  %430 = vst [vmem:[%s1757_s16 + $0x90] sm:$0xff] %v429_v18  ;;  %432 = vst [vmem:[%s1757_s16 + $0x98] sm:$0xff] %v431_v19  ;;  %v435_v21 = vld [vmem:[%s1752_s15 + $0x150] sm:$0xff] }
  0x21   : > { %434 = vst [vmem:[%s1757_s16 + $0xa0] sm:$0xff] %v433_v20  ;;  %v437_v22 = vld [vmem:[%s1752_s15 + $0x160] sm:$0xff]  ;;  %v439_v23 = vld [vmem:[%s1752_s15 + $0x170] sm:$0xff]  ;;  %436 = vst [vmem:[%s1757_s16 + $0xa8] sm:$0xff] %v435_v21 }
  0x22   : > { %438 = vst [vmem:[%s1757_s16 + $0xb0] sm:$0xff] %v437_v22  ;;  %440 = vst [vmem:[%s1757_s16 + $0xb8] sm:$0xff] %v439_v23  ;;  %v441_v24 = vld [vmem:[%s1752_s15 + $0x180] sm:$0xff]  ;;  %v443_v25 = vld [vmem:[%s1752_s15 + $0x190] sm:$0xff] }
  0x23   : > { %v445_v26 = vld [vmem:[%s1752_s15 + $0x1a0] sm:$0xff]  ;;  %442 = vst [vmem:[%s1757_s16 + $0xc0] sm:$0xff] %v441_v24  ;;  %444 = vst [vmem:[%s1757_s16 + $0xc8] sm:$0xff] %v443_v25  ;;  %v447_v27 = vld [vmem:[%s1752_s15 + $0x1b0] sm:$0xff] }
  0x24   : > { %446 = vst [vmem:[%s1757_s16 + $0xd0] sm:$0xff] %v445_v26  ;;  %v449_v28 = vld [vmem:[%s1752_s15 + $0x1c0] sm:$0xff]  ;;  %v451_v29 = vld [vmem:[%s1752_s15 + $0x1d0] sm:$0xff]  ;;  %448 = vst [vmem:[%s1757_s16 + $0xd8] sm:$0xff] %v447_v27 }
  0x25   : > { %450 = vst [vmem:[%s1757_s16 + $0xe0] sm:$0xff] %v449_v28  ;;  %452 = vst [vmem:[%s1757_s16 + $0xe8] sm:$0xff] %v451_v29  ;;  %v453_v30 = vld [vmem:[%s1752_s15 + $0x1e0] sm:$0xff]  ;;  %v455_v31 = vld [vmem:[%s1752_s15 + $0x1f0] sm:$0xff] }
  0x26   : > { %v457_v32 = vld [vmem:[%s1752_s15 + $0x200] sm:$0xff]  ;;  %454 = vst [vmem:[%s1757_s16 + $0xf0] sm:$0xff] %v453_v30  ;;  %456 = vst [vmem:[%s1757_s16 + $0xf8] sm:$0xff] %v455_v31  ;;  %v459_v33 = vld [vmem:[%s1752_s15 + $0x210] sm:$0xff] }
  0x27   : > { %458 = vst [vmem:[%s1757_s16 + $0x100] sm:$0xff] %v457_v32  ;;  %v461_v34 = vld [vmem:[%s1752_s15 + $0x220] sm:$0xff]  ;;  %v463_v35 = vld [vmem:[%s1752_s15 + $0x230] sm:$0xff]  ;;  %460 = vst [vmem:[%s1757_s16 + $0x108] sm:$0xff] %v459_v33 }
  0x28   : > { %462 = vst [vmem:[%s1757_s16 + $0x110] sm:$0xff] %v461_v34  ;;  %464 = vst [vmem:[%s1757_s16 + $0x118] sm:$0xff] %v463_v35  ;;  %v465_v36 = vld [vmem:[%s1752_s15 + $0x240] sm:$0xff]  ;;  %v467_v37 = vld [vmem:[%s1752_s15 + $0x250] sm:$0xff] }
  0x29   : > { %v469_v38 = vld [vmem:[%s1752_s15 + $0x260] sm:$0xff]  ;;  %466 = vst [vmem:[%s1757_s16 + $0x120] sm:$0xff] %v465_v36  ;;  %468 = vst [vmem:[%s1757_s16 + $0x128] sm:$0xff] %v467_v37  ;;  %v471_v39 = vld [vmem:[%s1752_s15 + $0x270] sm:$0xff] }
  0x2a   : > { %470 = vst [vmem:[%s1757_s16 + $0x130] sm:$0xff] %v469_v38  ;;  %v473_v40 = vld [vmem:[%s1752_s15 + $0x280] sm:$0xff]  ;;  %v475_v41 = vld [vmem:[%s1752_s15 + $0x290] sm:$0xff]  ;;  %472 = vst [vmem:[%s1757_s16 + $0x138] sm:$0xff] %v471_v39 }
  0x2b   : > { %474 = vst [vmem:[%s1757_s16 + $0x140] sm:$0xff] %v473_v40  ;;  %476 = vst [vmem:[%s1757_s16 + $0x148] sm:$0xff] %v475_v41  ;;  %v477_v42 = vld [vmem:[%s1752_s15 + $0x2a0] sm:$0xff]  ;;  %v479_v43 = vld [vmem:[%s1752_s15 + $0x2b0] sm:$0xff] }
  0x2c   : > { %v481_v44 = vld [vmem:[%s1752_s15 + $0x2c0] sm:$0xff]  ;;  %478 = vst [vmem:[%s1757_s16 + $0x150] sm:$0xff] %v477_v42  ;;  %480 = vst [vmem:[%s1757_s16 + $0x158] sm:$0xff] %v479_v43  ;;  %v483_v45 = vld [vmem:[%s1752_s15 + $0x2d0] sm:$0xff] }
  0x2d   : > { %482 = vst [vmem:[%s1757_s16 + $0x160] sm:$0xff] %v481_v44  ;;  %v485_v46 = vld [vmem:[%s1752_s15 + $0x2e0] sm:$0xff]  ;;  %v487_v47 = vld [vmem:[%s1752_s15 + $0x2f0] sm:$0xff]  ;;  %484 = vst [vmem:[%s1757_s16 + $0x168] sm:$0xff] %v483_v45 }
  0x2e   : > { %486 = vst [vmem:[%s1757_s16 + $0x170] sm:$0xff] %v485_v46  ;;  %488 = vst [vmem:[%s1757_s16 + $0x178] sm:$0xff] %v487_v47  ;;  %v489_v48 = vld [vmem:[%s1752_s15 + $0x300] sm:$0xff]  ;;  %v491_v49 = vld [vmem:[%s1752_s15 + $0x310] sm:$0xff] }
  0x2f   : > { %v493_v50 = vld [vmem:[%s1752_s15 + $0x320] sm:$0xff]  ;;  %490 = vst [vmem:[%s1757_s16 + $0x180] sm:$0xff] %v489_v48  ;;  %492 = vst [vmem:[%s1757_s16 + $0x188] sm:$0xff] %v491_v49  ;;  %v495_v51 = vld [vmem:[%s1752_s15 + $0x330] sm:$0xff] }
  0x30   : > { %494 = vst [vmem:[%s1757_s16 + $0x190] sm:$0xff] %v493_v50  ;;  %v497_v52 = vld [vmem:[%s1752_s15 + $0x340] sm:$0xff]  ;;  %v499_v53 = vld [vmem:[%s1752_s15 + $0x350] sm:$0xff]  ;;  %496 = vst [vmem:[%s1757_s16 + $0x198] sm:$0xff] %v495_v51 }
  0x31   : > { %498 = vst [vmem:[%s1757_s16 + $0x1a0] sm:$0xff] %v497_v52  ;;  %500 = vst [vmem:[%s1757_s16 + $0x1a8] sm:$0xff] %v499_v53  ;;  %v501_v54 = vld [vmem:[%s1752_s15 + $0x360] sm:$0xff]  ;;  %v503_v55 = vld [vmem:[%s1752_s15 + $0x370] sm:$0xff] }
  0x32   : > { %v505_v56 = vld [vmem:[%s1752_s15 + $0x380] sm:$0xff]  ;;  %502 = vst [vmem:[%s1757_s16 + $0x1b0] sm:$0xff] %v501_v54  ;;  %504 = vst [vmem:[%s1757_s16 + $0x1b8] sm:$0xff] %v503_v55  ;;  %v507_v57 = vld [vmem:[%s1752_s15 + $0x390] sm:$0xff] }
  0x33   : > { %506 = vst [vmem:[%s1757_s16 + $0x1c0] sm:$0xff] %v505_v56  ;;  %v509_v58 = vld [vmem:[%s1752_s15 + $0x3a0] sm:$0xff]  ;;  %v511_v59 = vld [vmem:[%s1752_s15 + $0x3b0] sm:$0xff]  ;;  %508 = vst [vmem:[%s1757_s16 + $0x1c8] sm:$0xff] %v507_v57 }
  0x34   : > { %510 = vst [vmem:[%s1757_s16 + $0x1d0] sm:$0xff] %v509_v58  ;;  %512 = vst [vmem:[%s1757_s16 + $0x1d8] sm:$0xff] %v511_v59  ;;  %v513_v60 = vld [vmem:[%s1752_s15 + $0x3c0] sm:$0xff]  ;;  %v515_v61 = vld [vmem:[%s1752_s15 + $0x3d0] sm:$0xff] }
  0x35   : > { %v517_v62 = vld [vmem:[%s1752_s15 + $0x3e0] sm:$0xff]  ;;  %514 = vst [vmem:[%s1757_s16 + $0x1e0] sm:$0xff] %v513_v60  ;;  %516 = vst [vmem:[%s1757_s16 + $0x1e8] sm:$0xff] %v515_v61  ;;  %v519_v63 = vld [vmem:[%s1752_s15 + $0x3f0] sm:$0xff] }
  0x36   : > { %518 = vst [vmem:[%s1757_s16 + $0x1f0] sm:$0xff] %v517_v62  ;;  %520 = vst [vmem:[%s1757_s16 + $0x1f8] sm:$0xff] %v519_v63 }
  0x37 PF: > { %p1363_p7 = scmp.ge.s32.totalorder %s1659_s24, 1  ;;  %p554_p8 = scmp.lt.s32.totalorder %s1659_s24, 19 }
  0x39   : > { %p555_p9 = pnand %p1363_p7, %p554_p8 }
  0x3a   : > { %s561_s17 = sand.u32 (!%p555_p9), 1, %s1635_s18   ;;  %s1365_s27 = sshll.u32 (!%p555_p9), %s1643_s20, 2 }
  0x3b   : > { %558 = sbr.rel (%p555_p9) target bundleno = 359 (0x167), region = 74  ;;  %s1364_s28 = sshll.u32 (!%p555_p9), %s561_s17, 9 }
  0x3c   : > { %p621_p10 = scmp.lt.s32.totalorder (!%p555_p9), %s1365_s27, 35  ;;  %s1367_s29 = sshll.u32 (!%p555_p9), %s1647_s21, 1 }
  0x3d   : > { %p631_p11 = scmp.lt.s32.totalorder (!%p555_p9), %s1367_s29, 3  ;;  %s1915_s8 = scalar_lea.vmem (!%p555_p9), [#allocation3], %s1364_s28 }
  0x3e   : > { %p1373_p12 = scmp.ne.s32.totalorder (!%p555_p9), %s1643_s20, 0 }
  0x40   : > { %s2037_s27 = smov (!%p621_p10, %s1365_s27), 35  ;;  %s2039_s29 = smov (!%p631_p11, %s1367_s29), 3 }
  0x41   : > { %s1366_s30 = sshll.u32 %s2037_s27, 2  ;;  %s633_s18 = scalar_lea.vmem %s2020_s2, %s2039_s29 }
  0x42   : > { %s1892_s9 = scalar_lea.vmem %s2018_s0, %s1366_s30  ;;  %s638_s21 = scalar_lea.vmem %s2021_s3, %s2039_s29 }
  0x43   : > { %s1370_s14 = sshll.u32 %s2039_s29, 2  ;;  %663 = sbr.rel (%p1373_p12) target bundleno = 74 (0x4a), region = 82 }
  0x44   : > { %s1908_s17 = scalar_lea.vmem %s2022_s4, %s1370_s14  ;;  %s1913_s7 = scalar_lea.vmem %s2023_s5, %s1370_s14 }
  0x48   : > { %v1661_v0 = vmov 0.0  }
  0x49   : > { %664 = vst [vmem:[#allocation2] sm:$0xff] %v1661_v0  ;;  %665 = vst [vmem:[#allocation2 + $0x8] sm:$0xff] %v1661_v0 }
  0x4a PF: > { %v1505_v1 = vld [vmem:[%s1915_s8 + $0x74] ss:$8 sps:$4 sm:$0xff]   ;;  %v1509_v3 = vld [vmem:[%s1915_s8 + $0x70] ss:$8 sps:$4 sm:$0xff]   ;;  %v1511_v5 = vld [vmem:[%s1915_s8 + $0x64] ss:$8 sps:$4 sm:$0xff]  }
  0x4b   : > { %v1507_v2 = vld [vmem:[%s1915_s8 + $0x174] ss:$8 sps:$4 sm:$0xff]   ;;  %1068 = vmatprep.subr.bf16.mxu0 %v1505_v1  ;;  %v1510_v4 = vld [vmem:[%s1915_s8 + $0x170] ss:$8 sps:$4 sm:$0xff]   ;;  %v1513_v6 = vld [vmem:[%s1915_s8 + $0x164] ss:$8 sps:$4 sm:$0xff]  }
  0x4c   : > { %1109 = vmatprep.subr.bf16.mxu1 %v1507_v2  ;;  %1069 = vmatpush1.bf16.msra.mxu0 %v1509_v3  ;;  %v1515_v7 = vld [vmem:[%s1915_s8 + $0x60] ss:$8 sps:$4 sm:$0xff]   ;;  %v1517_v9 = vld [vmem:[%s1915_s8 + $0x54] ss:$8 sps:$4 sm:$0xff]   ;;  %v1521_v11 = vld [vmem:[%s1915_s8 + $0x50] ss:$8 sps:$4 sm:$0xff]  }
  0x4d   : > { %1110 = vmatpush1.bf16.msra.mxu1 %v1510_v4  ;;  %1070 = vmatprep.subr.bf16.mxu0 %v1511_v5  ;;  %v1516_v8 = vld [vmem:[%s1915_s8 + $0x160] ss:$8 sps:$4 sm:$0xff]   ;;  %v1519_v10 = vld [vmem:[%s1915_s8 + $0x154] ss:$8 sps:$4 sm:$0xff]   ;;  %v1522_v12 = vld [vmem:[%s1915_s8 + $0x150] ss:$8 sps:$4 sm:$0xff]  }
  0x4e   : > { %1111 = vmatprep.subr.bf16.mxu1 %v1513_v6  ;;  %v1523_v13 = vld [vmem:[%s1915_s8 + $0x44] ss:$8 sps:$4 sm:$0xff]   ;;  %v1527_v15 = vld [vmem:[%s1915_s8 + $0x40] ss:$8 sps:$4 sm:$0xff]   ;;  %v1529_v17 = vld [vmem:[%s1915_s8 + $0x34] ss:$8 sps:$4 sm:$0xff]  }
  0x4f   : > { %v1525_v14 = vld [vmem:[%s1915_s8 + $0x144] ss:$8 sps:$4 sm:$0xff]   ;;  %v1528_v16 = vld [vmem:[%s1915_s8 + $0x140] ss:$8 sps:$4 sm:$0xff]   ;;  %v1531_v18 = vld [vmem:[%s1915_s8 + $0x134] ss:$8 sps:$4 sm:$0xff]  }
  0x50   : > { %1071 = vmatpush1.bf16.msra.mxu0 %v1515_v7  ;;  %v1533_v19 = vld [vmem:[%s1915_s8 + $0x30] ss:$8 sps:$4 sm:$0xff]   ;;  %v1535_v21 = vld [vmem:[%s1915_s8 + $0x24] ss:$8 sps:$4 sm:$0xff]   ;;  %v1539_v23 = vld [vmem:[%s1915_s8 + $0x20] ss:$8 sps:$4 sm:$0xff]  }
  0x51   : > { %1112 = vmatpush1.bf16.msra.mxu1 %v1516_v8  ;;  %1072 = vmatprep.subr.bf16.mxu0 %v1517_v9  ;;  %v1534_v20 = vld [vmem:[%s1915_s8 + $0x130] ss:$8 sps:$4 sm:$0xff]   ;;  %v1537_v22 = vld [vmem:[%s1915_s8 + $0x124] ss:$8 sps:$4 sm:$0xff]   ;;  %v1540_v24 = vld [vmem:[%s1915_s8 + $0x120] ss:$8 sps:$4 sm:$0xff]  }
  0x52   : > { %1113 = vmatprep.subr.bf16.mxu1 %v1519_v10  ;;  %v1541_v25 = vld [vmem:[%s1915_s8 + $0x14] ss:$8 sps:$4 sm:$0xff]   ;;  %v1545_v27 = vld [vmem:[%s1915_s8 + $0x10] ss:$8 sps:$4 sm:$0xff]   ;;  %v1547_v29 = vld [vmem:[%s1915_s8 + $0x4] ss:$8 sps:$4 sm:$0xff]  }
  0x53   : > { %v1543_v26 = vld [vmem:[%s1915_s8 + $0x114] ss:$8 sps:$4 sm:$0xff]   ;;  %v1546_v28 = vld [vmem:[%s1915_s8 + $0x110] ss:$8 sps:$4 sm:$0xff]   ;;  %v1549_v30 = vld [vmem:[%s1915_s8 + $0x104] ss:$8 sps:$4 sm:$0xff]  }
  0x54   : > { %1073 = vmatpush1.bf16.msra.mxu0 %v1521_v11  ;;  %v1551_v31 = vld [vmem:[%s1915_s8] ss:$8 sps:$4 sm:$0xff]   ;;  %v1553_v33 = vld [vmem:[%s1915_s8 + $0xf4] ss:$8 sps:$4 sm:$0xff]   ;;  %v1557_v35 = vld [vmem:[%s1915_s8 + $0xf0] ss:$8 sps:$4 sm:$0xff]  }
  0x55   : > { %1114 = vmatpush1.bf16.msra.mxu1 %v1522_v12  ;;  %1074 = vmatprep.subr.bf16.mxu0 %v1523_v13  ;;  %v1552_v32 = vld [vmem:[%s1915_s8 + $0x100] ss:$8 sps:$4 sm:$0xff]   ;;  %v1555_v34 = vld [vmem:[%s1915_s8 + $0x1f4] ss:$8 sps:$4 sm:$0xff]   ;;  %v1558_v36 = vld [vmem:[%s1915_s8 + $0x1f0] ss:$8 sps:$4 sm:$0xff]  }
  0x56   : > { %1115 = vmatprep.subr.bf16.mxu1 %v1525_v14  ;;  %v1559_v37 = vld [vmem:[%s1915_s8 + $0xe4] ss:$8 sps:$4 sm:$0xff]   ;;  %v1563_v39 = vld [vmem:[%s1915_s8 + $0xe0] ss:$8 sps:$4 sm:$0xff]   ;;  %v1565_v41 = vld [vmem:[%s1915_s8 + $0xd4] ss:$8 sps:$4 sm:$0xff]  }
  0x57   : > { %v1561_v38 = vld [vmem:[%s1915_s8 + $0x1e4] ss:$8 sps:$4 sm:$0xff]   ;;  %v1564_v40 = vld [vmem:[%s1915_s8 + $0x1e0] ss:$8 sps:$4 sm:$0xff]   ;;  %v1567_v42 = vld [vmem:[%s1915_s8 + $0x1d4] ss:$8 sps:$4 sm:$0xff]  }
  0x58   : > { %1075 = vmatpush1.bf16.msra.mxu0 %v1527_v15  ;;  %v1569_v43 = vld [vmem:[%s1915_s8 + $0xd0] ss:$8 sps:$4 sm:$0xff]   ;;  %v1571_v45 = vld [vmem:[%s1915_s8 + $0xc4] ss:$8 sps:$4 sm:$0xff]   ;;  %v1575_v50 = vld [vmem:[%s1915_s8 + $0xc0] ss:$8 sps:$4 sm:$0xff]  }
  0x59   : > { %1116 = vmatpush1.bf16.msra.mxu1 %v1528_v16  ;;  %1076 = vmatprep.subr.bf16.mxu0 %v1529_v17  ;;  %v1570_v44 = vld [vmem:[%s1915_s8 + $0x1d0] ss:$8 sps:$4 sm:$0xff]   ;;  %v1573_v46 = vld [vmem:[%s1915_s8 + $0x1c4] ss:$8 sps:$4 sm:$0xff]   ;;  %v1576_v51 = vld [vmem:[%s1915_s8 + $0x1c0] ss:$8 sps:$4 sm:$0xff]  }
  0x5a   : > { %1117 = vmatprep.subr.bf16.mxu1 %v1531_v18  ;;  %v668_v47 = vld [vmem:[%s1892_s9] sm:$0xff]  ;;  %v669_v49 = vld [vmem:[%s1892_s9 + $0x8] sm:$0xff]  ;;  %v1583_v57 = vld [vmem:[%s1915_s8 + $0xa4] ss:$8 sps:$4 sm:$0xff]   ;;  %p1442_p13 = scmp.ne.s32.totalorder %s1643_s20, 8 }
  0x5b   : > { %v1375_v48 = vcombine.high %v668_v47, %v668_v47  ;;  %v1377_v52 = vcombine.high %v669_v49, %v669_v49  ;;  %v1577_v53 = vld [vmem:[%s1915_s8 + $0xb4] ss:$8 sps:$4 sm:$0xff]   ;;  %v1581_v55 = vld [vmem:[%s1915_s8 + $0xb0] ss:$8 sps:$4 sm:$0xff]   ;;  %v1585_v58 = vld [vmem:[%s1915_s8 + $0x1a4] ss:$8 sps:$4 sm:$0xff]   ;;  %v1374_v5 = vcombine.low %v668_v47, %v668_v47  ;;  %v1376_v6 = vcombine.low %v669_v49, %v669_v49 }
  0x5c   : > { %1077 = vmatpush1.bf16.msra.mxu0 %v1533_v19  ;;  %v1579_v54 = vld [vmem:[%s1915_s8 + $0x1b4] ss:$8 sps:$4 sm:$0xff]   ;;  %v1582_v56 = vld [vmem:[%s1915_s8 + $0x1b0] ss:$8 sps:$4 sm:$0xff]   ;;  %v1587_v59 = vld [vmem:[%s1915_s8 + $0xa0] ss:$8 sps:$4 sm:$0xff]  }
  0x5d   : > { %1118 = vmatpush1.bf16.msra.mxu1 %v1534_v20  ;;  %1078 = vmatprep.subr.bf16.mxu0 %v1535_v21  ;;  %v1588_v60 = vld [vmem:[%s1915_s8 + $0x1a0] ss:$8 sps:$4 sm:$0xff]   ;;  %v1589_v61 = vld [vmem:[%s1915_s8 + $0x94] ss:$8 sps:$4 sm:$0xff]   ;;  %v1593_v63 = vld [vmem:[%s1915_s8 + $0x90] ss:$8 sps:$4 sm:$0xff]  }
  0x5e   : > { %1119 = vmatprep.subr.bf16.mxu1 %v1537_v22  ;;  %1100 = vmatprep.mubr.bf16.mxu0 %v1375_v48  ;;  %v1591_v62 = vld [vmem:[%s1915_s8 + $0x194] ss:$8 sps:$4 sm:$0xff]   ;;  %v1594_v0 = vld [vmem:[%s1915_s8 + $0x190] ss:$8 sps:$4 sm:$0xff]   ;;  %v1595_v1 = vld [vmem:[%s1915_s8 + $0x84] ss:$8 sps:$4 sm:$0xff]  }
  0x5f   : > { %1141 = vmatprep.mubr.bf16.mxu1 %v1377_v52  ;;  %v1597_v2 = vld [vmem:[%s1915_s8 + $0x184] ss:$8 sps:$4 sm:$0xff]   ;;  %v1599_v3 = vld [vmem:[%s1915_s8 + $0x80] ss:$8 sps:$4 sm:$0xff]   ;;  %v666_v8 = vld [vmem:[#allocation2] sm:$0xff] }
  0x60   : > { %1079 = vmatpush1.bf16.msra.mxu0 %v1539_v23  ;;  %v1600_v4 = vld [vmem:[%s1915_s8 + $0x180] ss:$8 sps:$4 sm:$0xff]   ;;  %v667_v12 = vld [vmem:[#allocation2 + $0x8] sm:$0xff] }
  0x61   : > { %1120 = vmatpush1.bf16.msra.mxu1 %v1540_v24  ;;  %1080 = vmatprep.subr.bf16.mxu0 %v1541_v25 }
  0x62   : > { %1121 = vmatprep.subr.bf16.mxu1 %v1543_v26 }
  0x64   : > { %1081 = vmatpush1.bf16.msra.mxu0 %v1545_v27 }
  0x65   : > { %1122 = vmatpush1.bf16.msra.mxu1 %v1546_v28  ;;  %1082 = vmatprep.subr.bf16.mxu0 %v1547_v29 }
  0x66   : > { %1123 = vmatprep.subr.bf16.mxu1 %v1549_v30 }
  0x68   : > { %1083 = vmatpush1.bf16.msra.mxu0 %v1551_v31 }
  0x69   : > { %1124 = vmatpush1.bf16.msra.mxu1 %v1552_v32  ;;  %1084 = vmatprep.subr.bf16.mxu0 %v1553_v33 }
  0x6a   : > { %1125 = vmatprep.subr.bf16.mxu1 %v1555_v34 }
  0x6c   : > { %1085 = vmatpush2.bf16.msra.mxu0 %v1557_v35 }
  0x6d   : > { %1126 = vmatpush2.bf16.msra.mxu1 %v1558_v36  ;;  %1086 = vmatprep.subr.bf16.mxu0 %v1559_v37 }
  0x6e   : > { %1127 = vmatprep.subr.bf16.mxu1 %v1561_v38 }
  0x70   : > { %1087 = vmatpush2.bf16.msra.mxu0 %v1563_v39 }
  0x71   : > { %1128 = vmatpush2.bf16.msra.mxu1 %v1564_v40  ;;  %1088 = vmatprep.subr.bf16.mxu0 %v1565_v41 }
  0x72   : > { %1129 = vmatprep.subr.bf16.mxu1 %v1567_v42 }
  0x74   : > { %1089 = vmatpush2.bf16.msra.mxu0 %v1569_v43 }
  0x75   : > { %1130 = vmatpush2.bf16.msra.mxu1 %v1570_v44  ;;  %1090 = vmatprep.subr.bf16.mxu0 %v1571_v45 }
  0x76   : > { %1131 = vmatprep.subr.bf16.mxu1 %v1573_v46 }
  0x78   : > { %1091 = vmatpush2.bf16.msra.mxu0 %v1575_v50 }
  0x79   : > { %1132 = vmatpush2.bf16.msra.mxu1 %v1576_v51  ;;  %1092 = vmatprep.subr.bf16.mxu0 %v1577_v53 }
  0x7a   : > { %1133 = vmatprep.subr.bf16.mxu1 %v1579_v54 }
  0x7c   : > { %1093 = vmatpush2.bf16.msra.mxu0 %v1581_v55 }
  0x7d   : > { %1134 = vmatpush2.bf16.msra.mxu1 %v1582_v56  ;;  %1094 = vmatprep.subr.bf16.mxu0 %v1583_v57 }
  0x7e   : > { %1135 = vmatprep.subr.bf16.mxu1 %v1585_v58 }
  0x80   : > { %1095 = vmatpush2.bf16.msra.mxu0 %v1587_v59 }
  0x81   : > { %1136 = vmatpush2.bf16.msra.mxu1 %v1588_v60  ;;  %1096 = vmatprep.subr.bf16.mxu0 %v1589_v61 }
  0x82   : > { %1137 = vmatprep.subr.bf16.mxu1 %v1591_v62 }
  0x84   : > { %1097 = vmatpush2.bf16.msra.mxu0 %v1593_v63 }
  0x85   : > { %1138 = vmatpush2.bf16.msra.mxu1 %v1594_v0  ;;  %1098 = vmatprep.subr.bf16.mxu0 %v1595_v1 }
  0x86   : > { %1139 = vmatprep.subr.bf16.mxu1 %v1597_v2 }
  0x88   : > { %1099 = vmatpush2.bf16.msra.mxu0 %v1599_v3 }
  0x89   : > { %1140 = vmatpush2.bf16.msra.mxu1 %v1600_v4 }
  0x8b   : > { %1101 = vmatmul.mubr.bf16.vlgmr.msra.gmra.mxu0 %v1374_v5 }
  0x8c   : > { %1142 = vmatmul.mubr.bf16.vlgmr.msra.gmra.mxu1 %v1376_v6 }
 0x14b   : > { %v1102_v7 = vpop.f32.mrf.mxu0 }
 0x14c   : > { %v1143_v9 = vpop.f32.mrf.mxu1 }
 0x14d   : > { %v1144_v10 = vadd.f32 %v1143_v9, %v1102_v7  ;;  %v1104_v11 = vpop.f32.mrf.mxu0 }
 0x14e   : > { %v1145_v13 = vpop.f32.mrf.mxu1 }
 0x14f   : > { %v1150_v14 = vadd.f32 %v1144_v10, %v666_v8  ;;  %v1146_v15 = vadd.f32 %v1145_v13, %v1104_v11  ;;  %v1106_v16 = vpop.f32.mrf.mxu0  ;;  %1157 = sbr.rel (%p1442_p13) target bundleno = 359 (0x167), region = 86 }
 0x150   : > { %v1147_v17 = vpop.f32.mrf.mxu1 }
 0x151   : > { %1152 = vst [vmem:[#allocation2] sm:$0xff] %v1150_v14  ;;  %v1151_v18 = vadd.f32 %v1146_v15, %v667_v12  ;;  %v1107_v19 = vpop.f32.mrf.mxu0 }
 0x152   : > { %v1148_v20 = vpop.f32.mrf.mxu1 }
 0x153   : > { %1153 = vst [vmem:[#allocation2 + $0x8] sm:$0xff] %v1151_v18 }
 0x154   : > { %v1162_v21 = vlaneseq  ;;  %v1160_v23 = vld [vmem:[%s633_s18] sm:$0x3] }
 0x155   : > { %v1174_v24 = vld [vmem:[%s638_s21] sm:$0x3] }
 0x156   : > { %v1163_v22 = vshrl.u32 %v1162_v21, 7  ;;  %v1188_v29 = vld [vmem:[%s1908_s17] sm:$0xff] }
 0x157   : > { %v1189_v36 = vunpack.c.l.bf16 %v1188_v29  ;;  %v1190_v37 = vunpack.c.h.bf16 %v1188_v29 }
 0x158   : > { %v1164_v25 = vsub.s32 0, %v1163_v22  ;;  %v1168_v26 = vsub.s32 1, %v1163_v22  ;;  %v1158_v27 = vld [vmem:[#allocation2] sm:$0xff] }
 0x15a   : > { %v1159_v28 = vld [vmem:[#allocation2 + $0x8] sm:$0xff]  ;;  %v1165_v30 = vrot.slane %v1160_v23, %v1164_v25  ;;  %v1169_v31 = vrot.slane %v1160_v23, %v1168_v26  ;;  %v1179_v32 = vrot.slane %v1174_v24, %v1164_v25  ;;  %v1183_v33 = vrot.slane %v1174_v24, %v1168_v26 }
 0x15c   : > { %v1172_v34 = vmul.f32 %v1165_v30, %v1158_v27  ;;  %v1173_v35 = vmul.f32 %v1169_v31, %v1159_v28 }
 0x15e   : > { %v1186_v38 = vadd.f32 %v1179_v32, %v1172_v34  ;;  %v1187_v39 = vadd.f32 %v1183_v33, %v1173_v35 }
 0x160   : > { %v1191_v40 = vadd.f32 %v1189_v36, %v1186_v38  ;;  %v1192_v41 = vadd.f32 %v1190_v37, %v1187_v39 }
 0x162   : > { %v1193_v42 = vmax.f32 %v1191_v40, 0.0  ;;  %v1194_v43 = vmax.f32 %v1192_v41, 0.0 }
 0x164   : > { %v1447_v44 = vpack.c.bf16 %v1194_v43, %v1193_v42 }
 0x166   : > { %1203 = vst [vmem:[%s1913_s7] sm:$0xff] %v1447_v44 }
 0x167 PF: > { %s15_s24 = sadd.s32 1, %s1659_s24   ;;  %s2024_s18 = smov %s1639_s19 }
 0x168   : > { %p12_p0 = scmp.ge.s32.totalorder %s15_s24, 20   ;;  %s2025_s19 = smov %s1743_s6 }
 0x169   : > { %s2026_s20 = smov %s1651_s22  ;;  %s2027_s21 = smov %s1655_s23 }
 0x16a   : > { %s2028_s22 = smov %s2031_s25  ;;  %s2029_s23 = smov %s2035_s26 }
 0x16b   :  { %14 = sbr.rel (!%p12_p0) target bundleno = 4 (0x4), region = 133 }

// kernel: resnet18_forward.41
= control target key start
LH: loop header
LB: loop body
LE: loop exit
PB: predicated region body
PF: predicated region fallthrough
CT: control target
= control target key end

     0   :  { %s1599_s15 = smov 0   ;;  %s1601_s16 = smov 0   ;;  %s1919_s0 = inlined_call_operand.vmem [shape: bf16[8,4608], index: 0, kind: input, shape index: {}]   ;;  %s1920_s1 = inlined_call_operand.vmem [shape: bf16[4608,512], index: 1, kind: input, shape index: {}]   ;;  %s1921_s2 = inlined_call_operand.vmem [shape: f32[1,512], index: 2, kind: input, shape index: {}]   ;;  %s1922_s3 = inlined_call_operand.vmem [shape: f32[1,512], index: 3, kind: input, shape index: {}]   ;;  %s1923_s4 = inlined_call_operand.vmem [shape: bf16[8,512], index: 4, kind: output, shape index: {}]  }
   0x1   :  { %s1603_s17 = smov 0   ;;  %s1605_s18 = smov 0  }
   0x2   :  { %s1607_s19 = smov 0   ;;  %s1609_s20 = smov 0  }
   0x3   :  { %s1611_s21 = smov 0  }
   0x4 LB: > { %s26_s22 = sadd.s32 1, %s1563_s19  ;;  %s29_s23 = sadd.s32 1, %s1567_s20  ;;  %s1571_s21 = sphi %s1611_s21, %s14_s21   ;;  %s1567_s20 = sphi %s1609_s20, %s1929_s20   ;;  %s1563_s19 = sphi %s1607_s19, %s1928_s19   ;;  %s1559_s18 = sphi %s1605_s18, %s1927_s18   ;;  %s1555_s17 = sphi %s1603_s17, %s1926_s17   ;;  %s1551_s16 = sphi %s1601_s16, %s1925_s16   ;;  %s1547_s15 = sphi %s1599_s15, %s1924_s15  }
   0x5   : > { %p27_p0 = scmp.ge.s32.totalorder %s26_s22, 9  ;;  %p77_p1 = scmp.ne.s32.totalorder %s1551_s16, %s1547_s15 }
   0x6   : > { %p78_p2 = scmp.eq.s32.totalorder %s1571_s21, 0  ;;  %s70_s27 = sadd.s32 1, %s1551_s16 }
   0x7   : > { %s1931_s22 = smov (%p27_p0, %s26_s22), 0  ;;  %s1933_s23 = smov (!%p27_p0, %s29_s23), %s1567_s20 }
   0x8   : > { %p79_p3 = por %p78_p2, %p77_p1  ;;  %p31_p4 = scmp.ge.s32.totalorder %s1933_s23, 2 }
   0x9   : > { %s65_s24 = ssub.s32 %s1563_s19, %s1931_s22  ;;  %p1271_p6 = scmp.ge.s32.totalorder %s1571_s21, 18 }
   0xa   : > { %s1935_s23 = smov (%p31_p4, %s1933_s23), 0 }
   0xb   : > { %s66_s25 = ssub.s32 %s1567_s20, %s1935_s23  ;;  %183 = sbr.rel (%p1271_p6) target bundleno = 55 (0x37), region = 16 }
   0xc   : > { %s67_s26 = sor.u32 %s66_s25, %s65_s24 }
   0xd   : > { %p68_p5 = scmp.eq.s32.totalorder %s67_s26, 0 }
   0xf   : > { %s1650_s28 = scalar_select %p68_p5, %s1551_s16, %s70_s27  }
  0x10   : > { %199 = sbr.rel (!%p79_p3) target bundleno = 55 (0x37), region = 24  ;;  %s201_s29 = sand.u32 (%p79_p3), 1, %s1551_s16  }
  0x11   : > { %s1274_s30 = sshll.u32 (%p79_p3), %s1567_s20, 1  ;;  %s1272_s5 = sshll.u32 (%p79_p3), %s201_s29, 9 }
  0x12   : > { %s1358_s6 = sshll.u32 (%p79_p3), %s1563_s19, 8  ;;  %s1664_s12 = scalar_lea.vmem (%p79_p3), [#allocation3], %s1272_s5 }
  0x13   : > { %s207_s7 = sadd.s32 (%p79_p3), %s1358_s6, %s1274_s30 }
  0x14   : > { %s1276_s8 = sshll.u32 (%p79_p3), %s207_s7, 2 }
  0x15   : > { %s1659_s11 = scalar_lea.vmem %s1920_s1, %s1276_s8 }
  0x16   : > { %v364_v0 = vld [vmem:[%s1659_s11] sm:$0xff]  ;;  %v366_v1 = vld [vmem:[%s1659_s11 + $0x10] sm:$0xff] }
  0x17   : > { %v368_v2 = vld [vmem:[%s1659_s11 + $0x20] sm:$0xff]  ;;  %365 = vst [vmem:[%s1664_s12] sm:$0xff] %v364_v0  ;;  %367 = vst [vmem:[%s1664_s12 + $0x8] sm:$0xff] %v366_v1  ;;  %v370_v3 = vld [vmem:[%s1659_s11 + $0x30] sm:$0xff] }
  0x18   : > { %369 = vst [vmem:[%s1664_s12 + $0x10] sm:$0xff] %v368_v2  ;;  %v372_v4 = vld [vmem:[%s1659_s11 + $0x40] sm:$0xff]  ;;  %v374_v5 = vld [vmem:[%s1659_s11 + $0x50] sm:$0xff]  ;;  %371 = vst [vmem:[%s1664_s12 + $0x18] sm:$0xff] %v370_v3 }
  0x19   : > { %373 = vst [vmem:[%s1664_s12 + $0x20] sm:$0xff] %v372_v4  ;;  %375 = vst [vmem:[%s1664_s12 + $0x28] sm:$0xff] %v374_v5  ;;  %v376_v6 = vld [vmem:[%s1659_s11 + $0x60] sm:$0xff]  ;;  %v378_v7 = vld [vmem:[%s1659_s11 + $0x70] sm:$0xff] }
  0x1a   : > { %v380_v8 = vld [vmem:[%s1659_s11 + $0x80] sm:$0xff]  ;;  %377 = vst [vmem:[%s1664_s12 + $0x30] sm:$0xff] %v376_v6  ;;  %379 = vst [vmem:[%s1664_s12 + $0x38] sm:$0xff] %v378_v7  ;;  %v382_v9 = vld [vmem:[%s1659_s11 + $0x90] sm:$0xff] }
  0x1b   : > { %381 = vst [vmem:[%s1664_s12 + $0x40] sm:$0xff] %v380_v8  ;;  %v384_v10 = vld [vmem:[%s1659_s11 + $0xa0] sm:$0xff]  ;;  %v386_v11 = vld [vmem:[%s1659_s11 + $0xb0] sm:$0xff]  ;;  %383 = vst [vmem:[%s1664_s12 + $0x48] sm:$0xff] %v382_v9 }
  0x1c   : > { %385 = vst [vmem:[%s1664_s12 + $0x50] sm:$0xff] %v384_v10  ;;  %387 = vst [vmem:[%s1664_s12 + $0x58] sm:$0xff] %v386_v11  ;;  %v388_v12 = vld [vmem:[%s1659_s11 + $0xc0] sm:$0xff]  ;;  %v390_v13 = vld [vmem:[%s1659_s11 + $0xd0] sm:$0xff] }
  0x1d   : > { %v392_v14 = vld [vmem:[%s1659_s11 + $0xe0] sm:$0xff]  ;;  %389 = vst [vmem:[%s1664_s12 + $0x60] sm:$0xff] %v388_v12  ;;  %391 = vst [vmem:[%s1664_s12 + $0x68] sm:$0xff] %v390_v13  ;;  %v394_v15 = vld [vmem:[%s1659_s11 + $0xf0] sm:$0xff] }
  0x1e   : > { %393 = vst [vmem:[%s1664_s12 + $0x70] sm:$0xff] %v392_v14  ;;  %v396_v16 = vld [vmem:[%s1659_s11 + $0x100] sm:$0xff]  ;;  %v398_v17 = vld [vmem:[%s1659_s11 + $0x110] sm:$0xff]  ;;  %395 = vst [vmem:[%s1664_s12 + $0x78] sm:$0xff] %v394_v15 }
  0x1f   : > { %397 = vst [vmem:[%s1664_s12 + $0x80] sm:$0xff] %v396_v16  ;;  %399 = vst [vmem:[%s1664_s12 + $0x88] sm:$0xff] %v398_v17  ;;  %v400_v18 = vld [vmem:[%s1659_s11 + $0x120] sm:$0xff]  ;;  %v402_v19 = vld [vmem:[%s1659_s11 + $0x130] sm:$0xff] }
  0x20   : > { %v404_v20 = vld [vmem:[%s1659_s11 + $0x140] sm:$0xff]  ;;  %401 = vst [vmem:[%s1664_s12 + $0x90] sm:$0xff] %v400_v18  ;;  %403 = vst [vmem:[%s1664_s12 + $0x98] sm:$0xff] %v402_v19  ;;  %v406_v21 = vld [vmem:[%s1659_s11 + $0x150] sm:$0xff] }
  0x21   : > { %405 = vst [vmem:[%s1664_s12 + $0xa0] sm:$0xff] %v404_v20  ;;  %v408_v22 = vld [vmem:[%s1659_s11 + $0x160] sm:$0xff]  ;;  %v410_v23 = vld [vmem:[%s1659_s11 + $0x170] sm:$0xff]  ;;  %407 = vst [vmem:[%s1664_s12 + $0xa8] sm:$0xff] %v406_v21 }
  0x22   : > { %409 = vst [vmem:[%s1664_s12 + $0xb0] sm:$0xff] %v408_v22  ;;  %411 = vst [vmem:[%s1664_s12 + $0xb8] sm:$0xff] %v410_v23  ;;  %v412_v24 = vld [vmem:[%s1659_s11 + $0x180] sm:$0xff]  ;;  %v414_v25 = vld [vmem:[%s1659_s11 + $0x190] sm:$0xff] }
  0x23   : > { %v416_v26 = vld [vmem:[%s1659_s11 + $0x1a0] sm:$0xff]  ;;  %413 = vst [vmem:[%s1664_s12 + $0xc0] sm:$0xff] %v412_v24  ;;  %415 = vst [vmem:[%s1664_s12 + $0xc8] sm:$0xff] %v414_v25  ;;  %v418_v27 = vld [vmem:[%s1659_s11 + $0x1b0] sm:$0xff] }
  0x24   : > { %417 = vst [vmem:[%s1664_s12 + $0xd0] sm:$0xff] %v416_v26  ;;  %v420_v28 = vld [vmem:[%s1659_s11 + $0x1c0] sm:$0xff]  ;;  %v422_v29 = vld [vmem:[%s1659_s11 + $0x1d0] sm:$0xff]  ;;  %419 = vst [vmem:[%s1664_s12 + $0xd8] sm:$0xff] %v418_v27 }
  0x25   : > { %421 = vst [vmem:[%s1664_s12 + $0xe0] sm:$0xff] %v420_v28  ;;  %423 = vst [vmem:[%s1664_s12 + $0xe8] sm:$0xff] %v422_v29  ;;  %v424_v30 = vld [vmem:[%s1659_s11 + $0x1e0] sm:$0xff]  ;;  %v426_v31 = vld [vmem:[%s1659_s11 + $0x1f0] sm:$0xff] }
  0x26   : > { %v428_v32 = vld [vmem:[%s1659_s11 + $0x200] sm:$0xff]  ;;  %425 = vst [vmem:[%s1664_s12 + $0xf0] sm:$0xff] %v424_v30  ;;  %427 = vst [vmem:[%s1664_s12 + $0xf8] sm:$0xff] %v426_v31  ;;  %v430_v33 = vld [vmem:[%s1659_s11 + $0x210] sm:$0xff] }
  0x27   : > { %429 = vst [vmem:[%s1664_s12 + $0x100] sm:$0xff] %v428_v32  ;;  %v432_v34 = vld [vmem:[%s1659_s11 + $0x220] sm:$0xff]  ;;  %v434_v35 = vld [vmem:[%s1659_s11 + $0x230] sm:$0xff]  ;;  %431 = vst [vmem:[%s1664_s12 + $0x108] sm:$0xff] %v430_v33 }
  0x28   : > { %433 = vst [vmem:[%s1664_s12 + $0x110] sm:$0xff] %v432_v34  ;;  %435 = vst [vmem:[%s1664_s12 + $0x118] sm:$0xff] %v434_v35  ;;  %v436_v36 = vld [vmem:[%s1659_s11 + $0x240] sm:$0xff]  ;;  %v438_v37 = vld [vmem:[%s1659_s11 + $0x250] sm:$0xff] }
  0x29   : > { %v440_v38 = vld [vmem:[%s1659_s11 + $0x260] sm:$0xff]  ;;  %437 = vst [vmem:[%s1664_s12 + $0x120] sm:$0xff] %v436_v36  ;;  %439 = vst [vmem:[%s1664_s12 + $0x128] sm:$0xff] %v438_v37  ;;  %v442_v39 = vld [vmem:[%s1659_s11 + $0x270] sm:$0xff] }
  0x2a   : > { %441 = vst [vmem:[%s1664_s12 + $0x130] sm:$0xff] %v440_v38  ;;  %v444_v40 = vld [vmem:[%s1659_s11 + $0x280] sm:$0xff]  ;;  %v446_v41 = vld [vmem:[%s1659_s11 + $0x290] sm:$0xff]  ;;  %443 = vst [vmem:[%s1664_s12 + $0x138] sm:$0xff] %v442_v39 }
  0x2b   : > { %445 = vst [vmem:[%s1664_s12 + $0x140] sm:$0xff] %v444_v40  ;;  %447 = vst [vmem:[%s1664_s12 + $0x148] sm:$0xff] %v446_v41  ;;  %v448_v42 = vld [vmem:[%s1659_s11 + $0x2a0] sm:$0xff]  ;;  %v450_v43 = vld [vmem:[%s1659_s11 + $0x2b0] sm:$0xff] }
  0x2c   : > { %v452_v44 = vld [vmem:[%s1659_s11 + $0x2c0] sm:$0xff]  ;;  %449 = vst [vmem:[%s1664_s12 + $0x150] sm:$0xff] %v448_v42  ;;  %451 = vst [vmem:[%s1664_s12 + $0x158] sm:$0xff] %v450_v43  ;;  %v454_v45 = vld [vmem:[%s1659_s11 + $0x2d0] sm:$0xff] }
  0x2d   : > { %453 = vst [vmem:[%s1664_s12 + $0x160] sm:$0xff] %v452_v44  ;;  %v456_v46 = vld [vmem:[%s1659_s11 + $0x2e0] sm:$0xff]  ;;  %v458_v47 = vld [vmem:[%s1659_s11 + $0x2f0] sm:$0xff]  ;;  %455 = vst [vmem:[%s1664_s12 + $0x168] sm:$0xff] %v454_v45 }
  0x2e   : > { %457 = vst [vmem:[%s1664_s12 + $0x170] sm:$0xff] %v456_v46  ;;  %459 = vst [vmem:[%s1664_s12 + $0x178] sm:$0xff] %v458_v47  ;;  %v460_v48 = vld [vmem:[%s1659_s11 + $0x300] sm:$0xff]  ;;  %v462_v49 = vld [vmem:[%s1659_s11 + $0x310] sm:$0xff] }
  0x2f   : > { %v464_v50 = vld [vmem:[%s1659_s11 + $0x320] sm:$0xff]  ;;  %461 = vst [vmem:[%s1664_s12 + $0x180] sm:$0xff] %v460_v48  ;;  %463 = vst [vmem:[%s1664_s12 + $0x188] sm:$0xff] %v462_v49  ;;  %v466_v51 = vld [vmem:[%s1659_s11 + $0x330] sm:$0xff] }
  0x30   : > { %465 = vst [vmem:[%s1664_s12 + $0x190] sm:$0xff] %v464_v50  ;;  %v468_v52 = vld [vmem:[%s1659_s11 + $0x340] sm:$0xff]  ;;  %v470_v53 = vld [vmem:[%s1659_s11 + $0x350] sm:$0xff]  ;;  %467 = vst [vmem:[%s1664_s12 + $0x198] sm:$0xff] %v466_v51 }
  0x31   : > { %469 = vst [vmem:[%s1664_s12 + $0x1a0] sm:$0xff] %v468_v52  ;;  %471 = vst [vmem:[%s1664_s12 + $0x1a8] sm:$0xff] %v470_v53  ;;  %v472_v54 = vld [vmem:[%s1659_s11 + $0x360] sm:$0xff]  ;;  %v474_v55 = vld [vmem:[%s1659_s11 + $0x370] sm:$0xff] }
  0x32   : > { %v476_v56 = vld [vmem:[%s1659_s11 + $0x380] sm:$0xff]  ;;  %473 = vst [vmem:[%s1664_s12 + $0x1b0] sm:$0xff] %v472_v54  ;;  %475 = vst [vmem:[%s1664_s12 + $0x1b8] sm:$0xff] %v474_v55  ;;  %v478_v57 = vld [vmem:[%s1659_s11 + $0x390] sm:$0xff] }
  0x33   : > { %477 = vst [vmem:[%s1664_s12 + $0x1c0] sm:$0xff] %v476_v56  ;;  %v480_v58 = vld [vmem:[%s1659_s11 + $0x3a0] sm:$0xff]  ;;  %v482_v59 = vld [vmem:[%s1659_s11 + $0x3b0] sm:$0xff]  ;;  %479 = vst [vmem:[%s1664_s12 + $0x1c8] sm:$0xff] %v478_v57 }
  0x34   : > { %481 = vst [vmem:[%s1664_s12 + $0x1d0] sm:$0xff] %v480_v58  ;;  %483 = vst [vmem:[%s1664_s12 + $0x1d8] sm:$0xff] %v482_v59  ;;  %v484_v60 = vld [vmem:[%s1659_s11 + $0x3c0] sm:$0xff]  ;;  %v486_v61 = vld [vmem:[%s1659_s11 + $0x3d0] sm:$0xff] }
  0x35   : > { %v488_v62 = vld [vmem:[%s1659_s11 + $0x3e0] sm:$0xff]  ;;  %485 = vst [vmem:[%s1664_s12 + $0x1e0] sm:$0xff] %v484_v60  ;;  %487 = vst [vmem:[%s1664_s12 + $0x1e8] sm:$0xff] %v486_v61  ;;  %v490_v63 = vld [vmem:[%s1659_s11 + $0x3f0] sm:$0xff] }
  0x36   : > { %489 = vst [vmem:[%s1664_s12 + $0x1f0] sm:$0xff] %v488_v62  ;;  %491 = vst [vmem:[%s1664_s12 + $0x1f8] sm:$0xff] %v490_v63 }
  0x37 PF: > { %p1277_p7 = scmp.ge.s32.totalorder %s1571_s21, 1  ;;  %p512_p8 = scmp.lt.s32.totalorder %s1571_s21, 19 }
  0x39   : > { %p513_p9 = pnand %p1277_p7, %p512_p8 }
  0x3a   : > { %s519_s13 = sand.u32 (!%p513_p9), 1, %s1547_s15   ;;  %s1279_s14 = sshll.u32 (!%p513_p9), %s1555_s17, 2 }
  0x3b   : > { %516 = sbr.rel (%p513_p9) target bundleno = 357 (0x165), region = 70  ;;  %s1278_s24 = sshll.u32 (!%p513_p9), %s519_s13, 9 }
  0x3c   : > { %p568_p10 = scmp.lt.s32.totalorder (!%p513_p9), %s1279_s14, 35  ;;  %s1281_s25 = sshll.u32 (!%p513_p9), %s1559_s18, 1 }
  0x3d   : > { %p578_p11 = scmp.lt.s32.totalorder (!%p513_p9), %s1281_s25, 3  ;;  %s1817_s13 = scalar_lea.vmem (!%p513_p9), [#allocation3], %s1278_s24 }
  0x3e   : > { %p1285_p12 = scmp.ne.s32.totalorder (!%p513_p9), %s1555_s17, 0 }
  0x40   : > { %s1937_s14 = smov (!%p568_p10, %s1279_s14), 35  ;;  %s1939_s25 = smov (!%p578_p11, %s1281_s25), 3 }
  0x41   : > { %s1280_s26 = sshll.u32 %s1937_s14, 2  ;;  %s580_s15 = scalar_lea.vmem %s1921_s2, %s1939_s25 }
  0x42   : > { %s1799_s30 = scalar_lea.vmem %s1919_s0, %s1280_s26  ;;  %s585_s18 = scalar_lea.vmem %s1922_s3, %s1939_s25 }
  0x43   : > { %s1284_s9 = sshll.u32 %s1939_s25, 2  ;;  %600 = sbr.rel (%p1285_p12) target bundleno = 74 (0x4a), region = 78 }
  0x44   : > { %s1815_s12 = scalar_lea.vmem %s1923_s4, %s1284_s9 }
  0x48   : > { %v1573_v0 = vmov 0.0  }
  0x49   : > { %601 = vst [vmem:[#allocation2] sm:$0xff] %v1573_v0  ;;  %602 = vst [vmem:[#allocation2 + $0x8] sm:$0xff] %v1573_v0 }
  0x4a PF: > { %v1417_v1 = vld [vmem:[%s1817_s13 + $0x74] ss:$8 sps:$4 sm:$0xff]   ;;  %v1421_v3 = vld [vmem:[%s1817_s13 + $0x70] ss:$8 sps:$4 sm:$0xff]   ;;  %v1423_v5 = vld [vmem:[%s1817_s13 + $0x64] ss:$8 sps:$4 sm:$0xff]  }
  0x4b   : > { %v1419_v2 = vld [vmem:[%s1817_s13 + $0x174] ss:$8 sps:$4 sm:$0xff]   ;;  %1005 = vmatprep.subr.bf16.mxu0 %v1417_v1  ;;  %v1422_v4 = vld [vmem:[%s1817_s13 + $0x170] ss:$8 sps:$4 sm:$0xff]   ;;  %v1425_v6 = vld [vmem:[%s1817_s13 + $0x164] ss:$8 sps:$4 sm:$0xff]  }
  0x4c   : > { %1046 = vmatprep.subr.bf16.mxu1 %v1419_v2  ;;  %1006 = vmatpush1.bf16.msra.mxu0 %v1421_v3  ;;  %v1427_v7 = vld [vmem:[%s1817_s13 + $0x60] ss:$8 sps:$4 sm:$0xff]   ;;  %v1429_v9 = vld [vmem:[%s1817_s13 + $0x54] ss:$8 sps:$4 sm:$0xff]   ;;  %v1433_v11 = vld [vmem:[%s1817_s13 + $0x50] ss:$8 sps:$4 sm:$0xff]  }
  0x4d   : > { %1047 = vmatpush1.bf16.msra.mxu1 %v1422_v4  ;;  %1007 = vmatprep.subr.bf16.mxu0 %v1423_v5  ;;  %v1428_v8 = vld [vmem:[%s1817_s13 + $0x160] ss:$8 sps:$4 sm:$0xff]   ;;  %v1431_v10 = vld [vmem:[%s1817_s13 + $0x154] ss:$8 sps:$4 sm:$0xff]   ;;  %v1434_v12 = vld [vmem:[%s1817_s13 + $0x150] ss:$8 sps:$4 sm:$0xff]  }
  0x4e   : > { %1048 = vmatprep.subr.bf16.mxu1 %v1425_v6  ;;  %v1435_v13 = vld [vmem:[%s1817_s13 + $0x44] ss:$8 sps:$4 sm:$0xff]   ;;  %v1439_v15 = vld [vmem:[%s1817_s13 + $0x40] ss:$8 sps:$4 sm:$0xff]   ;;  %v1441_v17 = vld [vmem:[%s1817_s13 + $0x34] ss:$8 sps:$4 sm:$0xff]  }
  0x4f   : > { %v1437_v14 = vld [vmem:[%s1817_s13 + $0x144] ss:$8 sps:$4 sm:$0xff]   ;;  %v1440_v16 = vld [vmem:[%s1817_s13 + $0x140] ss:$8 sps:$4 sm:$0xff]   ;;  %v1443_v18 = vld [vmem:[%s1817_s13 + $0x134] ss:$8 sps:$4 sm:$0xff]  }
  0x50   : > { %1008 = vmatpush1.bf16.msra.mxu0 %v1427_v7  ;;  %v1445_v19 = vld [vmem:[%s1817_s13 + $0x30] ss:$8 sps:$4 sm:$0xff]   ;;  %v1447_v21 = vld [vmem:[%s1817_s13 + $0x24] ss:$8 sps:$4 sm:$0xff]   ;;  %v1451_v23 = vld [vmem:[%s1817_s13 + $0x20] ss:$8 sps:$4 sm:$0xff]  }
  0x51   : > { %1049 = vmatpush1.bf16.msra.mxu1 %v1428_v8  ;;  %1009 = vmatprep.subr.bf16.mxu0 %v1429_v9  ;;  %v1446_v20 = vld [vmem:[%s1817_s13 + $0x130] ss:$8 sps:$4 sm:$0xff]   ;;  %v1449_v22 = vld [vmem:[%s1817_s13 + $0x124] ss:$8 sps:$4 sm:$0xff]   ;;  %v1452_v24 = vld [vmem:[%s1817_s13 + $0x120] ss:$8 sps:$4 sm:$0xff]  }
  0x52   : > { %1050 = vmatprep.subr.bf16.mxu1 %v1431_v10  ;;  %v1453_v25 = vld [vmem:[%s1817_s13 + $0x14] ss:$8 sps:$4 sm:$0xff]   ;;  %v1457_v27 = vld [vmem:[%s1817_s13 + $0x10] ss:$8 sps:$4 sm:$0xff]   ;;  %v1459_v29 = vld [vmem:[%s1817_s13 + $0x4] ss:$8 sps:$4 sm:$0xff]  }
  0x53   : > { %v1455_v26 = vld [vmem:[%s1817_s13 + $0x114] ss:$8 sps:$4 sm:$0xff]   ;;  %v1458_v28 = vld [vmem:[%s1817_s13 + $0x110] ss:$8 sps:$4 sm:$0xff]   ;;  %v1461_v30 = vld [vmem:[%s1817_s13 + $0x104] ss:$8 sps:$4 sm:$0xff]  }
  0x54   : > { %1010 = vmatpush1.bf16.msra.mxu0 %v1433_v11  ;;  %v1463_v31 = vld [vmem:[%s1817_s13] ss:$8 sps:$4 sm:$0xff]   ;;  %v1465_v33 = vld [vmem:[%s1817_s13 + $0xf4] ss:$8 sps:$4 sm:$0xff]   ;;  %v1469_v35 = vld [vmem:[%s1817_s13 + $0xf0] ss:$8 sps:$4 sm:$0xff]  }
  0x55   : > { %1051 = vmatpush1.bf16.msra.mxu1 %v1434_v12  ;;  %1011 = vmatprep.subr.bf16.mxu0 %v1435_v13  ;;  %v1464_v32 = vld [vmem:[%s1817_s13 + $0x100] ss:$8 sps:$4 sm:$0xff]   ;;  %v1467_v34 = vld [vmem:[%s1817_s13 + $0x1f4] ss:$8 sps:$4 sm:$0xff]   ;;  %v1470_v36 = vld [vmem:[%s1817_s13 + $0x1f0] ss:$8 sps:$4 sm:$0xff]  }
  0x56   : > { %1052 = vmatprep.subr.bf16.mxu1 %v1437_v14  ;;  %v1471_v37 = vld [vmem:[%s1817_s13 + $0xe4] ss:$8 sps:$4 sm:$0xff]   ;;  %v1475_v39 = vld [vmem:[%s1817_s13 + $0xe0] ss:$8 sps:$4 sm:$0xff]   ;;  %v1477_v41 = vld [vmem:[%s1817_s13 + $0xd4] ss:$8 sps:$4 sm:$0xff]  }
  0x57   : > { %v1473_v38 = vld [vmem:[%s1817_s13 + $0x1e4] ss:$8 sps:$4 sm:$0xff]   ;;  %v1476_v40 = vld [vmem:[%s1817_s13 + $0x1e0] ss:$8 sps:$4 sm:$0xff]   ;;  %v1479_v42 = vld [vmem:[%s1817_s13 + $0x1d4] ss:$8 sps:$4 sm:$0xff]  }
  0x58   : > { %1012 = vmatpush1.bf16.msra.mxu0 %v1439_v15  ;;  %v1481_v43 = vld [vmem:[%s1817_s13 + $0xd0] ss:$8 sps:$4 sm:$0xff]   ;;  %v1483_v45 = vld [vmem:[%s1817_s13 + $0xc4] ss:$8 sps:$4 sm:$0xff]   ;;  %v1487_v50 = vld [vmem:[%s1817_s13 + $0xc0] ss:$8 sps:$4 sm:$0xff]  }
  0x59   : > { %1053 = vmatpush1.bf16.msra.mxu1 %v1440_v16  ;;  %1013 = vmatprep.subr.bf16.mxu0 %v1441_v17  ;;  %v1482_v44 = vld [vmem:[%s1817_s13 + $0x1d0] ss:$8 sps:$4 sm:$0xff]   ;;  %v1485_v46 = vld [vmem:[%s1817_s13 + $0x1c4] ss:$8 sps:$4 sm:$0xff]   ;;  %v1488_v51 = vld [vmem:[%s1817_s13 + $0x1c0] ss:$8 sps:$4 sm:$0xff]  }
  0x5a   : > { %1054 = vmatprep.subr.bf16.mxu1 %v1443_v18  ;;  %v605_v47 = vld [vmem:[%s1799_s30] sm:$0xff]  ;;  %v606_v49 = vld [vmem:[%s1799_s30 + $0x8] sm:$0xff]  ;;  %v1495_v57 = vld [vmem:[%s1817_s13 + $0xa4] ss:$8 sps:$4 sm:$0xff]   ;;  %p1354_p13 = scmp.ne.s32.totalorder %s1555_s17, 8 }
  0x5b   : > { %v1287_v48 = vcombine.high %v605_v47, %v605_v47  ;;  %v1289_v52 = vcombine.high %v606_v49, %v606_v49  ;;  %v1489_v53 = vld [vmem:[%s1817_s13 + $0xb4] ss:$8 sps:$4 sm:$0xff]   ;;  %v1493_v55 = vld [vmem:[%s1817_s13 + $0xb0] ss:$8 sps:$4 sm:$0xff]   ;;  %v1497_v58 = vld [vmem:[%s1817_s13 + $0x1a4] ss:$8 sps:$4 sm:$0xff]   ;;  %v1286_v5 = vcombine.low %v605_v47, %v605_v47  ;;  %v1288_v6 = vcombine.low %v606_v49, %v606_v49 }
  0x5c   : > { %1014 = vmatpush1.bf16.msra.mxu0 %v1445_v19  ;;  %v1491_v54 = vld [vmem:[%s1817_s13 + $0x1b4] ss:$8 sps:$4 sm:$0xff]   ;;  %v1494_v56 = vld [vmem:[%s1817_s13 + $0x1b0] ss:$8 sps:$4 sm:$0xff]   ;;  %v1499_v59 = vld [vmem:[%s1817_s13 + $0xa0] ss:$8 sps:$4 sm:$0xff]  }
  0x5d   : > { %1055 = vmatpush1.bf16.msra.mxu1 %v1446_v20  ;;  %1015 = vmatprep.subr.bf16.mxu0 %v1447_v21  ;;  %v1500_v60 = vld [vmem:[%s1817_s13 + $0x1a0] ss:$8 sps:$4 sm:$0xff]   ;;  %v1501_v61 = vld [vmem:[%s1817_s13 + $0x94] ss:$8 sps:$4 sm:$0xff]   ;;  %v1505_v63 = vld [vmem:[%s1817_s13 + $0x90] ss:$8 sps:$4 sm:$0xff]  }
  0x5e   : > { %1056 = vmatprep.subr.bf16.mxu1 %v1449_v22  ;;  %1037 = vmatprep.mubr.bf16.mxu0 %v1287_v48  ;;  %v1503_v62 = vld [vmem:[%s1817_s13 + $0x194] ss:$8 sps:$4 sm:$0xff]   ;;  %v1506_v0 = vld [vmem:[%s1817_s13 + $0x190] ss:$8 sps:$4 sm:$0xff]   ;;  %v1507_v1 = vld [vmem:[%s1817_s13 + $0x84] ss:$8 sps:$4 sm:$0xff]  }
  0x5f   : > { %1078 = vmatprep.mubr.bf16.mxu1 %v1289_v52  ;;  %v1509_v2 = vld [vmem:[%s1817_s13 + $0x184] ss:$8 sps:$4 sm:$0xff]   ;;  %v1511_v3 = vld [vmem:[%s1817_s13 + $0x80] ss:$8 sps:$4 sm:$0xff]   ;;  %v603_v8 = vld [vmem:[#allocation2] sm:$0xff] }
  0x60   : > { %1016 = vmatpush1.bf16.msra.mxu0 %v1451_v23  ;;  %v1512_v4 = vld [vmem:[%s1817_s13 + $0x180] ss:$8 sps:$4 sm:$0xff]   ;;  %v604_v12 = vld [vmem:[#allocation2 + $0x8] sm:$0xff] }
  0x61   : > { %1057 = vmatpush1.bf16.msra.mxu1 %v1452_v24  ;;  %1017 = vmatprep.subr.bf16.mxu0 %v1453_v25 }
  0x62   : > { %1058 = vmatprep.subr.bf16.mxu1 %v1455_v26 }
  0x64   : > { %1018 = vmatpush1.bf16.msra.mxu0 %v1457_v27 }
  0x65   : > { %1059 = vmatpush1.bf16.msra.mxu1 %v1458_v28  ;;  %1019 = vmatprep.subr.bf16.mxu0 %v1459_v29 }
  0x66   : > { %1060 = vmatprep.subr.bf16.mxu1 %v1461_v30 }
  0x68   : > { %1020 = vmatpush1.bf16.msra.mxu0 %v1463_v31 }
  0x69   : > { %1061 = vmatpush1.bf16.msra.mxu1 %v1464_v32  ;;  %1021 = vmatprep.subr.bf16.mxu0 %v1465_v33 }
  0x6a   : > { %1062 = vmatprep.subr.bf16.mxu1 %v1467_v34 }
  0x6c   : > { %1022 = vmatpush2.bf16.msra.mxu0 %v1469_v35 }
  0x6d   : > { %1063 = vmatpush2.bf16.msra.mxu1 %v1470_v36  ;;  %1023 = vmatprep.subr.bf16.mxu0 %v1471_v37 }
  0x6e   : > { %1064 = vmatprep.subr.bf16.mxu1 %v1473_v38 }
  0x70   : > { %1024 = vmatpush2.bf16.msra.mxu0 %v1475_v39 }
  0x71   : > { %1065 = vmatpush2.bf16.msra.mxu1 %v1476_v40  ;;  %1025 = vmatprep.subr.bf16.mxu0 %v1477_v41 }
  0x72   : > { %1066 = vmatprep.subr.bf16.mxu1 %v1479_v42 }
  0x74   : > { %1026 = vmatpush2.bf16.msra.mxu0 %v1481_v43 }
  0x75   : > { %1067 = vmatpush2.bf16.msra.mxu1 %v1482_v44  ;;  %1027 = vmatprep.subr.bf16.mxu0 %v1483_v45 }
  0x76   : > { %1068 = vmatprep.subr.bf16.mxu1 %v1485_v46 }
  0x78   : > { %1028 = vmatpush2.bf16.msra.mxu0 %v1487_v50 }
  0x79   : > { %1069 = vmatpush2.bf16.msra.mxu1 %v1488_v51  ;;  %1029 = vmatprep.subr.bf16.mxu0 %v1489_v53 }
  0x7a   : > { %1070 = vmatprep.subr.bf16.mxu1 %v1491_v54 }
  0x7c   : > { %1030 = vmatpush2.bf16.msra.mxu0 %v1493_v55 }
  0x7d   : > { %1071 = vmatpush2.bf16.msra.mxu1 %v1494_v56  ;;  %1031 = vmatprep.subr.bf16.mxu0 %v1495_v57 }
  0x7e   : > { %1072 = vmatprep.subr.bf16.mxu1 %v1497_v58 }
  0x80   : > { %1032 = vmatpush2.bf16.msra.mxu0 %v1499_v59 }
  0x81   : > { %1073 = vmatpush2.bf16.msra.mxu1 %v1500_v60  ;;  %1033 = vmatprep.subr.bf16.mxu0 %v1501_v61 }
  0x82   : > { %1074 = vmatprep.subr.bf16.mxu1 %v1503_v62 }
  0x84   : > { %1034 = vmatpush2.bf16.msra.mxu0 %v1505_v63 }
  0x85   : > { %1075 = vmatpush2.bf16.msra.mxu1 %v1506_v0  ;;  %1035 = vmatprep.subr.bf16.mxu0 %v1507_v1 }
  0x86   : > { %1076 = vmatprep.subr.bf16.mxu1 %v1509_v2 }
  0x88   : > { %1036 = vmatpush2.bf16.msra.mxu0 %v1511_v3 }
  0x89   : > { %1077 = vmatpush2.bf16.msra.mxu1 %v1512_v4 }
  0x8b   : > { %1038 = vmatmul.mubr.bf16.vlgmr.msra.gmra.mxu0 %v1286_v5 }
  0x8c   : > { %1079 = vmatmul.mubr.bf16.vlgmr.msra.gmra.mxu1 %v1288_v6 }
 0x14b   : > { %v1039_v7 = vpop.f32.mrf.mxu0 }
 0x14c   : > { %v1080_v9 = vpop.f32.mrf.mxu1 }
 0x14d   : > { %v1081_v10 = vadd.f32 %v1080_v9, %v1039_v7  ;;  %v1041_v11 = vpop.f32.mrf.mxu0 }
 0x14e   : > { %v1082_v13 = vpop.f32.mrf.mxu1 }
 0x14f   : > { %v1087_v14 = vadd.f32 %v1081_v10, %v603_v8  ;;  %v1083_v15 = vadd.f32 %v1082_v13, %v1041_v11  ;;  %v1043_v16 = vpop.f32.mrf.mxu0  ;;  %1094 = sbr.rel (%p1354_p13) target bundleno = 357 (0x165), region = 82 }
 0x150   : > { %v1084_v17 = vpop.f32.mrf.mxu1 }
 0x151   : > { %1089 = vst [vmem:[#allocation2] sm:$0xff] %v1087_v14  ;;  %v1088_v18 = vadd.f32 %v1083_v15, %v604_v12  ;;  %v1044_v19 = vpop.f32.mrf.mxu0 }
 0x152   : > { %v1085_v20 = vpop.f32.mrf.mxu1 }
 0x153   : > { %1090 = vst [vmem:[#allocation2 + $0x8] sm:$0xff] %v1088_v18 }
 0x154   : > { %v1099_v21 = vlaneseq  ;;  %v1097_v23 = vld [vmem:[%s580_s15] sm:$0x3] }
 0x155   : > { %v1111_v24 = vld [vmem:[%s585_s18] sm:$0x3] }
 0x156   : > { %v1100_v22 = vshrl.u32 %v1099_v21, 7 }
 0x158   : > { %v1101_v25 = vsub.s32 0, %v1100_v22  ;;  %v1105_v26 = vsub.s32 1, %v1100_v22  ;;  %v1095_v27 = vld [vmem:[#allocation2] sm:$0xff] }
 0x15a   : > { %v1096_v28 = vld [vmem:[#allocation2 + $0x8] sm:$0xff]  ;;  %v1102_v29 = vrot.slane %v1097_v23, %v1101_v25  ;;  %v1106_v30 = vrot.slane %v1097_v23, %v1105_v26  ;;  %v1116_v31 = vrot.slane %v1111_v24, %v1101_v25  ;;  %v1120_v32 = vrot.slane %v1111_v24, %v1105_v26 }
 0x15c   : > { %v1109_v33 = vmul.f32 %v1102_v29, %v1095_v27  ;;  %v1110_v34 = vmul.f32 %v1106_v30, %v1096_v28 }
 0x15e   : > { %v1123_v35 = vadd.f32 %v1116_v31, %v1109_v33  ;;  %v1124_v36 = vadd.f32 %v1120_v32, %v1110_v34 }
 0x160   : > { %v1125_v37 = vmax.f32 %v1123_v35, 0.0  ;;  %v1126_v38 = vmax.f32 %v1124_v36, 0.0 }
 0x162   : > { %v1359_v39 = vpack.c.bf16 %v1126_v38, %v1125_v37 }
 0x164   : > { %1135 = vst [vmem:[%s1815_s12] sm:$0xff] %v1359_v39 }
 0x165 PF: > { %s14_s21 = sadd.s32 1, %s1571_s21   ;;  %s1924_s15 = smov %s1551_s16 }
 0x166   : > { %p11_p0 = scmp.ge.s32.totalorder %s14_s21, 20   ;;  %s1925_s16 = smov %s1650_s28 }
 0x167   : > { %s1926_s17 = smov %s1563_s19  ;;  %s1927_s18 = smov %s1567_s20 }
 0x168   : > { %s1928_s19 = smov %s1931_s22  ;;  %s1929_s20 = smov %s1935_s23 }
 0x169   :  { %13 = sbr.rel (!%p11_p0) target bundleno = 4 (0x4), region = 126 }

// kernel: resnet18_forward.43
= control target key start
LH: loop header
LB: loop body
LE: loop exit
PB: predicated region body
PF: predicated region fallthrough
CT: control target
= control target key end

     0   :  { %s90_s0 = inlined_call_operand.vmem [shape: bf16[2,1,512], index: 0, kind: input, shape index: {}]   ;;  %s91_s1 = inlined_call_operand.hbm [shape: f32[2,512], index: 1, kind: output, shape index: {}]  }
   0x1   :  { %v47_v0 = vld [vmem:[%s90_s0] sm:$0xff]  }
   0x2   :  { %v48_v1 = vunpack.c.l.bf16 %v47_v0  ;;  %v49_v2 = vunpack.c.h.bf16 %v47_v0 }
   0x3   :  { %6 = vsyncpa [#allocation3], 0  ;;  %vm22_vm0 = vcmask 1041409   ;;  %vm24_vm1 = vcmask 1043459   ;;  %vm26_vm2 = vcmask 1045509   ;;  %s73_s8 = smov [#allocation2]  }
   0x4   :  { %v21_v3 = vrot.slane %v49_v2, 7  ;;  %s38_s9 = sshll.u32 %s73_s8, 4  ;;  %vm28_vm3 = vcmask 1047559   ;;  %s39_s9 = int_to_ptr.vmem [resolvable:$true] %s38_s9 }
   0x5   :  { %s51_s10 = scalar_lea.vmem %s39_s9, 128  ;;  %p56_p1 = scmp.lt.s32.totalorder %s39_s9, %s39_s9 }
   0x6   :  { %v23_v4 = vsel %vm22_vm0, %v21_v3, %v48_v1  ;;  %p52_p0 = scmp.ne.s32.totalorder %s39_s9, %s51_s10  ;;  %p57_p2 = scmp.lt.s32.totalorder %s51_s10, %s51_s10 }
   0x7   :  { %v25_v5 = vsel %vm24_vm1, %v21_v3, %v23_v4 }
   0x8   :  { %v27_v6 = vsel %vm26_vm2, %v21_v3, %v25_v5  ;;  %p58_p3 = por %p57_p2, %p56_p1 }
   0x9   :  { %v29_v7 = vsel %vm28_vm3, %v21_v3, %v27_v6 }
   0xa   :  { %31 = vst [vmem:[#allocation2] sm:$0xff] %v29_v7  ;;  %p59_p4 = pnand %p58_p3, %p52_p0 }
   0xc   :  { %62 = shalt.err (!%p59_p4)
}
   0xd   :  { %41 = dma.vmem_to_hbm [thread:$0]  %s39_s9, 128, %s91_s1, [#allocation3]  }
   0xe   :  { %71 = dma.done.wait [#allocation3], 128  }
   0xf   :  { %72 = vsyncadd [#allocation3], 4294967168 }
  0x10   :  { %45 = vsyncpa [#allocation3], 1 }

</bundles_post_ra>
